<compile_context>
chip_gen: v6e
topology: v6e:2x2x1
jax: 0.10.0
libtpu: 0.0.40
codegen_flags: <defaults>
</compile_context>

<pallas_src>
import functools

import jax
import jax.numpy as jnp
from jax import lax
from jax.experimental import pallas as pl
from jax.experimental.pallas import tpu as pltpu

NZ = 16          # nz  (reference uses 100; small here)
NGF = 8          # ngf (reference uses 64; small here)
NC = 3           # nc
N_CLASSES = 4
BATCH = 2
BN_EPS = 1e-5


# ------------- layer 1: class-embedding + 1x1-input ConvTranspose -----------

def _embed_l1_kernel(lab_ref, we_ref, z_ref, w1z_ref, w1e_ref,
                     y_ref, s_ref, q_ref):
    """emb = leaky_relu(lab @ We); y = z @ W1z + emb @ W1e (all MXU, bf16 in,
    f32 out).  Per-column sum / sum-of-squares for the layer-1 BatchNorm come
    out as two (1, 16*Cout) side outputs -- no second pass over y."""
    e = jnp.dot(lab_ref[...], we_ref[...], preferred_element_type=jnp.float32)
    e = jnp.where(e > 0, e, 0.2 * e)                     # LeakyReLU(0.2), f32
    r = jnp.dot(z_ref[...], w1z_ref[...], preferred_element_type=jnp.float32)
    r = r + jnp.dot(e.astype(jnp.bfloat16), w1e_ref[...],
                    preferred_element_type=jnp.float32)
    y_ref[...] = r
    s_ref[...] = jnp.sum(r, axis=0, keepdims=True)
    q_ref[...] = jnp.sum(r * r, axis=0, keepdims=True)


def embed_and_layer1(lab, wemb, z, w1z, w1e):
    B = z.shape[0]
    N = w1z.shape[1]
    # Everything is tiny -> single invocation, full-array VMEM blocks.
    return pl.pallas_call(
        _embed_l1_kernel,
        out_shape=(jax.ShapeDtypeStruct((B, N), jnp.float32),
                   jax.ShapeDtypeStruct((1, N), jnp.float32),
                   jax.ShapeDtypeStruct((1, N), jnp.float32)),
    )(lab, wemb, z, w1z, w1e)


# ------------------------- BatchNorm-apply + ReLU ---------------------------

def _bn_relu_kernel(x_ref, sc_ref, sh_ref, o_ref):
    # normalize + ReLU in f32 (v5e has no bf16 VPU path); cast only at store
    o_ref[...] = jnp.maximum(x_ref[...] * sc_ref[...] + sh_ref[...],
                             0.0).astype(o_ref.dtype)


def bn_relu_apply(x, scale, shift):
    """relu(x*scale + shift) -> bf16.  Used only for layer 1, whose per-channel
    stats need a cross-column group reduce that is done in JAX."""
    return pl.pallas_call(
        _bn_relu_kernel,
        out_shape=jax.ShapeDtypeStruct(x.shape, jnp.bfloat16),
    )(x, scale, shift)


def bn_scale_shift(s, q, gamma, beta, count):
    # E[x^2] - mean^2 in f32 is fine at these magnitudes (0.02-scale weights);
    # switch to a two-pass / Welford reduction if scaled to full DCGAN sizes.
    mean = s / count
    var = q / count - mean * mean            # biased var == PyTorch train-mode BN
    scale = gamma / jnp.sqrt(var + BN_EPS)
    shift = beta - mean * scale
    return scale, shift


# ------ fused stride-2 ConvTranspose (phase-decomposed) + BN + ReLU ---------

def _dconv_bn_relu_kernel(a_ref, w_ref, g_ref, b_ref, o_ref,
                          y_sc, s_sc, q_sc, *, count):
    """Grid step p = output phase (py, px).  Each step: one MXU matmul
    O_p = A_p @ W_p (bf16 in, f32 acc), result kept resident in VMEM scratch,
    per-channel sum / sum-of-squares accumulated.  At the last phase the
    BatchNorm scale/shift is computed in-kernel and the whole layer output is
    normalized + ReLU'd and stored once as bf16."""
    p = pl.program_id(0)
    r = jnp.dot(a_ref[...], w_ref[...], preferred_element_type=jnp.float32)

    @pl.when(p == 0)
    def _():
        s_sc[...] = jnp.zeros_like(s_sc)
        q_sc[...] = jnp.zeros_like(q_sc)

    s_sc[...] += jnp.sum(r, axis=0, keepdims=True)
    q_sc[...] += jnp.sum(r * r, axis=0, keepdims=True)
    y_sc[p] = r

    @pl.when(p == pl.num_programs(0) - 1)
    def _():
        inv = 1.0 / count
        mean = s_sc[...] * inv
        var = q_sc[...] * inv - mean * mean          # biased var (train-mode BN)
        scale = g_ref[...] * lax.rsqrt(var + BN_EPS)  # EUP rsqrt
        shift = b_ref[...] - mean * scale
        o_ref[...] = jnp.maximum(y_sc[...] * scale + shift,
                                 0.0).astype(o_ref.dtype)


def dconv_bn_relu_call(a_all, w_all, gamma, beta, M, count):
    K = a_all.shape[1]
    N = w_all.shape[1]
    return pl.pallas_call(
        functools.partial(_dconv_bn_relu_kernel, count=count),
        out_shape=jax.ShapeDtypeStruct((4, M, N), jnp.bfloat16),
        grid_spec=pltpu.PrefetchScalarGridSpec(
            num_scalar_prefetch=0,
            grid=(4,),
            in_specs=[pl.BlockSpec((M, K), lambda p: (p, 0)),
                      pl.BlockSpec((K, N), lambda p: (p, 0)),
                      pl.BlockSpec((1, N), lambda p: (0, 0)),
                      pl.BlockSpec((1, N), lambda p: (0, 0))],
            out_specs=pl.BlockSpec((4, M, N), lambda p: (0, 0, 0)),
            scratch_shapes=[pltpu.VMEM((4, M, N), jnp.float32),
                            pltpu.VMEM((1, N), jnp.float32),
                            pltpu.VMEM((1, N), jnp.float32)]),
        compiler_params=pltpu.CompilerParams(
            dimension_semantics=("arbitrary",)),     # stats/scratch carry across p
    )(a_all, w_all, gamma, beta)


# ------------------ final stride-2 ConvTranspose + Tanh ---------------------

def _matmul_tanh_kernel(a_ref, w_ref, o_ref):
    o_ref[...] = jnp.tanh(jnp.dot(a_ref[...], w_ref[...],
                                  preferred_element_type=jnp.float32))


def matmul_tanh_call(a_all, w_all, M):
    K = a_all.shape[1]
    N = w_all.shape[1]
    return pl.pallas_call(
        _matmul_tanh_kernel,
        out_shape=jax.ShapeDtypeStruct((4 * M, N), jnp.float32),
        grid_spec=pltpu.PrefetchScalarGridSpec(
            num_scalar_prefetch=0,
            grid=(4,),
            in_specs=[pl.BlockSpec((M, K), lambda p: (p, 0)),
                      pl.BlockSpec((K, N), lambda p: (p, 0))],
            out_specs=pl.BlockSpec((M, N), lambda p: (p, 0))),
        compiler_params=pltpu.CompilerParams(
            dimension_semantics=("parallel",)),
    )(a_all, w_all)


# --------- ConvTranspose2d(k=4, s=2, p=1) output-phase decomposition --------
# (JAX-side glue: pad / shifted views / stack; the gather pattern is not a
#  rectangular block, so it stays in XLA.)

def _phase_im2col(x, w):
    """x: NHWC bf16, w: PyTorch layout (Cin, Cout, 4, 4).
    y[2m+py, 2n+px] only sees a 2x2 window of x, so the layer is 4 phase
    sub-convs with K = 4*Cin (no dilation zeros).  Phases are stacked along M.
    Returns a_all (4*B*H*W, 4Cin) bf16, w_all (4*4Cin, Cout) bf16, M, dims."""
    B, H, W_, Cin = x.shape
    Cout = w.shape[1]
    xp = jnp.pad(x, ((0, 0), (1, 1), (1, 1), (0, 0)))
    # 9 shifted HxW views of the padded input; each phase's 2x2 taps pick 4.
    sh = [[xp[:, dy:dy + H, dx:dx + W_, :] for dx in range(3)] for dy in range(3)]
    a_blocks, w_blocks = [], []
    for py in (0, 1):
        for px in (0, 1):
            taps = [sh[py + ti][px + tj] for ti in (0, 1) for tj in (0, 1)]
            a_blocks.append(jnp.stack(taps, axis=3).reshape(B * H * W_, 4 * Cin))
            wt = jnp.stack([w[:, :, 3 - py - 2 * ti, 3 - px - 2 * tj]
                            for ti in (0, 1) for tj in (0, 1)], axis=0)
            w_blocks.append(wt.reshape(4 * Cin, Cout))
    a_all = jnp.concatenate(a_blocks, axis=0)                        # (4M, 4Cin) bf16
    w_all = jnp.concatenate(w_blocks, axis=0).astype(jnp.bfloat16)   # (16Cin, Cout)
    return a_all, w_all, B * H * W_, (B, H, W_, Cout)


def interleave_phases(y_phase_major, dims):
    """Phase-major rows (4, M, C) or (4M, C) -> (B, 2H, 2W, C)."""
    B, H, W_, Cout = dims
    y = y_phase_major.reshape(2, 2, B, H, W_, Cout)
    return y.transpose(2, 3, 0, 4, 1, 5).reshape(B, 2 * H, 2 * W_, Cout)


# ------------------------------- Generator ---------------------------------

def init_params(key, nz=NZ, ngf=NGF, nc=NC, n_classes=N_CLASSES):
    keys = jax.random.split(key, 6)

    def conv_w(k, cin, cout):
        return 0.02 * jax.random.normal(k, (cin, cout, 4, 4), jnp.float32)

    return {
        "emb_w": 0.02 * jax.random.normal(keys[0], (nz, n_classes), jnp.float32),
        "emb_b": jnp.zeros((nz,), jnp.float32),
        "w1": conv_w(keys[1], 2 * nz, ngf * 8),
        "w2": conv_w(keys[2], ngf * 8, ngf * 4),
        "w3": conv_w(keys[3], ngf * 4, ngf * 2),
        "w4": conv_w(keys[4], ngf * 2, ngf),
        "w5": conv_w(keys[5], ngf, nc),
        "g1": jnp.ones((ngf * 8,), jnp.float32), "b1": jnp.zeros((ngf * 8,), jnp.float32),
        "g2": jnp.ones((ngf * 4,), jnp.float32), "b2": jnp.zeros((ngf * 4,), jnp.float32),
        "g3": jnp.ones((ngf * 2,), jnp.float32), "b3": jnp.zeros((ngf * 2,), jnp.float32),
        "g4": jnp.ones((ngf,), jnp.float32),     "b4": jnp.zeros((ngf,), jnp.float32),
    }


@jax.jit
def generator_forward(params, z, labels):
    B = z.shape[0]
    f32, bf16 = jnp.float32, jnp.bfloat16
    c1 = NGF * 8

    # class_embedding: Linear(n_classes, nz) + LeakyReLU(0.2).  Bias folded in
    # via a ones column; K padded 5 -> 8 (keeps the tiny W sublane-aligned).
    lab = jnp.concatenate([labels.astype(f32), jnp.ones((B, 1), f32),
                           jnp.zeros((B, 3), f32)], axis=1).astype(bf16)
    wemb = jnp.concatenate([params["emb_w"].T, params["emb_b"][None, :],
                            jnp.zeros((3, NZ), f32)], axis=0).astype(bf16)

    # ---- layer 1: ConvTranspose2d(2nz, ngf*8, 4, 1, 0) on a 1x1 input ------
    # y[b, oy, ox, c] = sum_cin x[b,cin] * w1[cin, c, oy, ox] -> one matmul.
    # x = cat((z, emb)) is split into z-part and emb-part so the embedding
    # fuses into the same kernel (no concat, one pallas_call).
    w1m = jnp.transpose(params["w1"], (0, 2, 3, 1)).reshape(2 * NZ, 16 * c1)
    y1, s1, q1 = embed_and_layer1(lab, wemb, z.astype(bf16),
                                  w1m[:NZ].astype(bf16), w1m[NZ:].astype(bf16))
    # BN stats are per channel: reduce per-column stats over the 16 (oy, ox).
    s1r = jnp.sum(s1.reshape(16, c1), axis=0)
    q1r = jnp.sum(q1.reshape(16, c1), axis=0)
    scale, shift = bn_scale_shift(s1r, q1r, params["g1"], params["b1"], B * 16)
    h = bn_relu_apply(y1, jnp.tile(scale, 16)[None, :], jnp.tile(shift, 16)[None, :])
    h = h.reshape(B, 4, 4, c1)                                       # NHWC bf16

    # ---- layers 2-4: one fused pallas_call per layer ------------------------
    for wk, gk, bk in (("w2", "g2", "b2"), ("w3", "g3", "b3"), ("w4", "g4", "b4")):
        a_all, w_all, M, dims = _phase_im2col(h, params[wk])
        y = dconv_bn_relu_call(a_all, w_all,
                               params[gk][None, :], params[bk][None, :],
                               M, count=4 * M)                       # (4, M, Cout) bf16
        h = interleave_phases(y, dims)

    # ---- layer 5: stride-2 ConvTranspose + Tanh (fused in the epilogue) ----
    a_all, w_all, M, dims = _phase_im2col(h, params["w5"])
    y5 = matmul_tanh_call(a_all, w_all, M)                           # (4M, nc) f32
    out = interleave_phases(y5, dims)                                # (B,64,64,nc)
    return jnp.transpose(out, (0, 3, 1, 2))                          # NCHW, like PyTorch


if __name__ == "__main__":
    key = jax.random.PRNGKey(0)
    kp, kz, kl = jax.random.split(key, 3)
    params = init_params(kp)
    z = jax.random.normal(kz, (BATCH, NZ), jnp.float32)
    label_ids = jax.random.randint(kl, (BATCH,), 0, N_CLASSES)
    labels = jax.nn.one_hot(label_ids, N_CLASSES, dtype=jnp.float32)

    out = generator_forward(params, z, labels)
    out = jax.block_until_ready(out)

    assert out.shape == (BATCH, NC, 64, 64), out.shape
    assert bool(jnp.all(jnp.isfinite(out)))
    assert bool(jnp.all(jnp.abs(out) <= 1.0 + 1e-6))   # tanh range
    print("KERNEL_OK")
</pallas_src>

<mosaic_0001>
module attributes {stable_mosaic.version = 11 : i64} {
  func.func @_embed_l1_kernel(%arg0: memref<2x8xbf16, #tpu.memory_space<vmem>>, %arg1: memref<8x16xbf16, #tpu.memory_space<vmem>>, %arg2: memref<2x16xbf16, #tpu.memory_space<vmem>>, %arg3: memref<16x1024xbf16, #tpu.memory_space<vmem>>, %arg4: memref<16x1024xbf16, #tpu.memory_space<vmem>>, %arg5: memref<2x1024xf32, #tpu.memory_space<vmem>>, %arg6: memref<1x1024xf32, #tpu.memory_space<vmem>>, %arg7: memref<1x1024xf32, #tpu.memory_space<vmem>>) attributes {dimension_semantics = [], scalar_prefetch = 0 : i64, scratch_operands = 0 : i64, tpu.core_type = #tpu.core_type<tc>} {
    %c0 = arith.constant 0 : index
    %c0_0 = arith.constant 0 : index
    %0 = vector.load %arg0[%c0, %c0_0] : memref<2x8xbf16, #tpu.memory_space<vmem>>, vector<2x8xbf16>
    %c0_1 = arith.constant 0 : index
    %c0_2 = arith.constant 0 : index
    %1 = vector.load %arg1[%c0_1, %c0_2] : memref<8x16xbf16, #tpu.memory_space<vmem>>, vector<8x16xbf16>
    %cst = arith.constant dense<0.000000e+00> : vector<2x16xf32>
    %2 = tpu.matmul %0, %1, %cst {dimension_numbers = #tpu.dot_dimension_numbers<[1], [0], [0], [1], [0, 0, 1, 1], [], []>} : vector<2x8xbf16>, vector<8x16xbf16>, vector<2x16xf32> -> vector<2x16xf32>
    %cst_3 = arith.constant 0.000000e+00 : f32
    %3 = vector.broadcast %cst_3 : f32 to vector<2x16xf32>
    %4 = arith.cmpf ogt, %2, %3 : vector<2x16xf32>
    %cst_4 = arith.constant 2.000000e-01 : f32
    %5 = vector.broadcast %cst_4 : f32 to vector<2x16xf32>
    %6 = arith.mulf %5, %2 : vector<2x16xf32>
    %7 = arith.select %4, %2, %6 : vector<2x16xi1>, vector<2x16xf32>
    %c0_5 = arith.constant 0 : index
    %c0_6 = arith.constant 0 : index
    %8 = vector.load %arg2[%c0_5, %c0_6] : memref<2x16xbf16, #tpu.memory_space<vmem>>, vector<2x16xbf16>
    %c0_7 = arith.constant 0 : index
    %c0_8 = arith.constant 0 : index
    %9 = vector.load %arg3[%c0_7, %c0_8] : memref<16x1024xbf16, #tpu.memory_space<vmem>>, vector<16x1024xbf16>
    %cst_9 = arith.constant dense<0.000000e+00> : vector<2x1024xf32>
    %10 = tpu.matmul %8, %9, %cst_9 {dimension_numbers = #tpu.dot_dimension_numbers<[1], [0], [0], [1], [0, 0, 1, 1], [], []>} : vector<2x16xbf16>, vector<16x1024xbf16>, vector<2x1024xf32> -> vector<2x1024xf32>
    %11 = arith.truncf %7 : vector<2x16xf32> to vector<2x16xbf16>
    %c0_10 = arith.constant 0 : index
    %c0_11 = arith.constant 0 : index
    %12 = vector.load %arg4[%c0_10, %c0_11] : memref<16x1024xbf16, #tpu.memory_space<vmem>>, vector<16x1024xbf16>
    %cst_12 = arith.constant dense<0.000000e+00> : vector<2x1024xf32>
    %13 = tpu.matmul %11, %12, %cst_12 {dimension_numbers = #tpu.dot_dimension_numbers<[1], [0], [0], [1], [0, 0, 1, 1], [], []>} : vector<2x16xbf16>, vector<16x1024xbf16>, vector<2x1024xf32> -> vector<2x1024xf32>
    %14 = arith.addf %10, %13 : vector<2x1024xf32>
    %c0_13 = arith.constant 0 : index
    %c0_14 = arith.constant 0 : index
    %15 = vector.load %arg5[%c0_13, %c0_14] : memref<2x1024xf32, #tpu.memory_space<vmem>>, vector<2x1024xf32>
    tpu.vector_store %arg5[%c0_13, %c0_14], %14 {strides = array<i32>} : memref<2x1024xf32, #tpu.memory_space<vmem>>, vector<2x1024xf32>,
    %cst_15 = arith.constant dense<0.000000e+00> : vector<1024xf32>
    %16 = vector.multi_reduction <add>, %14, %cst_15 [0] : vector<2x1024xf32> to vector<1024xf32>
    %17 = vector.shape_cast %16 : vector<1024xf32> to vector<1x1024xf32>
    %c0_16 = arith.constant 0 : index
    %c0_17 = arith.constant 0 : index
    %18 = vector.load %arg6[%c0_16, %c0_17] : memref<1x1024xf32, #tpu.memory_space<vmem>>, vector<1x1024xf32>
    tpu.vector_store %arg6[%c0_16, %c0_17], %17 {strides = array<i32>} : memref<1x1024xf32, #tpu.memory_space<vmem>>, vector<1x1024xf32>,
    %19 = arith.mulf %14, %14 : vector<2x1024xf32>
    %cst_18 = arith.constant dense<0.000000e+00> : vector<1024xf32>
    %20 = vector.multi_reduction <add>, %19, %cst_18 [0] : vector<2x1024xf32> to vector<1024xf32>
    %21 = vector.shape_cast %20 : vector<1024xf32> to vector<1x1024xf32>
    %c0_19 = arith.constant 0 : index
    %c0_20 = arith.constant 0 : index
    %22 = vector.load %arg7[%c0_19, %c0_20] : memref<1x1024xf32, #tpu.memory_space<vmem>>, vector<1x1024xf32>
    tpu.vector_store %arg7[%c0_19, %c0_20], %21 {strides = array<i32>} : memref<1x1024xf32, #tpu.memory_space<vmem>>, vector<1x1024xf32>,
    return
  }
}

module attributes {stable_mosaic.version = 11 : i64} {
  func.func @_bn_relu_kernel(%arg0: memref<2x1024xf32, #tpu.memory_space<vmem>>, %arg1: memref<1x1024xf32, #tpu.memory_space<vmem>>, %arg2: memref<1x1024xf32, #tpu.memory_space<vmem>>, %arg3: memref<2x1024xbf16, #tpu.memory_space<vmem>>) attributes {dimension_semantics = [], scalar_prefetch = 0 : i64, scratch_operands = 0 : i64, tpu.core_type = #tpu.core_type<tc>} {
    %c0 = arith.constant 0 : index
    %c0_0 = arith.constant 0 : index
    %0 = vector.load %arg0[%c0, %c0_0] : memref<2x1024xf32, #tpu.memory_space<vmem>>, vector<2x1024xf32>
    %c0_1 = arith.constant 0 : index
    %c0_2 = arith.constant 0 : index
    %1 = vector.load %arg1[%c0_1, %c0_2] : memref<1x1024xf32, #tpu.memory_space<vmem>>, vector<1x1024xf32>
    %2 = vector.broadcast %1 : vector<1x1024xf32> to vector<2x1024xf32>
    %3 = arith.mulf %0, %2 : vector<2x1024xf32>
    %c0_3 = arith.constant 0 : index
    %c0_4 = arith.constant 0 : index
    %4 = vector.load %arg2[%c0_3, %c0_4] : memref<1x1024xf32, #tpu.memory_space<vmem>>, vector<1x1024xf32>
    %5 = vector.broadcast %4 : vector<1x1024xf32> to vector<2x1024xf32>
    %6 = arith.addf %3, %5 : vector<2x1024xf32>
    %cst = arith.constant 0.000000e+00 : f32
    %7 = vector.broadcast %cst : f32 to vector<2x1024xf32>
    %8 = arith.maximumf %6, %7 : vector<2x1024xf32>
    %9 = arith.truncf %8 : vector<2x1024xf32> to vector<2x1024xbf16>
    %c0_5 = arith.constant 0 : index
    %c0_6 = arith.constant 0 : index
    %10 = vector.load %arg3[%c0_5, %c0_6] : memref<2x1024xbf16, #tpu.memory_space<vmem>>, vector<2x1024xbf16>
    tpu.vector_store %arg3[%c0_5, %c0_6], %9 {strides = array<i32>} : memref<2x1024xbf16, #tpu.memory_space<vmem>>, vector<2x1024xbf16>,
    return
  }
}

module attributes {stable_mosaic.version = 11 : i64} {
  func.func @_dconv_bn_relu_kernel(%arg0: i32, %arg1: memref<32x256xbf16, #tpu.memory_space<vmem>>, %arg2: memref<256x32xbf16, #tpu.memory_space<vmem>>, %arg3: memref<1x32xf32, #tpu.memory_space<vmem>>, %arg4: memref<1x32xf32, #tpu.memory_space<vmem>>, %arg5: memref<4x32x32xbf16, #tpu.memory_space<vmem>>, %arg6: memref<4x32x32xf32, #tpu.memory_space<vmem>>, %arg7: memref<1x32xf32, #tpu.memory_space<vmem>>, %arg8: memref<1x32xf32, #tpu.memory_space<vmem>>) attributes {dimension_semantics = [#tpu.dimension_semantics<arbitrary>], iteration_bounds = array<i64: 4>, scalar_prefetch = 0 : i64, scratch_operands = 3 : i64, tpu.core_type = #tpu.core_type<tc>, window_params = [{transform_indices = @transform_0, window_bounds = array<i64: 32, 256>}, {transform_indices = @transform_1, window_bounds = array<i64: 256, 32>}, {pipeline_mode = #tpu.pipeline_mode<synchronous>, transform_indices = @transform_2, window_bounds = array<i64: 1, 32>}, {pipeline_mode = #tpu.pipeline_mode<synchronous>, transform_indices = @transform_3, window_bounds = array<i64: 1, 32>}, {pipeline_mode = #tpu.pipeline_mode<synchronous>, transform_indices = @transform_4, window_bounds = array<i64: 4, 32, 32>}]} {
    %c0 = arith.constant 0 : index
    %c0_0 = arith.constant 0 : index
    %0 = vector.load %arg1[%c0, %c0_0] : memref<32x256xbf16, #tpu.memory_space<vmem>>, vector<32x256xbf16>
    %c0_1 = arith.constant 0 : index
    %c0_2 = arith.constant 0 : index
    %1 = vector.load %arg2[%c0_1, %c0_2] : memref<256x32xbf16, #tpu.memory_space<vmem>>, vector<256x32xbf16>
    %cst = arith.constant dense<0.000000e+00> : vector<32x32xf32>
    %2 = tpu.matmul %0, %1, %cst {dimension_numbers = #tpu.dot_dimension_numbers<[1], [0], [0], [1], [0, 0, 1, 1], [], []>} : vector<32x256xbf16>, vector<256x32xbf16>, vector<32x32xf32> -> vector<32x32xf32>
    %c0_i32 = arith.constant 0 : i32
    %3 = arith.cmpi eq, %arg0, %c0_i32 : i32
    %4 = arith.extui %3 : i1 to i32
    %c0_i32_3 = arith.constant 0 : i32
    %5 = arith.cmpi ne, %4, %c0_i32_3 : i32
    scf.if %5 {
      %cst_17 = arith.constant 0.000000e+00 : f32
      %24 = vector.broadcast %cst_17 : f32 to vector<1x32xf32>
      %c0_18 = arith.constant 0 : index
      %c0_19 = arith.constant 0 : index
      %25 = vector.load %arg7[%c0_18, %c0_19] : memref<1x32xf32, #tpu.memory_space<vmem>>, vector<1x32xf32>
      tpu.vector_store %arg7[%c0_18, %c0_19], %24 {strides = array<i32>} : memref<1x32xf32, #tpu.memory_space<vmem>>, vector<1x32xf32>,
      %cst_20 = arith.constant 0.000000e+00 : f32
      %26 = vector.broadcast %cst_20 : f32 to vector<1x32xf32>
      %c0_21 = arith.constant 0 : index
      %c0_22 = arith.constant 0 : index
      %27 = vector.load %arg8[%c0_21, %c0_22] : memref<1x32xf32, #tpu.memory_space<vmem>>, vector<1x32xf32>
      tpu.vector_store %arg8[%c0_21, %c0_22], %26 {strides = array<i32>} : memref<1x32xf32, #tpu.memory_space<vmem>>, vector<1x32xf32>,
    } else {
    }
    %c0_4 = arith.constant 0 : index
    %c0_5 = arith.constant 0 : index
    %6 = vector.load %arg7[%c0_4, %c0_5] : memref<1x32xf32, #tpu.memory_space<vmem>>, vector<1x32xf32>
    %cst_6 = arith.constant dense<0.000000e+00> : vector<32xf32>
    %7 = vector.multi_reduction <add>, %2, %cst_6 [0] : vector<32x32xf32> to vector<32xf32>
    %8 = vector.shape_cast %7 : vector<32xf32> to vector<1x32xf32>
    %9 = arith.addf %6, %8 : vector<1x32xf32>
    %c0_7 = arith.constant 0 : index
    %c0_8 = arith.constant 0 : index
    %10 = vector.load %arg7[%c0_7, %c0_8] : memref<1x32xf32, #tpu.memory_space<vmem>>, vector<1x32xf32>
    tpu.vector_store %arg7[%c0_7, %c0_8], %9 {strides = array<i32>} : memref<1x32xf32, #tpu.memory_space<vmem>>, vector<1x32xf32>,
    %c0_9 = arith.constant 0 : index
    %c0_10 = arith.constant 0 : index
    %11 = vector.load %arg8[%c0_9, %c0_10] : memref<1x32xf32, #tpu.memory_space<vmem>>, vector<1x32xf32>
    %12 = arith.mulf %2, %2 : vector<32x32xf32>
    %cst_11 = arith.constant dense<0.000000e+00> : vector<32xf32>
    %13 = vector.multi_reduction <add>, %12, %cst_11 [0] : vector<32x32xf32> to vector<32xf32>
    %14 = vector.shape_cast %13 : vector<32xf32> to vector<1x32xf32>
    %15 = arith.addf %11, %14 : vector<1x32xf32>
    %c0_12 = arith.constant 0 : index
    %c0_13 = arith.constant 0 : index
    %16 = vector.load %arg8[%c0_12, %c0_13] : memref<1x32xf32, #tpu.memory_space<vmem>>, vector<1x32xf32>
    tpu.vector_store %arg8[%c0_12, %c0_13], %15 {strides = array<i32>} : memref<1x32xf32, #tpu.memory_space<vmem>>, vector<1x32xf32>,
    %17 = arith.index_cast %arg0 : i32 to index
    %c0_14 = arith.constant 0 : index
    %c0_15 = arith.constant 0 : index
    %18 = vector.load %arg6[%17, %c0_14, %c0_15] : memref<4x32x32xf32, #tpu.memory_space<vmem>>, vector<1x32x32xf32>
    %19 = vector.shape_cast %18 : vector<1x32x32xf32> to vector<32x32xf32>
    %20 = vector.shape_cast %2 : vector<32x32xf32> to vector<1x32x32xf32>
    tpu.vector_store %arg6[%17, %c0_14, %c0_15], %20 {strides = array<i32>} : memref<4x32x32xf32, #tpu.memory_space<vmem>>, vector<1x32x32xf32>,
    %c3_i32 = arith.constant 3 : i32
    %21 = arith.cmpi eq, %arg0, %c3_i32 : i32
    %22 = arith.extui %21 : i1 to i32
    %c0_i32_16 = arith.constant 0 : i32
    %23 = arith.cmpi ne, %22, %c0_i32_16 : i32
    scf.if %23 {
      %c0_17 = arith.constant 0 : index
      %c0_18 = arith.constant 0 : index
      %24 = vector.load %arg7[%c0_17, %c0_18] : memref<1x32xf32, #tpu.memory_space<vmem>>, vector<1x32xf32>
      %cst_19 = arith.constant 7.812500e-03 : f32
      %25 = vector.broadcast %cst_19 : f32 to vector<1x32xf32>
      %26 = arith.mulf %24, %25 : vector<1x32xf32>
      %c0_20 = arith.constant 0 : index
      %c0_21 = arith.constant 0 : index
      %27 = vector.load %arg8[%c0_20, %c0_21] : memref<1x32xf32, #tpu.memory_space<vmem>>, vector<1x32xf32>
      %cst_22 = arith.constant 7.812500e-03 : f32
      %28 = vector.broadcast %cst_22 : f32 to vector<1x32xf32>
      %29 = arith.mulf %27, %28 : vector<1x32xf32>
      %30 = arith.mulf %26, %26 : vector<1x32xf32>
      %31 = arith.subf %29, %30 : vector<1x32xf32>
      %c0_23 = arith.constant 0 : index
      %c0_24 = arith.constant 0 : index
      %32 = vector.load %arg3[%c0_23, %c0_24] : memref<1x32xf32, #tpu.memory_space<vmem>>, vector<1x32xf32>
      %cst_25 = arith.constant 9.99999974E-6 : f32
      %33 = vector.broadcast %cst_25 : f32 to vector<1x32xf32>
      %34 = arith.addf %31, %33 : vector<1x32xf32>
      %35 = math.rsqrt %34 : vector<1x32xf32>
      %36 = arith.mulf %32, %35 : vector<1x32xf32>
      %c0_26 = arith.constant 0 : index
      %c0_27 = arith.constant 0 : index
      %37 = vector.load %arg4[%c0_26, %c0_27] : memref<1x32xf32, #tpu.memory_space<vmem>>, vector<1x32xf32>
      %38 = arith.mulf %26, %36 : vector<1x32xf32>
      %39 = arith.subf %37, %38 : vector<1x32xf32>
      %c0_28 = arith.constant 0 : index
      %c0_29 = arith.constant 0 : index
      %c0_30 = arith.constant 0 : index
      %40 = vector.load %arg6[%c0_28, %c0_29, %c0_30] : memref<4x32x32xf32, #tpu.memory_space<vmem>>, vector<4x32x32xf32>
      %41 = vector.shape_cast %36 : vector<1x32xf32> to vector<1x1x32xf32>
      %42 = vector.broadcast %41 : vector<1x1x32xf32> to vector<4x32x32xf32>
      %43 = arith.mulf %40, %42 : vector<4x32x32xf32>
      %44 = vector.shape_cast %39 : vector<1x32xf32> to vector<1x1x32xf32>
      %45 = vector.broadcast %44 : vector<1x1x32xf32> to vector<4x32x32xf32>
      %46 = arith.addf %43, %45 : vector<4x32x32xf32>
      %cst_31 = arith.constant 0.000000e+00 : f32
      %47 = vector.broadcast %cst_31 : f32 to vector<4x32x32xf32>
      %48 = arith.maximumf %46, %47 : vector<4x32x32xf32>
      %49 = arith.truncf %48 : vector<4x32x32xf32> to vector<4x32x32xbf16>
      %c0_32 = arith.constant 0 : index
      %c0_33 = arith.constant 0 : index
      %c0_34 = arith.constant 0 : index
      %50 = vector.load %arg5[%c0_32, %c0_33, %c0_34] : memref<4x32x32xbf16, #tpu.memory_space<vmem>>, vector<4x32x32xbf16>
      tpu.vector_store %arg5[%c0_32, %c0_33, %c0_34], %49 {strides = array<i32>} : memref<4x32x32xbf16, #tpu.memory_space<vmem>>, vector<4x32x32xbf16>,
    } else {
    }
    return
  }
  func.func @transform_0(%arg0: i32) -> (i32, i32) {
    %c0_i32 = arith.constant 0 : i32
    %c0_i32_0 = arith.constant 0 : i32
    return %arg0, %c0_i32 : i32, i32
  }
  func.func @transform_1(%arg0: i32) -> (i32, i32) {
    %c0_i32 = arith.constant 0 : i32
    %c0_i32_0 = arith.constant 0 : i32
    return %arg0, %c0_i32 : i32, i32
  }
  func.func @transform_2(%arg0: i32) -> (i32, i32) {
    %c0_i32 = arith.constant 0 : i32
    %c0_i32_0 = arith.constant 0 : i32
    %c0_i32_1 = arith.constant 0 : i32
    return %c0_i32, %c0_i32_0 : i32, i32
  }
  func.func @transform_3(%arg0: i32) -> (i32, i32) {
    %c0_i32 = arith.constant 0 : i32
    %c0_i32_0 = arith.constant 0 : i32
    %c0_i32_1 = arith.constant 0 : i32
    return %c0_i32, %c0_i32_0 : i32, i32
  }
  func.func @transform_4(%arg0: i32) -> (i32, i32, i32) {
    %c0_i32 = arith.constant 0 : i32
    %c0_i32_0 = arith.constant 0 : i32
    %c0_i32_1 = arith.constant 0 : i32
    %c0_i32_2 = arith.constant 0 : i32
    return %c0_i32, %c0_i32_0, %c0_i32_1 : i32, i32, i32
  }
}

module attributes {stable_mosaic.version = 11 : i64} {
  func.func @_dconv_bn_relu_kernel(%arg0: i32, %arg1: memref<128x128xbf16, #tpu.memory_space<vmem>>, %arg2: memref<128x16xbf16, #tpu.memory_space<vmem>>, %arg3: memref<1x16xf32, #tpu.memory_space<vmem>>, %arg4: memref<1x16xf32, #tpu.memory_space<vmem>>, %arg5: memref<4x128x16xbf16, #tpu.memory_space<vmem>>, %arg6: memref<4x128x16xf32, #tpu.memory_space<vmem>>, %arg7: memref<1x16xf32, #tpu.memory_space<vmem>>, %arg8: memref<1x16xf32, #tpu.memory_space<vmem>>) attributes {dimension_semantics = [#tpu.dimension_semantics<arbitrary>], iteration_bounds = array<i64: 4>, scalar_prefetch = 0 : i64, scratch_operands = 3 : i64, tpu.core_type = #tpu.core_type<tc>, window_params = [{transform_indices = @transform_0, window_bounds = array<i64: 128, 128>}, {transform_indices = @transform_1, window_bounds = array<i64: 128, 16>}, {pipeline_mode = #tpu.pipeline_mode<synchronous>, transform_indices = @transform_2, window_bounds = array<i64: 1, 16>}, {pipeline_mode = #tpu.pipeline_mode<synchronous>, transform_indices = @transform_3, window_bounds = array<i64: 1, 16>}, {pipeline_mode = #tpu.pipeline_mode<synchronous>, transform_indices = @transform_4, window_bounds = array<i64: 4, 128, 16>}]} {
    %c0 = arith.constant 0 : index
    %c0_0 = arith.constant 0 : index
    %0 = vector.load %arg1[%c0, %c0_0] : memref<128x128xbf16, #tpu.memory_space<vmem>>, vector<128x128xbf16>
    %c0_1 = arith.constant 0 : index
    %c0_2 = arith.constant 0 : index
    %1 = vector.load %arg2[%c0_1, %c0_2] : memref<128x16xbf16, #tpu.memory_space<vmem>>, vector<128x16xbf16>
    %cst = arith.constant dense<0.000000e+00> : vector<128x16xf32>
    %2 = tpu.matmul %0, %1, %cst {dimension_numbers = #tpu.dot_dimension_numbers<[1], [0], [0], [1], [0, 0, 1, 1], [], []>} : vector<128x128xbf16>, vector<128x16xbf16>, vector<128x16xf32> -> vector<128x16xf32>
    %c0_i32 = arith.constant 0 : i32
    %3 = arith.cmpi eq, %arg0, %c0_i32 : i32
    %4 = arith.extui %3 : i1 to i32
    %c0_i32_3 = arith.constant 0 : i32
    %5 = arith.cmpi ne, %4, %c0_i32_3 : i32
    scf.if %5 {
      %cst_17 = arith.constant 0.000000e+00 : f32
      %24 = vector.broadcast %cst_17 : f32 to vector<1x16xf32>
      %c0_18 = arith.constant 0 : index
      %c0_19 = arith.constant 0 : index
      %25 = vector.load %arg7[%c0_18, %c0_19] : memref<1x16xf32, #tpu.memory_space<vmem>>, vector<1x16xf32>
      tpu.vector_store %arg7[%c0_18, %c0_19], %24 {strides = array<i32>} : memref<1x16xf32, #tpu.memory_space<vmem>>, vector<1x16xf32>,
      %cst_20 = arith.constant 0.000000e+00 : f32
      %26 = vector.broadcast %cst_20 : f32 to vector<1x16xf32>
      %c0_21 = arith.constant 0 : index
      %c0_22 = arith.constant 0 : index
      %27 = vector.load %arg8[%c0_21, %c0_22] : memref<1x16xf32, #tpu.memory_space<vmem>>, vector<1x16xf32>
      tpu.vector_store %arg8[%c0_21, %c0_22], %26 {strides = array<i32>} : memref<1x16xf32, #tpu.memory_space<vmem>>, vector<1x16xf32>,
    } else {
    }
    %c0_4 = arith.constant 0 : index
    %c0_5 = arith.constant 0 : index
    %6 = vector.load %arg7[%c0_4, %c0_5] : memref<1x16xf32, #tpu.memory_space<vmem>>, vector<1x16xf32>
    %cst_6 = arith.constant dense<0.000000e+00> : vector<16xf32>
    %7 = vector.multi_reduction <add>, %2, %cst_6 [0] : vector<128x16xf32> to vector<16xf32>
    %8 = vector.shape_cast %7 : vector<16xf32> to vector<1x16xf32>
    %9 = arith.addf %6, %8 : vector<1x16xf32>
    %c0_7 = arith.constant 0 : index
    %c0_8 = arith.constant 0 : index
    %10 = vector.load %arg7[%c0_7, %c0_8] : memref<1x16xf32, #tpu.memory_space<vmem>>, vector<1x16xf32>
    tpu.vector_store %arg7[%c0_7, %c0_8], %9 {strides = array<i32>} : memref<1x16xf32, #tpu.memory_space<vmem>>, vector<1x16xf32>,
    %c0_9 = arith.constant 0 : index
    %c0_10 = arith.constant 0 : index
    %11 = vector.load %arg8[%c0_9, %c0_10] : memref<1x16xf32, #tpu.memory_space<vmem>>, vector<1x16xf32>
    %12 = arith.mulf %2, %2 : vector<128x16xf32>
    %cst_11 = arith.constant dense<0.000000e+00> : vector<16xf32>
    %13 = vector.multi_reduction <add>, %12, %cst_11 [0] : vector<128x16xf32> to vector<16xf32>
    %14 = vector.shape_cast %13 : vector<16xf32> to vector<1x16xf32>
    %15 = arith.addf %11, %14 : vector<1x16xf32>
    %c0_12 = arith.constant 0 : index
    %c0_13 = arith.constant 0 : index
    %16 = vector.load %arg8[%c0_12, %c0_13] : memref<1x16xf32, #tpu.memory_space<vmem>>, vector<1x16xf32>
    tpu.vector_store %arg8[%c0_12, %c0_13], %15 {strides = array<i32>} : memref<1x16xf32, #tpu.memory_space<vmem>>, vector<1x16xf32>,
    %17 = arith.index_cast %arg0 : i32 to index
    %c0_14 = arith.constant 0 : index
    %c0_15 = arith.constant 0 : index
    %18 = vector.load %arg6[%17, %c0_14, %c0_15] : memref<4x128x16xf32, #tpu.memory_space<vmem>>, vector<1x128x16xf32>
    %19 = vector.shape_cast %18 : vector<1x128x16xf32> to vector<128x16xf32>
    %20 = vector.shape_cast %2 : vector<128x16xf32> to vector<1x128x16xf32>
    tpu.vector_store %arg6[%17, %c0_14, %c0_15], %20 {strides = array<i32>} : memref<4x128x16xf32, #tpu.memory_space<vmem>>, vector<1x128x16xf32>,
    %c3_i32 = arith.constant 3 : i32
    %21 = arith.cmpi eq, %arg0, %c3_i32 : i32
    %22 = arith.extui %21 : i1 to i32
    %c0_i32_16 = arith.constant 0 : i32
    %23 = arith.cmpi ne, %22, %c0_i32_16 : i32
    scf.if %23 {
      %c0_17 = arith.constant 0 : index
      %c0_18 = arith.constant 0 : index
      %24 = vector.load %arg7[%c0_17, %c0_18] : memref<1x16xf32, #tpu.memory_space<vmem>>, vector<1x16xf32>
      %cst_19 = arith.constant 0.001953125 : f32
      %25 = vector.broadcast %cst_19 : f32 to vector<1x16xf32>
      %26 = arith.mulf %24, %25 : vector<1x16xf32>
      %c0_20 = arith.constant 0 : index
      %c0_21 = arith.constant 0 : index
      %27 = vector.load %arg8[%c0_20, %c0_21] : memref<1x16xf32, #tpu.memory_space<vmem>>, vector<1x16xf32>
      %cst_22 = arith.constant 0.001953125 : f32
      %28 = vector.broadcast %cst_22 : f32 to vector<1x16xf32>
      %29 = arith.mulf %27, %28 : vector<1x16xf32>
      %30 = arith.mulf %26, %26 : vector<1x16xf32>
      %31 = arith.subf %29, %30 : vector<1x16xf32>
      %c0_23 = arith.constant 0 : index
      %c0_24 = arith.constant 0 : index
      %32 = vector.load %arg3[%c0_23, %c0_24] : memref<1x16xf32, #tpu.memory_space<vmem>>, vector<1x16xf32>
      %cst_25 = arith.constant 9.99999974E-6 : f32
      %33 = vector.broadcast %cst_25 : f32 to vector<1x16xf32>
      %34 = arith.addf %31, %33 : vector<1x16xf32>
      %35 = math.rsqrt %34 : vector<1x16xf32>
      %36 = arith.mulf %32, %35 : vector<1x16xf32>
      %c0_26 = arith.constant 0 : index
      %c0_27 = arith.constant 0 : index
      %37 = vector.load %arg4[%c0_26, %c0_27] : memref<1x16xf32, #tpu.memory_space<vmem>>, vector<1x16xf32>
      %38 = arith.mulf %26, %36 : vector<1x16xf32>
      %39 = arith.subf %37, %38 : vector<1x16xf32>
      %c0_28 = arith.constant 0 : index
      %c0_29 = arith.constant 0 : index
      %c0_30 = arith.constant 0 : index
      %40 = vector.load %arg6[%c0_28, %c0_29, %c0_30] : memref<4x128x16xf32, #tpu.memory_space<vmem>>, vector<4x128x16xf32>
      %41 = vector.shape_cast %36 : vector<1x16xf32> to vector<1x1x16xf32>
      %42 = vector.broadcast %41 : vector<1x1x16xf32> to vector<4x128x16xf32>
      %43 = arith.mulf %40, %42 : vector<4x128x16xf32>
      %44 = vector.shape_cast %39 : vector<1x16xf32> to vector<1x1x16xf32>
      %45 = vector.broadcast %44 : vector<1x1x16xf32> to vector<4x128x16xf32>
      %46 = arith.addf %43, %45 : vector<4x128x16xf32>
      %cst_31 = arith.constant 0.000000e+00 : f32
      %47 = vector.broadcast %cst_31 : f32 to vector<4x128x16xf32>
      %48 = arith.maximumf %46, %47 : vector<4x128x16xf32>
      %49 = arith.truncf %48 : vector<4x128x16xf32> to vector<4x128x16xbf16>
      %c0_32 = arith.constant 0 : index
      %c0_33 = arith.constant 0 : index
      %c0_34 = arith.constant 0 : index
      %50 = vector.load %arg5[%c0_32, %c0_33, %c0_34] : memref<4x128x16xbf16, #tpu.memory_space<vmem>>, vector<4x128x16xbf16>
      tpu.vector_store %arg5[%c0_32, %c0_33, %c0_34], %49 {strides = array<i32>} : memref<4x128x16xbf16, #tpu.memory_space<vmem>>, vector<4x128x16xbf16>,
    } else {
    }
    return
  }
  func.func @transform_0(%arg0: i32) -> (i32, i32) {
    %c0_i32 = arith.constant 0 : i32
    %c0_i32_0 = arith.constant 0 : i32
    return %arg0, %c0_i32 : i32, i32
  }
  func.func @transform_1(%arg0: i32) -> (i32, i32) {
    %c0_i32 = arith.constant 0 : i32
    %c0_i32_0 = arith.constant 0 : i32
    return %arg0, %c0_i32 : i32, i32
  }
  func.func @transform_2(%arg0: i32) -> (i32, i32) {
    %c0_i32 = arith.constant 0 : i32
    %c0_i32_0 = arith.constant 0 : i32
    %c0_i32_1 = arith.constant 0 : i32
    return %c0_i32, %c0_i32_0 : i32, i32
  }
  func.func @transform_3(%arg0: i32) -> (i32, i32) {
    %c0_i32 = arith.constant 0 : i32
    %c0_i32_0 = arith.constant 0 : i32
    %c0_i32_1 = arith.constant 0 : i32
    return %c0_i32, %c0_i32_0 : i32, i32
  }
  func.func @transform_4(%arg0: i32) -> (i32, i32, i32) {
    %c0_i32 = arith.constant 0 : i32
    %c0_i32_0 = arith.constant 0 : i32
    %c0_i32_1 = arith.constant 0 : i32
    %c0_i32_2 = arith.constant 0 : i32
    return %c0_i32, %c0_i32_0, %c0_i32_1 : i32, i32, i32
  }
}

module attributes {stable_mosaic.version = 11 : i64} {
  func.func @_dconv_bn_relu_kernel(%arg0: i32, %arg1: memref<512x64xbf16, #tpu.memory_space<vmem>>, %arg2: memref<64x8xbf16, #tpu.memory_space<vmem>>, %arg3: memref<1x8xf32, #tpu.memory_space<vmem>>, %arg4: memref<1x8xf32, #tpu.memory_space<vmem>>, %arg5: memref<4x512x8xbf16, #tpu.memory_space<vmem>>, %arg6: memref<4x512x8xf32, #tpu.memory_space<vmem>>, %arg7: memref<1x8xf32, #tpu.memory_space<vmem>>, %arg8: memref<1x8xf32, #tpu.memory_space<vmem>>) attributes {dimension_semantics = [#tpu.dimension_semantics<arbitrary>], iteration_bounds = array<i64: 4>, scalar_prefetch = 0 : i64, scratch_operands = 3 : i64, tpu.core_type = #tpu.core_type<tc>, window_params = [{transform_indices = @transform_0, window_bounds = array<i64: 512, 64>}, {transform_indices = @transform_1, window_bounds = array<i64: 64, 8>}, {pipeline_mode = #tpu.pipeline_mode<synchronous>, transform_indices = @transform_2, window_bounds = array<i64: 1, 8>}, {pipeline_mode = #tpu.pipeline_mode<synchronous>, transform_indices = @transform_3, window_bounds = array<i64: 1, 8>}, {pipeline_mode = #tpu.pipeline_mode<synchronous>, transform_indices = @transform_4, window_bounds = array<i64: 4, 512, 8>}]} {
    %c0 = arith.constant 0 : index
    %c0_0 = arith.constant 0 : index
    %0 = vector.load %arg1[%c0, %c0_0] : memref<512x64xbf16, #tpu.memory_space<vmem>>, vector<512x64xbf16>
    %c0_1 = arith.constant 0 : index
    %c0_2 = arith.constant 0 : index
    %1 = vector.load %arg2[%c0_1, %c0_2] : memref<64x8xbf16, #tpu.memory_space<vmem>>, vector<64x8xbf16>
    %cst = arith.constant dense<0.000000e+00> : vector<512x8xf32>
    %2 = tpu.matmul %0, %1, %cst {dimension_numbers = #tpu.dot_dimension_numbers<[1], [0], [0], [1], [0, 0, 1, 1], [], []>} : vector<512x64xbf16>, vector<64x8xbf16>, vector<512x8xf32> -> vector<512x8xf32>
    %c0_i32 = arith.constant 0 : i32
    %3 = arith.cmpi eq, %arg0, %c0_i32 : i32
    %4 = arith.extui %3 : i1 to i32
    %c0_i32_3 = arith.constant 0 : i32
    %5 = arith.cmpi ne, %4, %c0_i32_3 : i32
    scf.if %5 {
      %cst_17 = arith.constant 0.000000e+00 : f32
      %24 = vector.broadcast %cst_17 : f32 to vector<1x8xf32>
      %c0_18 = arith.constant 0 : index
      %c0_19 = arith.constant 0 : index
      %25 = vector.load %arg7[%c0_18, %c0_19] : memref<1x8xf32, #tpu.memory_space<vmem>>, vector<1x8xf32>
      tpu.vector_store %arg7[%c0_18, %c0_19], %24 {strides = array<i32>} : memref<1x8xf32, #tpu.memory_space<vmem>>, vector<1x8xf32>,
      %cst_20 = arith.constant 0.000000e+00 : f32
      %26 = vector.broadcast %cst_20 : f32 to vector<1x8xf32>
      %c0_21 = arith.constant 0 : index
      %c0_22 = arith.constant 0 : index
      %27 = vector.load %arg8[%c0_21, %c0_22] : memref<1x8xf32, #tpu.memory_space<vmem>>, vector<1x8xf32>
      tpu.vector_store %arg8[%c0_21, %c0_22], %26 {strides = array<i32>} : memref<1x8xf32, #tpu.memory_space<vmem>>, vector<1x8xf32>,
    } else {
    }
    %c0_4 = arith.constant 0 : index
    %c0_5 = arith.constant 0 : index
    %6 = vector.load %arg7[%c0_4, %c0_5] : memref<1x8xf32, #tpu.memory_space<vmem>>, vector<1x8xf32>
    %cst_6 = arith.constant dense<0.000000e+00> : vector<8xf32>
    %7 = vector.multi_reduction <add>, %2, %cst_6 [0] : vector<512x8xf32> to vector<8xf32>
    %8 = vector.shape_cast %7 : vector<8xf32> to vector<1x8xf32>
    %9 = arith.addf %6, %8 : vector<1x8xf32>
    %c0_7 = arith.constant 0 : index
    %c0_8 = arith.constant 0 : index
    %10 = vector.load %arg7[%c0_7, %c0_8] : memref<1x8xf32, #tpu.memory_space<vmem>>, vector<1x8xf32>
    tpu.vector_store %arg7[%c0_7, %c0_8], %9 {strides = array<i32>} : memref<1x8xf32, #tpu.memory_space<vmem>>, vector<1x8xf32>,
    %c0_9 = arith.constant 0 : index
    %c0_10 = arith.constant 0 : index
    %11 = vector.load %arg8[%c0_9, %c0_10] : memref<1x8xf32, #tpu.memory_space<vmem>>, vector<1x8xf32>
    %12 = arith.mulf %2, %2 : vector<512x8xf32>
    %cst_11 = arith.constant dense<0.000000e+00> : vector<8xf32>
    %13 = vector.multi_reduction <add>, %12, %cst_11 [0] : vector<512x8xf32> to vector<8xf32>
    %14 = vector.shape_cast %13 : vector<8xf32> to vector<1x8xf32>
    %15 = arith.addf %11, %14 : vector<1x8xf32>
    %c0_12 = arith.constant 0 : index
    %c0_13 = arith.constant 0 : index
    %16 = vector.load %arg8[%c0_12, %c0_13] : memref<1x8xf32, #tpu.memory_space<vmem>>, vector<1x8xf32>
    tpu.vector_store %arg8[%c0_12, %c0_13], %15 {strides = array<i32>} : memref<1x8xf32, #tpu.memory_space<vmem>>, vector<1x8xf32>,
    %17 = arith.index_cast %arg0 : i32 to index
    %c0_14 = arith.constant 0 : index
    %c0_15 = arith.constant 0 : index
    %18 = vector.load %arg6[%17, %c0_14, %c0_15] : memref<4x512x8xf32, #tpu.memory_space<vmem>>, vector<1x512x8xf32>
    %19 = vector.shape_cast %18 : vector<1x512x8xf32> to vector<512x8xf32>
    %20 = vector.shape_cast %2 : vector<512x8xf32> to vector<1x512x8xf32>
    tpu.vector_store %arg6[%17, %c0_14, %c0_15], %20 {strides = array<i32>} : memref<4x512x8xf32, #tpu.memory_space<vmem>>, vector<1x512x8xf32>,
    %c3_i32 = arith.constant 3 : i32
    %21 = arith.cmpi eq, %arg0, %c3_i32 : i32
    %22 = arith.extui %21 : i1 to i32
    %c0_i32_16 = arith.constant 0 : i32
    %23 = arith.cmpi ne, %22, %c0_i32_16 : i32
    scf.if %23 {
      %c0_17 = arith.constant 0 : index
      %c0_18 = arith.constant 0 : index
      %24 = vector.load %arg7[%c0_17, %c0_18] : memref<1x8xf32, #tpu.memory_space<vmem>>, vector<1x8xf32>
      %cst_19 = arith.constant 4.8828125E-4 : f32
      %25 = vector.broadcast %cst_19 : f32 to vector<1x8xf32>
      %26 = arith.mulf %24, %25 : vector<1x8xf32>
      %c0_20 = arith.constant 0 : index
      %c0_21 = arith.constant 0 : index
      %27 = vector.load %arg8[%c0_20, %c0_21] : memref<1x8xf32, #tpu.memory_space<vmem>>, vector<1x8xf32>
      %cst_22 = arith.constant 4.8828125E-4 : f32
      %28 = vector.broadcast %cst_22 : f32 to vector<1x8xf32>
      %29 = arith.mulf %27, %28 : vector<1x8xf32>
      %30 = arith.mulf %26, %26 : vector<1x8xf32>
      %31 = arith.subf %29, %30 : vector<1x8xf32>
      %c0_23 = arith.constant 0 : index
      %c0_24 = arith.constant 0 : index
      %32 = vector.load %arg3[%c0_23, %c0_24] : memref<1x8xf32, #tpu.memory_space<vmem>>, vector<1x8xf32>
      %cst_25 = arith.constant 9.99999974E-6 : f32
      %33 = vector.broadcast %cst_25 : f32 to vector<1x8xf32>
      %34 = arith.addf %31, %33 : vector<1x8xf32>
      %35 = math.rsqrt %34 : vector<1x8xf32>
      %36 = arith.mulf %32, %35 : vector<1x8xf32>
      %c0_26 = arith.constant 0 : index
      %c0_27 = arith.constant 0 : index
      %37 = vector.load %arg4[%c0_26, %c0_27] : memref<1x8xf32, #tpu.memory_space<vmem>>, vector<1x8xf32>
      %38 = arith.mulf %26, %36 : vector<1x8xf32>
      %39 = arith.subf %37, %38 : vector<1x8xf32>
      %c0_28 = arith.constant 0 : index
      %c0_29 = arith.constant 0 : index
      %c0_30 = arith.constant 0 : index
      %40 = vector.load %arg6[%c0_28, %c0_29, %c0_30] : memref<4x512x8xf32, #tpu.memory_space<vmem>>, vector<4x512x8xf32>
      %41 = vector.shape_cast %36 : vector<1x8xf32> to vector<1x1x8xf32>
      %42 = vector.broadcast %41 : vector<1x1x8xf32> to vector<4x512x8xf32>
      %43 = arith.mulf %40, %42 : vector<4x512x8xf32>
      %44 = vector.shape_cast %39 : vector<1x8xf32> to vector<1x1x8xf32>
      %45 = vector.broadcast %44 : vector<1x1x8xf32> to vector<4x512x8xf32>
      %46 = arith.addf %43, %45 : vector<4x512x8xf32>
      %cst_31 = arith.constant 0.000000e+00 : f32
      %47 = vector.broadcast %cst_31 : f32 to vector<4x512x8xf32>
      %48 = arith.maximumf %46, %47 : vector<4x512x8xf32>
      %49 = arith.truncf %48 : vector<4x512x8xf32> to vector<4x512x8xbf16>
      %c0_32 = arith.constant 0 : index
      %c0_33 = arith.constant 0 : index
      %c0_34 = arith.constant 0 : index
      %50 = vector.load %arg5[%c0_32, %c0_33, %c0_34] : memref<4x512x8xbf16, #tpu.memory_space<vmem>>, vector<4x512x8xbf16>
      tpu.vector_store %arg5[%c0_32, %c0_33, %c0_34], %49 {strides = array<i32>} : memref<4x512x8xbf16, #tpu.memory_space<vmem>>, vector<4x512x8xbf16>,
    } else {
    }
    return
  }
  func.func @transform_0(%arg0: i32) -> (i32, i32) {
    %c0_i32 = arith.constant 0 : i32
    %c0_i32_0 = arith.constant 0 : i32
    return %arg0, %c0_i32 : i32, i32
  }
  func.func @transform_1(%arg0: i32) -> (i32, i32) {
    %c0_i32 = arith.constant 0 : i32
    %c0_i32_0 = arith.constant 0 : i32
    return %arg0, %c0_i32 : i32, i32
  }
  func.func @transform_2(%arg0: i32) -> (i32, i32) {
    %c0_i32 = arith.constant 0 : i32
    %c0_i32_0 = arith.constant 0 : i32
    %c0_i32_1 = arith.constant 0 : i32
    return %c0_i32, %c0_i32_0 : i32, i32
  }
  func.func @transform_3(%arg0: i32) -> (i32, i32) {
    %c0_i32 = arith.constant 0 : i32
    %c0_i32_0 = arith.constant 0 : i32
    %c0_i32_1 = arith.constant 0 : i32
    return %c0_i32, %c0_i32_0 : i32, i32
  }
  func.func @transform_4(%arg0: i32) -> (i32, i32, i32) {
    %c0_i32 = arith.constant 0 : i32
    %c0_i32_0 = arith.constant 0 : i32
    %c0_i32_1 = arith.constant 0 : i32
    %c0_i32_2 = arith.constant 0 : i32
    return %c0_i32, %c0_i32_0, %c0_i32_1 : i32, i32, i32
  }
}

module attributes {stable_mosaic.version = 11 : i64} {
  func.func @_matmul_tanh_kernel(%arg0: i32, %arg1: memref<2048x32xbf16, #tpu.memory_space<vmem>>, %arg2: memref<32x3xbf16, #tpu.memory_space<vmem>>, %arg3: memref<2048x3xf32, #tpu.memory_space<vmem>>) attributes {dimension_semantics = [#tpu.dimension_semantics<parallel>], iteration_bounds = array<i64: 4>, scalar_prefetch = 0 : i64, scratch_operands = 0 : i64, tpu.core_type = #tpu.core_type<tc>, window_params = [{transform_indices = @transform_0, window_bounds = array<i64: 2048, 32>}, {transform_indices = @transform_1, window_bounds = array<i64: 32, 3>}, {transform_indices = @transform_2, window_bounds = array<i64: 2048, 3>}]} {
    %c0 = arith.constant 0 : index
    %c0_0 = arith.constant 0 : index
    %0 = vector.load %arg1[%c0, %c0_0] : memref<2048x32xbf16, #tpu.memory_space<vmem>>, vector<2048x32xbf16>
    %c0_1 = arith.constant 0 : index
    %c0_2 = arith.constant 0 : index
    %1 = vector.load %arg2[%c0_1, %c0_2] : memref<32x3xbf16, #tpu.memory_space<vmem>>, vector<32x3xbf16>
    %cst = arith.constant dense<0.000000e+00> : vector<2048x3xf32>
    %2 = tpu.matmul %0, %1, %cst {dimension_numbers = #tpu.dot_dimension_numbers<[1], [0], [0], [1], [0, 0, 1, 1], [], []>} : vector<2048x32xbf16>, vector<32x3xbf16>, vector<2048x3xf32> -> vector<2048x3xf32>
    %3 = math.tanh %2 : vector<2048x3xf32>
    %c0_3 = arith.constant 0 : index
    %c0_4 = arith.constant 0 : index
    %4 = vector.load %arg3[%c0_3, %c0_4] : memref<2048x3xf32, #tpu.memory_space<vmem>>, vector<2048x3xf32>
    tpu.vector_store %arg3[%c0_3, %c0_4], %3 {strides = array<i32>} : memref<2048x3xf32, #tpu.memory_space<vmem>>, vector<2048x3xf32>,
    return
  }
  func.func @transform_0(%arg0: i32) -> (i32, i32) {
    %c0_i32 = arith.constant 0 : i32
    %c0_i32_0 = arith.constant 0 : i32
    return %arg0, %c0_i32 : i32, i32
  }
  func.func @transform_1(%arg0: i32) -> (i32, i32) {
    %c0_i32 = arith.constant 0 : i32
    %c0_i32_0 = arith.constant 0 : i32
    return %arg0, %c0_i32 : i32, i32
  }
  func.func @transform_2(%arg0: i32) -> (i32, i32) {
    %c0_i32 = arith.constant 0 : i32
    %c0_i32_0 = arith.constant 0 : i32
    return %arg0, %c0_i32 : i32, i32
  }
}

</mosaic_0001>

<bundles_post_ra>
// kernel: tile.13
= control target key start
LH: loop header
LB: loop body
LE: loop exit
PB: predicated region body
PF: predicated region fallthrough
CT: control target
= control target key end

     0   :  { %s28_s0 = inlined_call_operand.vmem [shape: f32[64], index: 0, kind: input, shape index: {}]   ;;  %s29_s1 = inlined_call_operand.vmem [shape: f32[16,64], index: 1, kind: output, shape index: {}]  }
   0x1   :  { %v4_v0 = vld [vmem:[%s28_s0] ss:$0 sm:$0xff] }
   0x2   :  { %5 = vst [vmem:[%s29_s1] sm:$0xff] %v4_v0  ;;  %8 = vst [vmem:[%s29_s1 + $0x8] sm:$0xff] %v4_v0 }

// kernel: tile.14
= control target key start
LH: loop header
LB: loop body
LE: loop exit
PB: predicated region body
PF: predicated region fallthrough
CT: control target
= control target key end

     0   :  { %vm3_vm0 = vcmask 523264   ;;  %vm10_vm1 = vcmask 1048064   ;;  %s125_s0 = inlined_call_operand.vmem [shape: f32[16,64], index: 0, kind: input, shape index: {}]   ;;  %s126_s1 = inlined_call_operand.vmem [shape: f32[1,1024], index: 1, kind: output, shape index: {}]  }
   0x1   :  { %v75_v0 = vld [vmem:[%s125_s0 + $0x1] ss:$2 sm:$0xff]   ;;  %v2_v1 = vld [vmem:[%s125_s0] ss:$2 sm:$0xff]   ;;  %s84_s0 = smov 64  }
   0x2   :  { %8 = vrot.lane.b32.xlu0 %v75_v0, %s84_s0  ;;  %4 = vst.msk [vmem:[#allocation0] ss:$8 sm:$0xf] %vm3_vm0, %v2_v1   ;;  %5 = vst.msk [vmem:[#allocation0] ss:$8 sm:$0xf0] %vm3_vm0, %v2_v1  }
  0x74   :  { %v9_v2 = vpop.permute.xlu0 %8  }
  0x75   :  { %11 = vst.msk [vmem:[#allocation0] ss:$8 sm:$0xf] %vm10_vm1, %v9_v2   ;;  %12 = vst.msk [vmem:[#allocation0] ss:$8 sm:$0xf0] %vm10_vm1, %v9_v2  }
  0x7c   :  { %v17_v3 = vld [vmem:[#allocation0] sm:$0x1]  ;;  %v22_v4 = vld [vmem:[#allocation0 + $0x8] sm:$0x1]  ;;  %v28_v5 = vld [vmem:[#allocation0 + $0x10] sm:$0x1] }
  0x7d   :  { %20 = vst [vmem:[%s126_s1] sm:$0x1] %v17_v3  ;;  %76 = vst [vmem:[%s126_s1 + $0x1] sm:$0x1] %v22_v4  ;;  %v35_v6 = vld [vmem:[#allocation0 + $0x18] sm:$0x1] }
  0x7e   :  { %77 = vst [vmem:[%s126_s1 + $0x2] sm:$0x1] %v28_v5  ;;  %v42_v7 = vld [vmem:[#allocation0 + $0x20] sm:$0x1]  ;;  %v49_v8 = vld [vmem:[#allocation0 + $0x28] sm:$0x1] }
  0x7f   :  { %78 = vst [vmem:[%s126_s1 + $0x3] sm:$0x1] %v35_v6  ;;  %79 = vst [vmem:[%s126_s1 + $0x4] sm:$0x1] %v42_v7  ;;  %v56_v9 = vld [vmem:[#allocation0 + $0x30] sm:$0x1] }
  0x80   :  { %80 = vst [vmem:[%s126_s1 + $0x5] sm:$0x1] %v49_v8  ;;  %v63_v10 = vld [vmem:[#allocation0 + $0x38] sm:$0x1]  ;;  %81 = vst [vmem:[%s126_s1 + $0x6] sm:$0x1] %v56_v9 }
  0x81   :  { %82 = vst [vmem:[%s126_s1 + $0x7] sm:$0x1] %v63_v10 }

// kernel: generator_forward.7
= control target key start
LH: loop header
LB: loop body
LE: loop exit
PB: predicated region body
PF: predicated region fallthrough
CT: control target
= control target key end

     0   :  { %v18_v0 = vlaneseq  ;;  %v283_v1 = vmov 1983009808   ;;  %v284_v52 = vmov 1966171168   ;;  %s332_s1 = inlined_call_operand.vmem [shape: f32[1,1024], index: 1, kind: input, shape index: {}]   ;;  %s333_s2 = inlined_call_operand.vmem [shape: f32[1,1024], index: 2, kind: input, shape index: {}]   ;;  %s334_s0 = inlined_call_operand.vmem [shape: f32[2,1024], index: 0, kind: input, shape index: {}]   ;;  %s335_s3 = inlined_call_operand.vmem [shape: bf16[2,1024], index: 3, kind: output, shape index: {}]  }
   0x1   :  { %v53_v2 = vunpack.c.l.s4 %v283_v1  ;;  %v16_v4 = vld [vmem:[%s332_s1] sm:$0xff]  ;;  %v15_v44 = vld [vmem:[%s334_s0 + $0x8] sm:$0xff]  ;;  %v227_v53 = vunpack.c.l.s4 %v284_v52 }
   0x2   :  { %v305_v3 = vshrl.u32 %v18_v0, 7  ;;  %v88_v14 = vld [vmem:[%s333_s2] sm:$0xff] }
   0x3   :  { %v54_v5 = vunpack.c.0.s8 %v53_v2  ;;  %v14_v35 = vld [vmem:[%s334_s0] sm:$0xff]  ;;  %v228_v59 = vunpack.c.0.s8 %v227_v53 }
   0x4   :  { %v20_v6 = vsub.s32 0, %v305_v3  ;;  %v24_v7 = vsub.s32 1, %v305_v3  ;;  %v28_v8 = vsub.s32 2, %v305_v3  ;;  %v32_v9 = vsub.s32 3, %v305_v3 }
   0x5   :  { %v36_v10 = vsub.s32 4, %v305_v3  ;;  %v40_v11 = vsub.s32 5, %v305_v3  ;;  %v44_v12 = vsub.s32 6, %v305_v3  ;;  %v48_v13 = vsub.s32 7, %v305_v3 }
   0x6   :  { %v21_v15 = vrot.slane %v16_v4, %v20_v6  ;;  %v25_v16 = vrot.slane %v16_v4, %v24_v7  ;;  %v29_v17 = vrot.slane %v16_v4, %v28_v8  ;;  %v33_v18 = vrot.slane %v16_v4, %v32_v9 }
   0x7   :  { %v37_v19 = vrot.slane %v16_v4, %v36_v10  ;;  %v41_v20 = vrot.slane %v16_v4, %v40_v11  ;;  %v45_v21 = vrot.slane %v16_v4, %v44_v12  ;;  %v49_v22 = vrot.slane %v16_v4, %v48_v13 }
   0x8   :  { %v50_v23 = vcombine.low %v21_v15, %v25_v16  ;;  %v51_v24 = vcombine.low %v29_v17, %v33_v18  ;;  %v57_v25 = vsub.s32 %v54_v5, %v305_v3  ;;  %v93_v26 = vrot.slane %v88_v14, %v20_v6 }
   0x9   :  { %v67_v27 = vcombine.low %v37_v19, %v41_v20  ;;  %v68_v28 = vcombine.low %v45_v21, %v49_v22  ;;  %v97_v29 = vrot.slane %v88_v14, %v24_v7  ;;  %v101_v30 = vrot.slane %v88_v14, %v28_v8 }
   0xa   :  { %v58_v31 = vrot.slane %v50_v23, %v57_v25  ;;  %v65_v32 = vrot.slane %v51_v24, %v57_v25  ;;  %v105_v33 = vrot.slane %v88_v14, %v32_v9  ;;  %v109_v34 = vrot.slane %v88_v14, %v36_v10 }
   0xb   :  { %v75_v36 = vrot.slane %v67_v27, %v57_v25  ;;  %v82_v37 = vrot.slane %v68_v28, %v57_v25  ;;  %v113_v38 = vrot.slane %v88_v14, %v40_v11  ;;  %v117_v39 = vrot.slane %v88_v14, %v44_v12 }
   0xc   :  { %v66_v40 = vcombine.low %v58_v31, %v65_v32  ;;  %v121_v41 = vrot.slane %v88_v14, %v48_v13  ;;  %v122_v42 = vcombine.low %v93_v26, %v97_v29  ;;  %v123_v43 = vcombine.low %v101_v30, %v105_v33 }
   0xd   :  { %v83_v45 = vcombine.low %v75_v36, %v82_v37  ;;  %v139_v46 = vcombine.low %v109_v34, %v113_v38  ;;  %v231_v1 = vsub.s32 %v228_v59, %v305_v3 }
   0xe   :  { %v86_v47 = vmul.f32 %v66_v40, %v14_v35  ;;  %v130_v48 = vrot.slane %v122_v42, %v57_v25  ;;  %v137_v49 = vrot.slane %v123_v43, %v57_v25  ;;  %v140_v50 = vcombine.low %v117_v39, %v121_v41 }
   0xf   :  { %v147_v51 = vrot.slane %v139_v46, %v57_v25  ;;  %v87_v54 = vmul.f32 %v83_v45, %v15_v44 }
  0x10   :  { %v138_v55 = vcombine.low %v130_v48, %v137_v49  ;;  %v154_v56 = vrot.slane %v140_v50, %v57_v25 }
  0x12   :  { %v155_v57 = vcombine.low %v147_v51, %v154_v56  ;;  %v158_v58 = vadd.f32 %v138_v55, %v86_v47 }
  0x14   :  { %v159_v60 = vadd.f32 %v155_v57, %v87_v54  ;;  %v160_v61 = vmax.f32 %v158_v58, 0.0 }
  0x16   :  { %v161_v62 = vmax.f32 %v159_v60, 0.0  ;;  %v164_v63 = vcombine.high %v160_v61, %v160_v61  ;;  %v171_v0 = vrot.slane %v160_v61, %v57_v25 }
  0x18   :  { %v178_v2 = vrot.slane %v164_v63, %v57_v25  ;;  %v179_v4 = vcombine.high %v171_v0, %v171_v0  ;;  %v181_v5 = vcombine.high %v161_v62, %v161_v62  ;;  %v188_v6 = vrot.slane %v161_v62, %v57_v25 }
  0x1a   :  { %v180_v7 = vcombine.high %v178_v2, %v178_v2  ;;  %v195_v8 = vrot.slane %v181_v5, %v57_v25  ;;  %v196_v9 = vcombine.high %v188_v6, %v188_v6  ;;  %v277_v10 = vpack.c.bf16 %v179_v4, %v171_v0 }
  0x1c   :  { %v197_v11 = vcombine.high %v195_v8, %v195_v8  ;;  %v278_v12 = vpack.c.bf16 %v180_v7, %v178_v2  ;;  %v279_v13 = vpack.c.bf16 %v196_v9, %v188_v6  ;;  %v232_v14 = vrot.slane %v277_v10, %v231_v1 }
  0x1e   :  { %v280_v15 = vpack.c.bf16 %v197_v11, %v195_v8  ;;  %v239_v16 = vrot.slane %v278_v12, %v231_v1  ;;  %v246_v17 = vrot.slane %v279_v13, %v231_v1 }
  0x20   :  { %v253_v18 = vrot.slane %v280_v15, %v231_v1  ;;  %v254_v19 = vcombine.low %v232_v14, %v239_v16 }
  0x22   :  { %v255_v20 = vcombine.low %v246_v17, %v253_v18  ;;  %v262_v21 = vrot.slane %v254_v19, %v231_v1 }
  0x24   :  { %v269_v3 = vrot.slane %v255_v20, %v231_v1 }
  0x26   :  { %v270_v22 = vcombine.low %v262_v21, %v269_v3 }
  0x28   :  { %272 = vst [vmem:[%s335_s3] sm:$0xff] %v270_v22 }

// kernel: generator_forward.6
= control target key start
LH: loop header
LB: loop body
LE: loop exit
PB: predicated region body
PF: predicated region fallthrough
CT: control target
= control target key end

     0   :  { %vm30_vm0 = vcmask 1043456   ;;  %v845_v0 = vmov 0.0   ;;  %vm846_vm1 = vmmov 0   ;;  %vm26_vm2 = vcmask 64512   ;;  %s1043_s1 = inlined_call_operand.vmem [shape: bf16[8,16], index: 1, kind: input, shape index: {}]   ;;  %s1044_s0 = inlined_call_operand.vmem [shape: bf16[2,8], index: 0, kind: input, shape index: {}]   ;;  %s1045_s4 = inlined_call_operand.vmem [shape: bf16[16,1024], index: 4, kind: input, shape index: {}]   ;;  %s1046_s3 = inlined_call_operand.vmem [shape: bf16[16,1024], index: 3, kind: input, shape index: {}]   ;;  %s1047_s2 = inlined_call_operand.vmem [shape: bf16[2,16], index: 2, kind: input, shape index: {}]   ;;  %s1048_s5 = inlined_call_operand.vmem [shape: f32[2,1024], index: 5, kind: output, shape index: {0}]   ;;  %s1049_s6 = inlined_call_operand.vmem [shape: f32[1,1024], index: 6, kind: output, shape index: {1}]   ;;  %s1050_s7 = inlined_call_operand.vmem [shape: f32[1,1024], index: 7, kind: output, shape index: {2}]  }
   0x1   :  { %834 = vmatprep.subr.bf16.mxu0 %v845_v0  ;;  %v25_v1 = vld [vmem:[%s1043_s1] sm:$0xf]  ;;  %836 = vmatprep.mubr.msk.bf16.mxu0 %vm846_vm1, %v845_v0  ;;  %v88_v2 = vld [vmem:[%s1045_s4 + $0x8] sm:$0xff]  ;;  %v89_v12 = vld [vmem:[%s1045_s4 + $0x10] sm:$0xff]  ;;  %v847_v15 = vmov 0   ;;  %vm135_vm4 = vcmask 130048   ;;  %v523_v61 = vlaneseq }
   0x2   :  { %v32_v3 = vsel %vm30_vm0, %v25_v1, 0  ;;  %v92_v4 = vld [vmem:[%s1045_s4 + $0x28] sm:$0xff]  ;;  %v24_v5 = vld [vmem:[%s1044_s0] sm:$0x1]  ;;  %v93_v13 = vld [vmem:[%s1045_s4 + $0x30] sm:$0xff]  ;;  %171 = vmatprep.mubr.bf16.mxu1 %v847_v15  ;;  %vm556_vm5 = vcmask 1041408  }
   0x3   :  { %835 = vmatpush3.bf16.msra.mxu0 %v32_v3  ;;  %v810_v6 = vcombine.low %v88_v2, %v92_v4  ;;  %v811_v7 = vcombine.high %v88_v2, %v92_v4  ;;  %v87_v8 = vld [vmem:[%s1045_s4] sm:$0xff]  ;;  %v90_v14 = vld [vmem:[%s1045_s4 + $0x18] sm:$0xff]  ;;  %v812_v16 = vcombine.low %v89_v12, %v93_v13  ;;  %v813_v17 = vcombine.high %v89_v12, %v93_v13  ;;  %v79_v26 = vld [vmem:[%s1046_s3 + $0x8] sm:$0xff] }
   0x4   :  { %v91_v9 = vld [vmem:[%s1045_s4 + $0x20] sm:$0xff]  ;;  %v94_v18 = vld [vmem:[%s1045_s4 + $0x38] sm:$0xff]  ;;  %v83_v27 = vld [vmem:[%s1046_s3 + $0x28] sm:$0xff]  ;;  %v848_v59 = vmov 1983009808  }
   0x5   :  { %194 = vmatprep.subr.bf16.mxu0 %v811_v7  ;;  %v809_v10 = vcombine.high %v87_v8, %v91_v9  ;;  %v808_v11 = vcombine.low %v87_v8, %v91_v9  ;;  %v814_v19 = vcombine.low %v90_v14, %v94_v18  ;;  %v815_v20 = vcombine.high %v90_v14, %v94_v18  ;;  %v78_v23 = vld [vmem:[%s1046_s3] sm:$0xff]  ;;  %v80_v34 = vld [vmem:[%s1046_s3 + $0x10] sm:$0xff]  ;;  %v81_v36 = vld [vmem:[%s1046_s3 + $0x18] sm:$0xff] }
   0x6   :  { %837 = vmatmul.mubr.msk.bf16.vlgmr.msra.gmra.mxu0 %vm26_vm2, %v24_v5  ;;  %v82_v25 = vld [vmem:[%s1046_s3 + $0x20] sm:$0xff]  ;;  %v823_v32 = vcombine.high %v79_v26, %v83_v27  ;;  %v84_v35 = vld [vmem:[%s1046_s3 + $0x30] sm:$0xff]  ;;  %v85_v37 = vld [vmem:[%s1046_s3 + $0x38] sm:$0xff]  ;;  %v822_v39 = vcombine.low %v79_v26, %v83_v27  ;;  %v521_v60 = vunpack.c.l.s4 %v848_v59  ;;  %v963_v5 = vshrl.u32 %v523_v61, 7 }
   0x7   :  { %195 = vmatpush1.bf16.msra.mxu0 %v810_v6  ;;  %153 = vmatprep.subr.bf16.mxu1 %v809_v10  ;;  %v821_v31 = vcombine.high %v78_v23, %v82_v25  ;;  %v820_v38 = vcombine.low %v78_v23, %v82_v25  ;;  %v825_v40 = vcombine.high %v80_v34, %v84_v35  ;;  %v77_v44 = vld [vmem:[%s1047_s2] sm:$0x1]  ;;  %v849_v59 = vmov 1966171168  }
   0x8   :  { %154 = vmatpush1.bf16.msra.mxu1 %v808_v11  ;;  %212 = vmatprep.mubr.bf16.mxu0 %v847_v15  ;;  %v827_v41 = vcombine.high %v81_v36, %v85_v37  ;;  %v824_v42 = vcombine.low %v80_v34, %v84_v35  ;;  %v826_v43 = vcombine.low %v81_v36, %v85_v37  ;;  %v522_v4 = vunpack.c.0.s8 %v521_v60 }
   0x9   :  { %235 = vmatprep.subr.bf16.mxu1 %v813_v17  ;;  %276 = vmatprep.subr.bf16.mxu0 %v815_v20  ;;  %v626_v60 = vunpack.c.l.s4 %v849_v59 }
   0xa   :  { %v969_v17 = vsub.s32 %v522_v4, %v963_v5 }
  0xc6   :  { %v68_v21 = vpop.f32.mrf.mxu0 }
  0xc7   :  { %vm74_vm3 = vcmp.gt.f32.partialorder %v68_v21, 0.0  ;;  %v75_v22 = vmul.f32 0.2, %v68_v21 }
  0xc8   :  { %v838_v24 = vpop.f32.mrf.mxu0 }
  0xc9   :  { %v76_v28 = vsel %vm74_vm3, %v68_v21, %v75_v22 }
  0xca   :  { %v86_v29 = vpack.c.bf16 %v76_v28, %v76_v28  ;;  %v71_v30 = vpop.f32.mrf.mxu0 }
  0xcc   :  { %v839_v33 = vpop.f32.mrf.mxu0  ;;  %816 = vmatmul.mubr.msk.bf16.vlgmr.msra.gmra.mxu1 %vm135_vm4, %v86_v29  ;;  %817 = vmatmul.mubr.msk.bf16.vlgmr.msra.gmra.mxu0 %vm135_vm4, %v86_v29 }
  0xcd   :  { %236 = vmatpush1.bf16.msra.mxu1 %v812_v16  ;;  %277 = vmatpush1.bf16.msra.mxu0 %v814_v19 }
  0xce   :  { %253 = vmatprep.mubr.bf16.mxu1 %v847_v15  ;;  %294 = vmatprep.mubr.bf16.mxu0 %v847_v15 }
  0xcf   :  { %360 = vmatprep.subr.bf16.mxu1 %v821_v31  ;;  %401 = vmatprep.subr.bf16.mxu0 %v823_v32 }
  0xd4   :  { %818 = vmatmul.mubr.msk.bf16.vlgmr.msra.gmra.mxu1 %vm135_vm4, %v86_v29  ;;  %819 = vmatmul.mubr.msk.bf16.vlgmr.msra.gmra.mxu0 %vm135_vm4, %v86_v29 }
  0xd5   :  { %361 = vmatpush1.bf16.msra.mxu1 %v820_v38  ;;  %402 = vmatpush1.bf16.msra.mxu0 %v822_v39 }
  0xd6   :  { %378 = vmatprep.mubr.bf16.mxu1 %v847_v15  ;;  %419 = vmatprep.mubr.bf16.mxu0 %v847_v15 }
  0xd7   :  { %442 = vmatprep.subr.bf16.mxu1 %v825_v40  ;;  %483 = vmatprep.subr.bf16.mxu0 %v827_v41 }
  0xdc   :  { %828 = vmatmul.mubr.msk.bf16.vlgmr.msra.gmra.mxu1 %vm135_vm4, %v77_v44  ;;  %829 = vmatmul.mubr.msk.bf16.vlgmr.msra.gmra.mxu0 %vm135_vm4, %v77_v44 }
  0xdd   :  { %443 = vmatpush1.bf16.msra.mxu1 %v824_v42  ;;  %484 = vmatpush1.bf16.msra.mxu0 %v826_v43 }
  0xde   :  { %460 = vmatprep.mubr.bf16.mxu1 %v847_v15  ;;  %501 = vmatprep.mubr.bf16.mxu0 %v847_v15 }
  0xe4   :  { %830 = vmatmul.mubr.msk.bf16.vlgmr.msra.gmra.mxu1 %vm135_vm4, %v77_v44  ;;  %831 = vmatmul.mubr.msk.bf16.vlgmr.msra.gmra.mxu0 %vm135_vm4, %v77_v44 }
 0x18c   :  { %v173_v45 = vpop.f32.mrf.mxu1  ;;  %v214_v46 = vpop.f32.mrf.mxu0 }
 0x18e   :  { %v175_v47 = vpop.f32.mrf.mxu1  ;;  %v216_v48 = vpop.f32.mrf.mxu0 }
 0x190   :  { %v177_v49 = vpop.f32.mrf.mxu1  ;;  %v218_v50 = vpop.f32.mrf.mxu0 }
 0x192   :  { %v178_v51 = vpop.f32.mrf.mxu1  ;;  %v219_v52 = vpop.f32.mrf.mxu0 }
 0x194   :  { %v955_v53 = vpop.f32.mrf.mxu1  ;;  %v957_v54 = vpop.f32.mrf.mxu0 }
 0x196   :  { %v959_v55 = vpop.f32.mrf.mxu1  ;;  %v961_v56 = vpop.f32.mrf.mxu0 }
 0x198   :  { %v259_v57 = vpop.f32.mrf.mxu1  ;;  %v300_v58 = vpop.f32.mrf.mxu0 }
 0x19a   :  { %v260_v62 = vpop.f32.mrf.mxu1  ;;  %v301_v63 = vpop.f32.mrf.mxu0 }
 0x19c   :  { %v380_v0 = vpop.f32.mrf.mxu1  ;;  %v421_v1 = vpop.f32.mrf.mxu0 }
 0x19d   :  { %v381_v2 = vadd.f32 %v380_v0, %v173_v45  ;;  %v422_v3 = vadd.f32 %v421_v1, %v214_v46 }
 0x19e   :  { %v382_v6 = vpop.f32.mrf.mxu1  ;;  %v423_v7 = vpop.f32.mrf.mxu0 }
 0x19f   :  { %v557_v8 = vsel %vm556_vm5, %v381_v2, 0.0  ;;  %v672_v9 = vmul.f32 %v381_v2, %v381_v2  ;;  %v571_v10 = vsel %vm556_vm5, %v422_v3, 0.0  ;;  %v674_v11 = vmul.f32 %v422_v3, %v422_v3 }
 0x1a0   :  { %v383_v12 = vadd.f32 %v382_v6, %v175_v47  ;;  %v424_v13 = vadd.f32 %v423_v7, %v216_v48  ;;  %v384_v14 = vpop.f32.mrf.mxu1  ;;  %v425_v15 = vpop.f32.mrf.mxu0  ;;  %v558_v18 = vrot.slane %v557_v8, 4  ;;  %v572_v19 = vrot.slane %v571_v10, 4 }
 0x1a1   :  { %v680_v16 = vsel %vm556_vm5, %v672_v9, 0.0  ;;  %v694_v20 = vsel %vm556_vm5, %v674_v11, 0.0  ;;  %v627_v15 = vunpack.c.0.s8 %v626_v60 }
 0x1a2   :  { %v385_v21 = vpop.f32.mrf.mxu1  ;;  %v426_v22 = vpop.f32.mrf.mxu0  ;;  %v518_v23 = vcombine.low %v381_v2, %v383_v12  ;;  %v564_v24 = vsel %vm556_vm5, %v383_v12, 0.0  ;;  %v673_v25 = vmul.f32 %v383_v12, %v383_v12  ;;  %v519_v26 = vcombine.low %v422_v3, %v424_v13 }
 0x1a3   :  { %v681_v27 = vrot.slane %v680_v16, 4  ;;  %v695_v30 = vrot.slane %v694_v20, 4  ;;  %v565_v32 = vrot.slane %v564_v24, 4  ;;  %v559_v34 = vadd.f32 %v558_v18, %v557_v8 }
 0x1a4   :  { %v462_v28 = vpop.f32.mrf.mxu1  ;;  %v503_v29 = vpop.f32.mrf.mxu0  ;;  %v526_v31 = vrot.slane %v518_v23, %v969_v17  ;;  %v533_v33 = vrot.slane %v519_v26, %v969_v17  ;;  %v687_v35 = vsel %vm556_vm5, %v673_v25, 0.0  ;;  %v573_v38 = vadd.f32 %v572_v19, %v571_v10 }
 0x1a5   :  { %v566_v39 = vadd.f32 %v565_v32, %v564_v24  ;;  %v578_v41 = vsel %vm556_vm5, %v424_v13, 0.0  ;;  %v682_v42 = vadd.f32 %v681_v27, %v680_v16  ;;  %v696_v45 = vadd.f32 %v695_v30, %v694_v20 }
 0x1a6   :  { %v464_v36 = vpop.f32.mrf.mxu1  ;;  %v976_v37 = vpop.f32.mrf.mxu0  ;;  %v534_v40 = vcombine.low %v526_v31, %v533_v33  ;;  %v688_v46 = vrot.slane %v687_v35, 4  ;;  %v579_v47 = vrot.slane %v578_v41, 4  ;;  %v675_v48 = vmul.f32 %v424_v13, %v424_v13 }
 0x1a7   :  { %v567_v49 = vrot.slane %v566_v39, 2  ;;  %v560_v52 = vrot.slane %v559_v34, 2  ;;  %v574_v57 = vrot.slane %v573_v38, 2  ;;  %v463_v62 = vadd.f32 %v462_v28, %v955_v53 }
 0x1a8   :  { %v466_v43 = vpop.f32.mrf.mxu1  ;;  %v507_v44 = vpop.f32.mrf.mxu0  ;;  %554 = vst [vmem:[%s1048_s5] sm:$0xff] %v534_v40  ;;  %v701_v58 = vsel %vm556_vm5, %v675_v48, 0.0  ;;  %v580_v61 = vadd.f32 %v579_v47, %v578_v41  ;;  %v683_v63 = vrot.slane %v682_v42, 2  ;;  %v697_v0 = vrot.slane %v696_v45, 2 }
 0x1a9   :  { %v689_v1 = vadd.f32 %v688_v46, %v687_v35  ;;  %v985_v2 = vadd.f32 %v503_v29, %v957_v54  ;;  %v568_v3 = vadd.f32 %v567_v49, %v566_v39  ;;  %v702_v4 = vrot.slane %v701_v58, 4 }
 0x1aa   :  { %v467_v50 = vpop.f32.mrf.mxu1  ;;  %v508_v51 = vpop.f32.mrf.mxu0  ;;  %v585_v6 = vsel %vm556_vm5, %v463_v62, 0.0  ;;  %v676_v7 = vmul.f32 %v463_v62, %v463_v62  ;;  %v561_v8 = vadd.f32 %v560_v52, %v559_v34  ;;  %v575_v9 = vadd.f32 %v574_v57, %v573_v38 }
 0x1ab   :  { %v581_v10 = vrot.slane %v580_v61, 2  ;;  %v586_v11 = vrot.slane %v585_v6, 4  ;;  %v678_v53 = vmul.f32 %v985_v2, %v985_v2  ;;  %v684_v13 = vadd.f32 %v683_v63, %v682_v42 }
 0x1ac   :  { %v708_v12 = vsel %vm556_vm5, %v676_v7, 0.0  ;;  %v698_v14 = vadd.f32 %v697_v0, %v696_v45  ;;  %v599_v54 = vsel %vm556_vm5, %v985_v2, 0.0  ;;  %v569_v16 = vrot.slane %v568_v3, 1 }
 0x1ad   :  { %v690_v18 = vrot.slane %v689_v1, 2  ;;  %v703_v19 = vadd.f32 %v702_v4, %v701_v58  ;;  %v709_v20 = vrot.slane %v708_v12, 4  ;;  %v562_v21 = vrot.slane %v561_v8, 1 }
 0x1ae   :  { %v576_v22 = vrot.slane %v575_v9, 1  ;;  %v465_v23 = vadd.f32 %v464_v36, %v959_v55  ;;  %v582_v24 = vadd.f32 %v581_v10, %v580_v61  ;;  %v587_v25 = vadd.f32 %v586_v11, %v585_v6 }
 0x1af   :  { %v600_v26 = vrot.slane %v599_v54, 4  ;;  %v722_v27 = vsel %vm556_vm5, %v678_v53, 0.0  ;;  %v685_v28 = vrot.slane %v684_v13, 1  ;;  %v699_v29 = vrot.slane %v698_v14, 1 }
 0x1b0   :  { %v996_v30 = vsub.s32 %v627_v15, %v963_v5  ;;  %v998_v31 = vadd.f32 %v569_v16, %v568_v3  ;;  %v691_v32 = vadd.f32 %v690_v18, %v689_v1  ;;  %v704_v33 = vrot.slane %v703_v19, 2 }
 0x1b1   :  { %v710_v34 = vadd.f32 %v709_v20, %v708_v12  ;;  %v1000_v35 = vadd.f32 %v562_v21, %v561_v8  ;;  %v1002_v38 = vadd.f32 %v576_v22, %v575_v9  ;;  %v723_v55 = vrot.slane %v722_v27, 4 }
 0x1b2   :  { %v592_v36 = vsel %vm556_vm5, %v465_v23, 0.0  ;;  %v583_v39 = vrot.slane %v582_v24, 1  ;;  %v588_v40 = vrot.slane %v587_v25, 2  ;;  %v601_v41 = vadd.f32 %v600_v26, %v599_v54 }
 0x1b3   :  { %v535_v42 = vcombine.low %v463_v62, %v465_v23  ;;  %v1005_v43 = vadd.f32 %v685_v28, %v684_v13  ;;  %v1007_v5 = vadd.f32 %v699_v29, %v698_v14  ;;  %v593_v44 = vrot.slane %v592_v36, 4 }
 0x1b4   :  { %v677_v45 = vmul.f32 %v465_v23, %v465_v23  ;;  %v621_v46 = vcombine.low %v1000_v35, %v998_v31  ;;  %v692_v47 = vrot.slane %v691_v32, 1  ;;  %v705_v48 = vadd.f32 %v704_v33, %v703_v19 }
 0x1b5   :  { %v711_v49 = vrot.slane %v710_v34, 2  ;;  %v724_v50 = vadd.f32 %v723_v55, %v722_v27  ;;  %v594_v51 = vadd.f32 %v593_v44, %v592_v36  ;;  %v506_v57 = vadd.f32 %v976_v37, %v961_v56 }
 0x1b6   :  { %v715_v52 = vsel %vm556_vm5, %v677_v45, 0.0  ;;  %v584_v58 = vadd.f32 %v583_v39, %v582_v24  ;;  %v589_v59 = vadd.f32 %v588_v40, %v587_v25  ;;  %v602_v60 = vrot.slane %v601_v41, 2 }
 0x1b7   :  { %v543_v61 = vrot.slane %v535_v42, %v969_v17  ;;  %v595_v62 = vrot.slane %v594_v51, 2  ;;  %v716_v63 = vrot.slane %v715_v52, 4  ;;  %v536_v0 = vcombine.low %v985_v2, %v506_v57 }
 0x1b8   :  { %v606_v1 = vsel %vm556_vm5, %v506_v57, 0.0  ;;  %v706_v3 = vrot.slane %v705_v48, 1  ;;  %v712_v4 = vadd.f32 %v711_v49, %v710_v34  ;;  %v679_v7 = vmul.f32 %v506_v57, %v506_v57 }
 0x1b9   :  { %v607_v6 = vrot.slane %v606_v1, 4  ;;  %v725_v8 = vrot.slane %v724_v50, 2  ;;  %v596_v9 = vadd.f32 %v595_v62, %v594_v51  ;;  %v717_v10 = vadd.f32 %v716_v63, %v715_v52 }
 0x1ba   :  { %v550_v56 = vrot.slane %v536_v0, %v969_v17  ;;  %v590_v37 = vrot.slane %v589_v59, 1  ;;  %v603_v11 = vadd.f32 %v602_v60, %v601_v41  ;;  %v729_v53 = vsel %vm556_vm5, %v679_v7, 0.0 }
 0x1bb   :  { %v608_v12 = vadd.f32 %v607_v6, %v606_v1  ;;  %v597_v13 = vrot.slane %v596_v9, 1  ;;  %v718_v14 = vrot.slane %v717_v10, 2  ;;  %v730_v2 = vrot.slane %v729_v53, 4 }
 0x1bc   :  { %v551_v15 = vcombine.low %v543_v61, %v550_v56  ;;  %v693_v54 = vadd.f32 %v692_v47, %v691_v32  ;;  %v707_v16 = vadd.f32 %v706_v3, %v705_v48  ;;  %v713_v18 = vrot.slane %v712_v4, 1 }
 0x1bd   :  { %v609_v19 = vrot.slane %v608_v12, 2  ;;  %v726_v20 = vadd.f32 %v725_v8, %v724_v50  ;;  %v598_v21 = vadd.f32 %v597_v13, %v596_v9  ;;  %v719_v22 = vadd.f32 %v718_v14, %v717_v10 }
 0x1be   :  { %555 = vst [vmem:[%s1048_s5 + $0x8] sm:$0xff] %v551_v15  ;;  %v731_v17 = vadd.f32 %v730_v2, %v729_v53  ;;  %v622_v23 = vcombine.low %v1002_v38, %v584_v58  ;;  %v591_v24 = vadd.f32 %v590_v37, %v589_v59  ;;  %v604_v25 = vrot.slane %v603_v11, 1 }
 0x1bf   :  { %v610_v26 = vadd.f32 %v609_v19, %v608_v12  ;;  %v720_v27 = vrot.slane %v719_v22, 1  ;;  %v744_v29 = vcombine.low %v1005_v43, %v693_v54  ;;  %v745_v31 = vcombine.low %v1007_v5, %v707_v16 }
 0x1c0   :  { %v732_v28 = vrot.slane %v731_v17, 2  ;;  %v623_v32 = vcombine.low %v591_v24, %v598_v21  ;;  %v714_v34 = vadd.f32 %v713_v18, %v712_v4  ;;  %v727_v35 = vrot.slane %v726_v20, 1 }
 0x1c1   :  { %v611_v33 = vrot.slane %v610_v26, 1  ;;  %v721_v55 = vadd.f32 %v720_v27, %v719_v22  ;;  %v631_v39 = vrot.slane %v621_v46, %v996_v30  ;;  %v638_v40 = vrot.slane %v622_v23, %v996_v30 }
 0x1c2   :  { %v733_v36 = vadd.f32 %v732_v28, %v731_v17  ;;  %v605_v38 = vadd.f32 %v604_v25, %v603_v11  ;;  %v645_v45 = vrot.slane %v623_v32, %v996_v30  ;;  %v754_v43 = vrot.slane %v744_v29, %v996_v30 }
 0x1c3   :  { %v612_v41 = vadd.f32 %v611_v33, %v610_v26  ;;  %v746_v42 = vcombine.low %v714_v34, %v721_v55  ;;  %v761_v5 = vrot.slane %v745_v31, %v996_v30  ;;  %v728_v48 = vadd.f32 %v727_v35, %v726_v20 }
 0x1c4   :  { %v734_v44 = vrot.slane %v733_v36, 1  ;;  %v653_v50 = vcombine.low %v631_v39, %v638_v40 }
 0x1c5   :  { %v624_v47 = vcombine.low %v605_v38, %v612_v41  ;;  %v768_v46 = vrot.slane %v746_v42, %v996_v30  ;;  %v776_v58 = vcombine.low %v754_v43, %v761_v5 }
 0x1c6   :  { %v735_v49 = vadd.f32 %v734_v44, %v733_v36  ;;  %v661_v60 = vrot.slane %v653_v50, %v996_v30 }
 0x1c7   :  { %v652_v51 = vrot.slane %v624_v47, %v996_v30  ;;  %v784_v0 = vrot.slane %v776_v58, %v996_v30 }
 0x1c8   :  { %v747_v52 = vcombine.low %v728_v48, %v735_v49 }
 0x1c9   :  { %v654_v57 = vcombine.low %v645_v45, %v652_v51 }
 0x1ca   :  { %v775_v59 = vrot.slane %v747_v52, %v996_v30 }
 0x1cb   :  { %v668_v61 = vrot.slane %v654_v57, %v996_v30 }
 0x1cc   :  { %v777_v62 = vcombine.low %v768_v46, %v775_v59 }
 0x1cd   :  { %v669_v63 = vcombine.low %v661_v60, %v668_v61 }
 0x1ce   :  { %v791_v1 = vrot.slane %v777_v62, %v996_v30 }
 0x1cf   :  { %671 = vst [vmem:[%s1049_s6] sm:$0xff] %v669_v63 }
 0x1d0   :  { %v792_v3 = vcombine.low %v784_v0, %v791_v1 }
 0x1d2   :  { %794 = vst [vmem:[%s1050_s7] sm:$0xff] %v792_v3 }

// kernel: generator_forward.8
= control target key start
LH: loop header
LB: loop body
LE: loop exit
PB: predicated region body
PF: predicated region fallthrough
CT: control target
= control target key end

     0   :  { %s857_s15 = smov 0   ;;  %s1003_s0 = inlined_call_operand.vmem [shape: bf16[128,256], index: 0, kind: input, shape index: {}]   ;;  %s1004_s1 = inlined_call_operand.vmem [shape: bf16[1024,32], index: 1, kind: input, shape index: {}]   ;;  %s1005_s2 = inlined_call_operand.vmem [shape: f32[1,32], index: 2, kind: input, shape index: {}]   ;;  %s1006_s3 = inlined_call_operand.vmem [shape: f32[1,32], index: 3, kind: input, shape index: {}]   ;;  %s1007_s4 = inlined_call_operand.vmem [shape: bf16[4,32,32], index: 4, kind: output, shape index: {}]  }
   0x1 LB: > { %s863_s16 = sadd.s32 4294967295, %s829_s15   ;;  %p682_p0 = scmp.ge.s32.totalorder %s829_s15, 1  ;;  %s829_s15 = sphi %s857_s15, %s14_s15  }
   0x2   : > { %p170_p1 = scmp.lt.s32.totalorder %s829_s15, 5 }
   0x4   : > { %p171_p2 = pnand %p682_p0, %p170_p1 }
   0x5   : > { %s868_s17 = sshll.u32 (!%p171_p2), %s863_s16, 5  ;;  %s683_s23 = sshll.u32 (!%p171_p2), %s863_s16, 2 }
   0x6   : > { %174 = sbr.rel (%p171_p2) target bundleno = 327 (0x147), region = 36  ;;  %p205_p3 = scmp.lt.s32.totalorder (!%p171_p2), %s868_s17, 127 }
   0x7   : > { %p198_p4 = scmp.lt.s32.totalorder (!%p171_p2), %s683_s23, 15  ;;  %p708_p5 = scmp.ne.s32.totalorder (!%p171_p2), %s863_s16, 0 }
   0xb   : > { %s206_s18 = scalar_select %p205_p3, %s868_s17, 127 }
   0xc   : > { %s1009_s23 = smov (!%p198_p4, %s683_s23), 15 }
   0xd   : > { %s687_s19 = sshll.u32 %s206_s18, 2  ;;  %s729_s24 = sshll.u32 %s1009_s23, 3 }
   0xe   : > { %s875_s22 = scalar_lea.vmem %s1004_s1, %s687_s19  ;;  %s202_s27 = scalar_lea.vmem %s1003_s0, %s729_s24 }
   0xf   : > { %v799_v0 = vld [vmem:[%s875_s22 + $0x78] sm:$0xff]   ;;  %v801_v2 = vld [vmem:[%s875_s22 + $0x70] sm:$0xff]   ;;  %v803_v4 = vld [vmem:[%s875_s22 + $0x68] sm:$0xff]  }
  0x10   : > { %v800_v1 = vld [vmem:[%s875_s22 + $0x38] sm:$0xff]   ;;  %746 = vmatprep.subr.bf16.mxu0 %v799_v0  ;;  %774 = vmatprep.subr.bf16.mxu1 %v799_v0  ;;  %v802_v3 = vld [vmem:[%s875_s22 + $0x30] sm:$0xff]   ;;  %v804_v5 = vld [vmem:[%s875_s22 + $0x28] sm:$0xff]  }
  0x11   : > { %747 = vmatpush3.bf16.msra.mxu0 %v800_v1  ;;  %782 = vmatpush3.bf16.msra.mxu1 %v800_v1  ;;  %v805_v6 = vld [vmem:[%s875_s22 + $0x60] sm:$0xff]   ;;  %v807_v8 = vld [vmem:[%s875_s22 + $0x58] sm:$0xff]   ;;  %v809_v10 = vld [vmem:[%s875_s22 + $0x50] sm:$0xff]  }
  0x12   : > { %748 = vmatprep.subr.bf16.mxu0 %v801_v2  ;;  %775 = vmatprep.subr.bf16.mxu1 %v801_v2  ;;  %v806_v7 = vld [vmem:[%s875_s22 + $0x20] sm:$0xff]   ;;  %v808_v9 = vld [vmem:[%s875_s22 + $0x18] sm:$0xff]   ;;  %v810_v13 = vld [vmem:[%s875_s22 + $0x10] sm:$0xff]  }
  0x13   : > { %v817_v11 = vld [vmem:[%s202_s27 + $0x4] ss:$8 sps:$4 sm:$0xff]   ;;  %v820_v12 = vld [vmem:[%s202_s27 + $0x14] ss:$8 sps:$4 sm:$0xff]   ;;  %v815_v18 = vld [vmem:[%s202_s27] ss:$8 sps:$4 sm:$0xff]  }
  0x14   : > { %v811_v14 = vld [vmem:[%s875_s22 + $0x48] sm:$0xff]   ;;  %395 = vmatprep.mubr.bf16.mxu0 %v817_v11  ;;  %403 = vmatprep.mubr.bf16.mxu1 %v820_v12  ;;  %v813_v16 = vld [vmem:[%s875_s22 + $0x40] sm:$0xff]   ;;  %v818_v19 = vld [vmem:[%s202_s27 + $0x10] ss:$8 sps:$4 sm:$0xff]  }
  0x15   : > { %749 = vmatpush3.bf16.msra.mxu0 %v802_v3  ;;  %783 = vmatpush3.bf16.msra.mxu1 %v802_v3  ;;  %v812_v15 = vld [vmem:[%s875_s22 + $0x8] sm:$0xff]   ;;  %v814_v17 = vld [vmem:[%s875_s22] sm:$0xff]  }
  0x16   : > { %750 = vmatprep.subr.bf16.mxu0 %v803_v4  ;;  %776 = vmatprep.subr.bf16.mxu1 %v803_v4 }
  0x19   : > { %751 = vmatpush3.bf16.msra.mxu0 %v804_v5  ;;  %784 = vmatpush3.bf16.msra.mxu1 %v804_v5 }
  0x1a   : > { %752 = vmatprep.subr.bf16.mxu0 %v805_v6  ;;  %777 = vmatprep.subr.bf16.mxu1 %v805_v6 }
  0x1d   : > { %753 = vmatpush3.bf16.msra.mxu0 %v806_v7  ;;  %785 = vmatpush3.bf16.msra.mxu1 %v806_v7 }
  0x1e   : > { %754 = vmatprep.subr.bf16.mxu0 %v807_v8  ;;  %778 = vmatprep.subr.bf16.mxu1 %v807_v8 }
  0x21   : > { %755 = vmatpush3.bf16.msra.mxu0 %v808_v9  ;;  %786 = vmatpush3.bf16.msra.mxu1 %v808_v9 }
  0x22   : > { %756 = vmatprep.subr.bf16.mxu0 %v809_v10  ;;  %779 = vmatprep.subr.bf16.mxu1 %v809_v10 }
  0x25   : > { %757 = vmatpush3.bf16.msra.mxu0 %v810_v13  ;;  %787 = vmatpush3.bf16.msra.mxu1 %v810_v13 }
  0x26   : > { %758 = vmatprep.subr.bf16.mxu0 %v811_v14  ;;  %780 = vmatprep.subr.bf16.mxu1 %v811_v14 }
  0x29   : > { %759 = vmatpush3.bf16.msra.mxu0 %v812_v15  ;;  %788 = vmatpush3.bf16.msra.mxu1 %v812_v15 }
  0x2a   : > { %760 = vmatprep.subr.bf16.mxu0 %v813_v16  ;;  %781 = vmatprep.subr.bf16.mxu1 %v813_v16 }
  0x2d   : > { %761 = vmatpush3.bf16.msra.mxu0 %v814_v17  ;;  %789 = vmatpush3.bf16.msra.mxu1 %v814_v17 }
  0x30   : > { %396 = vmatmul.mubr.bf16.vlgmr.msra.gmra.mxu0 %v815_v18  ;;  %404 = vmatmul.mubr.bf16.vlgmr.msra.gmra.mxu1 %v818_v19 }
  0xf0   : > { %v762_v20 = vpop.f32.mrf.mxu0  ;;  %v768_v21 = vpop.f32.mrf.mxu1 }
  0xf2   : > { %v763_v22 = vpop.f32.mrf.mxu0  ;;  %v769_v23 = vpop.f32.mrf.mxu1 }
  0xf3   : > { %v764_v24 = vadd.f32 %v763_v22, %v762_v20  ;;  %v770_v25 = vadd.f32 %v769_v23, %v768_v21  ;;  %415 = sbr.rel (%p708_p5) target bundleno = 250 (0xfa), region = 40 }
  0xf4   : > { %v765_v26 = vpop.f32.mrf.mxu0  ;;  %v771_v27 = vpop.f32.mrf.mxu1 }
  0xf6   : > { %v766_v28 = vpop.f32.mrf.mxu0  ;;  %v772_v29 = vpop.f32.mrf.mxu1 }
  0xf7   : > { %v767_v30 = vadd.f32 %v766_v28, %v765_v26  ;;  %v773_v31 = vadd.f32 %v772_v29, %v771_v27 }
  0xf8   : > { %vm416_vm0 = vcmask 253952   ;;  %v831_v32 = vmov 0.0  }
  0xf9   : > { %417 = vst.msk [vmem:[#allocation3] sm:$0x1] %vm416_vm0, %v831_v32  ;;  %418 = vst.msk [vmem:[#allocation4] sm:$0x1] %vm416_vm0, %v831_v32 }
  0xfa PF: > { %vm420_vm1 = vcmask 261120   ;;  %v438_v33 = vmul.f32 %v764_v24, %v764_v24  ;;  %v439_v34 = vmul.f32 %v767_v30, %v767_v30  ;;  %v440_v39 = vmul.f32 %v770_v25, %v770_v25  ;;  %s458_s28 = scalar_lea.vmem [#allocation2], %s868_s17  ;;  %p710_p6 = scmp.ne.s32.totalorder %s863_s16, 3 }
  0xfb   : > { %v421_v35 = vsel %vm420_vm1, %v764_v24, 0.0  ;;  %v422_v36 = vsel %vm420_vm1, %v767_v30, 0.0  ;;  %v424_v37 = vsel %vm420_vm1, %v770_v25, 0.0  ;;  %v441_v40 = vmul.f32 %v773_v31, %v773_v31  ;;  %459 = vst.msk [vmem:[%s458_s28] sm:$0xff] %vm420_vm1, %v764_v24  ;;  %460 = vst.msk [vmem:[%s458_s28 + $0x8] sm:$0xff] %vm420_vm1, %v767_v30 }
  0xfc   : > { %v423_v38 = vadd.f32 %v422_v36, %v421_v35  ;;  %v442_v41 = vsel %vm420_vm1, %v438_v33, 0.0  ;;  %461 = vst.msk [vmem:[%s458_s28 + $0x10] sm:$0xff] %vm420_vm1, %v770_v25  ;;  %462 = vst.msk [vmem:[%s458_s28 + $0x18] sm:$0xff] %vm420_vm1, %v773_v31  ;;  %v426_v42 = vsel %vm420_vm1, %v773_v31, 0.0  ;;  %v443_v43 = vsel %vm420_vm1, %v439_v34, 0.0 }
  0xfd   : > { %v444_v45 = vadd.f32 %v443_v43, %v442_v41  ;;  %v445_v46 = vsel %vm420_vm1, %v440_v39, 0.0  ;;  %v447_v47 = vsel %vm420_vm1, %v441_v40, 0.0  ;;  %vm435_vm2 = vcmask 253952  }
  0xfe   : > { %v425_v44 = vadd.f32 %v424_v37, %v423_v38 }
  0xff   : > { %v446_v49 = vadd.f32 %v445_v46, %v444_v45 }
 0x100   : > { %v427_v48 = vadd.f32 %v426_v42, %v425_v44  ;;  %v419_v60 = vld [vmem:[#allocation3] sm:$0x1]  ;;  %v437_v63 = vld [vmem:[#allocation4] sm:$0x1] }
 0x101   : > { %v448_v51 = vadd.f32 %v447_v47, %v446_v49 }
 0x102   : > { %v428_v50 = vrot.slane %v427_v48, 4 }
 0x103   : > { %v449_v53 = vrot.slane %v448_v51, 4 }
 0x104   : > { %v429_v52 = vadd.f32 %v428_v50, %v427_v48 }
 0x105   : > { %v450_v55 = vadd.f32 %v449_v53, %v448_v51 }
 0x106   : > { %v430_v54 = vrot.slane %v429_v52, 2 }
 0x107   : > { %v451_v57 = vrot.slane %v450_v55, 2 }
 0x108   : > { %v431_v56 = vadd.f32 %v430_v54, %v429_v52 }
 0x109   : > { %v452_v59 = vadd.f32 %v451_v57, %v450_v55 }
 0x10a   : > { %v432_v58 = vrot.slane %v431_v56, 1 }
 0x10b   : > { %v453_v62 = vrot.slane %v452_v59, 1 }
 0x10c   : > { %v433_v61 = vadd.f32 %v432_v58, %v431_v56 }
 0x10d   : > { %v454_v1 = vadd.f32 %v453_v62, %v452_v59  ;;  %466 = sbr.rel (%p710_p6) target bundleno = 327 (0x147), region = 44 }
 0x10e   : > { %v434_v0 = vadd.f32 %v433_v61, %v419_v60 }
 0x10f   : > { %v455_v2 = vadd.f32 %v454_v1, %v437_v63 }
 0x110   : > { %436 = vst.msk [vmem:[#allocation3] sm:$0x1] %vm435_vm2, %v434_v0 }
 0x111   : > { %456 = vst.msk [vmem:[#allocation4] sm:$0x1] %vm435_vm2, %v455_v2 }
 0x112   : > { %v497_v10 = vlaneseq  ;;  %v473_v12 = vld [vmem:[%s1005_s2] sm:$0x1]  ;;  %v481_v18 = vld [vmem:[#allocation2 + $0x8] sm:$0xff]  ;;  %v482_v19 = vld [vmem:[#allocation2 + $0x10] sm:$0xff]  ;;  %vm620_vm3 = vcmask 257024  }
 0x113   : > { %v477_v16 = vld [vmem:[%s1006_s3] sm:$0x1]  ;;  %v483_v20 = vld [vmem:[#allocation2 + $0x18] sm:$0xff]  ;;  %v485_v24 = vld [vmem:[#allocation2 + $0x28] sm:$0xff] }
 0x114   : > { %v498_v11 = vshrl.u32 %v497_v10, 7  ;;  %v480_v17 = vld [vmem:[#allocation2] sm:$0xff]  ;;  %v486_v25 = vld [vmem:[#allocation2 + $0x30] sm:$0xff]  ;;  %v487_v26 = vld [vmem:[#allocation2 + $0x38] sm:$0xff] }
 0x115   : > { %v484_v21 = vld [vmem:[#allocation2 + $0x20] sm:$0xff]  ;;  %v489_v28 = vld [vmem:[#allocation2 + $0x48] sm:$0xff]  ;;  %v490_v29 = vld [vmem:[#allocation2 + $0x50] sm:$0xff] }
 0x116   : > { %v499_v13 = vsub.s32 0, %v498_v11  ;;  %v488_v27 = vld [vmem:[#allocation2 + $0x40] sm:$0xff]  ;;  %v491_v34 = vld [vmem:[#allocation2 + $0x58] sm:$0xff]  ;;  %v493_v36 = vld [vmem:[#allocation2 + $0x68] sm:$0xff] }
 0x117   : > { %v467_v3 = vld [vmem:[#allocation3] sm:$0x1] }
 0x118   : > { %v469_v4 = vld [vmem:[#allocation4] sm:$0x1]  ;;  %v468_v5 = vmul.f32 0.0078125, %v467_v3 }
 0x119   : > { %v470_v6 = vmul.f32 0.0078125, %v469_v4  ;;  %v492_v35 = vld [vmem:[#allocation2 + $0x60] sm:$0xff] }
 0x11a   : > { %v471_v7 = vmul.f32 %v468_v5, %v468_v5 }
 0x11c   : > { %v472_v8 = vsub.f32 %v470_v6, %v471_v7  ;;  %v495_v6 = vld [vmem:[#allocation2 + $0x78] sm:$0xff] }
 0x11e   : > { %v474_v9 = vadd.f32 1e-05, %v472_v8 }
 0x120   : > { %821 = vrsqrt.f32 %v474_v9 }
 0x12d   : > { %v822_v14 = vpop.eup %821 }
 0x12e   : > { %v476_v15 = vmul.f32 %v822_v14, %v473_v12 }
 0x130   : > { %v478_v22 = vmul.f32 %v476_v15, %v468_v5  ;;  %v918_v23 = vrot.slane %v476_v15, %v499_v13  ;;  %v494_v5 = vld [vmem:[#allocation2 + $0x70] sm:$0xff] }
 0x132   : > { %v479_v30 = vsub.f32 %v477_v16, %v478_v22  ;;  %v502_v31 = vmul.f32 %v918_v23, %v480_v17  ;;  %v503_v32 = vmul.f32 %v918_v23, %v481_v18  ;;  %v504_v33 = vmul.f32 %v918_v23, %v482_v19 }
 0x133   : > { %v505_v37 = vmul.f32 %v918_v23, %v483_v20  ;;  %v506_v38 = vmul.f32 %v918_v23, %v484_v21  ;;  %v507_v39 = vmul.f32 %v918_v23, %v485_v24  ;;  %v508_v40 = vmul.f32 %v918_v23, %v486_v25 }
 0x134   : > { %v522_v41 = vrot.slane %v479_v30, %v499_v13  ;;  %v509_v42 = vmul.f32 %v918_v23, %v487_v26  ;;  %v510_v43 = vmul.f32 %v918_v23, %v488_v27  ;;  %v511_v44 = vmul.f32 %v918_v23, %v489_v28 }
 0x135   : > { %v512_v45 = vmul.f32 %v918_v23, %v490_v29  ;;  %v513_v46 = vmul.f32 %v918_v23, %v491_v34  ;;  %v514_v47 = vmul.f32 %v918_v23, %v492_v35  ;;  %v515_v48 = vmul.f32 %v918_v23, %v493_v36 }
 0x136   : > { %v524_v49 = vadd.f32 %v522_v41, %v502_v31  ;;  %v525_v50 = vadd.f32 %v522_v41, %v503_v32  ;;  %v526_v51 = vadd.f32 %v522_v41, %v504_v33  ;;  %v527_v52 = vadd.f32 %v522_v41, %v505_v37 }
 0x137   : > { %v528_v53 = vadd.f32 %v522_v41, %v506_v38  ;;  %v529_v54 = vadd.f32 %v522_v41, %v507_v39  ;;  %v530_v55 = vadd.f32 %v522_v41, %v508_v40  ;;  %v531_v56 = vadd.f32 %v522_v41, %v509_v42 }
 0x138   : > { %v540_v57 = vmax.f32 %v524_v49, 0.0  ;;  %v541_v58 = vmax.f32 %v525_v50, 0.0  ;;  %v542_v59 = vmax.f32 %v526_v51, 0.0  ;;  %v543_v60 = vmax.f32 %v527_v52, 0.0 }
 0x139   : > { %v544_v61 = vmax.f32 %v528_v53, 0.0  ;;  %v545_v62 = vmax.f32 %v529_v54, 0.0  ;;  %v546_v63 = vmax.f32 %v530_v55, 0.0  ;;  %v547_v0 = vmax.f32 %v531_v56, 0.0 }
 0x13a   : > { %v730_v1 = vpack.c.bf16 %v540_v57, %v540_v57  ;;  %v731_v2 = vpack.c.bf16 %v541_v58, %v541_v58  ;;  %v732_v3 = vpack.c.bf16 %v542_v59, %v542_v59  ;;  %v733_v4 = vpack.c.bf16 %v543_v60, %v543_v60 }
 0x13b   : > { %v734_v7 = vpack.c.bf16 %v544_v61, %v544_v61  ;;  %v735_v8 = vpack.c.bf16 %v545_v62, %v545_v62  ;;  %v736_v9 = vpack.c.bf16 %v546_v63, %v546_v63  ;;  %v737_v10 = vpack.c.bf16 %v547_v0, %v547_v0 }
 0x13c   : > { %621 = vst.msk [vmem:[%s1007_s4] sm:$0xf] %vm620_vm3, %v730_v1  ;;  %622 = vst.msk [vmem:[%s1007_s4 + $0x4] sm:$0xf] %vm620_vm3, %v731_v2  ;;  %v532_v11 = vadd.f32 %v522_v41, %v510_v43  ;;  %v533_v12 = vadd.f32 %v522_v41, %v511_v44  ;;  %v534_v13 = vadd.f32 %v522_v41, %v512_v45 }
 0x13d   : > { %623 = vst.msk [vmem:[%s1007_s4 + $0x8] sm:$0xf] %vm620_vm3, %v732_v3  ;;  %624 = vst.msk [vmem:[%s1007_s4 + $0xc] sm:$0xf] %vm620_vm3, %v733_v4  ;;  %v535_v14 = vadd.f32 %v522_v41, %v513_v46  ;;  %v536_v15 = vadd.f32 %v522_v41, %v514_v47  ;;  %v537_v16 = vadd.f32 %v522_v41, %v515_v48 }
 0x13e   : > { %625 = vst.msk [vmem:[%s1007_s4 + $0x10] sm:$0xf] %vm620_vm3, %v734_v7  ;;  %626 = vst.msk [vmem:[%s1007_s4 + $0x14] sm:$0xf] %vm620_vm3, %v735_v8  ;;  %v516_v17 = vmul.f32 %v918_v23, %v494_v5  ;;  %v517_v18 = vmul.f32 %v918_v23, %v495_v6  ;;  %v548_v19 = vmax.f32 %v532_v11, 0.0  ;;  %v549_v20 = vmax.f32 %v533_v12, 0.0 }
 0x13f   : > { %627 = vst.msk [vmem:[%s1007_s4 + $0x18] sm:$0xf] %vm620_vm3, %v736_v9  ;;  %628 = vst.msk [vmem:[%s1007_s4 + $0x1c] sm:$0xf] %vm620_vm3, %v737_v10  ;;  %v550_v21 = vmax.f32 %v534_v13, 0.0  ;;  %v551_v22 = vmax.f32 %v535_v14, 0.0 }
 0x140   : > { %v552_v24 = vmax.f32 %v536_v15, 0.0  ;;  %v553_v25 = vmax.f32 %v537_v16, 0.0  ;;  %v538_v26 = vadd.f32 %v522_v41, %v516_v17  ;;  %v539_v27 = vadd.f32 %v522_v41, %v517_v18 }
 0x141   : > { %v738_v28 = vpack.c.bf16 %v548_v19, %v548_v19  ;;  %v739_v29 = vpack.c.bf16 %v549_v20, %v549_v20  ;;  %v740_v30 = vpack.c.bf16 %v550_v21, %v550_v21  ;;  %v741_v31 = vpack.c.bf16 %v551_v22, %v551_v22 }
 0x142   : > { %v742_v32 = vpack.c.bf16 %v552_v24, %v552_v24  ;;  %v743_v33 = vpack.c.bf16 %v553_v25, %v553_v25  ;;  %v554_v34 = vmax.f32 %v538_v26, 0.0  ;;  %v555_v35 = vmax.f32 %v539_v27, 0.0 }
 0x143   : > { %629 = vst.msk [vmem:[%s1007_s4 + $0x20] sm:$0xf] %vm620_vm3, %v738_v28  ;;  %630 = vst.msk [vmem:[%s1007_s4 + $0x24] sm:$0xf] %vm620_vm3, %v739_v29 }
 0x144   : > { %631 = vst.msk [vmem:[%s1007_s4 + $0x28] sm:$0xf] %vm620_vm3, %v740_v30  ;;  %632 = vst.msk [vmem:[%s1007_s4 + $0x2c] sm:$0xf] %vm620_vm3, %v741_v31  ;;  %v744_v23 = vpack.c.bf16 %v554_v34, %v554_v34  ;;  %v745_v36 = vpack.c.bf16 %v555_v35, %v555_v35 }
 0x145   : > { %633 = vst.msk [vmem:[%s1007_s4 + $0x30] sm:$0xf] %vm620_vm3, %v742_v32  ;;  %634 = vst.msk [vmem:[%s1007_s4 + $0x34] sm:$0xf] %vm620_vm3, %v743_v33 }
 0x146   : > { %635 = vst.msk [vmem:[%s1007_s4 + $0x38] sm:$0xf] %vm620_vm3, %v744_v23  ;;  %636 = vst.msk [vmem:[%s1007_s4 + $0x3c] sm:$0xf] %vm620_vm3, %v745_v36 }
 0x147 PF: > { %s14_s15 = sadd.s32 1, %s829_s15  }
 0x148   : > { %p11_p7 = scmp.ge.s32.totalorder %s14_s15, 6  }
 0x14a   :  { %13 = sbr.rel (!%p11_p7) target bundleno = 1 (0x1), region = 74 }

// kernel: generator_forward.9
= control target key start
LH: loop header
LB: loop body
LE: loop exit
PB: predicated region body
PF: predicated region fallthrough
CT: control target
= control target key end

     0   :  { %s1486_s15 = smov 0   ;;  %s2019_s0 = inlined_call_operand.vmem [shape: bf16[512,128], index: 0, kind: input, shape index: {}]   ;;  %s2020_s1 = inlined_call_operand.vmem [shape: bf16[512,16], index: 1, kind: input, shape index: {}]   ;;  %s2021_s2 = inlined_call_operand.vmem [shape: f32[1,16], index: 2, kind: input, shape index: {}]   ;;  %s2022_s3 = inlined_call_operand.vmem [shape: f32[1,16], index: 3, kind: input, shape index: {}]   ;;  %s2023_s4 = inlined_call_operand.vmem [shape: bf16[4,128,16], index: 4, kind: output, shape index: {}]  }
   0x1 LB: > { %s1492_s16 = sadd.s32 4294967295, %s1458_s15   ;;  %p1207_p0 = scmp.ge.s32.totalorder %s1458_s15, 1  ;;  %s1458_s15 = sphi %s1486_s15, %s14_s15  }
   0x2   : > { %p169_p1 = scmp.lt.s32.totalorder %s1458_s15, 5 }
   0x4   : > { %p170_p2 = pnand %p1207_p0, %p169_p1 }
   0x5   : > { %s1208_s17 = sshll.u32 (!%p170_p2), %s1492_s16, 4  ;;  %p1228_p4 = scmp.ne.s32.totalorder (!%p170_p2), %s1492_s16, 0 }
   0x6   : > { %173 = sbr.rel (%p170_p2) target bundleno = 409 (0x199), region = 36  ;;  %p196_p3 = scmp.lt.s32.totalorder (!%p170_p2), %s1208_s17, 63 }
   0xb   : > { %s2025_s17 = smov (!%p196_p3, %s1208_s17), 63 }
   0xc   : > { %s1209_s18 = sshll.u32 %s2025_s17, 2 }
   0xd   : > { %s1500_s21 = scalar_lea.vmem %s2020_s1, %s1209_s18  ;;  %s1508_s24 = scalar_lea.vmem %s2019_s0, %s1209_s18 }
   0xe   : > { %v1434_v0 = vld [vmem:[%s1500_s21 + $0x38] sm:$0xff]   ;;  %v1435_v1 = vld [vmem:[%s1500_s21 + $0x30] sm:$0xff]   ;;  %v1436_v2 = vld [vmem:[%s1500_s21 + $0x28] sm:$0xff]  }
   0xf   : > { %1377 = vmatprep.subr.bf16.mxu0 %v1434_v0  ;;  %1409 = vmatprep.subr.bf16.mxu1 %v1434_v0  ;;  %v1437_v3 = vld [vmem:[%s1500_s21 + $0x20] sm:$0xff]   ;;  %v1438_v6 = vld [vmem:[%s1500_s21 + $0x18] sm:$0xff]   ;;  %v1439_v7 = vld [vmem:[%s1500_s21 + $0x10] sm:$0xff]  }
  0x10   : > { %1378 = vmatpush3.bf16.msra.mxu0 %v1434_v0  ;;  %1417 = vmatpush3.bf16.msra.mxu1 %v1434_v0  ;;  %v1442_v4 = vld [vmem:[%s1508_s24] sm:$0xff]   ;;  %v1440_v8 = vld [vmem:[%s1500_s21 + $0x8] sm:$0xff]   ;;  %v1446_v12 = vld [vmem:[%s1508_s24 + $0x10] sm:$0xff]  }
  0x11   : > { %1379 = vmatprep.subr.bf16.mxu0 %v1435_v1  ;;  %1410 = vmatprep.subr.bf16.mxu1 %v1435_v1  ;;  %v1443_v5 = vld [vmem:[%s1508_s24 + $0x20] sm:$0xff]   ;;  %v1444_v10 = vld [vmem:[%s1508_s24 + $0x8] sm:$0xff]   ;;  %v1447_v13 = vld [vmem:[%s1508_s24 + $0x30] sm:$0xff]  }
  0x12   : > { %1393 = vmatprep.mubr.bf16.mxu0 %v1442_v4  ;;  %1401 = vmatprep.mubr.bf16.mxu1 %v1443_v5  ;;  %v1441_v9 = vld [vmem:[%s1500_s21] sm:$0xff]   ;;  %v1445_v11 = vld [vmem:[%s1508_s24 + $0x28] sm:$0xff]   ;;  %v1448_v14 = vld [vmem:[%s1508_s24 + $0x18] sm:$0xff]  }
  0x13   : > { %v1449_v15 = vld [vmem:[%s1508_s24 + $0x38] sm:$0xff]  }
  0x14   : > { %1380 = vmatpush3.bf16.msra.mxu0 %v1435_v1  ;;  %1418 = vmatpush3.bf16.msra.mxu1 %v1435_v1 }
  0x15   : > { %1381 = vmatprep.subr.bf16.mxu0 %v1436_v2  ;;  %1411 = vmatprep.subr.bf16.mxu1 %v1436_v2 }
  0x18   : > { %1382 = vmatpush3.bf16.msra.mxu0 %v1436_v2  ;;  %1419 = vmatpush3.bf16.msra.mxu1 %v1436_v2 }
  0x19   : > { %1383 = vmatprep.subr.bf16.mxu0 %v1437_v3  ;;  %1412 = vmatprep.subr.bf16.mxu1 %v1437_v3 }
  0x1c   : > { %1384 = vmatpush3.bf16.msra.mxu0 %v1437_v3  ;;  %1420 = vmatpush3.bf16.msra.mxu1 %v1437_v3 }
  0x1d   : > { %1385 = vmatprep.subr.bf16.mxu0 %v1438_v6  ;;  %1413 = vmatprep.subr.bf16.mxu1 %v1438_v6 }
  0x20   : > { %1386 = vmatpush3.bf16.msra.mxu0 %v1438_v6  ;;  %1421 = vmatpush3.bf16.msra.mxu1 %v1438_v6 }
  0x21   : > { %1387 = vmatprep.subr.bf16.mxu0 %v1439_v7  ;;  %1414 = vmatprep.subr.bf16.mxu1 %v1439_v7 }
  0x24   : > { %1388 = vmatpush3.bf16.msra.mxu0 %v1439_v7  ;;  %1422 = vmatpush3.bf16.msra.mxu1 %v1439_v7 }
  0x25   : > { %1389 = vmatprep.subr.bf16.mxu0 %v1440_v8  ;;  %1415 = vmatprep.subr.bf16.mxu1 %v1440_v8 }
  0x28   : > { %1390 = vmatpush3.bf16.msra.mxu0 %v1440_v8  ;;  %1423 = vmatpush3.bf16.msra.mxu1 %v1440_v8 }
  0x29   : > { %1391 = vmatprep.subr.bf16.mxu0 %v1441_v9  ;;  %1416 = vmatprep.subr.bf16.mxu1 %v1441_v9 }
  0x2c   : > { %1392 = vmatpush3.bf16.msra.mxu0 %v1441_v9  ;;  %1424 = vmatpush3.bf16.msra.mxu1 %v1441_v9 }
  0x2f   : > { %1394 = vmatmul.mubr.bf16.vlgmr.msra.gmra.mxu0 %v1444_v10  ;;  %1402 = vmatmul.mubr.bf16.vlgmr.msra.gmra.mxu1 %v1445_v11 }
  0x30   : > { %1397 = vmatprep.mubr.bf16.mxu0 %v1446_v12  ;;  %1405 = vmatprep.mubr.bf16.mxu1 %v1447_v13 }
  0x37   : > { %1398 = vmatmul.mubr.bf16.gmra.mxu0 %v1448_v14  ;;  %1406 = vmatmul.mubr.bf16.gmra.mxu1 %v1449_v15 }
  0xef   : > { %v1395_v16 = vpop.f32.mrf.mxu0  ;;  %v1523_v17 = vpop.f32.mrf.mxu1 }
  0xf1   : > { %v370_v18 = vpop.f32.mrf.mxu0  ;;  %v1525_v19 = vpop.f32.mrf.mxu1 }
  0xf3   : > { %v1396_v20 = vpop.f32.mrf.mxu0  ;;  %v1527_v21 = vpop.f32.mrf.mxu1 }
  0xf5   : > { %v373_v22 = vpop.f32.mrf.mxu0  ;;  %v1529_v23 = vpop.f32.mrf.mxu1 }
  0xf7   : > { %v1399_v24 = vpop.f32.mrf.mxu0  ;;  %v1531_v25 = vpop.f32.mrf.mxu1 }
  0xf9   : > { %v386_v26 = vpop.f32.mrf.mxu0  ;;  %v1533_v27 = vpop.f32.mrf.mxu1  ;;  %436 = sbr.rel (%p1228_p4) target bundleno = 256 (0x100), region = 40 }
  0xfb   : > { %v1400_v28 = vpop.f32.mrf.mxu0  ;;  %v1535_v29 = vpop.f32.mrf.mxu1 }
  0xfd   : > { %v389_v30 = vpop.f32.mrf.mxu0  ;;  %v1537_v31 = vpop.f32.mrf.mxu1 }
  0xfe   : > { %vm437_vm0 = vcmask 122880   ;;  %v1460_v32 = vmov 0.0  }
  0xff   : > { %438 = vst.msk [vmem:[#allocation3] sm:$0x1] %vm437_vm0, %v1460_v32  ;;  %439 = vst.msk [vmem:[#allocation4] sm:$0x1] %vm437_vm0, %v1460_v32 }
 0x100 PF: > { %vm441_vm1 = vcmask 130048   ;;  %s1229_s25 = sshll.u32 %s1492_s16, 7  ;;  %v483_v40 = vmul.f32 %v370_v18, %v370_v18  ;;  %v484_v41 = vmul.f32 %v373_v22, %v373_v22  ;;  %v485_v43 = vmul.f32 %v1395_v16, %v1395_v16  ;;  %p1230_p5 = scmp.ne.s32.totalorder %s1492_s16, 3 }
 0x101   : > { %v442_v33 = vsel %vm441_vm1, %v370_v18, 0.0  ;;  %v443_v34 = vsel %vm441_vm1, %v373_v22, 0.0  ;;  %v445_v35 = vsel %vm441_vm1, %v1395_v16, 0.0  ;;  %v447_v37 = vsel %vm441_vm1, %v1396_v20, 0.0  ;;  %s539_s26 = scalar_lea.vmem [#allocation2], %s1229_s25 }
 0x102   : > { %v444_v36 = vadd.f32 %v443_v34, %v442_v33  ;;  %540 = vst.msk [vmem:[%s539_s26] sm:$0xff] %vm441_vm1, %v370_v18  ;;  %541 = vst.msk [vmem:[%s539_s26 + $0x8] sm:$0xff] %vm441_vm1, %v373_v22  ;;  %v449_v39 = vsel %vm441_vm1, %v386_v26, 0.0  ;;  %v451_v44 = vsel %vm441_vm1, %v389_v30, 0.0  ;;  %v486_v45 = vmul.f32 %v1396_v20, %v1396_v20 }
 0x103   : > { %542 = vst.msk [vmem:[%s539_s26 + $0x10] sm:$0xff] %vm441_vm1, %v1395_v16  ;;  %543 = vst.msk [vmem:[%s539_s26 + $0x18] sm:$0xff] %vm441_vm1, %v1396_v20  ;;  %v453_v47 = vsel %vm441_vm1, %v1399_v24, 0.0  ;;  %v487_v48 = vmul.f32 %v386_v26, %v386_v26  ;;  %v499_v49 = vsel %vm441_vm1, %v483_v40, 0.0  ;;  %v500_v50 = vsel %vm441_vm1, %v484_v41, 0.0 }
 0x104   : > { %544 = vst.msk [vmem:[%s539_s26 + $0x20] sm:$0xff] %vm441_vm1, %v386_v26  ;;  %545 = vst.msk [vmem:[%s539_s26 + $0x28] sm:$0xff] %vm441_vm1, %v389_v30  ;;  %v446_v38 = vadd.f32 %v445_v35, %v444_v36  ;;  %v501_v52 = vadd.f32 %v500_v50, %v499_v49  ;;  %v502_v53 = vsel %vm441_vm1, %v485_v43, 0.0  ;;  %v455_v54 = vsel %vm441_vm1, %v1400_v28, 0.0 }
 0x105   : > { %546 = vst.msk [vmem:[%s539_s26 + $0x30] sm:$0xff] %vm441_vm1, %v1399_v24  ;;  %547 = vst.msk [vmem:[%s539_s26 + $0x38] sm:$0xff] %vm441_vm1, %v1400_v28  ;;  %v488_v55 = vmul.f32 %v389_v30, %v389_v30  ;;  %v504_v56 = vsel %vm441_vm1, %v486_v45, 0.0  ;;  %v457_v59 = vsel %vm441_vm1, %v1525_v19, 0.0  ;;  %v489_v60 = vmul.f32 %v1399_v24, %v1399_v24 }
 0x106   : > { %548 = vst.msk [vmem:[%s539_s26 + $0x40] sm:$0xff] %vm441_vm1, %v1525_v19  ;;  %549 = vst.msk [vmem:[%s539_s26 + $0x48] sm:$0xff] %vm441_vm1, %v1529_v23  ;;  %v448_v42 = vadd.f32 %v447_v37, %v446_v38  ;;  %v503_v58 = vadd.f32 %v502_v53, %v501_v52  ;;  %v506_v61 = vsel %vm441_vm1, %v487_v48, 0.0  ;;  %v459_v0 = vsel %vm441_vm1, %v1529_v23, 0.0 }
 0x107   : > { %550 = vst.msk [vmem:[%s539_s26 + $0x50] sm:$0xff] %vm441_vm1, %v1523_v17  ;;  %551 = vst.msk [vmem:[%s539_s26 + $0x58] sm:$0xff] %vm441_vm1, %v1527_v21  ;;  %v490_v1 = vmul.f32 %v1400_v28, %v1400_v28  ;;  %v508_v2 = vsel %vm441_vm1, %v488_v55, 0.0  ;;  %v461_v5 = vsel %vm441_vm1, %v1523_v17, 0.0  ;;  %v491_v6 = vmul.f32 %v1525_v19, %v1525_v19 }
 0x108   : > { %552 = vst.msk [vmem:[%s539_s26 + $0x60] sm:$0xff] %vm441_vm1, %v1533_v27  ;;  %553 = vst.msk [vmem:[%s539_s26 + $0x68] sm:$0xff] %vm441_vm1, %v1537_v31  ;;  %v450_v46 = vadd.f32 %v449_v39, %v448_v42  ;;  %v505_v63 = vadd.f32 %v504_v56, %v503_v58  ;;  %v510_v7 = vsel %vm441_vm1, %v489_v60, 0.0  ;;  %v463_v10 = vsel %vm441_vm1, %v1527_v21, 0.0  ;;  %v482_v60 = vld [vmem:[#allocation4] sm:$0x1] }
 0x109   : > { %554 = vst.msk [vmem:[%s539_s26 + $0x70] sm:$0xff] %vm441_vm1, %v1531_v25  ;;  %555 = vst.msk [vmem:[%s539_s26 + $0x78] sm:$0xff] %vm441_vm1, %v1535_v29  ;;  %v492_v11 = vmul.f32 %v1529_v23, %v1529_v23  ;;  %v512_v12 = vsel %vm441_vm1, %v490_v1, 0.0  ;;  %v465_v15 = vsel %vm441_vm1, %v1533_v27, 0.0  ;;  %v493_v16 = vmul.f32 %v1523_v17, %v1523_v17 }
 0x10a   : > { %v452_v51 = vadd.f32 %v451_v44, %v450_v46  ;;  %v507_v4 = vadd.f32 %v506_v61, %v505_v63  ;;  %v514_v18 = vsel %vm441_vm1, %v491_v6, 0.0  ;;  %v467_v22 = vsel %vm441_vm1, %v1537_v31, 0.0 }
 0x10b   : > { %v494_v23 = vmul.f32 %v1527_v21, %v1527_v21  ;;  %v516_v24 = vsel %vm441_vm1, %v492_v11, 0.0  ;;  %v469_v30 = vsel %vm441_vm1, %v1531_v25, 0.0  ;;  %v495_v17 = vmul.f32 %v1533_v27, %v1533_v27 }
 0x10c   : > { %v454_v57 = vadd.f32 %v453_v47, %v452_v51  ;;  %v509_v9 = vadd.f32 %v508_v2, %v507_v4  ;;  %v518_v32 = vsel %vm441_vm1, %v493_v16, 0.0  ;;  %v471_v35 = vsel %vm441_vm1, %v1535_v29, 0.0 }
 0x10d   : > { %v496_v21 = vmul.f32 %v1537_v31, %v1537_v31  ;;  %v520_v36 = vsel %vm441_vm1, %v494_v23, 0.0  ;;  %v497_v39 = vmul.f32 %v1531_v25, %v1531_v25  ;;  %v522_v40 = vsel %vm441_vm1, %v495_v17, 0.0 }
 0x10e   : > { %v456_v62 = vadd.f32 %v455_v54, %v454_v57  ;;  %v511_v14 = vadd.f32 %v510_v7, %v509_v9  ;;  %v498_v42 = vmul.f32 %v1535_v29, %v1535_v29  ;;  %v440_v54 = vld [vmem:[#allocation3] sm:$0x1]  ;;  %vm480_vm2 = vcmask 122880  }
 0x10f   : > { %v524_v43 = vsel %vm441_vm1, %v496_v21, 0.0  ;;  %v526_v31 = vsel %vm441_vm1, %v497_v39, 0.0 }
 0x110   : > { %v458_v3 = vadd.f32 %v457_v59, %v456_v62  ;;  %v513_v20 = vadd.f32 %v512_v12, %v511_v14  ;;  %v528_v48 = vsel %vm441_vm1, %v498_v42, 0.0 }
 0x112   : > { %v460_v8 = vadd.f32 %v459_v0, %v458_v3  ;;  %v515_v28 = vadd.f32 %v514_v18, %v513_v20 }
 0x114   : > { %v462_v13 = vadd.f32 %v461_v5, %v460_v8  ;;  %v517_v34 = vadd.f32 %v516_v24, %v515_v28 }
 0x116   : > { %v464_v19 = vadd.f32 %v463_v10, %v462_v13  ;;  %v519_v38 = vadd.f32 %v518_v32, %v517_v34 }
 0x118   : > { %v466_v26 = vadd.f32 %v465_v15, %v464_v19  ;;  %v521_v41 = vadd.f32 %v520_v36, %v519_v38 }
 0x11a   : > { %v468_v33 = vadd.f32 %v467_v22, %v466_v26  ;;  %v523_v45 = vadd.f32 %v522_v40, %v521_v41 }
 0x11c   : > { %v470_v37 = vadd.f32 %v469_v30, %v468_v33  ;;  %v525_v47 = vadd.f32 %v524_v43, %v523_v45 }
 0x11e   : > { %v472_v27 = vadd.f32 %v471_v35, %v470_v37  ;;  %v527_v50 = vadd.f32 %v526_v31, %v525_v47 }
 0x120   : > { %v473_v44 = vrot.slane %v472_v27, 4  ;;  %v529_v51 = vadd.f32 %v528_v48, %v527_v50 }
 0x122   : > { %v474_v46 = vadd.f32 %v473_v44, %v472_v27  ;;  %v530_v53 = vrot.slane %v529_v51, 4 }
 0x124   : > { %v475_v49 = vrot.slane %v474_v46, 2  ;;  %v531_v56 = vadd.f32 %v530_v53, %v529_v51 }
 0x126   : > { %v476_v25 = vadd.f32 %v475_v49, %v474_v46  ;;  %v532_v57 = vrot.slane %v531_v56, 2 }
 0x128   : > { %v477_v52 = vrot.slane %v476_v25, 1  ;;  %v533_v58 = vadd.f32 %v532_v57, %v531_v56 }
 0x12a   : > { %v478_v55 = vadd.f32 %v477_v52, %v476_v25  ;;  %v534_v59 = vrot.slane %v533_v58, 1 }
 0x12c   : > { %v479_v29 = vadd.f32 %v478_v55, %v440_v54  ;;  %v535_v61 = vadd.f32 %v534_v59, %v533_v58  ;;  %559 = sbr.rel (%p1230_p5) target bundleno = 409 (0x199), region = 44 }
 0x12e   : > { %481 = vst.msk [vmem:[#allocation3] sm:$0x1] %vm480_vm2, %v479_v29  ;;  %v536_v62 = vadd.f32 %v535_v61, %v482_v60 }
 0x130   : > { %537 = vst.msk [vmem:[#allocation4] sm:$0x1] %vm480_vm2, %v536_v62 }
 0x131   : > { %v638_v6 = vlaneseq  ;;  %v566_v8 = vld [vmem:[%s2021_s2] sm:$0x1]  ;;  %v574_v14 = vld [vmem:[#allocation2 + $0x8] sm:$0xff]  ;;  %v575_v15 = vld [vmem:[#allocation2 + $0x10] sm:$0xff]  ;;  %vm1097_vm3 = vcmask 125952  }
 0x132   : > { %v570_v12 = vld [vmem:[%s2022_s3] sm:$0x1]  ;;  %v576_v16 = vld [vmem:[#allocation2 + $0x18] sm:$0xff]  ;;  %v578_v22 = vld [vmem:[#allocation2 + $0x28] sm:$0xff] }
 0x133   : > { %v639_v7 = vshrl.u32 %v638_v6, 7  ;;  %v573_v13 = vld [vmem:[#allocation2] sm:$0xff]  ;;  %v579_v23 = vld [vmem:[#allocation2 + $0x30] sm:$0xff]  ;;  %v580_v24 = vld [vmem:[#allocation2 + $0x38] sm:$0xff] }
 0x134   : > { %v577_v18 = vld [vmem:[#allocation2 + $0x20] sm:$0xff]  ;;  %v582_v28 = vld [vmem:[#allocation2 + $0x48] sm:$0xff]  ;;  %v583_v30 = vld [vmem:[#allocation2 + $0x50] sm:$0xff] }
 0x135   : > { %v560_v63 = vld [vmem:[#allocation3] sm:$0x1]  ;;  %v640_v9 = vsub.s32 0, %v639_v7  ;;  %v584_v35 = vld [vmem:[#allocation2 + $0x58] sm:$0xff]  ;;  %v586_v36 = vld [vmem:[#allocation2 + $0x68] sm:$0xff] }
 0x136   : > { %v561_v1 = vmul.f32 0.001953125, %v560_v63  ;;  %v581_v26 = vld [vmem:[#allocation2 + $0x40] sm:$0xff] }
 0x137   : > { %v562_v0 = vld [vmem:[#allocation4] sm:$0x1] }
 0x138   : > { %v563_v2 = vmul.f32 0.001953125, %v562_v0  ;;  %v564_v3 = vmul.f32 %v561_v1, %v561_v1  ;;  %v585_v21 = vld [vmem:[#allocation2 + $0x60] sm:$0xff] }
 0x13a   : > { %v565_v4 = vsub.f32 %v563_v2, %v564_v3  ;;  %v588_v2 = vld [vmem:[#allocation2 + $0x78] sm:$0xff] }
 0x13c   : > { %v567_v5 = vadd.f32 1e-05, %v565_v4 }
 0x13e   : > { %1450 = vrsqrt.f32 %v567_v5 }
 0x14b   : > { %v1451_v10 = vpop.eup %1450 }
 0x14c   : > { %v569_v11 = vmul.f32 %v1451_v10, %v566_v8 }
 0x14e   : > { %v571_v19 = vmul.f32 %v569_v11, %v561_v1  ;;  %v1628_v20 = vrot.slane %v569_v11, %v640_v9  ;;  %v587_v1 = vld [vmem:[#allocation2 + $0x70] sm:$0xff] }
 0x150   : > { %v572_v17 = vsub.f32 %v570_v12, %v571_v19  ;;  %v643_v32 = vmul.f32 %v1628_v20, %v573_v13  ;;  %v644_v33 = vmul.f32 %v1628_v20, %v574_v14  ;;  %v645_v34 = vmul.f32 %v1628_v20, %v575_v15 }
 0x151   : > { %v646_v37 = vmul.f32 %v1628_v20, %v576_v16  ;;  %v647_v38 = vmul.f32 %v1628_v20, %v577_v18  ;;  %v648_v39 = vmul.f32 %v1628_v20, %v578_v22  ;;  %v649_v40 = vmul.f32 %v1628_v20, %v579_v23  ;;  %v589_v22 = vld [vmem:[#allocation2 + $0x80] sm:$0xff] }
 0x152   : > { %v1637_v27 = vrot.slane %v572_v17, %v640_v9  ;;  %v650_v41 = vmul.f32 %v1628_v20, %v580_v24  ;;  %v651_v42 = vmul.f32 %v1628_v20, %v581_v26  ;;  %v652_v43 = vmul.f32 %v1628_v20, %v582_v28  ;;  %v591_v17 = vld [vmem:[#allocation2 + $0x90] sm:$0xff] }
 0x153   : > { %v653_v44 = vmul.f32 %v1628_v20, %v583_v30  ;;  %v654_v45 = vmul.f32 %v1628_v20, %v584_v35  ;;  %v655_v31 = vmul.f32 %v1628_v20, %v585_v21  ;;  %v656_v46 = vmul.f32 %v1628_v20, %v586_v36  ;;  %v590_v30 = vld [vmem:[#allocation2 + $0x88] sm:$0xff]  ;;  %v593_v36 = vld [vmem:[#allocation2 + $0xa0] sm:$0xff] }
 0x154   : > { %v713_v47 = vadd.f32 %v1637_v27, %v643_v32  ;;  %v714_v48 = vadd.f32 %v1637_v27, %v644_v33  ;;  %v715_v49 = vadd.f32 %v1637_v27, %v645_v34  ;;  %v716_v50 = vadd.f32 %v1637_v27, %v646_v37  ;;  %v592_v32 = vld [vmem:[#allocation2 + $0x98] sm:$0xff]  ;;  %v594_v37 = vld [vmem:[#allocation2 + $0xa8] sm:$0xff] }
 0x155   : > { %v717_v25 = vadd.f32 %v1637_v27, %v647_v38  ;;  %v718_v51 = vadd.f32 %v1637_v27, %v648_v39  ;;  %v719_v52 = vadd.f32 %v1637_v27, %v649_v40  ;;  %v720_v53 = vadd.f32 %v1637_v27, %v650_v41 }
 0x156   : > { %v777_v54 = vmax.f32 %v713_v47, 0.0  ;;  %v778_v55 = vmax.f32 %v714_v48, 0.0  ;;  %v779_v56 = vmax.f32 %v715_v49, 0.0  ;;  %v780_v29 = vmax.f32 %v716_v50, 0.0 }
 0x157   : > { %v781_v57 = vmax.f32 %v717_v25, 0.0  ;;  %v782_v58 = vmax.f32 %v718_v51, 0.0  ;;  %v783_v59 = vmax.f32 %v719_v52, 0.0  ;;  %v784_v60 = vmax.f32 %v720_v53, 0.0 }
 0x158   : > { %v1297_v61 = vpack.c.bf16 %v777_v54, %v777_v54  ;;  %v1298_v62 = vpack.c.bf16 %v778_v55, %v778_v55  ;;  %v1299_v63 = vpack.c.bf16 %v779_v56, %v779_v56  ;;  %v1300_v0 = vpack.c.bf16 %v780_v29, %v780_v29 }
 0x159   : > { %v1301_v3 = vpack.c.bf16 %v781_v57, %v781_v57  ;;  %v1302_v4 = vpack.c.bf16 %v782_v58, %v782_v58  ;;  %v1303_v5 = vpack.c.bf16 %v783_v59, %v783_v59  ;;  %v1304_v6 = vpack.c.bf16 %v784_v60, %v784_v60 }
 0x15a   : > { %1098 = vst.msk [vmem:[%s2023_s4] sm:$0xf] %vm1097_vm3, %v1297_v61  ;;  %1099 = vst.msk [vmem:[%s2023_s4 + $0x4] sm:$0xf] %vm1097_vm3, %v1298_v62  ;;  %v721_v7 = vadd.f32 %v1637_v27, %v651_v42  ;;  %v722_v8 = vadd.f32 %v1637_v27, %v652_v43  ;;  %v723_v9 = vadd.f32 %v1637_v27, %v653_v44  ;;  %v597_v61 = vld [vmem:[#allocation2 + $0xc0] sm:$0xff] }
 0x15b   : > { %1100 = vst.msk [vmem:[%s2023_s4 + $0x8] sm:$0xf] %vm1097_vm3, %v1299_v63  ;;  %1101 = vst.msk [vmem:[%s2023_s4 + $0xc] sm:$0xf] %vm1097_vm3, %v1300_v0  ;;  %v724_v10 = vadd.f32 %v1637_v27, %v654_v45  ;;  %v725_v11 = vadd.f32 %v1637_v27, %v655_v31  ;;  %v726_v12 = vadd.f32 %v1637_v27, %v656_v46  ;;  %v595_v31 = vld [vmem:[#allocation2 + $0xb0] sm:$0xff]  ;;  %v596_v46 = vld [vmem:[#allocation2 + $0xb8] sm:$0xff] }
 0x15c   : > { %1102 = vst.msk [vmem:[%s2023_s4 + $0x10] sm:$0xf] %vm1097_vm3, %v1301_v3  ;;  %1103 = vst.msk [vmem:[%s2023_s4 + $0x14] sm:$0xf] %vm1097_vm3, %v1302_v4  ;;  %v657_v13 = vmul.f32 %v1628_v20, %v587_v1  ;;  %v658_v14 = vmul.f32 %v1628_v20, %v588_v2  ;;  %v785_v15 = vmax.f32 %v721_v7, 0.0  ;;  %v786_v16 = vmax.f32 %v722_v8, 0.0 }
 0x15d   : > { %1104 = vst.msk [vmem:[%s2023_s4 + $0x18] sm:$0xf] %vm1097_vm3, %v1303_v5  ;;  %1105 = vst.msk [vmem:[%s2023_s4 + $0x1c] sm:$0xf] %vm1097_vm3, %v1304_v6  ;;  %v787_v18 = vmax.f32 %v723_v9, 0.0  ;;  %v788_v19 = vmax.f32 %v724_v10, 0.0  ;;  %v659_v42 = vmul.f32 %v1628_v20, %v589_v22  ;;  %v660_v43 = vmul.f32 %v1628_v20, %v590_v30 }
 0x15e   : > { %v789_v23 = vmax.f32 %v725_v11, 0.0  ;;  %v790_v24 = vmax.f32 %v726_v12, 0.0  ;;  %v727_v26 = vadd.f32 %v1637_v27, %v657_v13  ;;  %v728_v28 = vadd.f32 %v1637_v27, %v658_v14  ;;  %v598_v2 = vld [vmem:[#allocation2 + $0xc8] sm:$0xff]  ;;  %v599_v3 = vld [vmem:[#allocation2 + $0xd0] sm:$0xff]  ;;  %v600_v4 = vld [vmem:[#allocation2 + $0xd8] sm:$0xff] }
 0x15f   : > { %v1305_v33 = vpack.c.bf16 %v785_v15, %v785_v15  ;;  %v1306_v34 = vpack.c.bf16 %v786_v16, %v786_v16  ;;  %v1307_v35 = vpack.c.bf16 %v787_v18, %v787_v18  ;;  %v1308_v21 = vpack.c.bf16 %v788_v19, %v788_v19  ;;  %v601_v9 = vld [vmem:[#allocation2 + $0xe0] sm:$0xff]  ;;  %v602_v10 = vld [vmem:[#allocation2 + $0xe8] sm:$0xff]  ;;  %v603_v22 = vld [vmem:[#allocation2 + $0xf0] sm:$0xff] }
 0x160   : > { %v1309_v38 = vpack.c.bf16 %v789_v23, %v789_v23  ;;  %v1310_v39 = vpack.c.bf16 %v790_v24, %v790_v24  ;;  %v791_v40 = vmax.f32 %v727_v26, 0.0  ;;  %v792_v41 = vmax.f32 %v728_v28, 0.0  ;;  %v604_v23 = vld [vmem:[#allocation2 + $0xf8] sm:$0xff] }
 0x161   : > { %1106 = vst.msk [vmem:[%s2023_s4 + $0x20] sm:$0xf] %vm1097_vm3, %v1305_v33  ;;  %1107 = vst.msk [vmem:[%s2023_s4 + $0x24] sm:$0xf] %vm1097_vm3, %v1306_v34  ;;  %v661_v44 = vmul.f32 %v1628_v20, %v591_v17  ;;  %v662_v45 = vmul.f32 %v1628_v20, %v592_v32  ;;  %v663_v49 = vmul.f32 %v1628_v20, %v593_v36 }
 0x162   : > { %1108 = vst.msk [vmem:[%s2023_s4 + $0x28] sm:$0xf] %vm1097_vm3, %v1307_v35  ;;  %1109 = vst.msk [vmem:[%s2023_s4 + $0x2c] sm:$0xf] %vm1097_vm3, %v1308_v21  ;;  %v1311_v47 = vpack.c.bf16 %v791_v40, %v791_v40  ;;  %v1312_v48 = vpack.c.bf16 %v792_v41, %v792_v41  ;;  %v664_v50 = vmul.f32 %v1628_v20, %v594_v37 }
 0x163   : > { %1110 = vst.msk [vmem:[%s2023_s4 + $0x30] sm:$0xf] %vm1097_vm3, %v1309_v38  ;;  %1111 = vst.msk [vmem:[%s2023_s4 + $0x34] sm:$0xf] %vm1097_vm3, %v1310_v39  ;;  %v729_v25 = vadd.f32 %v1637_v27, %v659_v42  ;;  %v730_v51 = vadd.f32 %v1637_v27, %v660_v43  ;;  %v731_v52 = vadd.f32 %v1637_v27, %v661_v44  ;;  %v605_v42 = vld [vmem:[#allocation2 + $0x100] sm:$0xff] }
 0x164   : > { %v732_v53 = vadd.f32 %v1637_v27, %v662_v45  ;;  %1112 = vst.msk [vmem:[%s2023_s4 + $0x38] sm:$0xf] %vm1097_vm3, %v1311_v47  ;;  %1113 = vst.msk [vmem:[%s2023_s4 + $0x3c] sm:$0xf] %vm1097_vm3, %v1312_v48  ;;  %v733_v54 = vadd.f32 %v1637_v27, %v663_v49  ;;  %v734_v55 = vadd.f32 %v1637_v27, %v664_v50  ;;  %v607_v47 = vld [vmem:[#allocation2 + $0x110] sm:$0xff]  ;;  %v608_v48 = vld [vmem:[#allocation2 + $0x118] sm:$0xff] }
 0x165   : > { %v665_v56 = vmul.f32 %v1628_v20, %v595_v31  ;;  %v666_v29 = vmul.f32 %v1628_v20, %v596_v46  ;;  %v793_v57 = vmax.f32 %v729_v25, 0.0  ;;  %v794_v58 = vmax.f32 %v730_v51, 0.0  ;;  %v606_v46 = vld [vmem:[#allocation2 + $0x108] sm:$0xff] }
 0x166   : > { %v795_v59 = vmax.f32 %v731_v52, 0.0  ;;  %v796_v60 = vmax.f32 %v732_v53, 0.0  ;;  %v797_v62 = vmax.f32 %v733_v54, 0.0  ;;  %v798_v63 = vmax.f32 %v734_v55, 0.0  ;;  %v609_v52 = vld [vmem:[#allocation2 + $0x120] sm:$0xff]  ;;  %v610_v53 = vld [vmem:[#allocation2 + $0x128] sm:$0xff] }
 0x167   : > { %v735_v0 = vadd.f32 %v1637_v27, %v665_v56  ;;  %v736_v1 = vadd.f32 %v1637_v27, %v666_v29  ;;  %v1313_v5 = vpack.c.bf16 %v793_v57, %v793_v57  ;;  %v1314_v6 = vpack.c.bf16 %v794_v58, %v794_v58 }
 0x168   : > { %v1315_v7 = vpack.c.bf16 %v795_v59, %v795_v59  ;;  %v1316_v8 = vpack.c.bf16 %v796_v60, %v796_v60  ;;  %v1317_v11 = vpack.c.bf16 %v797_v62, %v797_v62  ;;  %v1318_v12 = vpack.c.bf16 %v798_v63, %v798_v63  ;;  %v612_v62 = vld [vmem:[#allocation2 + $0x138] sm:$0xff] }
 0x169   : > { %v799_v13 = vmax.f32 %v735_v0, 0.0  ;;  %v800_v14 = vmax.f32 %v736_v1, 0.0  ;;  %1114 = vst.msk [vmem:[%s2023_s4 + $0x40] sm:$0xf] %vm1097_vm3, %v1313_v5  ;;  %1115 = vst.msk [vmem:[%s2023_s4 + $0x44] sm:$0xf] %vm1097_vm3, %v1314_v6  ;;  %v667_v15 = vmul.f32 %v1628_v20, %v597_v61  ;;  %v668_v16 = vmul.f32 %v1628_v20, %v598_v2 }
 0x16a   : > { %1116 = vst.msk [vmem:[%s2023_s4 + $0x48] sm:$0xf] %vm1097_vm3, %v1315_v7  ;;  %1117 = vst.msk [vmem:[%s2023_s4 + $0x4c] sm:$0xf] %vm1097_vm3, %v1316_v8  ;;  %v669_v18 = vmul.f32 %v1628_v20, %v599_v3  ;;  %v670_v19 = vmul.f32 %v1628_v20, %v600_v4  ;;  %v671_v28 = vmul.f32 %v1628_v20, %v601_v9  ;;  %v611_v61 = vld [vmem:[#allocation2 + $0x130] sm:$0xff] }
 0x16b   : > { %1118 = vst.msk [vmem:[%s2023_s4 + $0x50] sm:$0xf] %vm1097_vm3, %v1317_v11  ;;  %1119 = vst.msk [vmem:[%s2023_s4 + $0x54] sm:$0xf] %vm1097_vm3, %v1318_v12  ;;  %v1319_v24 = vpack.c.bf16 %v799_v13, %v799_v13  ;;  %v1320_v26 = vpack.c.bf16 %v800_v14, %v800_v14  ;;  %v672_v30 = vmul.f32 %v1628_v20, %v602_v10 }
 0x16c   : > { %v737_v17 = vadd.f32 %v1637_v27, %v667_v15  ;;  %v738_v32 = vadd.f32 %v1637_v27, %v668_v16  ;;  %v739_v33 = vadd.f32 %v1637_v27, %v669_v18  ;;  %v740_v34 = vadd.f32 %v1637_v27, %v670_v19  ;;  %v613_v15 = vld [vmem:[#allocation2 + $0x140] sm:$0xff] }
 0x16d   : > { %1120 = vst.msk [vmem:[%s2023_s4 + $0x58] sm:$0xf] %vm1097_vm3, %v1319_v24  ;;  %1121 = vst.msk [vmem:[%s2023_s4 + $0x5c] sm:$0xf] %vm1097_vm3, %v1320_v26  ;;  %v741_v35 = vadd.f32 %v1637_v27, %v671_v28  ;;  %v742_v21 = vadd.f32 %v1637_v27, %v672_v30  ;;  %v673_v36 = vmul.f32 %v1628_v20, %v603_v22  ;;  %v615_v24 = vld [vmem:[#allocation2 + $0x150] sm:$0xff]  ;;  %v616_v26 = vld [vmem:[#allocation2 + $0x158] sm:$0xff] }
 0x16e   : > { %v674_v37 = vmul.f32 %v1628_v20, %v604_v23  ;;  %v801_v38 = vmax.f32 %v737_v17, 0.0  ;;  %v802_v39 = vmax.f32 %v738_v32, 0.0  ;;  %v803_v40 = vmax.f32 %v739_v33, 0.0  ;;  %v614_v23 = vld [vmem:[#allocation2 + $0x148] sm:$0xff]  ;;  %v617_v33 = vld [vmem:[#allocation2 + $0x160] sm:$0xff] }
 0x16f   : > { %v804_v41 = vmax.f32 %v740_v34, 0.0  ;;  %v805_v43 = vmax.f32 %v741_v35, 0.0  ;;  %v806_v44 = vmax.f32 %v742_v21, 0.0  ;;  %v743_v45 = vadd.f32 %v1637_v27, %v673_v36  ;;  %v618_v34 = vld [vmem:[#allocation2 + $0x168] sm:$0xff] }
 0x170   : > { %v744_v31 = vadd.f32 %v1637_v27, %v674_v37  ;;  %v1321_v49 = vpack.c.bf16 %v801_v38, %v801_v38  ;;  %v1322_v50 = vpack.c.bf16 %v802_v39, %v802_v39  ;;  %v1323_v25 = vpack.c.bf16 %v803_v40, %v803_v40 }
 0x171   : > { %v1324_v51 = vpack.c.bf16 %v804_v41, %v804_v41  ;;  %v1325_v54 = vpack.c.bf16 %v805_v43, %v805_v43  ;;  %v1326_v55 = vpack.c.bf16 %v806_v44, %v806_v44  ;;  %v807_v56 = vmax.f32 %v743_v45, 0.0  ;;  %v620_v43 = vld [vmem:[#allocation2 + $0x178] sm:$0xff] }
 0x172   : > { %v808_v29 = vmax.f32 %v744_v31, 0.0  ;;  %1122 = vst.msk [vmem:[%s2023_s4 + $0x60] sm:$0xf] %vm1097_vm3, %v1321_v49  ;;  %1123 = vst.msk [vmem:[%s2023_s4 + $0x64] sm:$0xf] %vm1097_vm3, %v1322_v50  ;;  %v675_v57 = vmul.f32 %v1628_v20, %v605_v42  ;;  %v676_v58 = vmul.f32 %v1628_v20, %v606_v46  ;;  %v677_v59 = vmul.f32 %v1628_v20, %v607_v47  ;;  %v619_v42 = vld [vmem:[#allocation2 + $0x170] sm:$0xff] }
 0x173   : > { %1124 = vst.msk [vmem:[%s2023_s4 + $0x68] sm:$0xf] %vm1097_vm3, %v1323_v25  ;;  %1125 = vst.msk [vmem:[%s2023_s4 + $0x6c] sm:$0xf] %vm1097_vm3, %v1324_v51  ;;  %v678_v60 = vmul.f32 %v1628_v20, %v608_v48  ;;  %v1327_v63 = vpack.c.bf16 %v807_v56, %v807_v56  ;;  %v679_v1 = vmul.f32 %v1628_v20, %v609_v52 }
 0x174   : > { %1126 = vst.msk [vmem:[%s2023_s4 + $0x70] sm:$0xf] %vm1097_vm3, %v1325_v54  ;;  %1127 = vst.msk [vmem:[%s2023_s4 + $0x74] sm:$0xf] %vm1097_vm3, %v1326_v55  ;;  %v1328_v0 = vpack.c.bf16 %v808_v29, %v808_v29  ;;  %v680_v2 = vmul.f32 %v1628_v20, %v610_v53  ;;  %v745_v3 = vadd.f32 %v1637_v27, %v675_v57  ;;  %v621_v57 = vld [vmem:[#allocation2 + $0x180] sm:$0xff] }
 0x175   : > { %v746_v4 = vadd.f32 %v1637_v27, %v676_v58  ;;  %v747_v5 = vadd.f32 %v1637_v27, %v677_v59  ;;  %v748_v6 = vadd.f32 %v1637_v27, %v678_v60  ;;  %1128 = vst.msk [vmem:[%s2023_s4 + $0x78] sm:$0xf] %vm1097_vm3, %v1327_v63  ;;  %v749_v7 = vadd.f32 %v1637_v27, %v679_v1  ;;  %v623_v63 = vld [vmem:[#allocation2 + $0x190] sm:$0xff] }
 0x176   : > { %1129 = vst.msk [vmem:[%s2023_s4 + $0x7c] sm:$0xf] %vm1097_vm3, %v1328_v0  ;;  %v750_v8 = vadd.f32 %v1637_v27, %v680_v2  ;;  %v681_v9 = vmul.f32 %v1628_v20, %v611_v61  ;;  %v682_v10 = vmul.f32 %v1628_v20, %v612_v62  ;;  %v809_v11 = vmax.f32 %v745_v3, 0.0  ;;  %v622_v62 = vld [vmem:[#allocation2 + $0x188] sm:$0xff]  ;;  %v624_v0 = vld [vmem:[#allocation2 + $0x198] sm:$0xff] }
 0x177   : > { %v810_v12 = vmax.f32 %v746_v4, 0.0  ;;  %v811_v13 = vmax.f32 %v747_v5, 0.0  ;;  %v812_v14 = vmax.f32 %v748_v6, 0.0  ;;  %v813_v16 = vmax.f32 %v749_v7, 0.0  ;;  %v625_v5 = vld [vmem:[#allocation2 + $0x1a0] sm:$0xff]  ;;  %v626_v6 = vld [vmem:[#allocation2 + $0x1a8] sm:$0xff] }
 0x178   : > { %v814_v18 = vmax.f32 %v750_v8, 0.0  ;;  %v751_v19 = vadd.f32 %v1637_v27, %v681_v9  ;;  %v752_v22 = vadd.f32 %v1637_v27, %v682_v10  ;;  %v1329_v28 = vpack.c.bf16 %v809_v11, %v809_v11 }
 0x179   : > { %v1330_v30 = vpack.c.bf16 %v810_v12, %v810_v12  ;;  %v1331_v17 = vpack.c.bf16 %v811_v13, %v811_v13  ;;  %v1332_v32 = vpack.c.bf16 %v812_v14, %v812_v14  ;;  %v1333_v35 = vpack.c.bf16 %v813_v16, %v813_v16  ;;  %v628_v16 = vld [vmem:[#allocation2 + $0x1b8] sm:$0xff] }
 0x17a   : > { %v1334_v21 = vpack.c.bf16 %v814_v18, %v814_v18  ;;  %v815_v36 = vmax.f32 %v751_v19, 0.0  ;;  %v816_v37 = vmax.f32 %v752_v22, 0.0  ;;  %1130 = vst.msk [vmem:[%s2023_s4 + $0x80] sm:$0xf] %vm1097_vm3, %v1329_v28  ;;  %v683_v38 = vmul.f32 %v1628_v20, %v613_v15  ;;  %v627_v15 = vld [vmem:[#allocation2 + $0x1b0] sm:$0xff] }
 0x17b   : > { %1131 = vst.msk [vmem:[%s2023_s4 + $0x84] sm:$0xf] %vm1097_vm3, %v1330_v30  ;;  %1132 = vst.msk [vmem:[%s2023_s4 + $0x88] sm:$0xf] %vm1097_vm3, %v1331_v17  ;;  %v684_v39 = vmul.f32 %v1628_v20, %v614_v23  ;;  %v685_v40 = vmul.f32 %v1628_v20, %v615_v24  ;;  %v686_v41 = vmul.f32 %v1628_v20, %v616_v26 }
 0x17c   : > { %1133 = vst.msk [vmem:[%s2023_s4 + $0x8c] sm:$0xf] %vm1097_vm3, %v1332_v32  ;;  %1134 = vst.msk [vmem:[%s2023_s4 + $0x90] sm:$0xf] %vm1097_vm3, %v1333_v35  ;;  %v1335_v44 = vpack.c.bf16 %v815_v36, %v815_v36  ;;  %v1336_v45 = vpack.c.bf16 %v816_v37, %v816_v37  ;;  %v687_v31 = vmul.f32 %v1628_v20, %v617_v33 }
 0x17d   : > { %1135 = vst.msk [vmem:[%s2023_s4 + $0x94] sm:$0xf] %vm1097_vm3, %v1334_v21  ;;  %v688_v46 = vmul.f32 %v1628_v20, %v618_v34  ;;  %v753_v47 = vadd.f32 %v1637_v27, %v683_v38  ;;  %v754_v48 = vadd.f32 %v1637_v27, %v684_v39  ;;  %v755_v49 = vadd.f32 %v1637_v27, %v685_v40  ;;  %v629_v38 = vld [vmem:[#allocation2 + $0x1c0] sm:$0xff] }
 0x17e   : > { %v756_v50 = vadd.f32 %v1637_v27, %v686_v41  ;;  %1136 = vst.msk [vmem:[%s2023_s4 + $0x98] sm:$0xf] %vm1097_vm3, %v1335_v44  ;;  %1137 = vst.msk [vmem:[%s2023_s4 + $0x9c] sm:$0xf] %vm1097_vm3, %v1336_v45  ;;  %v757_v25 = vadd.f32 %v1637_v27, %v687_v31  ;;  %v689_v52 = vmul.f32 %v1628_v20, %v619_v42  ;;  %v631_v44 = vld [vmem:[#allocation2 + $0x1d0] sm:$0xff]  ;;  %v632_v45 = vld [vmem:[#allocation2 + $0x1d8] sm:$0xff] }
 0x17f   : > { %v758_v51 = vadd.f32 %v1637_v27, %v688_v46  ;;  %v690_v53 = vmul.f32 %v1628_v20, %v620_v43  ;;  %v817_v54 = vmax.f32 %v753_v47, 0.0  ;;  %v818_v55 = vmax.f32 %v754_v48, 0.0  ;;  %v630_v43 = vld [vmem:[#allocation2 + $0x1c8] sm:$0xff] }
 0x180   : > { %v819_v56 = vmax.f32 %v755_v49, 0.0  ;;  %v820_v29 = vmax.f32 %v756_v50, 0.0  ;;  %v821_v58 = vmax.f32 %v757_v25, 0.0  ;;  %v759_v60 = vadd.f32 %v1637_v27, %v689_v52  ;;  %v633_v49 = vld [vmem:[#allocation2 + $0x1e0] sm:$0xff]  ;;  %v634_v50 = vld [vmem:[#allocation2 + $0x1e8] sm:$0xff] }
 0x181   : > { %v822_v59 = vmax.f32 %v758_v51, 0.0  ;;  %v760_v61 = vadd.f32 %v1637_v27, %v690_v53  ;;  %v1337_v1 = vpack.c.bf16 %v817_v54, %v817_v54  ;;  %v1338_v2 = vpack.c.bf16 %v818_v55, %v818_v55 }
 0x182   : > { %v1339_v3 = vpack.c.bf16 %v819_v56, %v819_v56  ;;  %v1340_v4 = vpack.c.bf16 %v820_v29, %v820_v29  ;;  %v1341_v7 = vpack.c.bf16 %v821_v58, %v821_v58  ;;  %v823_v9 = vmax.f32 %v759_v60, 0.0  ;;  %v636_v58 = vld [vmem:[#allocation2 + $0x1f8] sm:$0xff] }
 0x183   : > { %v1342_v8 = vpack.c.bf16 %v822_v59, %v822_v59  ;;  %v824_v10 = vmax.f32 %v760_v61, 0.0  ;;  %1138 = vst.msk [vmem:[%s2023_s4 + $0xa0] sm:$0xf] %vm1097_vm3, %v1337_v1  ;;  %1139 = vst.msk [vmem:[%s2023_s4 + $0xa4] sm:$0xf] %vm1097_vm3, %v1338_v2  ;;  %v691_v11 = vmul.f32 %v1628_v20, %v621_v57  ;;  %v692_v12 = vmul.f32 %v1628_v20, %v622_v62  ;;  %v635_v57 = vld [vmem:[#allocation2 + $0x1f0] sm:$0xff] }
 0x184   : > { %1140 = vst.msk [vmem:[%s2023_s4 + $0xa8] sm:$0xf] %vm1097_vm3, %v1339_v3  ;;  %1141 = vst.msk [vmem:[%s2023_s4 + $0xac] sm:$0xf] %vm1097_vm3, %v1340_v4  ;;  %v693_v13 = vmul.f32 %v1628_v20, %v623_v63  ;;  %v694_v14 = vmul.f32 %v1628_v20, %v624_v0  ;;  %v1343_v18 = vpack.c.bf16 %v823_v9, %v823_v9 }
 0x185   : > { %1142 = vst.msk [vmem:[%s2023_s4 + $0xb0] sm:$0xf] %vm1097_vm3, %v1341_v7  ;;  %1143 = vst.msk [vmem:[%s2023_s4 + $0xb4] sm:$0xf] %vm1097_vm3, %v1342_v8  ;;  %v1344_v19 = vpack.c.bf16 %v824_v10, %v824_v10  ;;  %v695_v22 = vmul.f32 %v1628_v20, %v625_v5  ;;  %v696_v23 = vmul.f32 %v1628_v20, %v626_v6 }
 0x186   : > { %v761_v24 = vadd.f32 %v1637_v27, %v691_v11  ;;  %v762_v26 = vadd.f32 %v1637_v27, %v692_v12  ;;  %v763_v28 = vadd.f32 %v1637_v27, %v693_v13  ;;  %v764_v30 = vadd.f32 %v1637_v27, %v694_v14  ;;  %1144 = vst.msk [vmem:[%s2023_s4 + $0xb8] sm:$0xf] %vm1097_vm3, %v1343_v18 }
 0x187   : > { %1145 = vst.msk [vmem:[%s2023_s4 + $0xbc] sm:$0xf] %vm1097_vm3, %v1344_v19  ;;  %v765_v17 = vadd.f32 %v1637_v27, %v695_v22  ;;  %v766_v32 = vadd.f32 %v1637_v27, %v696_v23  ;;  %v697_v33 = vmul.f32 %v1628_v20, %v627_v15  ;;  %v698_v34 = vmul.f32 %v1628_v20, %v628_v16 }
 0x188   : > { %v825_v35 = vmax.f32 %v761_v24, 0.0  ;;  %v826_v21 = vmax.f32 %v762_v26, 0.0  ;;  %v827_v36 = vmax.f32 %v763_v28, 0.0  ;;  %v828_v37 = vmax.f32 %v764_v30, 0.0 }
 0x189   : > { %v829_v39 = vmax.f32 %v765_v17, 0.0  ;;  %v830_v40 = vmax.f32 %v766_v32, 0.0  ;;  %v767_v41 = vadd.f32 %v1637_v27, %v697_v33  ;;  %v768_v42 = vadd.f32 %v1637_v27, %v698_v34 }
 0x18a   : > { %v1345_v31 = vpack.c.bf16 %v825_v35, %v825_v35  ;;  %v1346_v46 = vpack.c.bf16 %v826_v21, %v826_v21  ;;  %v1347_v47 = vpack.c.bf16 %v827_v36, %v827_v36  ;;  %v1348_v48 = vpack.c.bf16 %v828_v37, %v828_v37 }
 0x18b   : > { %v1349_v25 = vpack.c.bf16 %v829_v39, %v829_v39  ;;  %v1350_v51 = vpack.c.bf16 %v830_v40, %v830_v40  ;;  %v831_v52 = vmax.f32 %v767_v41, 0.0  ;;  %v832_v53 = vmax.f32 %v768_v42, 0.0 }
 0x18c   : > { %1146 = vst.msk [vmem:[%s2023_s4 + $0xc0] sm:$0xf] %vm1097_vm3, %v1345_v31  ;;  %1147 = vst.msk [vmem:[%s2023_s4 + $0xc4] sm:$0xf] %vm1097_vm3, %v1346_v46  ;;  %v699_v54 = vmul.f32 %v1628_v20, %v629_v38  ;;  %v700_v55 = vmul.f32 %v1628_v20, %v630_v43  ;;  %v701_v56 = vmul.f32 %v1628_v20, %v631_v44 }
 0x18d   : > { %1148 = vst.msk [vmem:[%s2023_s4 + $0xc8] sm:$0xf] %vm1097_vm3, %v1347_v47  ;;  %1149 = vst.msk [vmem:[%s2023_s4 + $0xcc] sm:$0xf] %vm1097_vm3, %v1348_v48  ;;  %v702_v29 = vmul.f32 %v1628_v20, %v632_v45  ;;  %v1351_v59 = vpack.c.bf16 %v831_v52, %v831_v52  ;;  %v1352_v60 = vpack.c.bf16 %v832_v53, %v832_v53 }
 0x18e   : > { %1150 = vst.msk [vmem:[%s2023_s4 + $0xd0] sm:$0xf] %vm1097_vm3, %v1349_v25  ;;  %1151 = vst.msk [vmem:[%s2023_s4 + $0xd4] sm:$0xf] %vm1097_vm3, %v1350_v51  ;;  %v703_v61 = vmul.f32 %v1628_v20, %v633_v49  ;;  %v704_v62 = vmul.f32 %v1628_v20, %v634_v50  ;;  %v769_v63 = vadd.f32 %v1637_v27, %v699_v54 }
 0x18f   : > { %v770_v0 = vadd.f32 %v1637_v27, %v700_v55  ;;  %v771_v1 = vadd.f32 %v1637_v27, %v701_v56  ;;  %v772_v2 = vadd.f32 %v1637_v27, %v702_v29  ;;  %1152 = vst.msk [vmem:[%s2023_s4 + $0xd8] sm:$0xf] %vm1097_vm3, %v1351_v59  ;;  %1153 = vst.msk [vmem:[%s2023_s4 + $0xdc] sm:$0xf] %vm1097_vm3, %v1352_v60 }
 0x190   : > { %v773_v3 = vadd.f32 %v1637_v27, %v703_v61  ;;  %v774_v4 = vadd.f32 %v1637_v27, %v704_v62  ;;  %v705_v5 = vmul.f32 %v1628_v20, %v635_v57  ;;  %v706_v6 = vmul.f32 %v1628_v20, %v636_v58 }
 0x191   : > { %v833_v7 = vmax.f32 %v769_v63, 0.0  ;;  %v834_v8 = vmax.f32 %v770_v0, 0.0  ;;  %v835_v9 = vmax.f32 %v771_v1, 0.0  ;;  %v836_v10 = vmax.f32 %v772_v2, 0.0 }
 0x192   : > { %v837_v11 = vmax.f32 %v773_v3, 0.0  ;;  %v838_v12 = vmax.f32 %v774_v4, 0.0  ;;  %v775_v13 = vadd.f32 %v1637_v27, %v705_v5  ;;  %v776_v14 = vadd.f32 %v1637_v27, %v706_v6 }
 0x193   : > { %v1353_v15 = vpack.c.bf16 %v833_v7, %v833_v7  ;;  %v1354_v16 = vpack.c.bf16 %v834_v8, %v834_v8  ;;  %v1355_v18 = vpack.c.bf16 %v835_v9, %v835_v9  ;;  %v1356_v19 = vpack.c.bf16 %v836_v10, %v836_v10 }
 0x194   : > { %v1357_v22 = vpack.c.bf16 %v837_v11, %v837_v11  ;;  %v1358_v23 = vpack.c.bf16 %v838_v12, %v838_v12  ;;  %v839_v24 = vmax.f32 %v775_v13, 0.0  ;;  %v840_v26 = vmax.f32 %v776_v14, 0.0 }
 0x195   : > { %1154 = vst.msk [vmem:[%s2023_s4 + $0xe0] sm:$0xf] %vm1097_vm3, %v1353_v15  ;;  %1155 = vst.msk [vmem:[%s2023_s4 + $0xe4] sm:$0xf] %vm1097_vm3, %v1354_v16 }
 0x196   : > { %1156 = vst.msk [vmem:[%s2023_s4 + $0xe8] sm:$0xf] %vm1097_vm3, %v1355_v18  ;;  %1157 = vst.msk [vmem:[%s2023_s4 + $0xec] sm:$0xf] %vm1097_vm3, %v1356_v19  ;;  %v1359_v20 = vpack.c.bf16 %v839_v24, %v839_v24  ;;  %v1360_v27 = vpack.c.bf16 %v840_v26, %v840_v26 }
 0x197   : > { %1158 = vst.msk [vmem:[%s2023_s4 + $0xf0] sm:$0xf] %vm1097_vm3, %v1357_v22  ;;  %1159 = vst.msk [vmem:[%s2023_s4 + $0xf4] sm:$0xf] %vm1097_vm3, %v1358_v23 }
 0x198   : > { %1160 = vst.msk [vmem:[%s2023_s4 + $0xf8] sm:$0xf] %vm1097_vm3, %v1359_v20  ;;  %1161 = vst.msk [vmem:[%s2023_s4 + $0xfc] sm:$0xf] %vm1097_vm3, %v1360_v27 }
 0x199 PF: > { %s14_s15 = sadd.s32 1, %s1458_s15  }
 0x19a   : > { %p11_p6 = scmp.ge.s32.totalorder %s14_s15, 6  }
 0x19c   :  { %13 = sbr.rel (!%p11_p6) target bundleno = 1 (0x1), region = 74 }

// kernel: generator_forward.10
= control target key start
LH: loop header
LB: loop body
LE: loop exit
PB: predicated region body
PF: predicated region fallthrough
CT: control target
= control target key end

     0   :  { %s4427_s15 = smov 0   ;;  %s6725_s0 = inlined_call_operand.vmem [shape: bf16[2048,64], index: 0, kind: input, shape index: {}]   ;;  %s6726_s1 = inlined_call_operand.vmem [shape: bf16[256,8], index: 1, kind: input, shape index: {}]   ;;  %s6727_s2 = inlined_call_operand.vmem [shape: f32[1,8], index: 2, kind: input, shape index: {}]   ;;  %s6728_s3 = inlined_call_operand.vmem [shape: f32[1,8], index: 3, kind: input, shape index: {}]   ;;  %s6729_s4 = inlined_call_operand.vmem [shape: bf16[4,512,8], index: 4, kind: output, shape index: {}]  }
   0x1 LB: > { %s4433_s16 = sadd.s32 4294967295, %s4399_s15   ;;  %p3640_p0 = scmp.ge.s32.totalorder %s4399_s15, 1  ;;  %s4399_s15 = sphi %s4427_s15, %s14_s15  }
   0x2   : > { %p169_p1 = scmp.lt.s32.totalorder %s4399_s15, 5 }
   0x4   : > { %p170_p2 = pnand %p3640_p0, %p169_p1 }
   0x6   : > { %173 = sbr.rel (%p170_p2) target bundleno = 787 (0x313), region = 36 }
   0xb   : > { %s3643_s17 = sshll.u32 %s4433_s16, 3  ;;  %s3641_s18 = sshll.u32 %s4433_s16, 6  ;;  %vm464_vm0 = vcmask 523264  }
   0xc   : > { %p202_p3 = scmp.lt.s32.totalorder %s3643_s17, 31  ;;  %p196_p4 = scmp.lt.s32.totalorder %s3641_s18, 255 }
   0xd   : > { %p3713_p5 = scmp.ne.s32.totalorder %s4433_s16, 0 }
   0xe   : > { %s6793_s17 = smov (!%p202_p3, %s3643_s17), 31  ;;  %s6795_s18 = smov (!%p196_p4, %s3641_s18), 255 }
   0xf   : > { %s3644_s19 = sshll.u32 %s6793_s17, 2  ;;  %s3642_s23 = sshll.u32 %s6795_s18, 2 }
  0x10   : > { %s205_s22 = scalar_lea.vmem %s6726_s1, %s3644_s19  ;;  %s4445_s26 = scalar_lea.vmem %s6725_s0, %s3642_s23 }
  0x11   : > { %v4355_v0 = vld [vmem:[%s205_s22 + $0x18] sm:$0xff]   ;;  %v4356_v1 = vld [vmem:[%s205_s22 + $0x10] sm:$0xff]   ;;  %v4357_v2 = vld [vmem:[%s205_s22 + $0x8] sm:$0xff]  }
  0x12   : > { %4266 = vmatprep.subr.bf16.mxu0 %v4355_v0  ;;  %4338 = vmatprep.subr.bf16.mxu1 %v4355_v0  ;;  %v4359_v3 = vld [vmem:[%s4445_s26] sm:$0xff]   ;;  %v4361_v6 = vld [vmem:[%s4445_s26 + $0x8] sm:$0xff]   ;;  %v4363_v8 = vld [vmem:[%s4445_s26 + $0x10] sm:$0xff]  }
  0x13   : > { %4267 = vmatpush3.bf16.msra.mxu0 %v4355_v0  ;;  %4342 = vmatpush3.bf16.msra.mxu1 %v4355_v0  ;;  %v4360_v4 = vld [vmem:[%s4445_s26 + $0x80] sm:$0xff]   ;;  %v4362_v7 = vld [vmem:[%s4445_s26 + $0x88] sm:$0xff]   ;;  %v4364_v9 = vld [vmem:[%s4445_s26 + $0x90] sm:$0xff]  }
  0x14   : > { %4268 = vmatprep.subr.bf16.mxu0 %v4356_v1  ;;  %4339 = vmatprep.subr.bf16.mxu1 %v4356_v1  ;;  %v4358_v5 = vld [vmem:[%s205_s22] sm:$0xff]   ;;  %v4365_v10 = vld [vmem:[%s4445_s26 + $0x18] sm:$0xff]   ;;  %v4369_v14 = vld [vmem:[%s4445_s26 + $0x28] sm:$0xff]  }
  0x15   : > { %4274 = vmatprep.mubr.msk.bf16.mxu0 %vm464_vm0, %v4359_v3  ;;  %4306 = vmatprep.mubr.msk.bf16.mxu1 %vm464_vm0, %v4360_v4  ;;  %v4366_v11 = vld [vmem:[%s4445_s26 + $0x98] sm:$0xff]   ;;  %v4367_v12 = vld [vmem:[%s4445_s26 + $0x20] sm:$0xff]   ;;  %v4370_v15 = vld [vmem:[%s4445_s26 + $0xa8] sm:$0xff]  }
  0x16   : > { %v4368_v13 = vld [vmem:[%s4445_s26 + $0xa0] sm:$0xff]   ;;  %v4371_v16 = vld [vmem:[%s4445_s26 + $0x30] sm:$0xff]   ;;  %v4373_v18 = vld [vmem:[%s4445_s26 + $0x38] sm:$0xff]  }
  0x17   : > { %4269 = vmatpush3.bf16.msra.mxu0 %v4356_v1  ;;  %4343 = vmatpush3.bf16.msra.mxu1 %v4356_v1  ;;  %v4372_v17 = vld [vmem:[%s4445_s26 + $0xb0] sm:$0xff]   ;;  %v4374_v19 = vld [vmem:[%s4445_s26 + $0xb8] sm:$0xff]   ;;  %v4375_v20 = vld [vmem:[%s4445_s26 + $0x40] sm:$0xff]  }
  0x18   : > { %4270 = vmatprep.subr.bf16.mxu0 %v4357_v2  ;;  %4340 = vmatprep.subr.bf16.mxu1 %v4357_v2  ;;  %v4376_v21 = vld [vmem:[%s4445_s26 + $0xc0] sm:$0xff]   ;;  %v4377_v22 = vld [vmem:[%s4445_s26 + $0x48] sm:$0xff]   ;;  %v4379_v24 = vld [vmem:[%s4445_s26 + $0x50] sm:$0xff]  }
  0x19   : > { %v4378_v23 = vld [vmem:[%s4445_s26 + $0xc8] sm:$0xff]   ;;  %v4380_v25 = vld [vmem:[%s4445_s26 + $0xd0] sm:$0xff]   ;;  %v4381_v26 = vld [vmem:[%s4445_s26 + $0x58] sm:$0xff]  }
  0x1a   : > { %v4382_v27 = vld [vmem:[%s4445_s26 + $0xd8] sm:$0xff]   ;;  %v4383_v28 = vld [vmem:[%s4445_s26 + $0x60] sm:$0xff]   ;;  %v4385_v30 = vld [vmem:[%s4445_s26 + $0x68] sm:$0xff]  }
  0x1b   : > { %4271 = vmatpush3.bf16.msra.mxu0 %v4357_v2  ;;  %4344 = vmatpush3.bf16.msra.mxu1 %v4357_v2  ;;  %v4384_v29 = vld [vmem:[%s4445_s26 + $0xe0] sm:$0xff]   ;;  %v4386_v31 = vld [vmem:[%s4445_s26 + $0xe8] sm:$0xff]   ;;  %v4387_v32 = vld [vmem:[%s4445_s26 + $0x70] sm:$0xff]  }
  0x1c   : > { %4272 = vmatprep.subr.bf16.mxu0 %v4358_v5  ;;  %4341 = vmatprep.subr.bf16.mxu1 %v4358_v5  ;;  %v4388_v33 = vld [vmem:[%s4445_s26 + $0xf0] sm:$0xff]   ;;  %v4389_v34 = vld [vmem:[%s4445_s26 + $0x78] sm:$0xff]  }
  0x1d   : > { %v4390_v35 = vld [vmem:[%s4445_s26 + $0xf8] sm:$0xff]  }
  0x1f   : > { %4273 = vmatpush3.bf16.msra.mxu0 %v4358_v5  ;;  %4345 = vmatpush3.bf16.msra.mxu1 %v4358_v5 }
  0x22   : > { %4275 = vmatmul.mubr.msk.bf16.vlgmr.msra.gmra.mxu0 %vm464_vm0, %v4361_v6  ;;  %4307 = vmatmul.mubr.msk.bf16.vlgmr.msra.gmra.mxu1 %vm464_vm0, %v4362_v7 }
  0x23   : > { %4278 = vmatprep.mubr.msk.bf16.mxu0 %vm464_vm0, %v4363_v8  ;;  %4310 = vmatprep.mubr.msk.bf16.mxu1 %vm464_vm0, %v4364_v9 }
  0x2a   : > { %4279 = vmatmul.mubr.msk.bf16.gmra.mxu0 %vm464_vm0, %v4365_v10  ;;  %4311 = vmatmul.mubr.msk.bf16.gmra.mxu1 %vm464_vm0, %v4366_v11 }
  0x2b   : > { %4282 = vmatprep.mubr.msk.bf16.mxu0 %vm464_vm0, %v4367_v12  ;;  %4314 = vmatprep.mubr.msk.bf16.mxu1 %vm464_vm0, %v4368_v13 }
  0x32   : > { %4283 = vmatmul.mubr.msk.bf16.gmra.mxu0 %vm464_vm0, %v4369_v14  ;;  %4315 = vmatmul.mubr.msk.bf16.gmra.mxu1 %vm464_vm0, %v4370_v15 }
  0x33   : > { %4286 = vmatprep.mubr.msk.bf16.mxu0 %vm464_vm0, %v4371_v16  ;;  %4318 = vmatprep.mubr.msk.bf16.mxu1 %vm464_vm0, %v4372_v17 }
  0x3a   : > { %4287 = vmatmul.mubr.msk.bf16.gmra.mxu0 %vm464_vm0, %v4373_v18  ;;  %4319 = vmatmul.mubr.msk.bf16.gmra.mxu1 %vm464_vm0, %v4374_v19 }
  0x3b   : > { %4290 = vmatprep.mubr.msk.bf16.mxu0 %vm464_vm0, %v4375_v20  ;;  %4322 = vmatprep.mubr.msk.bf16.mxu1 %vm464_vm0, %v4376_v21 }
  0x42   : > { %4291 = vmatmul.mubr.msk.bf16.gmra.mxu0 %vm464_vm0, %v4377_v22  ;;  %4323 = vmatmul.mubr.msk.bf16.gmra.mxu1 %vm464_vm0, %v4378_v23 }
  0x43   : > { %4294 = vmatprep.mubr.msk.bf16.mxu0 %vm464_vm0, %v4379_v24  ;;  %4326 = vmatprep.mubr.msk.bf16.mxu1 %vm464_vm0, %v4380_v25 }
  0x4a   : > { %4295 = vmatmul.mubr.msk.bf16.gmra.mxu0 %vm464_vm0, %v4381_v26  ;;  %4327 = vmatmul.mubr.msk.bf16.gmra.mxu1 %vm464_vm0, %v4382_v27 }
  0x4b   : > { %4298 = vmatprep.mubr.msk.bf16.mxu0 %vm464_vm0, %v4383_v28  ;;  %4330 = vmatprep.mubr.msk.bf16.mxu1 %vm464_vm0, %v4384_v29 }
  0x52   : > { %4299 = vmatmul.mubr.msk.bf16.gmra.mxu0 %vm464_vm0, %v4385_v30  ;;  %4331 = vmatmul.mubr.msk.bf16.gmra.mxu1 %vm464_vm0, %v4386_v31 }
  0x53   : > { %4302 = vmatprep.mubr.msk.bf16.mxu0 %vm464_vm0, %v4387_v32  ;;  %4334 = vmatprep.mubr.msk.bf16.mxu1 %vm464_vm0, %v4388_v33 }
  0x5a   : > { %4303 = vmatmul.mubr.msk.bf16.gmra.mxu0 %vm464_vm0, %v4389_v34  ;;  %4335 = vmatmul.mubr.msk.bf16.gmra.mxu1 %vm464_vm0, %v4390_v35 }
  0xe2   : > { %v4511_v36 = vpop.f32.mrf.mxu0  ;;  %v4513_v37 = vpop.f32.mrf.mxu1 }
  0xe4   : > { %v4515_v38 = vpop.f32.mrf.mxu0  ;;  %v4517_v39 = vpop.f32.mrf.mxu1 }
  0xe6   : > { %v4519_v40 = vpop.f32.mrf.mxu0  ;;  %v4521_v41 = vpop.f32.mrf.mxu1 }
  0xe8   : > { %v4523_v42 = vpop.f32.mrf.mxu0  ;;  %v4525_v43 = vpop.f32.mrf.mxu1 }
  0xea   : > { %v4527_v44 = vpop.f32.mrf.mxu0  ;;  %v4529_v45 = vpop.f32.mrf.mxu1 }
  0xec   : > { %v4531_v46 = vpop.f32.mrf.mxu0  ;;  %v4533_v47 = vpop.f32.mrf.mxu1 }
  0xee   : > { %v4535_v48 = vpop.f32.mrf.mxu0  ;;  %v4537_v49 = vpop.f32.mrf.mxu1 }
  0xf0   : > { %v4539_v50 = vpop.f32.mrf.mxu0  ;;  %v4541_v51 = vpop.f32.mrf.mxu1 }
  0xf2   : > { %v4543_v52 = vpop.f32.mrf.mxu0  ;;  %v4545_v53 = vpop.f32.mrf.mxu1 }
  0xf4   : > { %v4547_v54 = vpop.f32.mrf.mxu0  ;;  %v4549_v55 = vpop.f32.mrf.mxu1 }
  0xf6   : > { %v4551_v56 = vpop.f32.mrf.mxu0  ;;  %v4553_v57 = vpop.f32.mrf.mxu1 }
  0xf8   : > { %v4555_v58 = vpop.f32.mrf.mxu0  ;;  %v4557_v59 = vpop.f32.mrf.mxu1 }
  0xfa   : > { %v4559_v60 = vpop.f32.mrf.mxu0  ;;  %v4561_v61 = vpop.f32.mrf.mxu1 }
  0xfb   : > { %6749 = vst [vmem:[#allocation5_spill] sm:$0xff] %v4561_v61 }
  0xfc   : > { %v4563_v62 = vpop.f32.mrf.mxu0  ;;  %v4565_v63 = vpop.f32.mrf.mxu1 }
  0xfe   : > { %v4567_v0 = vpop.f32.mrf.mxu0  ;;  %v4569_v1 = vpop.f32.mrf.mxu1 }
  0xff   : > { %6750 = vst [vmem:[#allocation6_spill] sm:$0xff] %v4569_v1 }
 0x100   : > { %v4571_v2 = vpop.f32.mrf.mxu0  ;;  %v4573_v3 = vpop.f32.mrf.mxu1 }
 0x101   : > { %6751 = vst [vmem:[#allocation7_spill] sm:$0xff] %v4573_v3 }
 0x102   : > { %v4575_v4 = vpop.f32.mrf.mxu0  ;;  %v4577_v5 = vpop.f32.mrf.mxu1 }
 0x103   : > { %6752 = vst [vmem:[#allocation8_spill] sm:$0xff] %v4577_v5 }
 0x104   : > { %v4579_v6 = vpop.f32.mrf.mxu0  ;;  %v4581_v7 = vpop.f32.mrf.mxu1 }
 0x105   : > { %6753 = vst [vmem:[#allocation9_spill] sm:$0xff] %v4581_v7 }
 0x106   : > { %v4583_v8 = vpop.f32.mrf.mxu0  ;;  %v4585_v9 = vpop.f32.mrf.mxu1 }
 0x107   : > { %6754 = vst [vmem:[#allocation10_spill] sm:$0xff] %v4585_v9 }
 0x108   : > { %v4587_v10 = vpop.f32.mrf.mxu0  ;;  %v4589_v11 = vpop.f32.mrf.mxu1 }
 0x109   : > { %6755 = vst [vmem:[#allocation11_spill] sm:$0xff] %v4589_v11 }
 0x10a   : > { %v4591_v12 = vpop.f32.mrf.mxu0  ;;  %v4593_v13 = vpop.f32.mrf.mxu1 }
 0x10b   : > { %6756 = vst [vmem:[#allocation12_spill] sm:$0xff] %v4593_v13 }
 0x10c   : > { %v4595_v14 = vpop.f32.mrf.mxu0  ;;  %v4597_v15 = vpop.f32.mrf.mxu1 }
 0x10d   : > { %6757 = vst [vmem:[#allocation13_spill] sm:$0xff] %v4597_v15 }
 0x10e   : > { %v4599_v16 = vpop.f32.mrf.mxu0  ;;  %v4601_v17 = vpop.f32.mrf.mxu1 }
 0x10f   : > { %6758 = vst [vmem:[#allocation14_spill] sm:$0xff] %v4601_v17 }
 0x110   : > { %v4603_v18 = vpop.f32.mrf.mxu0  ;;  %v4605_v19 = vpop.f32.mrf.mxu1 }
 0x111   : > { %6759 = vst [vmem:[#allocation15_spill] sm:$0xff] %v4605_v19 }
 0x112   : > { %v4607_v20 = vpop.f32.mrf.mxu0  ;;  %v4609_v21 = vpop.f32.mrf.mxu1 }
 0x113   : > { %6760 = vst [vmem:[#allocation16_spill] sm:$0xff] %v4609_v21 }
 0x114   : > { %v4611_v22 = vpop.f32.mrf.mxu0  ;;  %v4613_v23 = vpop.f32.mrf.mxu1 }
 0x115   : > { %6761 = vst [vmem:[#allocation17_spill] sm:$0xff] %v4613_v23 }
 0x116   : > { %v4615_v24 = vpop.f32.mrf.mxu0  ;;  %v4617_v25 = vpop.f32.mrf.mxu1 }
 0x117   : > { %6762 = vst [vmem:[#allocation18_spill] sm:$0xff] %v4617_v25 }
 0x118   : > { %v4619_v26 = vpop.f32.mrf.mxu0  ;;  %v4621_v27 = vpop.f32.mrf.mxu1 }
 0x119   : > { %6763 = vst [vmem:[#allocation19_spill] sm:$0xff] %v4621_v27 }
 0x11a   : > { %v4623_v28 = vpop.f32.mrf.mxu0  ;;  %v4625_v29 = vpop.f32.mrf.mxu1 }
 0x11b   : > { %6764 = vst [vmem:[#allocation20_spill] sm:$0xff] %v4625_v29 }
 0x11c   : > { %v4627_v30 = vpop.f32.mrf.mxu0  ;;  %v4629_v31 = vpop.f32.mrf.mxu1 }
 0x11d   : > { %6765 = vst [vmem:[#allocation21_spill] sm:$0xff] %v4629_v31  ;;  %853 = sbr.rel (%p3713_p5) target bundleno = 292 (0x124), region = 40 }
 0x11e   : > { %v4631_v32 = vpop.f32.mrf.mxu0  ;;  %v4633_v33 = vpop.f32.mrf.mxu1 }
 0x11f   : > { %6766 = vst [vmem:[#allocation22_spill] sm:$0xff] %v4633_v33 }
 0x120   : > { %v4635_v34 = vpop.f32.mrf.mxu0  ;;  %v4637_v35 = vpop.f32.mrf.mxu1 }
 0x121   : > { %6767 = vst [vmem:[#allocation23_spill] sm:$0xff] %v4637_v35 }
 0x122   : > { %vm854_vm1 = vcmask 57344   ;;  %v4401_v25 = vmov 0.0  }
 0x123   : > { %855 = vst.msk [vmem:[#allocation3] sm:$0x1] %vm854_vm1, %v4401_v25  ;;  %856 = vst.msk [vmem:[#allocation4] sm:$0x1] %vm854_vm1, %v4401_v25 }
 0x124 PF: > { %vm858_vm2 = vcmask 64512   ;;  %s3714_s27 = sshll.u32 %s4433_s16, 9  ;;  %vm993_vm3 = vcmask 57344   ;;  %p3715_p6 = scmp.ne.s32.totalorder %s4433_s16, 3 }
 0x125   : > { %v859_v29 = vsel %vm858_vm2, %v4515_v38, 0.0  ;;  %v860_v31 = vsel %vm858_vm2, %v4523_v42, 0.0  ;;  %v862_v33 = vsel %vm858_vm2, %v4511_v36, 0.0  ;;  %v864_v35 = vsel %vm858_vm2, %v4519_v40, 0.0  ;;  %s4738_s28 = scalar_lea.vmem [#allocation2], %s3714_s27 }
 0x126   : > { %v861_v21 = vadd.f32 %v860_v31, %v859_v29  ;;  %v866_v23 = vsel %vm858_vm2, %v4531_v46, 0.0  ;;  %v868_v17 = vsel %vm858_vm2, %v4539_v50, 0.0  ;;  %v870_v19 = vsel %vm858_vm2, %v4527_v44, 0.0  ;;  %1197 = vst.msk [vmem:[%s4738_s28] sm:$0xff] %vm858_vm2, %v4515_v38  ;;  %1198 = vst.msk [vmem:[%s4738_s28 + $0x8] sm:$0xff] %vm858_vm2, %v4523_v42 }
 0x127   : > { %v872_v9 = vsel %vm858_vm2, %v4535_v48, 0.0  ;;  %v874_v31 = vsel %vm858_vm2, %v4547_v54, 0.0  ;;  %v900_v7 = vsel %vm858_vm2, %v4603_v18, 0.0  ;;  %v902_v3 = vsel %vm858_vm2, %v4591_v12, 0.0  ;;  %1199 = vst.msk [vmem:[%s4738_s28 + $0x10] sm:$0xff] %vm858_vm2, %v4511_v36  ;;  %1200 = vst.msk [vmem:[%s4738_s28 + $0x18] sm:$0xff] %vm858_vm2, %v4519_v40 }
 0x128   : > { %v863_v27 = vadd.f32 %v862_v33, %v861_v21  ;;  %v876_v33 = vsel %vm858_vm2, %v4555_v58, 0.0  ;;  %1201 = vst.msk [vmem:[%s4738_s28 + $0x20] sm:$0xff] %vm858_vm2, %v4531_v46  ;;  %1202 = vst.msk [vmem:[%s4738_s28 + $0x28] sm:$0xff] %vm858_vm2, %v4539_v50 }
 0x129   : > { %1203 = vst.msk [vmem:[%s4738_s28 + $0x30] sm:$0xff] %vm858_vm2, %v4527_v44  ;;  %1204 = vst.msk [vmem:[%s4738_s28 + $0x38] sm:$0xff] %vm858_vm2, %v4535_v48 }
 0x12a   : > { %v865_v25 = vadd.f32 %v864_v35, %v863_v27  ;;  %v878_v35 = vsel %vm858_vm2, %v4543_v52, 0.0  ;;  %1205 = vst.msk [vmem:[%s4738_s28 + $0x40] sm:$0xff] %vm858_vm2, %v4547_v54  ;;  %1206 = vst.msk [vmem:[%s4738_s28 + $0x48] sm:$0xff] %vm858_vm2, %v4555_v58 }
 0x12b   : > { %1207 = vst.msk [vmem:[%s4738_s28 + $0x50] sm:$0xff] %vm858_vm2, %v4543_v52  ;;  %1208 = vst.msk [vmem:[%s4738_s28 + $0x58] sm:$0xff] %vm858_vm2, %v4551_v56 }
 0x12c   : > { %v867_v13 = vadd.f32 %v866_v23, %v865_v25  ;;  %v880_v25 = vsel %vm858_vm2, %v4551_v56, 0.0  ;;  %1209 = vst.msk [vmem:[%s4738_s28 + $0x60] sm:$0xff] %vm858_vm2, %v4563_v62  ;;  %1210 = vst.msk [vmem:[%s4738_s28 + $0x68] sm:$0xff] %vm858_vm2, %v4571_v2 }
 0x12d   : > { %1211 = vst.msk [vmem:[%s4738_s28 + $0x70] sm:$0xff] %vm858_vm2, %v4559_v60  ;;  %1212 = vst.msk [vmem:[%s4738_s28 + $0x78] sm:$0xff] %vm858_vm2, %v4567_v0 }
 0x12e   : > { %v869_v15 = vadd.f32 %v868_v17, %v867_v13  ;;  %v882_v17 = vsel %vm858_vm2, %v4563_v62, 0.0  ;;  %1213 = vst.msk [vmem:[%s4738_s28 + $0x80] sm:$0xff] %vm858_vm2, %v4579_v6  ;;  %1214 = vst.msk [vmem:[%s4738_s28 + $0x88] sm:$0xff] %vm858_vm2, %v4587_v10 }
 0x12f   : > { %1215 = vst.msk [vmem:[%s4738_s28 + $0x90] sm:$0xff] %vm858_vm2, %v4575_v4  ;;  %1216 = vst.msk [vmem:[%s4738_s28 + $0x98] sm:$0xff] %vm858_vm2, %v4583_v8 }
 0x130   : > { %v871_v29 = vadd.f32 %v870_v19, %v869_v15  ;;  %v884_v19 = vsel %vm858_vm2, %v4571_v2, 0.0  ;;  %1217 = vst.msk [vmem:[%s4738_s28 + $0xa0] sm:$0xff] %vm858_vm2, %v4595_v14  ;;  %1218 = vst.msk [vmem:[%s4738_s28 + $0xa8] sm:$0xff] %vm858_vm2, %v4603_v18 }
 0x131   : > { %1219 = vst.msk [vmem:[%s4738_s28 + $0xb0] sm:$0xff] %vm858_vm2, %v4591_v12  ;;  %1220 = vst.msk [vmem:[%s4738_s28 + $0xb8] sm:$0xff] %vm858_vm2, %v4599_v16 }
 0x132   : > { %v873_v21 = vadd.f32 %v872_v9, %v871_v29  ;;  %v886_v29 = vsel %vm858_vm2, %v4559_v60, 0.0  ;;  %1221 = vst.msk [vmem:[%s4738_s28 + $0xc0] sm:$0xff] %vm858_vm2, %v4611_v22  ;;  %1222 = vst.msk [vmem:[%s4738_s28 + $0xc8] sm:$0xff] %vm858_vm2, %v4619_v26 }
 0x133   : > { %1223 = vst.msk [vmem:[%s4738_s28 + $0xd0] sm:$0xff] %vm858_vm2, %v4607_v20  ;;  %1224 = vst.msk [vmem:[%s4738_s28 + $0xd8] sm:$0xff] %vm858_vm2, %v4615_v24 }
 0x134   : > { %v875_v27 = vadd.f32 %v874_v31, %v873_v21  ;;  %v888_v21 = vsel %vm858_vm2, %v4567_v0, 0.0  ;;  %1225 = vst.msk [vmem:[%s4738_s28 + $0xe0] sm:$0xff] %vm858_vm2, %v4627_v30  ;;  %1226 = vst.msk [vmem:[%s4738_s28 + $0xe8] sm:$0xff] %vm858_vm2, %v4635_v34 }
 0x135   : > { %1227 = vst.msk [vmem:[%s4738_s28 + $0xf0] sm:$0xff] %vm858_vm2, %v4623_v28  ;;  %1228 = vst.msk [vmem:[%s4738_s28 + $0xf8] sm:$0xff] %vm858_vm2, %v4631_v32 }
 0x136   : > { %v877_v23 = vadd.f32 %v876_v33, %v875_v27  ;;  %v890_v27 = vsel %vm858_vm2, %v4579_v6, 0.0  ;;  %1229 = vst.msk [vmem:[%s4738_s28 + $0x100] sm:$0xff] %vm858_vm2, %v4517_v39  ;;  %1230 = vst.msk [vmem:[%s4738_s28 + $0x108] sm:$0xff] %vm858_vm2, %v4525_v43 }
 0x137   : > { %1231 = vst.msk [vmem:[%s4738_s28 + $0x110] sm:$0xff] %vm858_vm2, %v4513_v37  ;;  %1232 = vst.msk [vmem:[%s4738_s28 + $0x118] sm:$0xff] %vm858_vm2, %v4521_v41 }
 0x138   : > { %v879_v13 = vadd.f32 %v878_v35, %v877_v23  ;;  %v892_v23 = vsel %vm858_vm2, %v4587_v10, 0.0  ;;  %1233 = vst.msk [vmem:[%s4738_s28 + $0x120] sm:$0xff] %vm858_vm2, %v4533_v47  ;;  %1234 = vst.msk [vmem:[%s4738_s28 + $0x128] sm:$0xff] %vm858_vm2, %v4541_v51 }
 0x139   : > { %1235 = vst.msk [vmem:[%s4738_s28 + $0x130] sm:$0xff] %vm858_vm2, %v4529_v45  ;;  %1236 = vst.msk [vmem:[%s4738_s28 + $0x138] sm:$0xff] %vm858_vm2, %v4537_v49 }
 0x13a   : > { %v881_v15 = vadd.f32 %v880_v25, %v879_v13  ;;  %v894_v13 = vsel %vm858_vm2, %v4575_v4, 0.0  ;;  %1237 = vst.msk [vmem:[%s4738_s28 + $0x140] sm:$0xff] %vm858_vm2, %v4549_v55  ;;  %1238 = vst.msk [vmem:[%s4738_s28 + $0x148] sm:$0xff] %vm858_vm2, %v4557_v59 }
 0x13b   : > { %1239 = vst.msk [vmem:[%s4738_s28 + $0x150] sm:$0xff] %vm858_vm2, %v4545_v53  ;;  %1240 = vst.msk [vmem:[%s4738_s28 + $0x158] sm:$0xff] %vm858_vm2, %v4553_v57 }
 0x13c   : > { %v883_v9 = vadd.f32 %v882_v17, %v881_v15  ;;  %v996_v17 = vmul.f32 %v4515_v38, %v4515_v38  ;;  %v997_v15 = vmul.f32 %v4523_v42, %v4523_v42  ;;  %1241 = vst.msk [vmem:[%s4738_s28 + $0x160] sm:$0xff] %vm858_vm2, %v4565_v63  ;;  %v6769_v38 = vld [vmem:[#allocation5_spill] sm:$0xff] }
 0x13d   : > { %1243 = vst.msk [vmem:[%s4738_s28 + $0x170] sm:$0xff] %vm858_vm2, %v6769_v38  ;;  %v6771_v42 = vld [vmem:[#allocation9_spill] sm:$0xff] }
 0x13e   : > { %v885_v31 = vadd.f32 %v884_v19, %v883_v9  ;;  %v998_v19 = vmul.f32 %v4511_v36, %v4511_v36  ;;  %v1061_v5 = vsel %vm858_vm2, %v997_v15, 0.0  ;;  %v6768_v36 = vld [vmem:[#allocation7_spill] sm:$0xff]  ;;  %1245 = vst.msk [vmem:[%s4738_s28 + $0x180] sm:$0xff] %vm858_vm2, %v6771_v42 }
 0x13f   : > { %1242 = vst.msk [vmem:[%s4738_s28 + $0x168] sm:$0xff] %vm858_vm2, %v6768_v36 }
 0x140   : > { %v887_v33 = vadd.f32 %v886_v29, %v885_v31  ;;  %v896_v29 = vsel %vm858_vm2, %v4583_v8, 0.0  ;;  %v999_v31 = vmul.f32 %v4519_v40, %v4519_v40  ;;  %v1063_v11 = vsel %vm858_vm2, %v998_v19, 0.0  ;;  %v6770_v40 = vld [vmem:[#allocation6_spill] sm:$0xff] }
 0x141   : > { %1244 = vst.msk [vmem:[%s4738_s28 + $0x178] sm:$0xff] %vm858_vm2, %v6770_v40 }
 0x142   : > { %v889_v35 = vadd.f32 %v888_v21, %v887_v33  ;;  %v898_v33 = vsel %vm858_vm2, %v4595_v14, 0.0 }
 0x144   : > { %v891_v25 = vadd.f32 %v890_v27, %v889_v35  ;;  %v1000_v27 = vmul.f32 %v4531_v46, %v4531_v46  ;;  %v1060_v35 = vsel %vm858_vm2, %v996_v17, 0.0  ;;  %v1002_v17 = vmul.f32 %v4527_v44, %v4527_v44  ;;  %v6772_v44 = vld [vmem:[#allocation11_spill] sm:$0xff]  ;;  %v6773_v46 = vld [vmem:[#allocation8_spill] sm:$0xff] }
 0x145   : > { %1246 = vst.msk [vmem:[%s4738_s28 + $0x188] sm:$0xff] %vm858_vm2, %v6772_v44  ;;  %1247 = vst.msk [vmem:[%s4738_s28 + $0x190] sm:$0xff] %vm858_vm2, %v6773_v46 }
 0x146   : > { %v893_v9 = vadd.f32 %v892_v23, %v891_v25  ;;  %v1062_v25 = vadd.f32 %v1061_v5, %v1060_v35  ;;  %v1067_v15 = vsel %vm858_vm2, %v1000_v27, 0.0  ;;  %v906_v35 = vsel %vm858_vm2, %v4611_v22, 0.0 }
 0x147   : > { %v908_v27 = vsel %vm858_vm2, %v4619_v26, 0.0 }
 0x148   : > { %v895_v21 = vadd.f32 %v894_v13, %v893_v9  ;;  %v1001_v13 = vmul.f32 %v4539_v50, %v4539_v50  ;;  %v1065_v9 = vsel %vm858_vm2, %v999_v31, 0.0  ;;  %v1064_v61 = vadd.f32 %v1063_v11, %v1062_v25  ;;  %v6775_v50 = vld [vmem:[#allocation13_spill] sm:$0xff] }
 0x149   : > { %v4719_v25 = vmul.f32 %v4555_v58, %v4555_v58  ;;  %1249 = vst.msk [vmem:[%s4738_s28 + $0x1a0] sm:$0xff] %vm858_vm2, %v6775_v50  ;;  %v6778_v58 = vld [vmem:[#allocation14_spill] sm:$0xff] }
 0x14a   : > { %v897_v23 = vadd.f32 %v896_v29, %v895_v21  ;;  %v1066_v5 = vadd.f32 %v1065_v9, %v1064_v61  ;;  %v904_v29 = vsel %vm858_vm2, %v4599_v16, 0.0  ;;  %v1003_v21 = vmul.f32 %v4535_v48, %v4535_v48  ;;  %v6774_v48 = vld [vmem:[#allocation10_spill] sm:$0xff]  ;;  %1252 = vst.msk [vmem:[%s4738_s28 + $0x1b8] sm:$0xff] %vm858_vm2, %v6778_v58 }
 0x14b   : > { %v1069_v31 = vsel %vm858_vm2, %v1001_v13, 0.0  ;;  %1248 = vst.msk [vmem:[%s4738_s28 + $0x198] sm:$0xff] %vm858_vm2, %v6774_v48 }
 0x14c   : > { %v899_v1 = vadd.f32 %v898_v33, %v897_v23  ;;  %v1068_v33 = vadd.f32 %v1067_v15, %v1066_v5  ;;  %v1004_v23 = vmul.f32 %v4547_v54, %v4547_v54  ;;  %v4725_v15 = vsel %vm858_vm2, %v4607_v20, 0.0  ;;  %v6777_v54 = vld [vmem:[#allocation12_spill] sm:$0xff] }
 0x14d   : > { %1251 = vst.msk [vmem:[%s4738_s28 + $0x1b0] sm:$0xff] %vm858_vm2, %v6777_v54 }
 0x14e   : > { %v901_v19 = vadd.f32 %v900_v7, %v899_v1  ;;  %v1071_v1 = vsel %vm858_vm2, %v1002_v17, 0.0  ;;  %v1070_v7 = vadd.f32 %v1069_v31, %v1068_v33  ;;  %v4729_v17 = vmul.f32 %v4543_v52, %v4543_v52  ;;  %v6776_v52 = vld [vmem:[#allocation15_spill] sm:$0xff]  ;;  %v6782_v33 = vld [vmem:[#allocation18_spill] sm:$0xff] }
 0x14f   : > { %1250 = vst.msk [vmem:[%s4738_s28 + $0x1a8] sm:$0xff] %vm858_vm2, %v6776_v52  ;;  %v6780_v31 = vld [vmem:[#allocation19_spill] sm:$0xff]  ;;  %1256 = vst.msk [vmem:[%s4738_s28 + $0x1d8] sm:$0xff] %vm858_vm2, %v6782_v33  ;;  %v918_v33 = vsel %vm858_vm2, %v4623_v28, 0.0 }
 0x150   : > { %v903_v11 = vadd.f32 %v902_v3, %v901_v19  ;;  %v1073_v3 = vsel %vm858_vm2, %v1003_v21, 0.0  ;;  %v1072_v9 = vadd.f32 %v1071_v1, %v1070_v7  ;;  %v4732_v19 = vsel %vm858_vm2, %v1004_v23, 0.0  ;;  %v6779_v21 = vld [vmem:[#allocation17_spill] sm:$0xff]  ;;  %1254 = vst.msk [vmem:[%s4738_s28 + $0x1c8] sm:$0xff] %vm858_vm2, %v6780_v31  ;;  %v6784_v23 = vld [vmem:[#allocation23_spill] sm:$0xff]  ;;  %v6785_v1 = vld [vmem:[#allocation20_spill] sm:$0xff] }
 0x151   : > { %1253 = vst.msk [vmem:[%s4738_s28 + $0x1c0] sm:$0xff] %vm858_vm2, %v6779_v21  ;;  %1258 = vst.msk [vmem:[%s4738_s28 + $0x1e8] sm:$0xff] %vm858_vm2, %v6784_v23  ;;  %v912_v7 = vsel %vm858_vm2, %v4615_v24, 0.0  ;;  %v1079_v23 = vsel %vm858_vm2, %v4729_v17, 0.0 }
 0x152   : > { %v905_v61 = vadd.f32 %v904_v29, %v903_v11  ;;  %v4736_v29 = vadd.f32 %v1073_v3, %v1072_v9  ;;  %v6781_v11 = vld [vmem:[#allocation16_spill] sm:$0xff]  ;;  %1259 = vst.msk [vmem:[%s4738_s28 + $0x1f0] sm:$0xff] %vm858_vm2, %v6785_v1  ;;  %v1077_v3 = vsel %vm858_vm2, %v4719_v25, 0.0  ;;  %v914_v1 = vsel %vm858_vm2, %v4627_v30, 0.0 }
 0x153   : > { %1255 = vst.msk [vmem:[%s4738_s28 + $0x1d0] sm:$0xff] %vm858_vm2, %v6781_v11  ;;  %v916_v25 = vsel %vm858_vm2, %v4635_v34, 0.0 }
 0x154   : > { %v907_v13 = vadd.f32 %v906_v35, %v905_v61  ;;  %v6783_v35 = vld [vmem:[#allocation21_spill] sm:$0xff]  ;;  %v6786_v61 = vld [vmem:[#allocation22_spill] sm:$0xff]  ;;  %v1076_v9 = vadd.f32 %v4732_v19, %v4736_v29 }
 0x155   : > { %1257 = vst.msk [vmem:[%s4738_s28 + $0x1e0] sm:$0xff] %vm858_vm2, %v6783_v35  ;;  %1260 = vst.msk [vmem:[%s4738_s28 + $0x1f8] sm:$0xff] %vm858_vm2, %v6786_v61  ;;  %v1008_v61 = vmul.f32 %v4563_v62, %v4563_v62  ;;  %v1010_v62 = vmul.f32 %v4559_v60, %v4559_v60  ;;  %v1012_v60 = vmul.f32 %v4579_v6, %v4579_v6 }
 0x156   : > { %v4734_v5 = vadd.f32 %v908_v27, %v907_v13  ;;  %v1007_v27 = vmul.f32 %v4551_v56, %v4551_v56  ;;  %v1078_v56 = vadd.f32 %v1077_v3, %v1076_v9  ;;  %v1014_v6 = vmul.f32 %v4575_v4, %v4575_v4 }
 0x157   : > { %v1083_v17 = vsel %vm858_vm2, %v1008_v61, 0.0  ;;  %v1087_v61 = vsel %vm858_vm2, %v1010_v62, 0.0  ;;  %v1016_v4 = vmul.f32 %v4595_v14, %v4595_v14  ;;  %v1018_v14 = vmul.f32 %v4591_v12, %v4591_v12 }
 0x158   : > { %v911_v13 = vadd.f32 %v4725_v15, %v4734_v5  ;;  %v1009_v15 = vmul.f32 %v4571_v2, %v4571_v2  ;;  %v1081_v5 = vsel %vm858_vm2, %v1007_v27, 0.0  ;;  %v1080_v29 = vadd.f32 %v1079_v23, %v1078_v56 }
 0x159   : > { %v1011_v2 = vmul.f32 %v4567_v0, %v4567_v0  ;;  %v1013_v0 = vmul.f32 %v4587_v10, %v4587_v10  ;;  %v1015_v10 = vmul.f32 %v4583_v8, %v4583_v8  ;;  %v1017_v8 = vmul.f32 %v4603_v18, %v4603_v18 }
 0x15a   : > { %v913_v35 = vadd.f32 %v912_v7, %v911_v13  ;;  %v1082_v3 = vadd.f32 %v1081_v5, %v1080_v29  ;;  %v920_v13 = vsel %vm858_vm2, %v4631_v32, 0.0  ;;  %v1085_v27 = vsel %vm858_vm2, %v1009_v15, 0.0 }
 0x15b   : > { %v1089_v15 = vsel %vm858_vm2, %v1011_v2, 0.0  ;;  %v1091_v29 = vsel %vm858_vm2, %v1012_v60, 0.0  ;;  %v932_v60 = vsel %vm858_vm2, %v4541_v51, 0.0  ;;  %v1019_v18 = vmul.f32 %v4599_v16, %v4599_v16 }
 0x15c   : > { %v915_v19 = vadd.f32 %v914_v1, %v913_v35  ;;  %v1084_v23 = vadd.f32 %v1083_v17, %v1082_v3  ;;  %v922_v1 = vsel %vm858_vm2, %v4517_v39, 0.0  ;;  %v1093_v3 = vsel %vm858_vm2, %v1013_v0, 0.0 }
 0x15d   : > { %v1099_v0 = vsel %vm858_vm2, %v1016_v4, 0.0  ;;  %v1020_v12 = vmul.f32 %v4611_v22, %v4611_v22  ;;  %v1021_v16 = vmul.f32 %v4619_v26, %v4619_v26  ;;  %v942_v4 = vsel %vm858_vm2, %v4545_v53, 0.0 }
 0x15e   : > { %v917_v7 = vadd.f32 %v916_v25, %v915_v19  ;;  %v1086_v56 = vadd.f32 %v1085_v27, %v1084_v23  ;;  %v924_v25 = vsel %vm858_vm2, %v4525_v43, 0.0  ;;  %v926_v19 = vsel %vm858_vm2, %v4513_v37, 0.0 }
 0x15f   : > { %v930_v27 = vsel %vm858_vm2, %v4533_v47, 0.0  ;;  %v1022_v22 = vmul.f32 %v4607_v20, %v4607_v20  ;;  %v1023_v26 = vmul.f32 %v4615_v24, %v4615_v24  ;;  %v1024_v20 = vmul.f32 %v4627_v30, %v4627_v30 }
 0x160   : > { %v919_v35 = vadd.f32 %v918_v33, %v917_v7  ;;  %v1088_v5 = vadd.f32 %v1087_v61, %v1086_v56  ;;  %v928_v7 = vsel %vm858_vm2, %v4521_v41, 0.0  ;;  %v1097_v61 = vsel %vm858_vm2, %v1015_v10, 0.0 }
 0x161   : > { %v1025_v24 = vmul.f32 %v4635_v34, %v4635_v34  ;;  %v1026_v30 = vmul.f32 %v4623_v28, %v4623_v28  ;;  %v1027_v34 = vmul.f32 %v4631_v32, %v4631_v32  ;;  %v1028_v28 = vmul.f32 %v4517_v39, %v4517_v39 }
 0x162   : > { %v921_v9 = vadd.f32 %v920_v13, %v919_v35  ;;  %v1090_v17 = vadd.f32 %v1089_v15, %v1088_v5  ;;  %v1095_v35 = vsel %vm858_vm2, %v1014_v6, 0.0  ;;  %v936_v5 = vsel %vm858_vm2, %v4537_v49, 0.0 }
 0x163   : > { %v1029_v32 = vmul.f32 %v4525_v43, %v4525_v43  ;;  %v1030_v39 = vmul.f32 %v4513_v37, %v4513_v37  ;;  %v1031_v43 = vmul.f32 %v4521_v41, %v4521_v41  ;;  %v1032_v37 = vmul.f32 %v4533_v47, %v4533_v47 }
 0x164   : > { %v923_v33 = vadd.f32 %v922_v1, %v921_v9  ;;  %v1092_v2 = vadd.f32 %v1091_v29, %v1090_v17  ;;  %v1103_v17 = vsel %vm858_vm2, %v1018_v14, 0.0  ;;  %v1033_v41 = vmul.f32 %v4541_v51, %v4541_v51 }
 0x165   : > { %v1034_v47 = vmul.f32 %v4529_v45, %v4529_v45  ;;  %v1035_v51 = vmul.f32 %v4537_v49, %v4537_v49  ;;  %v1037_v49 = vmul.f32 %v4557_v59, %v4557_v59 }
 0x166   : > { %v925_v62 = vadd.f32 %v924_v25, %v923_v33  ;;  %v1094_v1 = vadd.f32 %v1093_v3, %v1092_v2  ;;  %v934_v25 = vsel %vm858_vm2, %v4529_v45, 0.0  ;;  %v940_v3 = vsel %vm858_vm2, %v4557_v59, 0.0 }
 0x167   : > { %v1036_v45 = vmul.f32 %v4549_v55, %v4549_v55  ;;  %v1039_v59 = vmul.f32 %v4553_v57, %v4553_v57 }
 0x168   : > { %v927_v13 = vadd.f32 %v926_v19, %v925_v62  ;;  %v1096_v56 = vadd.f32 %v1095_v35, %v1094_v1  ;;  %v1101_v19 = vsel %vm858_vm2, %v1017_v8, 0.0  ;;  %v938_v62 = vsel %vm858_vm2, %v4549_v55, 0.0 }
 0x169   : > { %v1107_v35 = vsel %vm858_vm2, %v1020_v12, 0.0  ;;  %v1109_v8 = vsel %vm858_vm2, %v1021_v16, 0.0  ;;  %v952_v12 = vsel %vm858_vm2, %v6770_v40, 0.0  ;;  %v1119_v16 = vsel %vm858_vm2, %v1026_v30, 0.0 }
 0x16a   : > { %v929_v23 = vadd.f32 %v928_v7, %v927_v13  ;;  %v1098_v33 = vadd.f32 %v1097_v61, %v1096_v56  ;;  %v1105_v13 = vsel %vm858_vm2, %v1019_v18, 0.0  ;;  %v946_v56 = vsel %vm858_vm2, %v4565_v63, 0.0 }
 0x16b   : > { %v1038_v55 = vmul.f32 %v4545_v53, %v4545_v53  ;;  %v1040_v53 = vmul.f32 %v4565_v63, %v4565_v63  ;;  %v1042_v63 = vmul.f32 %v6769_v38, %v6769_v38 }
 0x16c   : > { %v931_v9 = vadd.f32 %v930_v27, %v929_v23  ;;  %v1100_v29 = vadd.f32 %v1099_v0, %v1098_v33  ;;  %v1113_v33 = vsel %vm858_vm2, %v1023_v26, 0.0 }
 0x16e   : > { %v933_v15 = vadd.f32 %v932_v60, %v931_v9  ;;  %v1102_v10 = vadd.f32 %v1101_v19, %v1100_v29  ;;  %v944_v60 = vsel %vm858_vm2, %v4553_v57, 0.0  ;;  %v950_v19 = vsel %vm858_vm2, %v6769_v38, 0.0 }
 0x16f   : > { %v1041_v57 = vmul.f32 %v6768_v36, %v6768_v36 }
 0x170   : > { %v935_v6 = vadd.f32 %v934_v25, %v933_v15  ;;  %v1104_v27 = vadd.f32 %v1103_v17, %v1102_v10  ;;  %v1111_v25 = vsel %vm858_vm2, %v1022_v22, 0.0  ;;  %v948_v15 = vsel %vm858_vm2, %v6768_v36, 0.0 }
 0x171   : > { %v1117_v17 = vsel %vm858_vm2, %v1025_v24, 0.0  ;;  %v1129_v24 = vsel %vm858_vm2, %v1031_v43, 0.0  ;;  %v1143_v43 = vsel %vm858_vm2, %v1038_v55, 0.0  ;;  %v1043_v36 = vmul.f32 %v6770_v40, %v6770_v40 }
 0x172   : > { %v937_v7 = vadd.f32 %v936_v5, %v935_v6  ;;  %v1106_v1 = vadd.f32 %v1105_v13, %v1104_v27  ;;  %v1115_v6 = vsel %vm858_vm2, %v1024_v20, 0.0  ;;  %v956_v27 = vsel %vm858_vm2, %v6772_v44, 0.0 }
 0x173   : > { %v962_v20 = vsel %vm858_vm2, %v6775_v50, 0.0  ;;  %v1046_v40 = vmul.f32 %v6773_v46, %v6773_v46 }
 0x174   : > { %v939_v2 = vadd.f32 %v938_v62, %v937_v7  ;;  %v1108_v9 = vadd.f32 %v1107_v35, %v1106_v1  ;;  %v1123_v1 = vsel %vm858_vm2, %v1028_v28, 0.0  ;;  %v972_v28 = vsel %vm858_vm2, %v6780_v31, 0.0 }
 0x176   : > { %v941_v23 = vadd.f32 %v940_v3, %v939_v2  ;;  %v1110_v0 = vadd.f32 %v1109_v8, %v1108_v9  ;;  %v954_v3 = vsel %vm858_vm2, %v6771_v42, 0.0  ;;  %v960_v8 = vsel %vm858_vm2, %v6774_v48, 0.0 }
 0x178   : > { %v943_v61 = vadd.f32 %v942_v4, %v941_v23  ;;  %v1112_v18 = vadd.f32 %v1111_v25, %v1110_v0  ;;  %v1121_v4 = vsel %vm858_vm2, %v1027_v34, 0.0  ;;  %v958_v23 = vsel %vm858_vm2, %v6773_v46, 0.0 }
 0x179   : > { %v1127_v25 = vsel %vm858_vm2, %v1030_v39, 0.0  ;;  %v1141_v39 = vsel %vm858_vm2, %v1037_v49, 0.0  ;;  %v1049_v46 = vmul.f32 %v6776_v52, %v6776_v52 }
 0x17a   : > { %v945_v14 = vadd.f32 %v944_v60, %v943_v61  ;;  %v1114_v62 = vadd.f32 %v1113_v33, %v1112_v18  ;;  %v1125_v61 = vsel %vm858_vm2, %v1029_v32, 0.0  ;;  %v966_v18 = vsel %vm858_vm2, %v6777_v54, 0.0 }
 0x17b   : > { %v1139_v32 = vsel %vm858_vm2, %v1036_v45, 0.0 }
 0x17c   : > { %v947_v5 = vadd.f32 %v946_v56, %v945_v14  ;;  %v1116_v10 = vadd.f32 %v1115_v6, %v1114_v62  ;;  %v1133_v62 = vsel %vm858_vm2, %v1033_v41, 0.0  ;;  %v1147_v41 = vsel %vm858_vm2, %v1040_v53, 0.0 }
 0x17d   : > { %v1053_v53 = vmul.f32 %v6780_v31, %v6780_v31 }
 0x17e   : > { %v949_v29 = vadd.f32 %v948_v15, %v947_v5  ;;  %v1118_v2 = vadd.f32 %v1117_v17, %v1116_v10  ;;  %v964_v15 = vsel %vm858_vm2, %v6776_v52, 0.0  ;;  %v970_v17 = vsel %vm858_vm2, %v6779_v21, 0.0 }
 0x180   : > { %v951_v7 = vadd.f32 %v950_v19, %v949_v29  ;;  %v1120_v35 = vadd.f32 %v1119_v16, %v1118_v2  ;;  %v1131_v19 = vsel %vm858_vm2, %v1032_v37, 0.0  ;;  %v968_v29 = vsel %vm858_vm2, %v6778_v58, 0.0 }
 0x181   : > { %v1137_v16 = vsel %vm858_vm2, %v1035_v51, 0.0  ;;  %v1145_v37 = vsel %vm858_vm2, %v1039_v59, 0.0 }
 0x182   : > { %v953_v13 = vadd.f32 %v952_v12, %v951_v7  ;;  %v1122_v26 = vadd.f32 %v1121_v4, %v1120_v35  ;;  %v1135_v7 = vsel %vm858_vm2, %v1034_v47, 0.0  ;;  %v6787_v35 = vld [vmem:[#allocation18_spill] sm:$0xff]  ;;  %v1149_v47 = vsel %vm858_vm2, %v1041_v57, 0.0 }
 0x183   : > { %v1173_v57 = vsel %vm858_vm2, %v1053_v53, 0.0 }
 0x184   : > { %v955_v22 = vadd.f32 %v954_v3, %v953_v13  ;;  %v1124_v56 = vadd.f32 %v1123_v1, %v1122_v26  ;;  %v6788_v26 = vld [vmem:[#allocation21_spill] sm:$0xff] }
 0x186   : > { %v957_v60 = vadd.f32 %v956_v27, %v955_v22  ;;  %v1126_v0 = vadd.f32 %v1125_v61, %v1124_v56  ;;  %v974_v27 = vsel %vm858_vm2, %v6781_v11, 0.0  ;;  %v6789_v56 = vld [vmem:[#allocation23_spill] sm:$0xff] }
 0x188   : > { %v959_v9 = vadd.f32 %v958_v23, %v957_v60  ;;  %v1128_v5 = vadd.f32 %v1127_v25, %v1126_v0  ;;  %v976_v23 = vsel %vm858_vm2, %v6787_v35, 0.0  ;;  %v6790_v0 = vld [vmem:[#allocation20_spill] sm:$0xff] }
 0x18a   : > { %v961_v14 = vadd.f32 %v960_v8, %v959_v9  ;;  %v1130_v6 = vadd.f32 %v1129_v24, %v1128_v5  ;;  %v978_v8 = vsel %vm858_vm2, %v6788_v26, 0.0  ;;  %v6791_v5 = vld [vmem:[#allocation22_spill] sm:$0xff] }
 0x18c   : > { %v963_v33 = vadd.f32 %v962_v20, %v961_v14  ;;  %v1132_v34 = vadd.f32 %v1131_v19, %v1130_v6  ;;  %v980_v20 = vsel %vm858_vm2, %v6789_v56, 0.0  ;;  %v1044_v6 = vmul.f32 %v6771_v42, %v6771_v42 }
 0x18d   : > { %v1047_v42 = vmul.f32 %v6774_v48, %v6774_v48  ;;  %v1050_v48 = vmul.f32 %v6777_v54, %v6777_v54 }
 0x18e   : > { %v965_v30 = vadd.f32 %v964_v15, %v963_v33  ;;  %v1134_v3 = vadd.f32 %v1133_v62, %v1132_v34  ;;  %v982_v15 = vsel %vm858_vm2, %v6790_v0, 0.0  ;;  %v1045_v62 = vmul.f32 %v6772_v44, %v6772_v44 }
 0x18f   : > { %v1155_v45 = vsel %vm858_vm2, %v1044_v6, 0.0  ;;  %v1048_v44 = vmul.f32 %v6775_v50, %v6775_v50  ;;  %v1051_v50 = vmul.f32 %v6778_v58, %v6778_v58  ;;  %v1054_v58 = vmul.f32 %v6781_v11, %v6781_v11 }
 0x190   : > { %v967_v12 = vadd.f32 %v966_v18, %v965_v30  ;;  %v1136_v2 = vadd.f32 %v1135_v7, %v1134_v3  ;;  %v984_v18 = vsel %vm858_vm2, %v6791_v5, 0.0  ;;  %v1157_v3 = vsel %vm858_vm2, %v1045_v62, 0.0  ;;  %v995_v62 = vld [vmem:[#allocation4] sm:$0x1] }
 0x191   : > { %v1175_v31 = vsel %vm858_vm2, %v1054_v58, 0.0 }
 0x192   : > { %v969_v10 = vadd.f32 %v968_v29, %v967_v12  ;;  %v1138_v22 = vadd.f32 %v1137_v16, %v1136_v2  ;;  %v1151_v29 = vsel %vm858_vm2, %v1042_v63, 0.0  ;;  %v1153_v12 = vsel %vm858_vm2, %v1043_v36, 0.0 }
 0x193   : > { %v1159_v16 = vsel %vm858_vm2, %v1046_v40, 0.0 }
 0x194   : > { %v971_v13 = vadd.f32 %v970_v17, %v969_v10  ;;  %v1140_v60 = vadd.f32 %v1139_v32, %v1138_v22  ;;  %v1163_v22 = vsel %vm858_vm2, %v1048_v44, 0.0 }
 0x196   : > { %v973_v4 = vadd.f32 %v972_v28, %v971_v13  ;;  %v1142_v9 = vadd.f32 %v1141_v39, %v1140_v60  ;;  %v1165_v39 = vsel %vm858_vm2, %v1049_v46, 0.0  ;;  %v1052_v60 = vmul.f32 %v6779_v21, %v6779_v21 }
 0x197   : > { %v1055_v21 = vmul.f32 %v6787_v35, %v6787_v35 }
 0x198   : > { %v975_v1 = vadd.f32 %v974_v27, %v973_v4  ;;  %v1144_v14 = vadd.f32 %v1143_v43, %v1142_v9  ;;  %v1161_v27 = vsel %vm858_vm2, %v1047_v42, 0.0  ;;  %v857_v4 = vld [vmem:[#allocation3] sm:$0x1]  ;;  %v1169_v43 = vsel %vm858_vm2, %v1051_v50, 0.0 }
 0x199   : > { %v1171_v9 = vsel %vm858_vm2, %v1052_v60, 0.0  ;;  %v1177_v11 = vsel %vm858_vm2, %v1055_v21, 0.0 }
 0x19a   : > { %v977_v61 = vadd.f32 %v976_v23, %v975_v1  ;;  %v1146_v33 = vadd.f32 %v1145_v37, %v1144_v14 }
 0x19c   : > { %v979_v25 = vadd.f32 %v978_v8, %v977_v61  ;;  %v1148_v30 = vadd.f32 %v1147_v41, %v1146_v33  ;;  %v1167_v8 = vsel %vm858_vm2, %v1050_v48, 0.0  ;;  %v1058_v41 = vmul.f32 %v6790_v0, %v6790_v0 }
 0x19d   : > { %v1059_v33 = vmul.f32 %v6791_v5, %v6791_v5 }
 0x19e   : > { %v981_v24 = vadd.f32 %v980_v20, %v979_v25  ;;  %v1150_v51 = vadd.f32 %v1149_v47, %v1148_v30  ;;  %v1056_v25 = vmul.f32 %v6788_v26, %v6788_v26  ;;  %v1183_v36 = vsel %vm858_vm2, %v1058_v41, 0.0 }
 0x1a0   : > { %v983_v19 = vadd.f32 %v982_v15, %v981_v24  ;;  %v1152_v17 = vadd.f32 %v1151_v29, %v1150_v51  ;;  %v1057_v15 = vmul.f32 %v6789_v56, %v6789_v56  ;;  %v1179_v35 = vsel %vm858_vm2, %v1056_v25, 0.0 }
 0x1a1   : > { %v1185_v56 = vsel %vm858_vm2, %v1059_v33, 0.0 }
 0x1a2   : > { %v985_v38 = vadd.f32 %v984_v18, %v983_v19  ;;  %v1154_v10 = vadd.f32 %v1153_v12, %v1152_v17  ;;  %v1181_v26 = vsel %vm858_vm2, %v1057_v15, 0.0 }
 0x1a4   : > { %v986_v34 = vrot.slane %v985_v38, 4  ;;  %v1156_v49 = vadd.f32 %v1155_v45, %v1154_v10 }
 0x1a6   : > { %v987_v7 = vadd.f32 %v986_v34, %v985_v38  ;;  %v1158_v2 = vadd.f32 %v1157_v3, %v1156_v49 }
 0x1a8   : > { %v988_v28 = vrot.slane %v987_v7, 2  ;;  %v1160_v32 = vadd.f32 %v1159_v16, %v1158_v2 }
 0x1aa   : > { %v989_v13 = vadd.f32 %v988_v28, %v987_v7  ;;  %v1162_v59 = vadd.f32 %v1161_v27, %v1160_v32 }
 0x1ac   : > { %v990_v55 = vrot.slane %v989_v13, 1  ;;  %v1164_v52 = vadd.f32 %v1163_v22, %v1162_v59 }
 0x1ae   : > { %v991_v23 = vadd.f32 %v990_v55, %v989_v13  ;;  %v1166_v54 = vadd.f32 %v1165_v39, %v1164_v52 }
 0x1b0   : > { %v992_v1 = vadd.f32 %v991_v23, %v857_v4  ;;  %v1168_v61 = vadd.f32 %v1167_v8, %v1166_v54 }
 0x1b2   : > { %994 = vst.msk [vmem:[#allocation3] sm:$0x1] %vm993_vm3, %v992_v1  ;;  %v1170_v20 = vadd.f32 %v1169_v43, %v1168_v61 }
 0x1b4   : > { %v1172_v37 = vadd.f32 %v1171_v9, %v1170_v20 }
 0x1b6   : > { %v1174_v14 = vadd.f32 %v1173_v57, %v1172_v37 }
 0x1b8   : > { %v1176_v63 = vadd.f32 %v1175_v31, %v1174_v14 }
 0x1ba   : > { %v1178_v24 = vadd.f32 %v1177_v11, %v1176_v63 }
 0x1bc   : > { %v1180_v18 = vadd.f32 %v1179_v35, %v1178_v24 }
 0x1be   : > { %v1182_v47 = vadd.f32 %v1181_v26, %v1180_v18 }
 0x1c0   : > { %v1184_v19 = vadd.f32 %v1183_v36, %v1182_v47 }
 0x1c2   : > { %v1186_v30 = vadd.f32 %v1185_v56, %v1184_v19 }
 0x1c4   : > { %v1187_v6 = vrot.slane %v1186_v30, 4 }
 0x1c6   : > { %v1188_v29 = vadd.f32 %v1187_v6, %v1186_v30 }
 0x1c8   : > { %v1189_v38 = vrot.slane %v1188_v29, 2 }
 0x1ca   : > { %v1190_v0 = vadd.f32 %v1189_v38, %v1188_v29 }
 0x1cc   : > { %v1191_v51 = vrot.slane %v1190_v0, 1 }
 0x1ce   : > { %v1192_v12 = vadd.f32 %v1191_v51, %v1190_v0  ;;  %1264 = sbr.rel (%p3715_p6) target bundleno = 787 (0x313), region = 44 }
 0x1d0   : > { %v1193_v34 = vadd.f32 %v1192_v12, %v995_v62 }
 0x1d2   : > { %1194 = vst.msk [vmem:[#allocation4] sm:$0x1] %vm993_vm3, %v1193_v34 }
 0x1d3   : > { %v1265_v5 = vld [vmem:[#allocation3] sm:$0x1]  ;;  %v1535_v3 = vlaneseq  ;;  %v1279_v27 = vld [vmem:[#allocation2 + $0x8] sm:$0xff]  ;;  %v1280_v55 = vld [vmem:[#allocation2 + $0x10] sm:$0xff]  ;;  %vm3338_vm4 = vcmask 60416  }
 0x1d4   : > { %v1266_v40 = vmul.f32 0.00048828125, %v1265_v5  ;;  %v1271_v49 = vld [vmem:[%s6727_s2] sm:$0x1]  ;;  %v1281_v32 = vld [vmem:[#allocation2 + $0x18] sm:$0xff]  ;;  %v1283_v23 = vld [vmem:[#allocation2 + $0x28] sm:$0xff] }
 0x1d5   : > { %v1536_v28 = vshrl.u32 %v1535_v3, 7  ;;  %v1275_v2 = vld [vmem:[%s6728_s3] sm:$0x1]  ;;  %v1284_v59 = vld [vmem:[#allocation2 + $0x30] sm:$0xff]  ;;  %v1285_v50 = vld [vmem:[#allocation2 + $0x38] sm:$0xff] }
 0x1d6   : > { %v1269_v7 = vmul.f32 %v1266_v40, %v1266_v40  ;;  %v1278_v46 = vld [vmem:[#allocation2] sm:$0xff]  ;;  %v1287_v1 = vld [vmem:[#allocation2 + $0x48] sm:$0xff]  ;;  %v1288_v52 = vld [vmem:[#allocation2 + $0x50] sm:$0xff] }
 0x1d7   : > { %v1537_v44 = vsub.s32 0, %v1536_v28  ;;  %v1282_v4 = vld [vmem:[#allocation2 + $0x20] sm:$0xff]  ;;  %v1289_v43 = vld [vmem:[#allocation2 + $0x58] sm:$0xff]  ;;  %v1291_v58 = vld [vmem:[#allocation2 + $0x68] sm:$0xff] }
 0x1d8   : > { %v1286_v39 = vld [vmem:[#allocation2 + $0x40] sm:$0xff] }
 0x1d9   : > { %v1267_v17 = vld [vmem:[#allocation4] sm:$0x1] }
 0x1da   : > { %v1268_v45 = vmul.f32 0.00048828125, %v1267_v17  ;;  %v1290_v61 = vld [vmem:[#allocation2 + $0x60] sm:$0xff] }
 0x1dc   : > { %v1270_v10 = vsub.f32 %v1268_v45, %v1269_v7  ;;  %v1293_v45 = vld [vmem:[#allocation2 + $0x78] sm:$0xff] }
 0x1de   : > { %v1272_v42 = vadd.f32 1e-05, %v1270_v10 }
 0x1e0   : > { %4391 = vrsqrt.f32 %v1272_v42 }
 0x1ed   : > { %v4392_v16 = vpop.eup %4391 }
 0x1ee   : > { %v1274_v13 = vmul.f32 %v4392_v16, %v1271_v49 }
 0x1f0   : > { %v1276_v48 = vmul.f32 %v1274_v13, %v1266_v40  ;;  %v5182_v22 = vrot.slane %v1274_v13, %v1537_v44  ;;  %v1292_v40 = vld [vmem:[#allocation2 + $0x70] sm:$0xff] }
 0x1f2   : > { %v1277_v60 = vsub.f32 %v1275_v2, %v1276_v48  ;;  %v1540_v8 = vmul.f32 %v5182_v22, %v1278_v46  ;;  %v1541_v54 = vmul.f32 %v5182_v22, %v1279_v27  ;;  %v1542_v53 = vmul.f32 %v5182_v22, %v1280_v55 }
 0x1f3   : > { %v1543_v9 = vmul.f32 %v5182_v22, %v1281_v32  ;;  %v1544_v20 = vmul.f32 %v5182_v22, %v1282_v4  ;;  %v1545_v21 = vmul.f32 %v5182_v22, %v1283_v23  ;;  %v1546_v57 = vmul.f32 %v5182_v22, %v1284_v59  ;;  %v1294_v23 = vld [vmem:[#allocation2 + $0x80] sm:$0xff] }
 0x1f4   : > { %v5191_v37 = vrot.slane %v1277_v60, %v1537_v44  ;;  %v1547_v25 = vmul.f32 %v5182_v22, %v1285_v50  ;;  %v1548_v31 = vmul.f32 %v5182_v22, %v1286_v39  ;;  %v1549_v14 = vmul.f32 %v5182_v22, %v1287_v1  ;;  %v1296_v60 = vld [vmem:[#allocation2 + $0x90] sm:$0xff] }
 0x1f5   : > { %v1550_v15 = vmul.f32 %v5182_v22, %v1288_v52  ;;  %v1551_v11 = vmul.f32 %v5182_v22, %v1289_v43  ;;  %v1552_v63 = vmul.f32 %v5182_v22, %v1290_v61  ;;  %v1553_v41 = vmul.f32 %v5182_v22, %v1291_v58  ;;  %v1295_v52 = vld [vmem:[#allocation2 + $0x88] sm:$0xff]  ;;  %v1298_v58 = vld [vmem:[#allocation2 + $0xa0] sm:$0xff] }
 0x1f6   : > { %v1802_v35 = vadd.f32 %v5191_v37, %v1540_v8  ;;  %v1803_v24 = vadd.f32 %v5191_v37, %v1541_v54  ;;  %v1804_v33 = vadd.f32 %v5191_v37, %v1542_v53  ;;  %v1805_v26 = vadd.f32 %v5191_v37, %v1543_v9  ;;  %v1297_v8 = vld [vmem:[#allocation2 + $0x98] sm:$0xff]  ;;  %v1299_v9 = vld [vmem:[#allocation2 + $0xa8] sm:$0xff] }
 0x1f7   : > { %v1806_v18 = vadd.f32 %v5191_v37, %v1544_v20  ;;  %v1807_v36 = vadd.f32 %v5191_v37, %v1545_v21  ;;  %v1808_v47 = vadd.f32 %v5191_v37, %v1546_v57  ;;  %v1809_v56 = vadd.f32 %v5191_v37, %v1547_v25 }
 0x1f8   : > { %v2058_v19 = vmax.f32 %v1802_v35, 0.0  ;;  %v2059_v30 = vmax.f32 %v1803_v24, 0.0  ;;  %v2060_v6 = vmax.f32 %v1804_v33, 0.0  ;;  %v2061_v29 = vmax.f32 %v1805_v26, 0.0 }
 0x1f9   : > { %v2062_v38 = vmax.f32 %v1806_v18, 0.0  ;;  %v2063_v0 = vmax.f32 %v1807_v36, 0.0  ;;  %v2064_v51 = vmax.f32 %v1808_v47, 0.0  ;;  %v2065_v62 = vmax.f32 %v1809_v56, 0.0 }
 0x1fa   : > { %v3974_v12 = vpack.c.bf16 %v2058_v19, %v2058_v19  ;;  %v3975_v34 = vpack.c.bf16 %v2059_v30, %v2059_v30  ;;  %v3976_v5 = vpack.c.bf16 %v2060_v6, %v2060_v6  ;;  %v3977_v17 = vpack.c.bf16 %v2061_v29, %v2061_v29 }
 0x1fb   : > { %v3978_v7 = vpack.c.bf16 %v2062_v38, %v2062_v38  ;;  %v3979_v10 = vpack.c.bf16 %v2063_v0, %v2063_v0  ;;  %v3980_v42 = vpack.c.bf16 %v2064_v51, %v2064_v51  ;;  %v3981_v3 = vpack.c.bf16 %v2065_v62, %v2065_v62 }
 0x1fc   : > { %3339 = vst.msk [vmem:[%s6729_s4] sm:$0xf] %vm3338_vm4, %v3974_v12  ;;  %3340 = vst.msk [vmem:[%s6729_s4 + $0x4] sm:$0xf] %vm3338_vm4, %v3975_v34  ;;  %v1810_v28 = vadd.f32 %v5191_v37, %v1548_v31  ;;  %v1811_v49 = vadd.f32 %v5191_v37, %v1549_v14  ;;  %v1812_v44 = vadd.f32 %v5191_v37, %v1550_v15  ;;  %v1302_v12 = vld [vmem:[#allocation2 + $0xc0] sm:$0xff] }
 0x1fd   : > { %3341 = vst.msk [vmem:[%s6729_s4 + $0x8] sm:$0xf] %vm3338_vm4, %v3976_v5  ;;  %3342 = vst.msk [vmem:[%s6729_s4 + $0xc] sm:$0xf] %vm3338_vm4, %v3977_v17  ;;  %v1813_v16 = vadd.f32 %v5191_v37, %v1551_v11  ;;  %v1814_v13 = vadd.f32 %v5191_v37, %v1552_v63  ;;  %v1815_v2 = vadd.f32 %v5191_v37, %v1553_v41  ;;  %v1300_v63 = vld [vmem:[#allocation2 + $0xb0] sm:$0xff]  ;;  %v1301_v41 = vld [vmem:[#allocation2 + $0xb8] sm:$0xff] }
 0x1fe   : > { %3343 = vst.msk [vmem:[%s6729_s4 + $0x10] sm:$0xf] %vm3338_vm4, %v3978_v7  ;;  %3344 = vst.msk [vmem:[%s6729_s4 + $0x14] sm:$0xf] %vm3338_vm4, %v3979_v10  ;;  %v1554_v46 = vmul.f32 %v5182_v22, %v1292_v40  ;;  %v1555_v27 = vmul.f32 %v5182_v22, %v1293_v45  ;;  %v2066_v55 = vmax.f32 %v1810_v28, 0.0  ;;  %v2067_v32 = vmax.f32 %v1811_v49, 0.0 }
 0x1ff   : > { %3345 = vst.msk [vmem:[%s6729_s4 + $0x18] sm:$0xf] %vm3338_vm4, %v3980_v42  ;;  %3346 = vst.msk [vmem:[%s6729_s4 + $0x1c] sm:$0xf] %vm3338_vm4, %v3981_v3  ;;  %v2068_v4 = vmax.f32 %v1812_v44, 0.0  ;;  %v2069_v48 = vmax.f32 %v1813_v16, 0.0  ;;  %v1556_v31 = vmul.f32 %v5182_v22, %v1294_v23  ;;  %v1557_v14 = vmul.f32 %v5182_v22, %v1295_v52 }
 0x200   : > { %v2070_v59 = vmax.f32 %v1814_v13, 0.0  ;;  %v2071_v50 = vmax.f32 %v1815_v2, 0.0  ;;  %v1816_v39 = vadd.f32 %v5191_v37, %v1554_v46  ;;  %v1817_v1 = vadd.f32 %v5191_v37, %v1555_v27  ;;  %v1303_v45 = vld [vmem:[#allocation2 + $0xc8] sm:$0xff]  ;;  %v1304_v7 = vld [vmem:[#allocation2 + $0xd0] sm:$0xff]  ;;  %v1305_v10 = vld [vmem:[#allocation2 + $0xd8] sm:$0xff] }
 0x201   : > { %v3982_v54 = vpack.c.bf16 %v2066_v55, %v2066_v55  ;;  %v3983_v53 = vpack.c.bf16 %v2067_v32, %v2067_v32  ;;  %v3984_v43 = vpack.c.bf16 %v2068_v4, %v2068_v4  ;;  %v3985_v61 = vpack.c.bf16 %v2069_v48, %v2069_v48  ;;  %v1306_v44 = vld [vmem:[#allocation2 + $0xe0] sm:$0xff]  ;;  %v1307_v16 = vld [vmem:[#allocation2 + $0xe8] sm:$0xff]  ;;  %v1308_v23 = vld [vmem:[#allocation2 + $0xf0] sm:$0xff] }
 0x202   : > { %v3986_v20 = vpack.c.bf16 %v2070_v59, %v2070_v59  ;;  %v3987_v21 = vpack.c.bf16 %v2071_v50, %v2071_v50  ;;  %v2072_v57 = vmax.f32 %v1816_v39, 0.0  ;;  %v2073_v25 = vmax.f32 %v1817_v1, 0.0  ;;  %v1309_v59 = vld [vmem:[#allocation2 + $0xf8] sm:$0xff] }
 0x203   : > { %3347 = vst.msk [vmem:[%s6729_s4 + $0x20] sm:$0xf] %vm3338_vm4, %v3982_v54  ;;  %3348 = vst.msk [vmem:[%s6729_s4 + $0x24] sm:$0xf] %vm3338_vm4, %v3983_v53  ;;  %v1558_v15 = vmul.f32 %v5182_v22, %v1296_v60  ;;  %v1559_v11 = vmul.f32 %v5182_v22, %v1297_v8  ;;  %v1560_v33 = vmul.f32 %v5182_v22, %v1298_v58 }
 0x204   : > { %3349 = vst.msk [vmem:[%s6729_s4 + $0x28] sm:$0xf] %vm3338_vm4, %v3984_v43  ;;  %3350 = vst.msk [vmem:[%s6729_s4 + $0x2c] sm:$0xf] %vm3338_vm4, %v3985_v61  ;;  %v3988_v35 = vpack.c.bf16 %v2072_v57, %v2072_v57  ;;  %v3989_v24 = vpack.c.bf16 %v2073_v25, %v2073_v25  ;;  %v1561_v26 = vmul.f32 %v5182_v22, %v1299_v9 }
 0x205   : > { %3351 = vst.msk [vmem:[%s6729_s4 + $0x30] sm:$0xf] %vm3338_vm4, %v3986_v20  ;;  %3352 = vst.msk [vmem:[%s6729_s4 + $0x34] sm:$0xf] %vm3338_vm4, %v3987_v21  ;;  %v1818_v18 = vadd.f32 %v5191_v37, %v1556_v31  ;;  %v1819_v36 = vadd.f32 %v5191_v37, %v1557_v14  ;;  %v1820_v47 = vadd.f32 %v5191_v37, %v1558_v15  ;;  %v1310_v31 = vld [vmem:[#allocation2 + $0x100] sm:$0xff] }
 0x206   : > { %v1821_v56 = vadd.f32 %v5191_v37, %v1559_v11  ;;  %3353 = vst.msk [vmem:[%s6729_s4 + $0x38] sm:$0xf] %vm3338_vm4, %v3988_v35  ;;  %3354 = vst.msk [vmem:[%s6729_s4 + $0x3c] sm:$0xf] %vm3338_vm4, %v3989_v24  ;;  %v1822_v19 = vadd.f32 %v5191_v37, %v1560_v33  ;;  %v1823_v30 = vadd.f32 %v5191_v37, %v1561_v26  ;;  %v1312_v35 = vld [vmem:[#allocation2 + $0x110] sm:$0xff]  ;;  %v1313_v24 = vld [vmem:[#allocation2 + $0x118] sm:$0xff] }
 0x207   : > { %v1562_v6 = vmul.f32 %v5182_v22, %v1300_v63  ;;  %v1563_v29 = vmul.f32 %v5182_v22, %v1301_v41  ;;  %v2074_v38 = vmax.f32 %v1818_v18, 0.0  ;;  %v2075_v0 = vmax.f32 %v1819_v36, 0.0  ;;  %v1311_v41 = vld [vmem:[#allocation2 + $0x108] sm:$0xff] }
 0x208   : > { %v2076_v51 = vmax.f32 %v1820_v47, 0.0  ;;  %v2077_v62 = vmax.f32 %v1821_v56, 0.0  ;;  %v2078_v34 = vmax.f32 %v1822_v19, 0.0  ;;  %v2079_v5 = vmax.f32 %v1823_v30, 0.0  ;;  %v1314_v47 = vld [vmem:[#allocation2 + $0x120] sm:$0xff]  ;;  %v1315_v56 = vld [vmem:[#allocation2 + $0x128] sm:$0xff] }
 0x209   : > { %v1824_v17 = vadd.f32 %v5191_v37, %v1562_v6  ;;  %v1825_v40 = vadd.f32 %v5191_v37, %v1563_v29  ;;  %v3990_v42 = vpack.c.bf16 %v2074_v38, %v2074_v38  ;;  %v3991_v3 = vpack.c.bf16 %v2075_v0, %v2075_v0 }
 0x20a   : > { %v3992_v28 = vpack.c.bf16 %v2076_v51, %v2076_v51  ;;  %v3993_v49 = vpack.c.bf16 %v2077_v62, %v2077_v62  ;;  %v3994_v13 = vpack.c.bf16 %v2078_v34, %v2078_v34  ;;  %v3995_v2 = vpack.c.bf16 %v2079_v5, %v2079_v5  ;;  %v1317_v34 = vld [vmem:[#allocation2 + $0x138] sm:$0xff] }
 0x20b   : > { %v2080_v46 = vmax.f32 %v1824_v17, 0.0  ;;  %v2081_v27 = vmax.f32 %v1825_v40, 0.0  ;;  %3355 = vst.msk [vmem:[%s6729_s4 + $0x40] sm:$0xf] %vm3338_vm4, %v3990_v42  ;;  %3356 = vst.msk [vmem:[%s6729_s4 + $0x44] sm:$0xf] %vm3338_vm4, %v3991_v3  ;;  %v1564_v55 = vmul.f32 %v5182_v22, %v1302_v12  ;;  %v1565_v32 = vmul.f32 %v5182_v22, %v1303_v45 }
 0x20c   : > { %3357 = vst.msk [vmem:[%s6729_s4 + $0x48] sm:$0xf] %vm3338_vm4, %v3992_v28  ;;  %3358 = vst.msk [vmem:[%s6729_s4 + $0x4c] sm:$0xf] %vm3338_vm4, %v3993_v49  ;;  %v1566_v4 = vmul.f32 %v5182_v22, %v1304_v7  ;;  %v1567_v48 = vmul.f32 %v5182_v22, %v1305_v10  ;;  %v1568_v1 = vmul.f32 %v5182_v22, %v1306_v44  ;;  %v1316_v12 = vld [vmem:[#allocation2 + $0x130] sm:$0xff] }
 0x20d   : > { %3359 = vst.msk [vmem:[%s6729_s4 + $0x50] sm:$0xf] %vm3338_vm4, %v3994_v13  ;;  %3360 = vst.msk [vmem:[%s6729_s4 + $0x54] sm:$0xf] %vm3338_vm4, %v3995_v2  ;;  %v3996_v50 = vpack.c.bf16 %v2080_v46, %v2080_v46  ;;  %v3997_v39 = vpack.c.bf16 %v2081_v27, %v2081_v27  ;;  %v1569_v52 = vmul.f32 %v5182_v22, %v1307_v16 }
 0x20e   : > { %v1826_v60 = vadd.f32 %v5191_v37, %v1564_v55  ;;  %v1827_v8 = vadd.f32 %v5191_v37, %v1565_v32  ;;  %v1828_v54 = vadd.f32 %v5191_v37, %v1566_v4  ;;  %v1829_v53 = vadd.f32 %v5191_v37, %v1567_v48  ;;  %v1318_v55 = vld [vmem:[#allocation2 + $0x140] sm:$0xff] }
 0x20f   : > { %3361 = vst.msk [vmem:[%s6729_s4 + $0x58] sm:$0xf] %vm3338_vm4, %v3996_v50  ;;  %3362 = vst.msk [vmem:[%s6729_s4 + $0x5c] sm:$0xf] %vm3338_vm4, %v3997_v39  ;;  %v1830_v43 = vadd.f32 %v5191_v37, %v1568_v1  ;;  %v1831_v61 = vadd.f32 %v5191_v37, %v1569_v52  ;;  %v1570_v58 = vmul.f32 %v5182_v22, %v1308_v23  ;;  %v1320_v50 = vld [vmem:[#allocation2 + $0x150] sm:$0xff]  ;;  %v1321_v39 = vld [vmem:[#allocation2 + $0x158] sm:$0xff] }
 0x210   : > { %v1571_v9 = vmul.f32 %v5182_v22, %v1309_v59  ;;  %v2082_v20 = vmax.f32 %v1826_v60, 0.0  ;;  %v2083_v21 = vmax.f32 %v1827_v8, 0.0  ;;  %v2084_v57 = vmax.f32 %v1828_v54, 0.0  ;;  %v1319_v59 = vld [vmem:[#allocation2 + $0x148] sm:$0xff]  ;;  %v1322_v54 = vld [vmem:[#allocation2 + $0x160] sm:$0xff] }
 0x211   : > { %v2085_v25 = vmax.f32 %v1829_v53, 0.0  ;;  %v2086_v14 = vmax.f32 %v1830_v43, 0.0  ;;  %v2087_v15 = vmax.f32 %v1831_v61, 0.0  ;;  %v1832_v11 = vadd.f32 %v5191_v37, %v1570_v58  ;;  %v1323_v53 = vld [vmem:[#allocation2 + $0x168] sm:$0xff] }
 0x212   : > { %v1833_v63 = vadd.f32 %v5191_v37, %v1571_v9  ;;  %v3998_v33 = vpack.c.bf16 %v2082_v20, %v2082_v20  ;;  %v3999_v26 = vpack.c.bf16 %v2083_v21, %v2083_v21  ;;  %v4000_v18 = vpack.c.bf16 %v2084_v57, %v2084_v57 }
 0x213   : > { %v4001_v36 = vpack.c.bf16 %v2085_v25, %v2085_v25  ;;  %v4002_v19 = vpack.c.bf16 %v2086_v14, %v2086_v14  ;;  %v4003_v30 = vpack.c.bf16 %v2087_v15, %v2087_v15  ;;  %v2088_v6 = vmax.f32 %v1832_v11, 0.0  ;;  %v1325_v14 = vld [vmem:[#allocation2 + $0x178] sm:$0xff] }
 0x214   : > { %v2089_v29 = vmax.f32 %v1833_v63, 0.0  ;;  %3363 = vst.msk [vmem:[%s6729_s4 + $0x60] sm:$0xf] %vm3338_vm4, %v3998_v33  ;;  %3364 = vst.msk [vmem:[%s6729_s4 + $0x64] sm:$0xf] %vm3338_vm4, %v3999_v26  ;;  %v1572_v38 = vmul.f32 %v5182_v22, %v1310_v31  ;;  %v1573_v0 = vmul.f32 %v5182_v22, %v1311_v41  ;;  %v1574_v51 = vmul.f32 %v5182_v22, %v1312_v35  ;;  %v1324_v31 = vld [vmem:[#allocation2 + $0x170] sm:$0xff] }
 0x215   : > { %3365 = vst.msk [vmem:[%s6729_s4 + $0x68] sm:$0xf] %vm3338_vm4, %v4000_v18  ;;  %3366 = vst.msk [vmem:[%s6729_s4 + $0x6c] sm:$0xf] %vm3338_vm4, %v4001_v36  ;;  %v1575_v62 = vmul.f32 %v5182_v22, %v1313_v24  ;;  %v4004_v5 = vpack.c.bf16 %v2088_v6, %v2088_v6  ;;  %v1576_v40 = vmul.f32 %v5182_v22, %v1314_v47 }
 0x216   : > { %3367 = vst.msk [vmem:[%s6729_s4 + $0x70] sm:$0xf] %vm3338_vm4, %v4002_v19  ;;  %3368 = vst.msk [vmem:[%s6729_s4 + $0x74] sm:$0xf] %vm3338_vm4, %v4003_v30  ;;  %v4005_v17 = vpack.c.bf16 %v2089_v29, %v2089_v29  ;;  %v1577_v45 = vmul.f32 %v5182_v22, %v1315_v56  ;;  %v1834_v7 = vadd.f32 %v5191_v37, %v1572_v38  ;;  %v1326_v38 = vld [vmem:[#allocation2 + $0x180] sm:$0xff] }
 0x217   : > { %v1835_v10 = vadd.f32 %v5191_v37, %v1573_v0  ;;  %v1836_v42 = vadd.f32 %v5191_v37, %v1574_v51  ;;  %v1837_v3 = vadd.f32 %v5191_v37, %v1575_v62  ;;  %3369 = vst.msk [vmem:[%s6729_s4 + $0x78] sm:$0xf] %vm3338_vm4, %v4004_v5  ;;  %v1838_v28 = vadd.f32 %v5191_v37, %v1576_v40  ;;  %v1328_v5 = vld [vmem:[#allocation2 + $0x190] sm:$0xff] }
 0x218   : > { %3370 = vst.msk [vmem:[%s6729_s4 + $0x7c] sm:$0xf] %vm3338_vm4, %v4005_v17  ;;  %v1839_v49 = vadd.f32 %v5191_v37, %v1577_v45  ;;  %v1578_v44 = vmul.f32 %v5182_v22, %v1316_v12  ;;  %v1579_v16 = vmul.f32 %v5182_v22, %v1317_v34  ;;  %v2090_v13 = vmax.f32 %v1834_v7, 0.0  ;;  %v1327_v34 = vld [vmem:[#allocation2 + $0x188] sm:$0xff]  ;;  %v1329_v17 = vld [vmem:[#allocation2 + $0x198] sm:$0xff] }
 0x219   : > { %v2091_v2 = vmax.f32 %v1835_v10, 0.0  ;;  %v2092_v46 = vmax.f32 %v1836_v42, 0.0  ;;  %v2093_v27 = vmax.f32 %v1837_v3, 0.0  ;;  %v2094_v32 = vmax.f32 %v1838_v28, 0.0  ;;  %v1330_v42 = vld [vmem:[#allocation2 + $0x1a0] sm:$0xff]  ;;  %v1331_v3 = vld [vmem:[#allocation2 + $0x1a8] sm:$0xff] }
 0x21a   : > { %v2095_v4 = vmax.f32 %v1839_v49, 0.0  ;;  %v1840_v48 = vadd.f32 %v5191_v37, %v1578_v44  ;;  %v1841_v23 = vadd.f32 %v5191_v37, %v1579_v16  ;;  %v4006_v1 = vpack.c.bf16 %v2090_v13, %v2090_v13 }
 0x21b   : > { %v4007_v52 = vpack.c.bf16 %v2091_v2, %v2091_v2  ;;  %v4008_v60 = vpack.c.bf16 %v2092_v46, %v2092_v46  ;;  %v4009_v8 = vpack.c.bf16 %v2093_v27, %v2093_v27  ;;  %v4010_v43 = vpack.c.bf16 %v2094_v32, %v2094_v32  ;;  %v1333_v32 = vld [vmem:[#allocation2 + $0x1b8] sm:$0xff] }
 0x21c   : > { %v4011_v61 = vpack.c.bf16 %v2095_v4, %v2095_v4  ;;  %v2096_v58 = vmax.f32 %v1840_v48, 0.0  ;;  %v2097_v9 = vmax.f32 %v1841_v23, 0.0  ;;  %3371 = vst.msk [vmem:[%s6729_s4 + $0x80] sm:$0xf] %vm3338_vm4, %v4006_v1  ;;  %v1580_v20 = vmul.f32 %v5182_v22, %v1318_v55  ;;  %v1332_v55 = vld [vmem:[#allocation2 + $0x1b0] sm:$0xff] }
 0x21d   : > { %3372 = vst.msk [vmem:[%s6729_s4 + $0x84] sm:$0xf] %vm3338_vm4, %v4007_v52  ;;  %3373 = vst.msk [vmem:[%s6729_s4 + $0x88] sm:$0xf] %vm3338_vm4, %v4008_v60  ;;  %v1581_v21 = vmul.f32 %v5182_v22, %v1319_v59  ;;  %v1582_v57 = vmul.f32 %v5182_v22, %v1320_v50  ;;  %v1583_v25 = vmul.f32 %v5182_v22, %v1321_v39 }
 0x21e   : > { %3374 = vst.msk [vmem:[%s6729_s4 + $0x8c] sm:$0xf] %vm3338_vm4, %v4009_v8  ;;  %3375 = vst.msk [vmem:[%s6729_s4 + $0x90] sm:$0xf] %vm3338_vm4, %v4010_v43  ;;  %v4012_v15 = vpack.c.bf16 %v2096_v58, %v2096_v58  ;;  %v4013_v11 = vpack.c.bf16 %v2097_v9, %v2097_v9  ;;  %v1584_v63 = vmul.f32 %v5182_v22, %v1322_v54 }
 0x21f   : > { %3376 = vst.msk [vmem:[%s6729_s4 + $0x94] sm:$0xf] %vm3338_vm4, %v4011_v61  ;;  %v1585_v41 = vmul.f32 %v5182_v22, %v1323_v53  ;;  %v1842_v35 = vadd.f32 %v5191_v37, %v1580_v20  ;;  %v1843_v24 = vadd.f32 %v5191_v37, %v1581_v21  ;;  %v1844_v33 = vadd.f32 %v5191_v37, %v1582_v57  ;;  %v1334_v20 = vld [vmem:[#allocation2 + $0x1c0] sm:$0xff] }
 0x220   : > { %v1845_v26 = vadd.f32 %v5191_v37, %v1583_v25  ;;  %3377 = vst.msk [vmem:[%s6729_s4 + $0x98] sm:$0xf] %vm3338_vm4, %v4012_v15  ;;  %3378 = vst.msk [vmem:[%s6729_s4 + $0x9c] sm:$0xf] %vm3338_vm4, %v4013_v11  ;;  %v1846_v18 = vadd.f32 %v5191_v37, %v1584_v63  ;;  %v1586_v47 = vmul.f32 %v5182_v22, %v1324_v31  ;;  %v1336_v15 = vld [vmem:[#allocation2 + $0x1d0] sm:$0xff]  ;;  %v1337_v11 = vld [vmem:[#allocation2 + $0x1d8] sm:$0xff] }
 0x221   : > { %v1847_v36 = vadd.f32 %v5191_v37, %v1585_v41  ;;  %v1587_v56 = vmul.f32 %v5182_v22, %v1325_v14  ;;  %v2098_v19 = vmax.f32 %v1842_v35, 0.0  ;;  %v2099_v30 = vmax.f32 %v1843_v24, 0.0  ;;  %v1335_v14 = vld [vmem:[#allocation2 + $0x1c8] sm:$0xff] }
 0x222   : > { %v2100_v6 = vmax.f32 %v1844_v33, 0.0  ;;  %v2101_v29 = vmax.f32 %v1845_v26, 0.0  ;;  %v2102_v0 = vmax.f32 %v1846_v18, 0.0  ;;  %v1848_v62 = vadd.f32 %v5191_v37, %v1586_v47  ;;  %v1338_v33 = vld [vmem:[#allocation2 + $0x1e0] sm:$0xff]  ;;  %v1339_v26 = vld [vmem:[#allocation2 + $0x1e8] sm:$0xff] }
 0x223   : > { %v2103_v51 = vmax.f32 %v1847_v36, 0.0  ;;  %v1849_v12 = vadd.f32 %v5191_v37, %v1587_v56  ;;  %v4014_v40 = vpack.c.bf16 %v2098_v19, %v2098_v19  ;;  %v4015_v45 = vpack.c.bf16 %v2099_v30, %v2099_v30 }
 0x224   : > { %v4016_v7 = vpack.c.bf16 %v2100_v6, %v2100_v6  ;;  %v4017_v10 = vpack.c.bf16 %v2101_v29, %v2101_v29  ;;  %v4018_v28 = vpack.c.bf16 %v2102_v0, %v2102_v0  ;;  %v2104_v44 = vmax.f32 %v1848_v62, 0.0  ;;  %v1341_v0 = vld [vmem:[#allocation2 + $0x1f8] sm:$0xff] }
 0x225   : > { %v4019_v49 = vpack.c.bf16 %v2103_v51, %v2103_v51  ;;  %v2105_v16 = vmax.f32 %v1849_v12, 0.0  ;;  %3379 = vst.msk [vmem:[%s6729_s4 + $0xa0] sm:$0xf] %vm3338_vm4, %v4014_v40  ;;  %3380 = vst.msk [vmem:[%s6729_s4 + $0xa4] sm:$0xf] %vm3338_vm4, %v4015_v45  ;;  %v1588_v13 = vmul.f32 %v5182_v22, %v1326_v38  ;;  %v1589_v2 = vmul.f32 %v5182_v22, %v1327_v34  ;;  %v1340_v38 = vld [vmem:[#allocation2 + $0x1f0] sm:$0xff] }
 0x226   : > { %3381 = vst.msk [vmem:[%s6729_s4 + $0xa8] sm:$0xf] %vm3338_vm4, %v4016_v7  ;;  %3382 = vst.msk [vmem:[%s6729_s4 + $0xac] sm:$0xf] %vm3338_vm4, %v4017_v10  ;;  %v1590_v46 = vmul.f32 %v5182_v22, %v1328_v5  ;;  %v1591_v27 = vmul.f32 %v5182_v22, %v1329_v17  ;;  %v4020_v4 = vpack.c.bf16 %v2104_v44, %v2104_v44 }
 0x227   : > { %3383 = vst.msk [vmem:[%s6729_s4 + $0xb0] sm:$0xf] %vm3338_vm4, %v4018_v28  ;;  %3384 = vst.msk [vmem:[%s6729_s4 + $0xb4] sm:$0xf] %vm3338_vm4, %v4019_v49  ;;  %v4021_v48 = vpack.c.bf16 %v2105_v16, %v2105_v16  ;;  %v1592_v23 = vmul.f32 %v5182_v22, %v1330_v42  ;;  %v1593_v59 = vmul.f32 %v5182_v22, %v1331_v3 }
 0x228   : > { %v1850_v50 = vadd.f32 %v5191_v37, %v1588_v13  ;;  %v1851_v39 = vadd.f32 %v5191_v37, %v1589_v2  ;;  %v1852_v1 = vadd.f32 %v5191_v37, %v1590_v46  ;;  %v1853_v52 = vadd.f32 %v5191_v37, %v1591_v27  ;;  %3385 = vst.msk [vmem:[%s6729_s4 + $0xb8] sm:$0xf] %vm3338_vm4, %v4020_v4  ;;  %v1342_v13 = vld [vmem:[#allocation2 + $0x200] sm:$0xff]  ;;  %v1344_v4 = vld [vmem:[#allocation2 + $0x210] sm:$0xff] }
 0x229   : > { %3386 = vst.msk [vmem:[%s6729_s4 + $0xbc] sm:$0xf] %vm3338_vm4, %v4021_v48  ;;  %v1854_v60 = vadd.f32 %v5191_v37, %v1592_v23  ;;  %v1855_v8 = vadd.f32 %v5191_v37, %v1593_v59  ;;  %v1594_v54 = vmul.f32 %v5182_v22, %v1332_v55  ;;  %v1595_v53 = vmul.f32 %v5182_v22, %v1333_v32  ;;  %v1343_v32 = vld [vmem:[#allocation2 + $0x208] sm:$0xff]  ;;  %v1345_v48 = vld [vmem:[#allocation2 + $0x218] sm:$0xff] }
 0x22a   : > { %v2106_v43 = vmax.f32 %v1850_v50, 0.0  ;;  %v2107_v61 = vmax.f32 %v1851_v39, 0.0  ;;  %v2108_v58 = vmax.f32 %v1852_v1, 0.0  ;;  %v2109_v9 = vmax.f32 %v1853_v52, 0.0  ;;  %v1346_v1 = vld [vmem:[#allocation2 + $0x220] sm:$0xff]  ;;  %v1347_v52 = vld [vmem:[#allocation2 + $0x228] sm:$0xff] }
 0x22b   : > { %v2110_v21 = vmax.f32 %v1854_v60, 0.0  ;;  %v2111_v57 = vmax.f32 %v1855_v8, 0.0  ;;  %v1856_v25 = vadd.f32 %v5191_v37, %v1594_v54  ;;  %v1857_v31 = vadd.f32 %v5191_v37, %v1595_v53 }
 0x22c   : > { %v4022_v63 = vpack.c.bf16 %v2106_v43, %v2106_v43  ;;  %v4023_v41 = vpack.c.bf16 %v2107_v61, %v2107_v61  ;;  %v4024_v35 = vpack.c.bf16 %v2108_v58, %v2108_v58  ;;  %v4025_v24 = vpack.c.bf16 %v2109_v9, %v2109_v9 }
 0x22d   : > { %v4026_v18 = vpack.c.bf16 %v2110_v21, %v2110_v21  ;;  %v4027_v36 = vpack.c.bf16 %v2111_v57, %v2111_v57  ;;  %v2112_v47 = vmax.f32 %v1856_v25, 0.0  ;;  %v2113_v56 = vmax.f32 %v1857_v31, 0.0  ;;  %v1349_v21 = vld [vmem:[#allocation2 + $0x238] sm:$0xff] }
 0x22e   : > { %3387 = vst.msk [vmem:[%s6729_s4 + $0xc0] sm:$0xf] %vm3338_vm4, %v4022_v63  ;;  %3388 = vst.msk [vmem:[%s6729_s4 + $0xc4] sm:$0xf] %vm3338_vm4, %v4023_v41  ;;  %v1596_v19 = vmul.f32 %v5182_v22, %v1334_v20  ;;  %v1597_v30 = vmul.f32 %v5182_v22, %v1335_v14  ;;  %v1598_v6 = vmul.f32 %v5182_v22, %v1336_v15  ;;  %v1348_v20 = vld [vmem:[#allocation2 + $0x230] sm:$0xff] }
 0x22f   : > { %3389 = vst.msk [vmem:[%s6729_s4 + $0xc8] sm:$0xf] %vm3338_vm4, %v4024_v35  ;;  %3390 = vst.msk [vmem:[%s6729_s4 + $0xcc] sm:$0xf] %vm3338_vm4, %v4025_v24  ;;  %v1599_v29 = vmul.f32 %v5182_v22, %v1337_v11  ;;  %v4028_v51 = vpack.c.bf16 %v2112_v47, %v2112_v47  ;;  %v4029_v62 = vpack.c.bf16 %v2113_v56, %v2113_v56 }
 0x230   : > { %3391 = vst.msk [vmem:[%s6729_s4 + $0xd0] sm:$0xf] %vm3338_vm4, %v4026_v18  ;;  %3392 = vst.msk [vmem:[%s6729_s4 + $0xd4] sm:$0xf] %vm3338_vm4, %v4027_v36  ;;  %v1600_v12 = vmul.f32 %v5182_v22, %v1338_v33  ;;  %v1601_v34 = vmul.f32 %v5182_v22, %v1339_v26  ;;  %v1858_v5 = vadd.f32 %v5191_v37, %v1596_v19  ;;  %v1350_v19 = vld [vmem:[#allocation2 + $0x240] sm:$0xff] }
 0x231   : > { %v1859_v17 = vadd.f32 %v5191_v37, %v1597_v30  ;;  %v1860_v40 = vadd.f32 %v5191_v37, %v1598_v6  ;;  %v1861_v45 = vadd.f32 %v5191_v37, %v1599_v29  ;;  %3393 = vst.msk [vmem:[%s6729_s4 + $0xd8] sm:$0xf] %vm3338_vm4, %v4028_v51  ;;  %3394 = vst.msk [vmem:[%s6729_s4 + $0xdc] sm:$0xf] %vm3338_vm4, %v4029_v62  ;;  %v1352_v51 = vld [vmem:[#allocation2 + $0x250] sm:$0xff]  ;;  %v1353_v62 = vld [vmem:[#allocation2 + $0x258] sm:$0xff] }
 0x232   : > { %v1862_v7 = vadd.f32 %v5191_v37, %v1600_v12  ;;  %v1863_v10 = vadd.f32 %v5191_v37, %v1601_v34  ;;  %v1602_v42 = vmul.f32 %v5182_v22, %v1340_v38  ;;  %v1603_v3 = vmul.f32 %v5182_v22, %v1341_v0  ;;  %v1351_v0 = vld [vmem:[#allocation2 + $0x248] sm:$0xff] }
 0x233   : > { %v2114_v28 = vmax.f32 %v1858_v5, 0.0  ;;  %v2115_v49 = vmax.f32 %v1859_v17, 0.0  ;;  %v2116_v44 = vmax.f32 %v1860_v40, 0.0  ;;  %v2117_v16 = vmax.f32 %v1861_v45, 0.0  ;;  %v1354_v40 = vld [vmem:[#allocation2 + $0x260] sm:$0xff]  ;;  %v1355_v45 = vld [vmem:[#allocation2 + $0x268] sm:$0xff] }
 0x234   : > { %v2118_v2 = vmax.f32 %v1862_v7, 0.0  ;;  %v2119_v46 = vmax.f32 %v1863_v10, 0.0  ;;  %v1864_v27 = vadd.f32 %v5191_v37, %v1602_v42  ;;  %v1865_v55 = vadd.f32 %v5191_v37, %v1603_v3 }
 0x235   : > { %v4030_v23 = vpack.c.bf16 %v2114_v28, %v2114_v28  ;;  %v4031_v59 = vpack.c.bf16 %v2115_v49, %v2115_v49  ;;  %v4032_v50 = vpack.c.bf16 %v2116_v44, %v2116_v44  ;;  %v4033_v39 = vpack.c.bf16 %v2117_v16, %v2117_v16 }
 0x236   : > { %v4034_v60 = vpack.c.bf16 %v2118_v2, %v2118_v2  ;;  %v4035_v8 = vpack.c.bf16 %v2119_v46, %v2119_v46  ;;  %v2120_v54 = vmax.f32 %v1864_v27, 0.0  ;;  %v2121_v53 = vmax.f32 %v1865_v55, 0.0  ;;  %v1357_v2 = vld [vmem:[#allocation2 + $0x278] sm:$0xff] }
 0x237   : > { %3395 = vst.msk [vmem:[%s6729_s4 + $0xe0] sm:$0xf] %vm3338_vm4, %v4030_v23  ;;  %3396 = vst.msk [vmem:[%s6729_s4 + $0xe4] sm:$0xf] %vm3338_vm4, %v4031_v59  ;;  %v1604_v43 = vmul.f32 %v5182_v22, %v1342_v13  ;;  %v1605_v61 = vmul.f32 %v5182_v22, %v1343_v32  ;;  %v1606_v58 = vmul.f32 %v5182_v22, %v1344_v4  ;;  %v1356_v13 = vld [vmem:[#allocation2 + $0x270] sm:$0xff] }
 0x238   : > { %3397 = vst.msk [vmem:[%s6729_s4 + $0xe8] sm:$0xf] %vm3338_vm4, %v4032_v50  ;;  %3398 = vst.msk [vmem:[%s6729_s4 + $0xec] sm:$0xf] %vm3338_vm4, %v4033_v39  ;;  %v1607_v9 = vmul.f32 %v5182_v22, %v1345_v48  ;;  %v4036_v57 = vpack.c.bf16 %v2120_v54, %v2120_v54  ;;  %v4037_v25 = vpack.c.bf16 %v2121_v53, %v2121_v53 }
 0x239   : > { %3399 = vst.msk [vmem:[%s6729_s4 + $0xf0] sm:$0xf] %vm3338_vm4, %v4034_v60  ;;  %3400 = vst.msk [vmem:[%s6729_s4 + $0xf4] sm:$0xf] %vm3338_vm4, %v4035_v8  ;;  %v1608_v31 = vmul.f32 %v5182_v22, %v1346_v1  ;;  %v1609_v14 = vmul.f32 %v5182_v22, %v1347_v52  ;;  %v1866_v15 = vadd.f32 %v5191_v37, %v1604_v43  ;;  %v1358_v43 = vld [vmem:[#allocation2 + $0x280] sm:$0xff] }
 0x23a   : > { %v1867_v11 = vadd.f32 %v5191_v37, %v1605_v61  ;;  %v1868_v63 = vadd.f32 %v5191_v37, %v1606_v58  ;;  %v1869_v41 = vadd.f32 %v5191_v37, %v1607_v9  ;;  %3401 = vst.msk [vmem:[%s6729_s4 + $0xf8] sm:$0xf] %vm3338_vm4, %v4036_v57  ;;  %3402 = vst.msk [vmem:[%s6729_s4 + $0xfc] sm:$0xf] %vm3338_vm4, %v4037_v25  ;;  %v1360_v57 = vld [vmem:[#allocation2 + $0x290] sm:$0xff]  ;;  %v1361_v25 = vld [vmem:[#allocation2 + $0x298] sm:$0xff] }
 0x23b   : > { %v1870_v35 = vadd.f32 %v5191_v37, %v1608_v31  ;;  %v1871_v24 = vadd.f32 %v5191_v37, %v1609_v14  ;;  %v1610_v33 = vmul.f32 %v5182_v22, %v1348_v20  ;;  %v1611_v26 = vmul.f32 %v5182_v22, %v1349_v21  ;;  %v1359_v21 = vld [vmem:[#allocation2 + $0x288] sm:$0xff] }
 0x23c   : > { %v2122_v18 = vmax.f32 %v1866_v15, 0.0  ;;  %v2123_v36 = vmax.f32 %v1867_v11, 0.0  ;;  %v2124_v47 = vmax.f32 %v1868_v63, 0.0  ;;  %v2125_v56 = vmax.f32 %v1869_v41, 0.0  ;;  %v1362_v63 = vld [vmem:[#allocation2 + $0x2a0] sm:$0xff]  ;;  %v1363_v41 = vld [vmem:[#allocation2 + $0x2a8] sm:$0xff] }
 0x23d   : > { %v2126_v30 = vmax.f32 %v1870_v35, 0.0  ;;  %v2127_v6 = vmax.f32 %v1871_v24, 0.0  ;;  %v1872_v29 = vadd.f32 %v5191_v37, %v1610_v33  ;;  %v1873_v38 = vadd.f32 %v5191_v37, %v1611_v26 }
 0x23e   : > { %v4038_v12 = vpack.c.bf16 %v2122_v18, %v2122_v18  ;;  %v4039_v34 = vpack.c.bf16 %v2123_v36, %v2123_v36  ;;  %v4040_v5 = vpack.c.bf16 %v2124_v47, %v2124_v47  ;;  %v4041_v17 = vpack.c.bf16 %v2125_v56, %v2125_v56 }
 0x23f   : > { %v4042_v7 = vpack.c.bf16 %v2126_v30, %v2126_v30  ;;  %v4043_v10 = vpack.c.bf16 %v2127_v6, %v2127_v6  ;;  %v2128_v42 = vmax.f32 %v1872_v29, 0.0  ;;  %v2129_v3 = vmax.f32 %v1873_v38, 0.0  ;;  %v1365_v30 = vld [vmem:[#allocation2 + $0x2b8] sm:$0xff] }
 0x240   : > { %3403 = vst.msk [vmem:[%s6729_s4 + $0x100] sm:$0xf] %vm3338_vm4, %v4038_v12  ;;  %3404 = vst.msk [vmem:[%s6729_s4 + $0x104] sm:$0xf] %vm3338_vm4, %v4039_v34  ;;  %v1612_v28 = vmul.f32 %v5182_v22, %v1350_v19  ;;  %v1613_v49 = vmul.f32 %v5182_v22, %v1351_v0  ;;  %v1614_v44 = vmul.f32 %v5182_v22, %v1352_v51  ;;  %v1364_v19 = vld [vmem:[#allocation2 + $0x2b0] sm:$0xff] }
 0x241   : > { %3405 = vst.msk [vmem:[%s6729_s4 + $0x108] sm:$0xf] %vm3338_vm4, %v4040_v5  ;;  %3406 = vst.msk [vmem:[%s6729_s4 + $0x10c] sm:$0xf] %vm3338_vm4, %v4041_v17  ;;  %v1615_v16 = vmul.f32 %v5182_v22, %v1353_v62  ;;  %v4044_v46 = vpack.c.bf16 %v2128_v42, %v2128_v42  ;;  %v4045_v27 = vpack.c.bf16 %v2129_v3, %v2129_v3 }
 0x242   : > { %3407 = vst.msk [vmem:[%s6729_s4 + $0x110] sm:$0xf] %vm3338_vm4, %v4042_v7  ;;  %3408 = vst.msk [vmem:[%s6729_s4 + $0x114] sm:$0xf] %vm3338_vm4, %v4043_v10  ;;  %v1616_v55 = vmul.f32 %v5182_v22, %v1354_v40  ;;  %v1617_v32 = vmul.f32 %v5182_v22, %v1355_v45  ;;  %v1874_v4 = vadd.f32 %v5191_v37, %v1612_v28  ;;  %v1366_v28 = vld [vmem:[#allocation2 + $0x2c0] sm:$0xff] }
 0x243   : > { %v1875_v48 = vadd.f32 %v5191_v37, %v1613_v49  ;;  %v1876_v23 = vadd.f32 %v5191_v37, %v1614_v44  ;;  %v1877_v59 = vadd.f32 %v5191_v37, %v1615_v16  ;;  %3409 = vst.msk [vmem:[%s6729_s4 + $0x118] sm:$0xf] %vm3338_vm4, %v4044_v46  ;;  %3410 = vst.msk [vmem:[%s6729_s4 + $0x11c] sm:$0xf] %vm3338_vm4, %v4045_v27  ;;  %v1368_v46 = vld [vmem:[#allocation2 + $0x2d0] sm:$0xff]  ;;  %v1369_v27 = vld [vmem:[#allocation2 + $0x2d8] sm:$0xff] }
 0x244   : > { %v1878_v50 = vadd.f32 %v5191_v37, %v1616_v55  ;;  %v1879_v39 = vadd.f32 %v5191_v37, %v1617_v32  ;;  %v1618_v1 = vmul.f32 %v5182_v22, %v1356_v13  ;;  %v1619_v52 = vmul.f32 %v5182_v22, %v1357_v2  ;;  %v1367_v2 = vld [vmem:[#allocation2 + $0x2c8] sm:$0xff] }
 0x245   : > { %v2130_v60 = vmax.f32 %v1874_v4, 0.0  ;;  %v2131_v8 = vmax.f32 %v1875_v48, 0.0  ;;  %v2132_v54 = vmax.f32 %v1876_v23, 0.0  ;;  %v2133_v53 = vmax.f32 %v1877_v59, 0.0  ;;  %v1370_v23 = vld [vmem:[#allocation2 + $0x2e0] sm:$0xff]  ;;  %v1371_v59 = vld [vmem:[#allocation2 + $0x2e8] sm:$0xff] }
 0x246   : > { %v2134_v61 = vmax.f32 %v1878_v50, 0.0  ;;  %v2135_v58 = vmax.f32 %v1879_v39, 0.0  ;;  %v1880_v9 = vadd.f32 %v5191_v37, %v1618_v1  ;;  %v1881_v20 = vadd.f32 %v5191_v37, %v1619_v52 }
 0x247   : > { %v4046_v31 = vpack.c.bf16 %v2130_v60, %v2130_v60  ;;  %v4047_v14 = vpack.c.bf16 %v2131_v8, %v2131_v8  ;;  %v4048_v15 = vpack.c.bf16 %v2132_v54, %v2132_v54  ;;  %v4049_v11 = vpack.c.bf16 %v2133_v53, %v2133_v53 }
 0x248   : > { %v4050_v35 = vpack.c.bf16 %v2134_v61, %v2134_v61  ;;  %v4051_v24 = vpack.c.bf16 %v2135_v58, %v2135_v58  ;;  %v2136_v33 = vmax.f32 %v1880_v9, 0.0  ;;  %v2137_v26 = vmax.f32 %v1881_v20, 0.0  ;;  %v1373_v61 = vld [vmem:[#allocation2 + $0x2f8] sm:$0xff] }
 0x249   : > { %3411 = vst.msk [vmem:[%s6729_s4 + $0x120] sm:$0xf] %vm3338_vm4, %v4046_v31  ;;  %3412 = vst.msk [vmem:[%s6729_s4 + $0x124] sm:$0xf] %vm3338_vm4, %v4047_v14  ;;  %v1620_v18 = vmul.f32 %v5182_v22, %v1358_v43  ;;  %v1621_v36 = vmul.f32 %v5182_v22, %v1359_v21  ;;  %v1622_v47 = vmul.f32 %v5182_v22, %v1360_v57  ;;  %v1372_v43 = vld [vmem:[#allocation2 + $0x2f0] sm:$0xff] }
 0x24a   : > { %3413 = vst.msk [vmem:[%s6729_s4 + $0x128] sm:$0xf] %vm3338_vm4, %v4048_v15  ;;  %3414 = vst.msk [vmem:[%s6729_s4 + $0x12c] sm:$0xf] %vm3338_vm4, %v4049_v11  ;;  %v1623_v56 = vmul.f32 %v5182_v22, %v1361_v25  ;;  %v4052_v6 = vpack.c.bf16 %v2136_v33, %v2136_v33  ;;  %v4053_v29 = vpack.c.bf16 %v2137_v26, %v2137_v26 }
 0x24b   : > { %3415 = vst.msk [vmem:[%s6729_s4 + $0x130] sm:$0xf] %vm3338_vm4, %v4050_v35  ;;  %3416 = vst.msk [vmem:[%s6729_s4 + $0x134] sm:$0xf] %vm3338_vm4, %v4051_v24  ;;  %v1624_v38 = vmul.f32 %v5182_v22, %v1362_v63  ;;  %v1625_v0 = vmul.f32 %v5182_v22, %v1363_v41  ;;  %v1882_v51 = vadd.f32 %v5191_v37, %v1620_v18  ;;  %v1374_v18 = vld [vmem:[#allocation2 + $0x300] sm:$0xff] }
 0x24c   : > { %v1883_v62 = vadd.f32 %v5191_v37, %v1621_v36  ;;  %v1884_v12 = vadd.f32 %v5191_v37, %v1622_v47  ;;  %v1885_v34 = vadd.f32 %v5191_v37, %v1623_v56  ;;  %3417 = vst.msk [vmem:[%s6729_s4 + $0x138] sm:$0xf] %vm3338_vm4, %v4052_v6  ;;  %3418 = vst.msk [vmem:[%s6729_s4 + $0x13c] sm:$0xf] %vm3338_vm4, %v4053_v29  ;;  %v1376_v6 = vld [vmem:[#allocation2 + $0x310] sm:$0xff]  ;;  %v1377_v29 = vld [vmem:[#allocation2 + $0x318] sm:$0xff] }
 0x24d   : > { %v1886_v5 = vadd.f32 %v5191_v37, %v1624_v38  ;;  %v1887_v17 = vadd.f32 %v5191_v37, %v1625_v0  ;;  %v1626_v40 = vmul.f32 %v5182_v22, %v1364_v19  ;;  %v1627_v45 = vmul.f32 %v5182_v22, %v1365_v30  ;;  %v1375_v30 = vld [vmem:[#allocation2 + $0x308] sm:$0xff] }
 0x24e   : > { %v2138_v7 = vmax.f32 %v1882_v51, 0.0  ;;  %v2139_v10 = vmax.f32 %v1883_v62, 0.0  ;;  %v2140_v42 = vmax.f32 %v1884_v12, 0.0  ;;  %v2141_v3 = vmax.f32 %v1885_v34, 0.0  ;;  %v1378_v12 = vld [vmem:[#allocation2 + $0x320] sm:$0xff]  ;;  %v1379_v34 = vld [vmem:[#allocation2 + $0x328] sm:$0xff] }
 0x24f   : > { %v2142_v49 = vmax.f32 %v1886_v5, 0.0  ;;  %v2143_v44 = vmax.f32 %v1887_v17, 0.0  ;;  %v1888_v16 = vadd.f32 %v5191_v37, %v1626_v40  ;;  %v1889_v13 = vadd.f32 %v5191_v37, %v1627_v45 }
 0x250   : > { %v4054_v55 = vpack.c.bf16 %v2138_v7, %v2138_v7  ;;  %v4055_v32 = vpack.c.bf16 %v2139_v10, %v2139_v10  ;;  %v4056_v4 = vpack.c.bf16 %v2140_v42, %v2140_v42  ;;  %v4057_v48 = vpack.c.bf16 %v2141_v3, %v2141_v3 }
 0x251   : > { %v4058_v50 = vpack.c.bf16 %v2142_v49, %v2142_v49  ;;  %v4059_v39 = vpack.c.bf16 %v2143_v44, %v2143_v44  ;;  %v2144_v1 = vmax.f32 %v1888_v16, 0.0  ;;  %v2145_v52 = vmax.f32 %v1889_v13, 0.0  ;;  %v1381_v49 = vld [vmem:[#allocation2 + $0x338] sm:$0xff] }
 0x252   : > { %3419 = vst.msk [vmem:[%s6729_s4 + $0x140] sm:$0xf] %vm3338_vm4, %v4054_v55  ;;  %3420 = vst.msk [vmem:[%s6729_s4 + $0x144] sm:$0xf] %vm3338_vm4, %v4055_v32  ;;  %v1628_v60 = vmul.f32 %v5182_v22, %v1366_v28  ;;  %v1629_v8 = vmul.f32 %v5182_v22, %v1367_v2  ;;  %v1630_v54 = vmul.f32 %v5182_v22, %v1368_v46  ;;  %v1380_v28 = vld [vmem:[#allocation2 + $0x330] sm:$0xff] }
 0x253   : > { %3421 = vst.msk [vmem:[%s6729_s4 + $0x148] sm:$0xf] %vm3338_vm4, %v4056_v4  ;;  %3422 = vst.msk [vmem:[%s6729_s4 + $0x14c] sm:$0xf] %vm3338_vm4, %v4057_v48  ;;  %v1631_v53 = vmul.f32 %v5182_v22, %v1369_v27  ;;  %v4060_v58 = vpack.c.bf16 %v2144_v1, %v2144_v1  ;;  %v4061_v9 = vpack.c.bf16 %v2145_v52, %v2145_v52 }
 0x254   : > { %3423 = vst.msk [vmem:[%s6729_s4 + $0x150] sm:$0xf] %vm3338_vm4, %v4058_v50  ;;  %3424 = vst.msk [vmem:[%s6729_s4 + $0x154] sm:$0xf] %vm3338_vm4, %v4059_v39  ;;  %v1632_v20 = vmul.f32 %v5182_v22, %v1370_v23  ;;  %v1633_v21 = vmul.f32 %v5182_v22, %v1371_v59  ;;  %v1890_v57 = vadd.f32 %v5191_v37, %v1628_v60  ;;  %v1382_v60 = vld [vmem:[#allocation2 + $0x340] sm:$0xff] }
 0x255   : > { %v1891_v25 = vadd.f32 %v5191_v37, %v1629_v8  ;;  %v1892_v31 = vadd.f32 %v5191_v37, %v1630_v54  ;;  %v1893_v14 = vadd.f32 %v5191_v37, %v1631_v53  ;;  %3425 = vst.msk [vmem:[%s6729_s4 + $0x158] sm:$0xf] %vm3338_vm4, %v4060_v58  ;;  %3426 = vst.msk [vmem:[%s6729_s4 + $0x15c] sm:$0xf] %vm3338_vm4, %v4061_v9  ;;  %v1384_v58 = vld [vmem:[#allocation2 + $0x350] sm:$0xff]  ;;  %v1385_v9 = vld [vmem:[#allocation2 + $0x358] sm:$0xff] }
 0x256   : > { %v1894_v15 = vadd.f32 %v5191_v37, %v1632_v20  ;;  %v1895_v11 = vadd.f32 %v5191_v37, %v1633_v21  ;;  %v1634_v63 = vmul.f32 %v5182_v22, %v1372_v43  ;;  %v1635_v41 = vmul.f32 %v5182_v22, %v1373_v61  ;;  %v1383_v61 = vld [vmem:[#allocation2 + $0x348] sm:$0xff] }
 0x257   : > { %v2146_v35 = vmax.f32 %v1890_v57, 0.0  ;;  %v2147_v24 = vmax.f32 %v1891_v25, 0.0  ;;  %v2148_v33 = vmax.f32 %v1892_v31, 0.0  ;;  %v2149_v26 = vmax.f32 %v1893_v14, 0.0  ;;  %v1386_v31 = vld [vmem:[#allocation2 + $0x360] sm:$0xff]  ;;  %v1387_v14 = vld [vmem:[#allocation2 + $0x368] sm:$0xff] }
 0x258   : > { %v2150_v36 = vmax.f32 %v1894_v15, 0.0  ;;  %v2151_v47 = vmax.f32 %v1895_v11, 0.0  ;;  %v1896_v56 = vadd.f32 %v5191_v37, %v1634_v63  ;;  %v1897_v19 = vadd.f32 %v5191_v37, %v1635_v41 }
 0x259   : > { %v4062_v38 = vpack.c.bf16 %v2146_v35, %v2146_v35  ;;  %v4063_v0 = vpack.c.bf16 %v2147_v24, %v2147_v24  ;;  %v4064_v51 = vpack.c.bf16 %v2148_v33, %v2148_v33  ;;  %v4065_v62 = vpack.c.bf16 %v2149_v26, %v2149_v26 }
 0x25a   : > { %v4066_v5 = vpack.c.bf16 %v2150_v36, %v2150_v36  ;;  %v4067_v17 = vpack.c.bf16 %v2151_v47, %v2151_v47  ;;  %v2152_v40 = vmax.f32 %v1896_v56, 0.0  ;;  %v2153_v45 = vmax.f32 %v1897_v19, 0.0  ;;  %v1389_v36 = vld [vmem:[#allocation2 + $0x378] sm:$0xff] }
 0x25b   : > { %3427 = vst.msk [vmem:[%s6729_s4 + $0x160] sm:$0xf] %vm3338_vm4, %v4062_v38  ;;  %3428 = vst.msk [vmem:[%s6729_s4 + $0x164] sm:$0xf] %vm3338_vm4, %v4063_v0  ;;  %v1636_v7 = vmul.f32 %v5182_v22, %v1374_v18  ;;  %v1637_v10 = vmul.f32 %v5182_v22, %v1375_v30  ;;  %v1638_v42 = vmul.f32 %v5182_v22, %v1376_v6  ;;  %v1388_v18 = vld [vmem:[#allocation2 + $0x370] sm:$0xff] }
 0x25c   : > { %3429 = vst.msk [vmem:[%s6729_s4 + $0x168] sm:$0xf] %vm3338_vm4, %v4064_v51  ;;  %3430 = vst.msk [vmem:[%s6729_s4 + $0x16c] sm:$0xf] %vm3338_vm4, %v4065_v62  ;;  %v1639_v3 = vmul.f32 %v5182_v22, %v1377_v29  ;;  %v4068_v44 = vpack.c.bf16 %v2152_v40, %v2152_v40  ;;  %v4069_v16 = vpack.c.bf16 %v2153_v45, %v2153_v45 }
 0x25d   : > { %3431 = vst.msk [vmem:[%s6729_s4 + $0x170] sm:$0xf] %vm3338_vm4, %v4066_v5  ;;  %3432 = vst.msk [vmem:[%s6729_s4 + $0x174] sm:$0xf] %vm3338_vm4, %v4067_v17  ;;  %v1640_v13 = vmul.f32 %v5182_v22, %v1378_v12  ;;  %v1641_v2 = vmul.f32 %v5182_v22, %v1379_v34  ;;  %v1898_v46 = vadd.f32 %v5191_v37, %v1636_v7  ;;  %v1390_v7 = vld [vmem:[#allocation2 + $0x380] sm:$0xff] }
 0x25e   : > { %v1899_v27 = vadd.f32 %v5191_v37, %v1637_v10  ;;  %v1900_v55 = vadd.f32 %v5191_v37, %v1638_v42  ;;  %v1901_v32 = vadd.f32 %v5191_v37, %v1639_v3  ;;  %3433 = vst.msk [vmem:[%s6729_s4 + $0x178] sm:$0xf] %vm3338_vm4, %v4068_v44  ;;  %3434 = vst.msk [vmem:[%s6729_s4 + $0x17c] sm:$0xf] %vm3338_vm4, %v4069_v16  ;;  %v1392_v44 = vld [vmem:[#allocation2 + $0x390] sm:$0xff]  ;;  %v1393_v16 = vld [vmem:[#allocation2 + $0x398] sm:$0xff] }
 0x25f   : > { %v1902_v4 = vadd.f32 %v5191_v37, %v1640_v13  ;;  %v1903_v48 = vadd.f32 %v5191_v37, %v1641_v2  ;;  %v1642_v23 = vmul.f32 %v5182_v22, %v1380_v28  ;;  %v1643_v59 = vmul.f32 %v5182_v22, %v1381_v49  ;;  %v1391_v49 = vld [vmem:[#allocation2 + $0x388] sm:$0xff] }
 0x260   : > { %v2154_v50 = vmax.f32 %v1898_v46, 0.0  ;;  %v2155_v39 = vmax.f32 %v1899_v27, 0.0  ;;  %v2156_v1 = vmax.f32 %v1900_v55, 0.0  ;;  %v2157_v52 = vmax.f32 %v1901_v32, 0.0  ;;  %v1394_v55 = vld [vmem:[#allocation2 + $0x3a0] sm:$0xff]  ;;  %v1395_v32 = vld [vmem:[#allocation2 + $0x3a8] sm:$0xff] }
 0x261   : > { %v2158_v8 = vmax.f32 %v1902_v4, 0.0  ;;  %v2159_v54 = vmax.f32 %v1903_v48, 0.0  ;;  %v1904_v53 = vadd.f32 %v5191_v37, %v1642_v23  ;;  %v1905_v43 = vadd.f32 %v5191_v37, %v1643_v59 }
 0x262   : > { %v4070_v20 = vpack.c.bf16 %v2154_v50, %v2154_v50  ;;  %v4071_v21 = vpack.c.bf16 %v2155_v39, %v2155_v39  ;;  %v4072_v57 = vpack.c.bf16 %v2156_v1, %v2156_v1  ;;  %v4073_v25 = vpack.c.bf16 %v2157_v52, %v2157_v52 }
 0x263   : > { %v4074_v15 = vpack.c.bf16 %v2158_v8, %v2158_v8  ;;  %v4075_v11 = vpack.c.bf16 %v2159_v54, %v2159_v54  ;;  %v2160_v63 = vmax.f32 %v1904_v53, 0.0  ;;  %v2161_v41 = vmax.f32 %v1905_v43, 0.0  ;;  %v1397_v8 = vld [vmem:[#allocation2 + $0x3b8] sm:$0xff] }
 0x264   : > { %3435 = vst.msk [vmem:[%s6729_s4 + $0x180] sm:$0xf] %vm3338_vm4, %v4070_v20  ;;  %3436 = vst.msk [vmem:[%s6729_s4 + $0x184] sm:$0xf] %vm3338_vm4, %v4071_v21  ;;  %v1644_v35 = vmul.f32 %v5182_v22, %v1382_v60  ;;  %v1645_v24 = vmul.f32 %v5182_v22, %v1383_v61  ;;  %v1646_v33 = vmul.f32 %v5182_v22, %v1384_v58  ;;  %v1396_v60 = vld [vmem:[#allocation2 + $0x3b0] sm:$0xff] }
 0x265   : > { %3437 = vst.msk [vmem:[%s6729_s4 + $0x188] sm:$0xf] %vm3338_vm4, %v4072_v57  ;;  %3438 = vst.msk [vmem:[%s6729_s4 + $0x18c] sm:$0xf] %vm3338_vm4, %v4073_v25  ;;  %v1647_v26 = vmul.f32 %v5182_v22, %v1385_v9  ;;  %v4076_v47 = vpack.c.bf16 %v2160_v63, %v2160_v63  ;;  %v4077_v56 = vpack.c.bf16 %v2161_v41, %v2161_v41 }
 0x266   : > { %3439 = vst.msk [vmem:[%s6729_s4 + $0x190] sm:$0xf] %vm3338_vm4, %v4074_v15  ;;  %3440 = vst.msk [vmem:[%s6729_s4 + $0x194] sm:$0xf] %vm3338_vm4, %v4075_v11  ;;  %v1648_v19 = vmul.f32 %v5182_v22, %v1386_v31  ;;  %v1649_v30 = vmul.f32 %v5182_v22, %v1387_v14  ;;  %v1906_v6 = vadd.f32 %v5191_v37, %v1644_v35  ;;  %v1398_v35 = vld [vmem:[#allocation2 + $0x3c0] sm:$0xff] }
 0x267   : > { %v1907_v29 = vadd.f32 %v5191_v37, %v1645_v24  ;;  %v1908_v38 = vadd.f32 %v5191_v37, %v1646_v33  ;;  %v1909_v0 = vadd.f32 %v5191_v37, %v1647_v26  ;;  %3441 = vst.msk [vmem:[%s6729_s4 + $0x198] sm:$0xf] %vm3338_vm4, %v4076_v47  ;;  %3442 = vst.msk [vmem:[%s6729_s4 + $0x19c] sm:$0xf] %vm3338_vm4, %v4077_v56  ;;  %v1400_v47 = vld [vmem:[#allocation2 + $0x3d0] sm:$0xff]  ;;  %v1401_v56 = vld [vmem:[#allocation2 + $0x3d8] sm:$0xff] }
 0x268   : > { %v1910_v51 = vadd.f32 %v5191_v37, %v1648_v19  ;;  %v1911_v62 = vadd.f32 %v5191_v37, %v1649_v30  ;;  %v1650_v12 = vmul.f32 %v5182_v22, %v1388_v18  ;;  %v1651_v34 = vmul.f32 %v5182_v22, %v1389_v36  ;;  %v1399_v36 = vld [vmem:[#allocation2 + $0x3c8] sm:$0xff] }
 0x269   : > { %v2162_v5 = vmax.f32 %v1906_v6, 0.0  ;;  %v2163_v17 = vmax.f32 %v1907_v29, 0.0  ;;  %v2164_v40 = vmax.f32 %v1908_v38, 0.0  ;;  %v2165_v45 = vmax.f32 %v1909_v0, 0.0  ;;  %v1402_v38 = vld [vmem:[#allocation2 + $0x3e0] sm:$0xff]  ;;  %v1403_v0 = vld [vmem:[#allocation2 + $0x3e8] sm:$0xff] }
 0x26a   : > { %v2166_v10 = vmax.f32 %v1910_v51, 0.0  ;;  %v2167_v42 = vmax.f32 %v1911_v62, 0.0  ;;  %v1912_v3 = vadd.f32 %v5191_v37, %v1650_v12  ;;  %v1913_v28 = vadd.f32 %v5191_v37, %v1651_v34 }
 0x26b   : > { %v4078_v13 = vpack.c.bf16 %v2162_v5, %v2162_v5  ;;  %v4079_v2 = vpack.c.bf16 %v2163_v17, %v2163_v17  ;;  %v4080_v46 = vpack.c.bf16 %v2164_v40, %v2164_v40  ;;  %v4081_v27 = vpack.c.bf16 %v2165_v45, %v2165_v45 }
 0x26c   : > { %v4082_v4 = vpack.c.bf16 %v2166_v10, %v2166_v10  ;;  %v4083_v48 = vpack.c.bf16 %v2167_v42, %v2167_v42  ;;  %v2168_v23 = vmax.f32 %v1912_v3, 0.0  ;;  %v2169_v59 = vmax.f32 %v1913_v28, 0.0  ;;  %v1405_v10 = vld [vmem:[#allocation2 + $0x3f8] sm:$0xff] }
 0x26d   : > { %3443 = vst.msk [vmem:[%s6729_s4 + $0x1a0] sm:$0xf] %vm3338_vm4, %v4078_v13  ;;  %3444 = vst.msk [vmem:[%s6729_s4 + $0x1a4] sm:$0xf] %vm3338_vm4, %v4079_v2  ;;  %v1652_v50 = vmul.f32 %v5182_v22, %v1390_v7  ;;  %v1653_v39 = vmul.f32 %v5182_v22, %v1391_v49  ;;  %v1654_v1 = vmul.f32 %v5182_v22, %v1392_v44  ;;  %v1404_v7 = vld [vmem:[#allocation2 + $0x3f0] sm:$0xff] }
 0x26e   : > { %3445 = vst.msk [vmem:[%s6729_s4 + $0x1a8] sm:$0xf] %vm3338_vm4, %v4080_v46  ;;  %3446 = vst.msk [vmem:[%s6729_s4 + $0x1ac] sm:$0xf] %vm3338_vm4, %v4081_v27  ;;  %v1655_v52 = vmul.f32 %v5182_v22, %v1393_v16  ;;  %v4084_v54 = vpack.c.bf16 %v2168_v23, %v2168_v23  ;;  %v4085_v53 = vpack.c.bf16 %v2169_v59, %v2169_v59 }
 0x26f   : > { %3447 = vst.msk [vmem:[%s6729_s4 + $0x1b0] sm:$0xf] %vm3338_vm4, %v4082_v4  ;;  %3448 = vst.msk [vmem:[%s6729_s4 + $0x1b4] sm:$0xf] %vm3338_vm4, %v4083_v48  ;;  %v1656_v43 = vmul.f32 %v5182_v22, %v1394_v55  ;;  %v1657_v61 = vmul.f32 %v5182_v22, %v1395_v32  ;;  %v1914_v58 = vadd.f32 %v5191_v37, %v1652_v50  ;;  %v1406_v50 = vld [vmem:[#allocation2 + $0x400] sm:$0xff] }
 0x270   : > { %v1915_v9 = vadd.f32 %v5191_v37, %v1653_v39  ;;  %v1916_v20 = vadd.f32 %v5191_v37, %v1654_v1  ;;  %v1917_v21 = vadd.f32 %v5191_v37, %v1655_v52  ;;  %3449 = vst.msk [vmem:[%s6729_s4 + $0x1b8] sm:$0xf] %vm3338_vm4, %v4084_v54  ;;  %3450 = vst.msk [vmem:[%s6729_s4 + $0x1bc] sm:$0xf] %vm3338_vm4, %v4085_v53  ;;  %v1408_v54 = vld [vmem:[#allocation2 + $0x410] sm:$0xff]  ;;  %v1409_v53 = vld [vmem:[#allocation2 + $0x418] sm:$0xff] }
 0x271   : > { %v1918_v57 = vadd.f32 %v5191_v37, %v1656_v43  ;;  %v1919_v25 = vadd.f32 %v5191_v37, %v1657_v61  ;;  %v1658_v31 = vmul.f32 %v5182_v22, %v1396_v60  ;;  %v1659_v14 = vmul.f32 %v5182_v22, %v1397_v8  ;;  %v1407_v8 = vld [vmem:[#allocation2 + $0x408] sm:$0xff] }
 0x272   : > { %v2170_v15 = vmax.f32 %v1914_v58, 0.0  ;;  %v2171_v11 = vmax.f32 %v1915_v9, 0.0  ;;  %v2172_v63 = vmax.f32 %v1916_v20, 0.0  ;;  %v2173_v41 = vmax.f32 %v1917_v21, 0.0  ;;  %v1410_v20 = vld [vmem:[#allocation2 + $0x420] sm:$0xff]  ;;  %v1411_v21 = vld [vmem:[#allocation2 + $0x428] sm:$0xff] }
 0x273   : > { %v2174_v24 = vmax.f32 %v1918_v57, 0.0  ;;  %v2175_v33 = vmax.f32 %v1919_v25, 0.0  ;;  %v1920_v26 = vadd.f32 %v5191_v37, %v1658_v31  ;;  %v1921_v18 = vadd.f32 %v5191_v37, %v1659_v14 }
 0x274   : > { %v4086_v19 = vpack.c.bf16 %v2170_v15, %v2170_v15  ;;  %v4087_v30 = vpack.c.bf16 %v2171_v11, %v2171_v11  ;;  %v4088_v6 = vpack.c.bf16 %v2172_v63, %v2172_v63  ;;  %v4089_v29 = vpack.c.bf16 %v2173_v41, %v2173_v41 }
 0x275   : > { %v4090_v51 = vpack.c.bf16 %v2174_v24, %v2174_v24  ;;  %v4091_v62 = vpack.c.bf16 %v2175_v33, %v2175_v33  ;;  %v2176_v12 = vmax.f32 %v1920_v26, 0.0  ;;  %v2177_v34 = vmax.f32 %v1921_v18, 0.0  ;;  %v1413_v24 = vld [vmem:[#allocation2 + $0x438] sm:$0xff] }
 0x276   : > { %3451 = vst.msk [vmem:[%s6729_s4 + $0x1c0] sm:$0xf] %vm3338_vm4, %v4086_v19  ;;  %3452 = vst.msk [vmem:[%s6729_s4 + $0x1c4] sm:$0xf] %vm3338_vm4, %v4087_v30  ;;  %v1660_v5 = vmul.f32 %v5182_v22, %v1398_v35  ;;  %v1661_v17 = vmul.f32 %v5182_v22, %v1399_v36  ;;  %v1662_v40 = vmul.f32 %v5182_v22, %v1400_v47  ;;  %v1412_v35 = vld [vmem:[#allocation2 + $0x430] sm:$0xff] }
 0x277   : > { %3453 = vst.msk [vmem:[%s6729_s4 + $0x1c8] sm:$0xf] %vm3338_vm4, %v4088_v6  ;;  %3454 = vst.msk [vmem:[%s6729_s4 + $0x1cc] sm:$0xf] %vm3338_vm4, %v4089_v29  ;;  %v1663_v45 = vmul.f32 %v5182_v22, %v1401_v56  ;;  %v4092_v42 = vpack.c.bf16 %v2176_v12, %v2176_v12  ;;  %v4093_v3 = vpack.c.bf16 %v2177_v34, %v2177_v34 }
 0x278   : > { %3455 = vst.msk [vmem:[%s6729_s4 + $0x1d0] sm:$0xf] %vm3338_vm4, %v4090_v51  ;;  %3456 = vst.msk [vmem:[%s6729_s4 + $0x1d4] sm:$0xf] %vm3338_vm4, %v4091_v62  ;;  %v1664_v28 = vmul.f32 %v5182_v22, %v1402_v38  ;;  %v1665_v49 = vmul.f32 %v5182_v22, %v1403_v0  ;;  %v1922_v44 = vadd.f32 %v5191_v37, %v1660_v5  ;;  %v1414_v5 = vld [vmem:[#allocation2 + $0x440] sm:$0xff] }
 0x279   : > { %v1923_v16 = vadd.f32 %v5191_v37, %v1661_v17  ;;  %v1924_v13 = vadd.f32 %v5191_v37, %v1662_v40  ;;  %v1925_v2 = vadd.f32 %v5191_v37, %v1663_v45  ;;  %3457 = vst.msk [vmem:[%s6729_s4 + $0x1d8] sm:$0xf] %vm3338_vm4, %v4092_v42  ;;  %3458 = vst.msk [vmem:[%s6729_s4 + $0x1dc] sm:$0xf] %vm3338_vm4, %v4093_v3  ;;  %v1416_v42 = vld [vmem:[#allocation2 + $0x450] sm:$0xff]  ;;  %v1417_v3 = vld [vmem:[#allocation2 + $0x458] sm:$0xff] }
 0x27a   : > { %v1926_v46 = vadd.f32 %v5191_v37, %v1664_v28  ;;  %v1927_v27 = vadd.f32 %v5191_v37, %v1665_v49  ;;  %v1666_v55 = vmul.f32 %v5182_v22, %v1404_v7  ;;  %v1667_v32 = vmul.f32 %v5182_v22, %v1405_v10  ;;  %v1415_v10 = vld [vmem:[#allocation2 + $0x448] sm:$0xff] }
 0x27b   : > { %v2178_v4 = vmax.f32 %v1922_v44, 0.0  ;;  %v2179_v48 = vmax.f32 %v1923_v16, 0.0  ;;  %v2180_v23 = vmax.f32 %v1924_v13, 0.0  ;;  %v2181_v59 = vmax.f32 %v1925_v2, 0.0  ;;  %v1418_v13 = vld [vmem:[#allocation2 + $0x460] sm:$0xff]  ;;  %v1419_v2 = vld [vmem:[#allocation2 + $0x468] sm:$0xff] }
 0x27c   : > { %v2182_v39 = vmax.f32 %v1926_v46, 0.0  ;;  %v2183_v1 = vmax.f32 %v1927_v27, 0.0  ;;  %v1928_v52 = vadd.f32 %v5191_v37, %v1666_v55  ;;  %v1929_v60 = vadd.f32 %v5191_v37, %v1667_v32 }
 0x27d   : > { %v4094_v43 = vpack.c.bf16 %v2178_v4, %v2178_v4  ;;  %v4095_v61 = vpack.c.bf16 %v2179_v48, %v2179_v48  ;;  %v4096_v58 = vpack.c.bf16 %v2180_v23, %v2180_v23  ;;  %v4097_v9 = vpack.c.bf16 %v2181_v59, %v2181_v59 }
 0x27e   : > { %v4098_v57 = vpack.c.bf16 %v2182_v39, %v2182_v39  ;;  %v4099_v25 = vpack.c.bf16 %v2183_v1, %v2183_v1  ;;  %v2184_v31 = vmax.f32 %v1928_v52, 0.0  ;;  %v2185_v14 = vmax.f32 %v1929_v60, 0.0  ;;  %v1421_v39 = vld [vmem:[#allocation2 + $0x478] sm:$0xff] }
 0x27f   : > { %3459 = vst.msk [vmem:[%s6729_s4 + $0x1e0] sm:$0xf] %vm3338_vm4, %v4094_v43  ;;  %3460 = vst.msk [vmem:[%s6729_s4 + $0x1e4] sm:$0xf] %vm3338_vm4, %v4095_v61  ;;  %v1668_v15 = vmul.f32 %v5182_v22, %v1406_v50  ;;  %v1669_v11 = vmul.f32 %v5182_v22, %v1407_v8  ;;  %v1670_v63 = vmul.f32 %v5182_v22, %v1408_v54  ;;  %v1420_v50 = vld [vmem:[#allocation2 + $0x470] sm:$0xff] }
 0x280   : > { %3461 = vst.msk [vmem:[%s6729_s4 + $0x1e8] sm:$0xf] %vm3338_vm4, %v4096_v58  ;;  %3462 = vst.msk [vmem:[%s6729_s4 + $0x1ec] sm:$0xf] %vm3338_vm4, %v4097_v9  ;;  %v1671_v41 = vmul.f32 %v5182_v22, %v1409_v53  ;;  %v4100_v33 = vpack.c.bf16 %v2184_v31, %v2184_v31  ;;  %v4101_v26 = vpack.c.bf16 %v2185_v14, %v2185_v14 }
 0x281   : > { %3463 = vst.msk [vmem:[%s6729_s4 + $0x1f0] sm:$0xf] %vm3338_vm4, %v4098_v57  ;;  %3464 = vst.msk [vmem:[%s6729_s4 + $0x1f4] sm:$0xf] %vm3338_vm4, %v4099_v25  ;;  %v1672_v18 = vmul.f32 %v5182_v22, %v1410_v20  ;;  %v1673_v36 = vmul.f32 %v5182_v22, %v1411_v21  ;;  %v1930_v47 = vadd.f32 %v5191_v37, %v1668_v15  ;;  %v1422_v15 = vld [vmem:[#allocation2 + $0x480] sm:$0xff] }
 0x282   : > { %v1931_v56 = vadd.f32 %v5191_v37, %v1669_v11  ;;  %v1932_v19 = vadd.f32 %v5191_v37, %v1670_v63  ;;  %v1933_v30 = vadd.f32 %v5191_v37, %v1671_v41  ;;  %3465 = vst.msk [vmem:[%s6729_s4 + $0x1f8] sm:$0xf] %vm3338_vm4, %v4100_v33  ;;  %3466 = vst.msk [vmem:[%s6729_s4 + $0x1fc] sm:$0xf] %vm3338_vm4, %v4101_v26  ;;  %v1424_v33 = vld [vmem:[#allocation2 + $0x490] sm:$0xff]  ;;  %v1425_v26 = vld [vmem:[#allocation2 + $0x498] sm:$0xff] }
 0x283   : > { %v1934_v6 = vadd.f32 %v5191_v37, %v1672_v18  ;;  %v1935_v29 = vadd.f32 %v5191_v37, %v1673_v36  ;;  %v1674_v38 = vmul.f32 %v5182_v22, %v1412_v35  ;;  %v1675_v0 = vmul.f32 %v5182_v22, %v1413_v24  ;;  %v1423_v24 = vld [vmem:[#allocation2 + $0x488] sm:$0xff] }
 0x284   : > { %v2186_v51 = vmax.f32 %v1930_v47, 0.0  ;;  %v2187_v62 = vmax.f32 %v1931_v56, 0.0  ;;  %v2188_v12 = vmax.f32 %v1932_v19, 0.0  ;;  %v2189_v34 = vmax.f32 %v1933_v30, 0.0  ;;  %v1426_v19 = vld [vmem:[#allocation2 + $0x4a0] sm:$0xff]  ;;  %v1427_v30 = vld [vmem:[#allocation2 + $0x4a8] sm:$0xff] }
 0x285   : > { %v2190_v17 = vmax.f32 %v1934_v6, 0.0  ;;  %v2191_v40 = vmax.f32 %v1935_v29, 0.0  ;;  %v1936_v45 = vadd.f32 %v5191_v37, %v1674_v38  ;;  %v1937_v7 = vadd.f32 %v5191_v37, %v1675_v0 }
 0x286   : > { %v4102_v28 = vpack.c.bf16 %v2186_v51, %v2186_v51  ;;  %v4103_v49 = vpack.c.bf16 %v2187_v62, %v2187_v62  ;;  %v4104_v44 = vpack.c.bf16 %v2188_v12, %v2188_v12  ;;  %v4105_v16 = vpack.c.bf16 %v2189_v34, %v2189_v34 }
 0x287   : > { %v4106_v46 = vpack.c.bf16 %v2190_v17, %v2190_v17  ;;  %v4107_v27 = vpack.c.bf16 %v2191_v40, %v2191_v40  ;;  %v2192_v55 = vmax.f32 %v1936_v45, 0.0  ;;  %v2193_v32 = vmax.f32 %v1937_v7, 0.0  ;;  %v1429_v17 = vld [vmem:[#allocation2 + $0x4b8] sm:$0xff] }
 0x288   : > { %3467 = vst.msk [vmem:[%s6729_s4 + $0x200] sm:$0xf] %vm3338_vm4, %v4102_v28  ;;  %3468 = vst.msk [vmem:[%s6729_s4 + $0x204] sm:$0xf] %vm3338_vm4, %v4103_v49  ;;  %v1676_v4 = vmul.f32 %v5182_v22, %v1414_v5  ;;  %v1677_v48 = vmul.f32 %v5182_v22, %v1415_v10  ;;  %v1678_v23 = vmul.f32 %v5182_v22, %v1416_v42  ;;  %v1428_v5 = vld [vmem:[#allocation2 + $0x4b0] sm:$0xff] }
 0x289   : > { %3469 = vst.msk [vmem:[%s6729_s4 + $0x208] sm:$0xf] %vm3338_vm4, %v4104_v44  ;;  %3470 = vst.msk [vmem:[%s6729_s4 + $0x20c] sm:$0xf] %vm3338_vm4, %v4105_v16  ;;  %v1679_v59 = vmul.f32 %v5182_v22, %v1417_v3  ;;  %v4108_v1 = vpack.c.bf16 %v2192_v55, %v2192_v55  ;;  %v4109_v52 = vpack.c.bf16 %v2193_v32, %v2193_v32 }
 0x28a   : > { %3471 = vst.msk [vmem:[%s6729_s4 + $0x210] sm:$0xf] %vm3338_vm4, %v4106_v46  ;;  %3472 = vst.msk [vmem:[%s6729_s4 + $0x214] sm:$0xf] %vm3338_vm4, %v4107_v27  ;;  %v1680_v60 = vmul.f32 %v5182_v22, %v1418_v13  ;;  %v1681_v8 = vmul.f32 %v5182_v22, %v1419_v2  ;;  %v1938_v54 = vadd.f32 %v5191_v37, %v1676_v4  ;;  %v1430_v4 = vld [vmem:[#allocation2 + $0x4c0] sm:$0xff] }
 0x28b   : > { %v1939_v53 = vadd.f32 %v5191_v37, %v1677_v48  ;;  %v1940_v43 = vadd.f32 %v5191_v37, %v1678_v23  ;;  %v1941_v61 = vadd.f32 %v5191_v37, %v1679_v59  ;;  %3473 = vst.msk [vmem:[%s6729_s4 + $0x218] sm:$0xf] %vm3338_vm4, %v4108_v1  ;;  %3474 = vst.msk [vmem:[%s6729_s4 + $0x21c] sm:$0xf] %vm3338_vm4, %v4109_v52  ;;  %v1432_v1 = vld [vmem:[#allocation2 + $0x4d0] sm:$0xff]  ;;  %v1433_v52 = vld [vmem:[#allocation2 + $0x4d8] sm:$0xff] }
 0x28c   : > { %v1942_v58 = vadd.f32 %v5191_v37, %v1680_v60  ;;  %v1943_v9 = vadd.f32 %v5191_v37, %v1681_v8  ;;  %v1682_v20 = vmul.f32 %v5182_v22, %v1420_v50  ;;  %v1683_v21 = vmul.f32 %v5182_v22, %v1421_v39  ;;  %v1431_v39 = vld [vmem:[#allocation2 + $0x4c8] sm:$0xff] }
 0x28d   : > { %v2194_v57 = vmax.f32 %v1938_v54, 0.0  ;;  %v2195_v25 = vmax.f32 %v1939_v53, 0.0  ;;  %v2196_v31 = vmax.f32 %v1940_v43, 0.0  ;;  %v2197_v14 = vmax.f32 %v1941_v61, 0.0  ;;  %v1434_v43 = vld [vmem:[#allocation2 + $0x4e0] sm:$0xff]  ;;  %v1435_v61 = vld [vmem:[#allocation2 + $0x4e8] sm:$0xff] }
 0x28e   : > { %v2198_v11 = vmax.f32 %v1942_v58, 0.0  ;;  %v2199_v63 = vmax.f32 %v1943_v9, 0.0  ;;  %v1944_v41 = vadd.f32 %v5191_v37, %v1682_v20  ;;  %v1945_v35 = vadd.f32 %v5191_v37, %v1683_v21 }
 0x28f   : > { %v4110_v18 = vpack.c.bf16 %v2194_v57, %v2194_v57  ;;  %v4111_v36 = vpack.c.bf16 %v2195_v25, %v2195_v25  ;;  %v4112_v47 = vpack.c.bf16 %v2196_v31, %v2196_v31  ;;  %v4113_v56 = vpack.c.bf16 %v2197_v14, %v2197_v14 }
 0x290   : > { %v4114_v6 = vpack.c.bf16 %v2198_v11, %v2198_v11  ;;  %v4115_v29 = vpack.c.bf16 %v2199_v63, %v2199_v63  ;;  %v2200_v38 = vmax.f32 %v1944_v41, 0.0  ;;  %v2201_v0 = vmax.f32 %v1945_v35, 0.0  ;;  %v1437_v11 = vld [vmem:[#allocation2 + $0x4f8] sm:$0xff] }
 0x291   : > { %3475 = vst.msk [vmem:[%s6729_s4 + $0x220] sm:$0xf] %vm3338_vm4, %v4110_v18  ;;  %3476 = vst.msk [vmem:[%s6729_s4 + $0x224] sm:$0xf] %vm3338_vm4, %v4111_v36  ;;  %v1684_v51 = vmul.f32 %v5182_v22, %v1422_v15  ;;  %v1685_v62 = vmul.f32 %v5182_v22, %v1423_v24  ;;  %v1686_v12 = vmul.f32 %v5182_v22, %v1424_v33  ;;  %v1436_v15 = vld [vmem:[#allocation2 + $0x4f0] sm:$0xff] }
 0x292   : > { %3477 = vst.msk [vmem:[%s6729_s4 + $0x228] sm:$0xf] %vm3338_vm4, %v4112_v47  ;;  %3478 = vst.msk [vmem:[%s6729_s4 + $0x22c] sm:$0xf] %vm3338_vm4, %v4113_v56  ;;  %v1687_v34 = vmul.f32 %v5182_v22, %v1425_v26  ;;  %v4116_v40 = vpack.c.bf16 %v2200_v38, %v2200_v38  ;;  %v4117_v45 = vpack.c.bf16 %v2201_v0, %v2201_v0 }
 0x293   : > { %3479 = vst.msk [vmem:[%s6729_s4 + $0x230] sm:$0xf] %vm3338_vm4, %v4114_v6  ;;  %3480 = vst.msk [vmem:[%s6729_s4 + $0x234] sm:$0xf] %vm3338_vm4, %v4115_v29  ;;  %v1688_v7 = vmul.f32 %v5182_v22, %v1426_v19  ;;  %v1689_v10 = vmul.f32 %v5182_v22, %v1427_v30  ;;  %v1946_v42 = vadd.f32 %v5191_v37, %v1684_v51  ;;  %v1438_v51 = vld [vmem:[#allocation2 + $0x500] sm:$0xff] }
 0x294   : > { %v1947_v3 = vadd.f32 %v5191_v37, %v1685_v62  ;;  %v1948_v28 = vadd.f32 %v5191_v37, %v1686_v12  ;;  %v1949_v49 = vadd.f32 %v5191_v37, %v1687_v34  ;;  %3481 = vst.msk [vmem:[%s6729_s4 + $0x238] sm:$0xf] %vm3338_vm4, %v4116_v40  ;;  %3482 = vst.msk [vmem:[%s6729_s4 + $0x23c] sm:$0xf] %vm3338_vm4, %v4117_v45  ;;  %v1440_v40 = vld [vmem:[#allocation2 + $0x510] sm:$0xff]  ;;  %v1441_v45 = vld [vmem:[#allocation2 + $0x518] sm:$0xff] }
 0x295   : > { %v1950_v44 = vadd.f32 %v5191_v37, %v1688_v7  ;;  %v1951_v16 = vadd.f32 %v5191_v37, %v1689_v10  ;;  %v1690_v13 = vmul.f32 %v5182_v22, %v1428_v5  ;;  %v1691_v2 = vmul.f32 %v5182_v22, %v1429_v17  ;;  %v1439_v17 = vld [vmem:[#allocation2 + $0x508] sm:$0xff] }
 0x296   : > { %v2202_v46 = vmax.f32 %v1946_v42, 0.0  ;;  %v2203_v27 = vmax.f32 %v1947_v3, 0.0  ;;  %v2204_v55 = vmax.f32 %v1948_v28, 0.0  ;;  %v2205_v32 = vmax.f32 %v1949_v49, 0.0  ;;  %v1442_v28 = vld [vmem:[#allocation2 + $0x520] sm:$0xff]  ;;  %v1443_v49 = vld [vmem:[#allocation2 + $0x528] sm:$0xff] }
 0x297   : > { %v2206_v48 = vmax.f32 %v1950_v44, 0.0  ;;  %v2207_v23 = vmax.f32 %v1951_v16, 0.0  ;;  %v1952_v59 = vadd.f32 %v5191_v37, %v1690_v13  ;;  %v1953_v50 = vadd.f32 %v5191_v37, %v1691_v2 }
 0x298   : > { %v4118_v60 = vpack.c.bf16 %v2202_v46, %v2202_v46  ;;  %v4119_v8 = vpack.c.bf16 %v2203_v27, %v2203_v27  ;;  %v4120_v54 = vpack.c.bf16 %v2204_v55, %v2204_v55  ;;  %v4121_v53 = vpack.c.bf16 %v2205_v32, %v2205_v32 }
 0x299   : > { %v4122_v58 = vpack.c.bf16 %v2206_v48, %v2206_v48  ;;  %v4123_v9 = vpack.c.bf16 %v2207_v23, %v2207_v23  ;;  %v2208_v20 = vmax.f32 %v1952_v59, 0.0  ;;  %v2209_v21 = vmax.f32 %v1953_v50, 0.0  ;;  %v1445_v48 = vld [vmem:[#allocation2 + $0x538] sm:$0xff] }
 0x29a   : > { %3483 = vst.msk [vmem:[%s6729_s4 + $0x240] sm:$0xf] %vm3338_vm4, %v4118_v60  ;;  %3484 = vst.msk [vmem:[%s6729_s4 + $0x244] sm:$0xf] %vm3338_vm4, %v4119_v8  ;;  %v1692_v57 = vmul.f32 %v5182_v22, %v1430_v4  ;;  %v1693_v25 = vmul.f32 %v5182_v22, %v1431_v39  ;;  %v1694_v31 = vmul.f32 %v5182_v22, %v1432_v1  ;;  %v1444_v4 = vld [vmem:[#allocation2 + $0x530] sm:$0xff] }
 0x29b   : > { %3485 = vst.msk [vmem:[%s6729_s4 + $0x248] sm:$0xf] %vm3338_vm4, %v4120_v54  ;;  %3486 = vst.msk [vmem:[%s6729_s4 + $0x24c] sm:$0xf] %vm3338_vm4, %v4121_v53  ;;  %v1695_v14 = vmul.f32 %v5182_v22, %v1433_v52  ;;  %v4124_v63 = vpack.c.bf16 %v2208_v20, %v2208_v20  ;;  %v4125_v41 = vpack.c.bf16 %v2209_v21, %v2209_v21 }
 0x29c   : > { %3487 = vst.msk [vmem:[%s6729_s4 + $0x250] sm:$0xf] %vm3338_vm4, %v4122_v58  ;;  %3488 = vst.msk [vmem:[%s6729_s4 + $0x254] sm:$0xf] %vm3338_vm4, %v4123_v9  ;;  %v1696_v35 = vmul.f32 %v5182_v22, %v1434_v43  ;;  %v1697_v24 = vmul.f32 %v5182_v22, %v1435_v61  ;;  %v1954_v33 = vadd.f32 %v5191_v37, %v1692_v57  ;;  %v1446_v57 = vld [vmem:[#allocation2 + $0x540] sm:$0xff] }
 0x29d   : > { %v1955_v26 = vadd.f32 %v5191_v37, %v1693_v25  ;;  %v1956_v18 = vadd.f32 %v5191_v37, %v1694_v31  ;;  %v1957_v36 = vadd.f32 %v5191_v37, %v1695_v14  ;;  %3489 = vst.msk [vmem:[%s6729_s4 + $0x258] sm:$0xf] %vm3338_vm4, %v4124_v63  ;;  %3490 = vst.msk [vmem:[%s6729_s4 + $0x25c] sm:$0xf] %vm3338_vm4, %v4125_v41  ;;  %v1448_v63 = vld [vmem:[#allocation2 + $0x550] sm:$0xff]  ;;  %v1449_v41 = vld [vmem:[#allocation2 + $0x558] sm:$0xff] }
 0x29e   : > { %v1958_v47 = vadd.f32 %v5191_v37, %v1696_v35  ;;  %v1959_v56 = vadd.f32 %v5191_v37, %v1697_v24  ;;  %v1698_v19 = vmul.f32 %v5182_v22, %v1436_v15  ;;  %v1699_v30 = vmul.f32 %v5182_v22, %v1437_v11  ;;  %v1447_v11 = vld [vmem:[#allocation2 + $0x548] sm:$0xff] }
 0x29f   : > { %v2210_v6 = vmax.f32 %v1954_v33, 0.0  ;;  %v2211_v29 = vmax.f32 %v1955_v26, 0.0  ;;  %v2212_v38 = vmax.f32 %v1956_v18, 0.0  ;;  %v2213_v0 = vmax.f32 %v1957_v36, 0.0  ;;  %v1450_v18 = vld [vmem:[#allocation2 + $0x560] sm:$0xff]  ;;  %v1451_v36 = vld [vmem:[#allocation2 + $0x568] sm:$0xff] }
 0x2a0   : > { %v2214_v62 = vmax.f32 %v1958_v47, 0.0  ;;  %v2215_v12 = vmax.f32 %v1959_v56, 0.0  ;;  %v1960_v34 = vadd.f32 %v5191_v37, %v1698_v19  ;;  %v1961_v5 = vadd.f32 %v5191_v37, %v1699_v30 }
 0x2a1   : > { %v4126_v7 = vpack.c.bf16 %v2210_v6, %v2210_v6  ;;  %v4127_v10 = vpack.c.bf16 %v2211_v29, %v2211_v29  ;;  %v4128_v42 = vpack.c.bf16 %v2212_v38, %v2212_v38  ;;  %v4129_v3 = vpack.c.bf16 %v2213_v0, %v2213_v0 }
 0x2a2   : > { %v4130_v44 = vpack.c.bf16 %v2214_v62, %v2214_v62  ;;  %v4131_v16 = vpack.c.bf16 %v2215_v12, %v2215_v12  ;;  %v2216_v13 = vmax.f32 %v1960_v34, 0.0  ;;  %v2217_v2 = vmax.f32 %v1961_v5, 0.0  ;;  %v1453_v62 = vld [vmem:[#allocation2 + $0x578] sm:$0xff] }
 0x2a3   : > { %3491 = vst.msk [vmem:[%s6729_s4 + $0x260] sm:$0xf] %vm3338_vm4, %v4126_v7  ;;  %3492 = vst.msk [vmem:[%s6729_s4 + $0x264] sm:$0xf] %vm3338_vm4, %v4127_v10  ;;  %v1700_v46 = vmul.f32 %v5182_v22, %v1438_v51  ;;  %v1701_v27 = vmul.f32 %v5182_v22, %v1439_v17  ;;  %v1702_v55 = vmul.f32 %v5182_v22, %v1440_v40  ;;  %v1452_v51 = vld [vmem:[#allocation2 + $0x570] sm:$0xff] }
 0x2a4   : > { %3493 = vst.msk [vmem:[%s6729_s4 + $0x268] sm:$0xf] %vm3338_vm4, %v4128_v42  ;;  %3494 = vst.msk [vmem:[%s6729_s4 + $0x26c] sm:$0xf] %vm3338_vm4, %v4129_v3  ;;  %v1703_v32 = vmul.f32 %v5182_v22, %v1441_v45  ;;  %v4132_v23 = vpack.c.bf16 %v2216_v13, %v2216_v13  ;;  %v4133_v59 = vpack.c.bf16 %v2217_v2, %v2217_v2 }
 0x2a5   : > { %3495 = vst.msk [vmem:[%s6729_s4 + $0x270] sm:$0xf] %vm3338_vm4, %v4130_v44  ;;  %3496 = vst.msk [vmem:[%s6729_s4 + $0x274] sm:$0xf] %vm3338_vm4, %v4131_v16  ;;  %v1704_v50 = vmul.f32 %v5182_v22, %v1442_v28  ;;  %v1705_v39 = vmul.f32 %v5182_v22, %v1443_v49  ;;  %v1962_v1 = vadd.f32 %v5191_v37, %v1700_v46  ;;  %v1454_v46 = vld [vmem:[#allocation2 + $0x580] sm:$0xff] }
 0x2a6   : > { %v1963_v52 = vadd.f32 %v5191_v37, %v1701_v27  ;;  %v1964_v60 = vadd.f32 %v5191_v37, %v1702_v55  ;;  %v1965_v8 = vadd.f32 %v5191_v37, %v1703_v32  ;;  %3497 = vst.msk [vmem:[%s6729_s4 + $0x278] sm:$0xf] %vm3338_vm4, %v4132_v23  ;;  %3498 = vst.msk [vmem:[%s6729_s4 + $0x27c] sm:$0xf] %vm3338_vm4, %v4133_v59  ;;  %v1456_v23 = vld [vmem:[#allocation2 + $0x590] sm:$0xff]  ;;  %v1457_v59 = vld [vmem:[#allocation2 + $0x598] sm:$0xff] }
 0x2a7   : > { %v1966_v54 = vadd.f32 %v5191_v37, %v1704_v50  ;;  %v1967_v53 = vadd.f32 %v5191_v37, %v1705_v39  ;;  %v1706_v43 = vmul.f32 %v5182_v22, %v1444_v4  ;;  %v1707_v61 = vmul.f32 %v5182_v22, %v1445_v48  ;;  %v1455_v48 = vld [vmem:[#allocation2 + $0x588] sm:$0xff] }
 0x2a8   : > { %v2218_v58 = vmax.f32 %v1962_v1, 0.0  ;;  %v2219_v9 = vmax.f32 %v1963_v52, 0.0  ;;  %v2220_v20 = vmax.f32 %v1964_v60, 0.0  ;;  %v2221_v21 = vmax.f32 %v1965_v8, 0.0  ;;  %v1458_v60 = vld [vmem:[#allocation2 + $0x5a0] sm:$0xff]  ;;  %v1459_v8 = vld [vmem:[#allocation2 + $0x5a8] sm:$0xff] }
 0x2a9   : > { %v2222_v25 = vmax.f32 %v1966_v54, 0.0  ;;  %v2223_v31 = vmax.f32 %v1967_v53, 0.0  ;;  %v1968_v14 = vadd.f32 %v5191_v37, %v1706_v43  ;;  %v1969_v15 = vadd.f32 %v5191_v37, %v1707_v61 }
 0x2aa   : > { %v4134_v35 = vpack.c.bf16 %v2218_v58, %v2218_v58  ;;  %v4135_v24 = vpack.c.bf16 %v2219_v9, %v2219_v9  ;;  %v4136_v33 = vpack.c.bf16 %v2220_v20, %v2220_v20  ;;  %v4137_v26 = vpack.c.bf16 %v2221_v21, %v2221_v21 }
 0x2ab   : > { %v4138_v47 = vpack.c.bf16 %v2222_v25, %v2222_v25  ;;  %v4139_v56 = vpack.c.bf16 %v2223_v31, %v2223_v31  ;;  %v2224_v19 = vmax.f32 %v1968_v14, 0.0  ;;  %v2225_v30 = vmax.f32 %v1969_v15, 0.0  ;;  %v1461_v25 = vld [vmem:[#allocation2 + $0x5b8] sm:$0xff] }
 0x2ac   : > { %3499 = vst.msk [vmem:[%s6729_s4 + $0x280] sm:$0xf] %vm3338_vm4, %v4134_v35  ;;  %3500 = vst.msk [vmem:[%s6729_s4 + $0x284] sm:$0xf] %vm3338_vm4, %v4135_v24  ;;  %v1708_v6 = vmul.f32 %v5182_v22, %v1446_v57  ;;  %v1709_v29 = vmul.f32 %v5182_v22, %v1447_v11  ;;  %v1710_v38 = vmul.f32 %v5182_v22, %v1448_v63  ;;  %v1460_v57 = vld [vmem:[#allocation2 + $0x5b0] sm:$0xff] }
 0x2ad   : > { %3501 = vst.msk [vmem:[%s6729_s4 + $0x288] sm:$0xf] %vm3338_vm4, %v4136_v33  ;;  %3502 = vst.msk [vmem:[%s6729_s4 + $0x28c] sm:$0xf] %vm3338_vm4, %v4137_v26  ;;  %v1711_v0 = vmul.f32 %v5182_v22, %v1449_v41  ;;  %v4140_v12 = vpack.c.bf16 %v2224_v19, %v2224_v19  ;;  %v4141_v34 = vpack.c.bf16 %v2225_v30, %v2225_v30 }
 0x2ae   : > { %3503 = vst.msk [vmem:[%s6729_s4 + $0x290] sm:$0xf] %vm3338_vm4, %v4138_v47  ;;  %3504 = vst.msk [vmem:[%s6729_s4 + $0x294] sm:$0xf] %vm3338_vm4, %v4139_v56  ;;  %v1712_v5 = vmul.f32 %v5182_v22, %v1450_v18  ;;  %v1713_v17 = vmul.f32 %v5182_v22, %v1451_v36  ;;  %v1970_v40 = vadd.f32 %v5191_v37, %v1708_v6  ;;  %v1462_v6 = vld [vmem:[#allocation2 + $0x5c0] sm:$0xff] }
 0x2af   : > { %v1971_v45 = vadd.f32 %v5191_v37, %v1709_v29  ;;  %v1972_v7 = vadd.f32 %v5191_v37, %v1710_v38  ;;  %v1973_v10 = vadd.f32 %v5191_v37, %v1711_v0  ;;  %3505 = vst.msk [vmem:[%s6729_s4 + $0x298] sm:$0xf] %vm3338_vm4, %v4140_v12  ;;  %3506 = vst.msk [vmem:[%s6729_s4 + $0x29c] sm:$0xf] %vm3338_vm4, %v4141_v34  ;;  %v1464_v12 = vld [vmem:[#allocation2 + $0x5d0] sm:$0xff]  ;;  %v1465_v34 = vld [vmem:[#allocation2 + $0x5d8] sm:$0xff] }
 0x2b0   : > { %v1974_v42 = vadd.f32 %v5191_v37, %v1712_v5  ;;  %v1975_v3 = vadd.f32 %v5191_v37, %v1713_v17  ;;  %v1714_v28 = vmul.f32 %v5182_v22, %v1452_v51  ;;  %v1715_v49 = vmul.f32 %v5182_v22, %v1453_v62  ;;  %v1463_v62 = vld [vmem:[#allocation2 + $0x5c8] sm:$0xff] }
 0x2b1   : > { %v2226_v44 = vmax.f32 %v1970_v40, 0.0  ;;  %v2227_v16 = vmax.f32 %v1971_v45, 0.0  ;;  %v2228_v13 = vmax.f32 %v1972_v7, 0.0  ;;  %v2229_v2 = vmax.f32 %v1973_v10, 0.0  ;;  %v1466_v7 = vld [vmem:[#allocation2 + $0x5e0] sm:$0xff]  ;;  %v1467_v10 = vld [vmem:[#allocation2 + $0x5e8] sm:$0xff] }
 0x2b2   : > { %v2230_v27 = vmax.f32 %v1974_v42, 0.0  ;;  %v2231_v55 = vmax.f32 %v1975_v3, 0.0  ;;  %v1976_v32 = vadd.f32 %v5191_v37, %v1714_v28  ;;  %v1977_v4 = vadd.f32 %v5191_v37, %v1715_v49 }
 0x2b3   : > { %v4142_v50 = vpack.c.bf16 %v2226_v44, %v2226_v44  ;;  %v4143_v39 = vpack.c.bf16 %v2227_v16, %v2227_v16  ;;  %v4144_v1 = vpack.c.bf16 %v2228_v13, %v2228_v13  ;;  %v4145_v52 = vpack.c.bf16 %v2229_v2, %v2229_v2 }
 0x2b4   : > { %v4146_v54 = vpack.c.bf16 %v2230_v27, %v2230_v27  ;;  %v4147_v53 = vpack.c.bf16 %v2231_v55, %v2231_v55  ;;  %v2232_v43 = vmax.f32 %v1976_v32, 0.0  ;;  %v2233_v61 = vmax.f32 %v1977_v4, 0.0  ;;  %v1469_v27 = vld [vmem:[#allocation2 + $0x5f8] sm:$0xff] }
 0x2b5   : > { %3507 = vst.msk [vmem:[%s6729_s4 + $0x2a0] sm:$0xf] %vm3338_vm4, %v4142_v50  ;;  %3508 = vst.msk [vmem:[%s6729_s4 + $0x2a4] sm:$0xf] %vm3338_vm4, %v4143_v39  ;;  %v1716_v58 = vmul.f32 %v5182_v22, %v1454_v46  ;;  %v1717_v9 = vmul.f32 %v5182_v22, %v1455_v48  ;;  %v1718_v20 = vmul.f32 %v5182_v22, %v1456_v23  ;;  %v1468_v46 = vld [vmem:[#allocation2 + $0x5f0] sm:$0xff] }
 0x2b6   : > { %3509 = vst.msk [vmem:[%s6729_s4 + $0x2a8] sm:$0xf] %vm3338_vm4, %v4144_v1  ;;  %3510 = vst.msk [vmem:[%s6729_s4 + $0x2ac] sm:$0xf] %vm3338_vm4, %v4145_v52  ;;  %v1719_v21 = vmul.f32 %v5182_v22, %v1457_v59  ;;  %v4148_v31 = vpack.c.bf16 %v2232_v43, %v2232_v43  ;;  %v4149_v14 = vpack.c.bf16 %v2233_v61, %v2233_v61 }
 0x2b7   : > { %3511 = vst.msk [vmem:[%s6729_s4 + $0x2b0] sm:$0xf] %vm3338_vm4, %v4146_v54  ;;  %3512 = vst.msk [vmem:[%s6729_s4 + $0x2b4] sm:$0xf] %vm3338_vm4, %v4147_v53  ;;  %v1720_v15 = vmul.f32 %v5182_v22, %v1458_v60  ;;  %v1721_v11 = vmul.f32 %v5182_v22, %v1459_v8  ;;  %v1978_v63 = vadd.f32 %v5191_v37, %v1716_v58  ;;  %v1470_v58 = vld [vmem:[#allocation2 + $0x600] sm:$0xff] }
 0x2b8   : > { %v1979_v41 = vadd.f32 %v5191_v37, %v1717_v9  ;;  %v1980_v35 = vadd.f32 %v5191_v37, %v1718_v20  ;;  %v1981_v24 = vadd.f32 %v5191_v37, %v1719_v21  ;;  %3513 = vst.msk [vmem:[%s6729_s4 + $0x2b8] sm:$0xf] %vm3338_vm4, %v4148_v31  ;;  %3514 = vst.msk [vmem:[%s6729_s4 + $0x2bc] sm:$0xf] %vm3338_vm4, %v4149_v14  ;;  %v1472_v31 = vld [vmem:[#allocation2 + $0x610] sm:$0xff]  ;;  %v1473_v14 = vld [vmem:[#allocation2 + $0x618] sm:$0xff] }
 0x2b9   : > { %v1982_v33 = vadd.f32 %v5191_v37, %v1720_v15  ;;  %v1983_v26 = vadd.f32 %v5191_v37, %v1721_v11  ;;  %v1722_v18 = vmul.f32 %v5182_v22, %v1460_v57  ;;  %v1723_v36 = vmul.f32 %v5182_v22, %v1461_v25  ;;  %v1471_v25 = vld [vmem:[#allocation2 + $0x608] sm:$0xff] }
 0x2ba   : > { %v2234_v47 = vmax.f32 %v1978_v63, 0.0  ;;  %v2235_v56 = vmax.f32 %v1979_v41, 0.0  ;;  %v2236_v19 = vmax.f32 %v1980_v35, 0.0  ;;  %v2237_v30 = vmax.f32 %v1981_v24, 0.0  ;;  %v1474_v35 = vld [vmem:[#allocation2 + $0x620] sm:$0xff]  ;;  %v1475_v24 = vld [vmem:[#allocation2 + $0x628] sm:$0xff] }
 0x2bb   : > { %v2238_v29 = vmax.f32 %v1982_v33, 0.0  ;;  %v2239_v38 = vmax.f32 %v1983_v26, 0.0  ;;  %v1984_v0 = vadd.f32 %v5191_v37, %v1722_v18  ;;  %v1985_v51 = vadd.f32 %v5191_v37, %v1723_v36 }
 0x2bc   : > { %v4150_v5 = vpack.c.bf16 %v2234_v47, %v2234_v47  ;;  %v4151_v17 = vpack.c.bf16 %v2235_v56, %v2235_v56  ;;  %v4152_v40 = vpack.c.bf16 %v2236_v19, %v2236_v19  ;;  %v4153_v45 = vpack.c.bf16 %v2237_v30, %v2237_v30 }
 0x2bd   : > { %v4154_v42 = vpack.c.bf16 %v2238_v29, %v2238_v29  ;;  %v4155_v3 = vpack.c.bf16 %v2239_v38, %v2239_v38  ;;  %v2240_v28 = vmax.f32 %v1984_v0, 0.0  ;;  %v2241_v49 = vmax.f32 %v1985_v51, 0.0  ;;  %v1477_v29 = vld [vmem:[#allocation2 + $0x638] sm:$0xff] }
 0x2be   : > { %3515 = vst.msk [vmem:[%s6729_s4 + $0x2c0] sm:$0xf] %vm3338_vm4, %v4150_v5  ;;  %3516 = vst.msk [vmem:[%s6729_s4 + $0x2c4] sm:$0xf] %vm3338_vm4, %v4151_v17  ;;  %v1724_v44 = vmul.f32 %v5182_v22, %v1462_v6  ;;  %v1725_v16 = vmul.f32 %v5182_v22, %v1463_v62  ;;  %v1726_v13 = vmul.f32 %v5182_v22, %v1464_v12  ;;  %v1476_v6 = vld [vmem:[#allocation2 + $0x630] sm:$0xff] }
 0x2bf   : > { %3517 = vst.msk [vmem:[%s6729_s4 + $0x2c8] sm:$0xf] %vm3338_vm4, %v4152_v40  ;;  %3518 = vst.msk [vmem:[%s6729_s4 + $0x2cc] sm:$0xf] %vm3338_vm4, %v4153_v45  ;;  %v1727_v2 = vmul.f32 %v5182_v22, %v1465_v34  ;;  %v4156_v55 = vpack.c.bf16 %v2240_v28, %v2240_v28  ;;  %v4157_v32 = vpack.c.bf16 %v2241_v49, %v2241_v49 }
 0x2c0   : > { %3519 = vst.msk [vmem:[%s6729_s4 + $0x2d0] sm:$0xf] %vm3338_vm4, %v4154_v42  ;;  %3520 = vst.msk [vmem:[%s6729_s4 + $0x2d4] sm:$0xf] %vm3338_vm4, %v4155_v3  ;;  %v1728_v4 = vmul.f32 %v5182_v22, %v1466_v7  ;;  %v1729_v48 = vmul.f32 %v5182_v22, %v1467_v10  ;;  %v1986_v23 = vadd.f32 %v5191_v37, %v1724_v44  ;;  %v1478_v44 = vld [vmem:[#allocation2 + $0x640] sm:$0xff] }
 0x2c1   : > { %v1987_v59 = vadd.f32 %v5191_v37, %v1725_v16  ;;  %v1988_v50 = vadd.f32 %v5191_v37, %v1726_v13  ;;  %v1989_v39 = vadd.f32 %v5191_v37, %v1727_v2  ;;  %3521 = vst.msk [vmem:[%s6729_s4 + $0x2d8] sm:$0xf] %vm3338_vm4, %v4156_v55  ;;  %3522 = vst.msk [vmem:[%s6729_s4 + $0x2dc] sm:$0xf] %vm3338_vm4, %v4157_v32  ;;  %v1480_v55 = vld [vmem:[#allocation2 + $0x650] sm:$0xff]  ;;  %v1481_v32 = vld [vmem:[#allocation2 + $0x658] sm:$0xff] }
 0x2c2   : > { %v1990_v1 = vadd.f32 %v5191_v37, %v1728_v4  ;;  %v1991_v52 = vadd.f32 %v5191_v37, %v1729_v48  ;;  %v1730_v60 = vmul.f32 %v5182_v22, %v1468_v46  ;;  %v1731_v8 = vmul.f32 %v5182_v22, %v1469_v27  ;;  %v1479_v27 = vld [vmem:[#allocation2 + $0x648] sm:$0xff] }
 0x2c3   : > { %v2242_v54 = vmax.f32 %v1986_v23, 0.0  ;;  %v2243_v53 = vmax.f32 %v1987_v59, 0.0  ;;  %v2244_v43 = vmax.f32 %v1988_v50, 0.0  ;;  %v2245_v61 = vmax.f32 %v1989_v39, 0.0  ;;  %v1482_v50 = vld [vmem:[#allocation2 + $0x660] sm:$0xff]  ;;  %v1483_v39 = vld [vmem:[#allocation2 + $0x668] sm:$0xff] }
 0x2c4   : > { %v2246_v9 = vmax.f32 %v1990_v1, 0.0  ;;  %v2247_v20 = vmax.f32 %v1991_v52, 0.0  ;;  %v1992_v21 = vadd.f32 %v5191_v37, %v1730_v60  ;;  %v1993_v57 = vadd.f32 %v5191_v37, %v1731_v8 }
 0x2c5   : > { %v4158_v15 = vpack.c.bf16 %v2242_v54, %v2242_v54  ;;  %v4159_v11 = vpack.c.bf16 %v2243_v53, %v2243_v53  ;;  %v4160_v63 = vpack.c.bf16 %v2244_v43, %v2244_v43  ;;  %v4161_v41 = vpack.c.bf16 %v2245_v61, %v2245_v61 }
 0x2c6   : > { %v4162_v33 = vpack.c.bf16 %v2246_v9, %v2246_v9  ;;  %v4163_v26 = vpack.c.bf16 %v2247_v20, %v2247_v20  ;;  %v2248_v18 = vmax.f32 %v1992_v21, 0.0  ;;  %v2249_v36 = vmax.f32 %v1993_v57, 0.0  ;;  %v1485_v9 = vld [vmem:[#allocation2 + $0x678] sm:$0xff] }
 0x2c7   : > { %3523 = vst.msk [vmem:[%s6729_s4 + $0x2e0] sm:$0xf] %vm3338_vm4, %v4158_v15  ;;  %3524 = vst.msk [vmem:[%s6729_s4 + $0x2e4] sm:$0xf] %vm3338_vm4, %v4159_v11  ;;  %v1732_v47 = vmul.f32 %v5182_v22, %v1470_v58  ;;  %v1733_v56 = vmul.f32 %v5182_v22, %v1471_v25  ;;  %v1734_v19 = vmul.f32 %v5182_v22, %v1472_v31  ;;  %v1484_v58 = vld [vmem:[#allocation2 + $0x670] sm:$0xff] }
 0x2c8   : > { %3525 = vst.msk [vmem:[%s6729_s4 + $0x2e8] sm:$0xf] %vm3338_vm4, %v4160_v63  ;;  %3526 = vst.msk [vmem:[%s6729_s4 + $0x2ec] sm:$0xf] %vm3338_vm4, %v4161_v41  ;;  %v1735_v30 = vmul.f32 %v5182_v22, %v1473_v14  ;;  %v4164_v38 = vpack.c.bf16 %v2248_v18, %v2248_v18  ;;  %v4165_v0 = vpack.c.bf16 %v2249_v36, %v2249_v36 }
 0x2c9   : > { %3527 = vst.msk [vmem:[%s6729_s4 + $0x2f0] sm:$0xf] %vm3338_vm4, %v4162_v33  ;;  %3528 = vst.msk [vmem:[%s6729_s4 + $0x2f4] sm:$0xf] %vm3338_vm4, %v4163_v26  ;;  %v1736_v51 = vmul.f32 %v5182_v22, %v1474_v35  ;;  %v1737_v62 = vmul.f32 %v5182_v22, %v1475_v24  ;;  %v1994_v12 = vadd.f32 %v5191_v37, %v1732_v47  ;;  %v1486_v47 = vld [vmem:[#allocation2 + $0x680] sm:$0xff] }
 0x2ca   : > { %v1995_v34 = vadd.f32 %v5191_v37, %v1733_v56  ;;  %v1996_v5 = vadd.f32 %v5191_v37, %v1734_v19  ;;  %v1997_v17 = vadd.f32 %v5191_v37, %v1735_v30  ;;  %3529 = vst.msk [vmem:[%s6729_s4 + $0x2f8] sm:$0xf] %vm3338_vm4, %v4164_v38  ;;  %3530 = vst.msk [vmem:[%s6729_s4 + $0x2fc] sm:$0xf] %vm3338_vm4, %v4165_v0  ;;  %v1488_v38 = vld [vmem:[#allocation2 + $0x690] sm:$0xff]  ;;  %v1489_v0 = vld [vmem:[#allocation2 + $0x698] sm:$0xff] }
 0x2cb   : > { %v1998_v40 = vadd.f32 %v5191_v37, %v1736_v51  ;;  %v1999_v45 = vadd.f32 %v5191_v37, %v1737_v62  ;;  %v1738_v7 = vmul.f32 %v5182_v22, %v1476_v6  ;;  %v1739_v10 = vmul.f32 %v5182_v22, %v1477_v29  ;;  %v1487_v29 = vld [vmem:[#allocation2 + $0x688] sm:$0xff] }
 0x2cc   : > { %v2250_v42 = vmax.f32 %v1994_v12, 0.0  ;;  %v2251_v3 = vmax.f32 %v1995_v34, 0.0  ;;  %v2252_v28 = vmax.f32 %v1996_v5, 0.0  ;;  %v2253_v49 = vmax.f32 %v1997_v17, 0.0  ;;  %v1490_v5 = vld [vmem:[#allocation2 + $0x6a0] sm:$0xff]  ;;  %v1491_v17 = vld [vmem:[#allocation2 + $0x6a8] sm:$0xff] }
 0x2cd   : > { %v2254_v16 = vmax.f32 %v1998_v40, 0.0  ;;  %v2255_v13 = vmax.f32 %v1999_v45, 0.0  ;;  %v2000_v2 = vadd.f32 %v5191_v37, %v1738_v7  ;;  %v2001_v46 = vadd.f32 %v5191_v37, %v1739_v10 }
 0x2ce   : > { %v4166_v4 = vpack.c.bf16 %v2250_v42, %v2250_v42  ;;  %v4167_v48 = vpack.c.bf16 %v2251_v3, %v2251_v3  ;;  %v4168_v23 = vpack.c.bf16 %v2252_v28, %v2252_v28  ;;  %v4169_v59 = vpack.c.bf16 %v2253_v49, %v2253_v49 }
 0x2cf   : > { %v4170_v1 = vpack.c.bf16 %v2254_v16, %v2254_v16  ;;  %v4171_v52 = vpack.c.bf16 %v2255_v13, %v2255_v13  ;;  %v2256_v60 = vmax.f32 %v2000_v2, 0.0  ;;  %v2257_v8 = vmax.f32 %v2001_v46, 0.0  ;;  %v1493_v16 = vld [vmem:[#allocation2 + $0x6b8] sm:$0xff] }
 0x2d0   : > { %3531 = vst.msk [vmem:[%s6729_s4 + $0x300] sm:$0xf] %vm3338_vm4, %v4166_v4  ;;  %3532 = vst.msk [vmem:[%s6729_s4 + $0x304] sm:$0xf] %vm3338_vm4, %v4167_v48  ;;  %v1740_v54 = vmul.f32 %v5182_v22, %v1478_v44  ;;  %v1741_v53 = vmul.f32 %v5182_v22, %v1479_v27  ;;  %v1742_v43 = vmul.f32 %v5182_v22, %v1480_v55  ;;  %v1492_v44 = vld [vmem:[#allocation2 + $0x6b0] sm:$0xff] }
 0x2d1   : > { %3533 = vst.msk [vmem:[%s6729_s4 + $0x308] sm:$0xf] %vm3338_vm4, %v4168_v23  ;;  %3534 = vst.msk [vmem:[%s6729_s4 + $0x30c] sm:$0xf] %vm3338_vm4, %v4169_v59  ;;  %v1743_v61 = vmul.f32 %v5182_v22, %v1481_v32  ;;  %v4172_v20 = vpack.c.bf16 %v2256_v60, %v2256_v60  ;;  %v4173_v21 = vpack.c.bf16 %v2257_v8, %v2257_v8 }
 0x2d2   : > { %3535 = vst.msk [vmem:[%s6729_s4 + $0x310] sm:$0xf] %vm3338_vm4, %v4170_v1  ;;  %3536 = vst.msk [vmem:[%s6729_s4 + $0x314] sm:$0xf] %vm3338_vm4, %v4171_v52  ;;  %v1744_v57 = vmul.f32 %v5182_v22, %v1482_v50  ;;  %v1745_v25 = vmul.f32 %v5182_v22, %v1483_v39  ;;  %v2002_v31 = vadd.f32 %v5191_v37, %v1740_v54  ;;  %v1494_v54 = vld [vmem:[#allocation2 + $0x6c0] sm:$0xff] }
 0x2d3   : > { %v2003_v14 = vadd.f32 %v5191_v37, %v1741_v53  ;;  %v2004_v15 = vadd.f32 %v5191_v37, %v1742_v43  ;;  %v2005_v11 = vadd.f32 %v5191_v37, %v1743_v61  ;;  %3537 = vst.msk [vmem:[%s6729_s4 + $0x318] sm:$0xf] %vm3338_vm4, %v4172_v20  ;;  %3538 = vst.msk [vmem:[%s6729_s4 + $0x31c] sm:$0xf] %vm3338_vm4, %v4173_v21  ;;  %v1496_v20 = vld [vmem:[#allocation2 + $0x6d0] sm:$0xff]  ;;  %v1497_v21 = vld [vmem:[#allocation2 + $0x6d8] sm:$0xff] }
 0x2d4   : > { %v2006_v63 = vadd.f32 %v5191_v37, %v1744_v57  ;;  %v2007_v41 = vadd.f32 %v5191_v37, %v1745_v25  ;;  %v1746_v35 = vmul.f32 %v5182_v22, %v1484_v58  ;;  %v1747_v24 = vmul.f32 %v5182_v22, %v1485_v9  ;;  %v1495_v9 = vld [vmem:[#allocation2 + $0x6c8] sm:$0xff] }
 0x2d5   : > { %v2258_v33 = vmax.f32 %v2002_v31, 0.0  ;;  %v2259_v26 = vmax.f32 %v2003_v14, 0.0  ;;  %v2260_v18 = vmax.f32 %v2004_v15, 0.0  ;;  %v2261_v36 = vmax.f32 %v2005_v11, 0.0  ;;  %v1498_v15 = vld [vmem:[#allocation2 + $0x6e0] sm:$0xff]  ;;  %v1499_v11 = vld [vmem:[#allocation2 + $0x6e8] sm:$0xff] }
 0x2d6   : > { %v2262_v56 = vmax.f32 %v2006_v63, 0.0  ;;  %v2263_v19 = vmax.f32 %v2007_v41, 0.0  ;;  %v2008_v30 = vadd.f32 %v5191_v37, %v1746_v35  ;;  %v2009_v6 = vadd.f32 %v5191_v37, %v1747_v24 }
 0x2d7   : > { %v4174_v51 = vpack.c.bf16 %v2258_v33, %v2258_v33  ;;  %v4175_v62 = vpack.c.bf16 %v2259_v26, %v2259_v26  ;;  %v4176_v12 = vpack.c.bf16 %v2260_v18, %v2260_v18  ;;  %v4177_v34 = vpack.c.bf16 %v2261_v36, %v2261_v36 }
 0x2d8   : > { %v4178_v40 = vpack.c.bf16 %v2262_v56, %v2262_v56  ;;  %v4179_v45 = vpack.c.bf16 %v2263_v19, %v2263_v19  ;;  %v2264_v7 = vmax.f32 %v2008_v30, 0.0  ;;  %v2265_v10 = vmax.f32 %v2009_v6, 0.0  ;;  %v1501_v56 = vld [vmem:[#allocation2 + $0x6f8] sm:$0xff] }
 0x2d9   : > { %3539 = vst.msk [vmem:[%s6729_s4 + $0x320] sm:$0xf] %vm3338_vm4, %v4174_v51  ;;  %3540 = vst.msk [vmem:[%s6729_s4 + $0x324] sm:$0xf] %vm3338_vm4, %v4175_v62  ;;  %v1748_v42 = vmul.f32 %v5182_v22, %v1486_v47  ;;  %v1749_v3 = vmul.f32 %v5182_v22, %v1487_v29  ;;  %v1750_v28 = vmul.f32 %v5182_v22, %v1488_v38  ;;  %v1500_v47 = vld [vmem:[#allocation2 + $0x6f0] sm:$0xff] }
 0x2da   : > { %3541 = vst.msk [vmem:[%s6729_s4 + $0x328] sm:$0xf] %vm3338_vm4, %v4176_v12  ;;  %3542 = vst.msk [vmem:[%s6729_s4 + $0x32c] sm:$0xf] %vm3338_vm4, %v4177_v34  ;;  %v1751_v49 = vmul.f32 %v5182_v22, %v1489_v0  ;;  %v4180_v13 = vpack.c.bf16 %v2264_v7, %v2264_v7  ;;  %v4181_v2 = vpack.c.bf16 %v2265_v10, %v2265_v10 }
 0x2db   : > { %3543 = vst.msk [vmem:[%s6729_s4 + $0x330] sm:$0xf] %vm3338_vm4, %v4178_v40  ;;  %3544 = vst.msk [vmem:[%s6729_s4 + $0x334] sm:$0xf] %vm3338_vm4, %v4179_v45  ;;  %v1752_v46 = vmul.f32 %v5182_v22, %v1490_v5  ;;  %v1753_v27 = vmul.f32 %v5182_v22, %v1491_v17  ;;  %v2010_v55 = vadd.f32 %v5191_v37, %v1748_v42  ;;  %v1502_v42 = vld [vmem:[#allocation2 + $0x700] sm:$0xff] }
 0x2dc   : > { %v2011_v32 = vadd.f32 %v5191_v37, %v1749_v3  ;;  %v2012_v4 = vadd.f32 %v5191_v37, %v1750_v28  ;;  %v2013_v48 = vadd.f32 %v5191_v37, %v1751_v49  ;;  %3545 = vst.msk [vmem:[%s6729_s4 + $0x338] sm:$0xf] %vm3338_vm4, %v4180_v13  ;;  %3546 = vst.msk [vmem:[%s6729_s4 + $0x33c] sm:$0xf] %vm3338_vm4, %v4181_v2  ;;  %v1504_v13 = vld [vmem:[#allocation2 + $0x710] sm:$0xff]  ;;  %v1505_v2 = vld [vmem:[#allocation2 + $0x718] sm:$0xff] }
 0x2dd   : > { %v2014_v23 = vadd.f32 %v5191_v37, %v1752_v46  ;;  %v2015_v59 = vadd.f32 %v5191_v37, %v1753_v27  ;;  %v1754_v50 = vmul.f32 %v5182_v22, %v1492_v44  ;;  %v1755_v39 = vmul.f32 %v5182_v22, %v1493_v16  ;;  %v1503_v16 = vld [vmem:[#allocation2 + $0x708] sm:$0xff] }
 0x2de   : > { %v2266_v1 = vmax.f32 %v2010_v55, 0.0  ;;  %v2267_v52 = vmax.f32 %v2011_v32, 0.0  ;;  %v2268_v60 = vmax.f32 %v2012_v4, 0.0  ;;  %v2269_v8 = vmax.f32 %v2013_v48, 0.0  ;;  %v1506_v4 = vld [vmem:[#allocation2 + $0x720] sm:$0xff]  ;;  %v1507_v48 = vld [vmem:[#allocation2 + $0x728] sm:$0xff] }
 0x2df   : > { %v2270_v53 = vmax.f32 %v2014_v23, 0.0  ;;  %v2271_v43 = vmax.f32 %v2015_v59, 0.0  ;;  %v2016_v61 = vadd.f32 %v5191_v37, %v1754_v50  ;;  %v2017_v58 = vadd.f32 %v5191_v37, %v1755_v39 }
 0x2e0   : > { %v4182_v57 = vpack.c.bf16 %v2266_v1, %v2266_v1  ;;  %v4183_v25 = vpack.c.bf16 %v2267_v52, %v2267_v52  ;;  %v4184_v31 = vpack.c.bf16 %v2268_v60, %v2268_v60  ;;  %v4185_v14 = vpack.c.bf16 %v2269_v8, %v2269_v8 }
 0x2e1   : > { %v4186_v63 = vpack.c.bf16 %v2270_v53, %v2270_v53  ;;  %v4187_v41 = vpack.c.bf16 %v2271_v43, %v2271_v43  ;;  %v2272_v35 = vmax.f32 %v2016_v61, 0.0  ;;  %v2273_v24 = vmax.f32 %v2017_v58, 0.0  ;;  %v1509_v53 = vld [vmem:[#allocation2 + $0x738] sm:$0xff] }
 0x2e2   : > { %3547 = vst.msk [vmem:[%s6729_s4 + $0x340] sm:$0xf] %vm3338_vm4, %v4182_v57  ;;  %3548 = vst.msk [vmem:[%s6729_s4 + $0x344] sm:$0xf] %vm3338_vm4, %v4183_v25  ;;  %v1756_v33 = vmul.f32 %v5182_v22, %v1494_v54  ;;  %v1757_v26 = vmul.f32 %v5182_v22, %v1495_v9  ;;  %v1758_v18 = vmul.f32 %v5182_v22, %v1496_v20  ;;  %v1508_v54 = vld [vmem:[#allocation2 + $0x730] sm:$0xff] }
 0x2e3   : > { %3549 = vst.msk [vmem:[%s6729_s4 + $0x348] sm:$0xf] %vm3338_vm4, %v4184_v31  ;;  %3550 = vst.msk [vmem:[%s6729_s4 + $0x34c] sm:$0xf] %vm3338_vm4, %v4185_v14  ;;  %v1759_v36 = vmul.f32 %v5182_v22, %v1497_v21  ;;  %v4188_v19 = vpack.c.bf16 %v2272_v35, %v2272_v35  ;;  %v4189_v30 = vpack.c.bf16 %v2273_v24, %v2273_v24 }
 0x2e4   : > { %3551 = vst.msk [vmem:[%s6729_s4 + $0x350] sm:$0xf] %vm3338_vm4, %v4186_v63  ;;  %3552 = vst.msk [vmem:[%s6729_s4 + $0x354] sm:$0xf] %vm3338_vm4, %v4187_v41  ;;  %v1760_v6 = vmul.f32 %v5182_v22, %v1498_v15  ;;  %v1761_v29 = vmul.f32 %v5182_v22, %v1499_v11  ;;  %v2018_v38 = vadd.f32 %v5191_v37, %v1756_v33  ;;  %v1510_v33 = vld [vmem:[#allocation2 + $0x740] sm:$0xff] }
 0x2e5   : > { %v2019_v0 = vadd.f32 %v5191_v37, %v1757_v26  ;;  %v2020_v51 = vadd.f32 %v5191_v37, %v1758_v18  ;;  %v2021_v62 = vadd.f32 %v5191_v37, %v1759_v36  ;;  %3553 = vst.msk [vmem:[%s6729_s4 + $0x358] sm:$0xf] %vm3338_vm4, %v4188_v19  ;;  %3554 = vst.msk [vmem:[%s6729_s4 + $0x35c] sm:$0xf] %vm3338_vm4, %v4189_v30  ;;  %v1512_v19 = vld [vmem:[#allocation2 + $0x750] sm:$0xff]  ;;  %v1513_v30 = vld [vmem:[#allocation2 + $0x758] sm:$0xff] }
 0x2e6   : > { %v2022_v12 = vadd.f32 %v5191_v37, %v1760_v6  ;;  %v2023_v34 = vadd.f32 %v5191_v37, %v1761_v29  ;;  %v1762_v5 = vmul.f32 %v5182_v22, %v1500_v47  ;;  %v1763_v17 = vmul.f32 %v5182_v22, %v1501_v56  ;;  %v1511_v56 = vld [vmem:[#allocation2 + $0x748] sm:$0xff] }
 0x2e7   : > { %v2274_v40 = vmax.f32 %v2018_v38, 0.0  ;;  %v2275_v45 = vmax.f32 %v2019_v0, 0.0  ;;  %v2276_v7 = vmax.f32 %v2020_v51, 0.0  ;;  %v2277_v10 = vmax.f32 %v2021_v62, 0.0  ;;  %v1514_v51 = vld [vmem:[#allocation2 + $0x760] sm:$0xff]  ;;  %v1515_v62 = vld [vmem:[#allocation2 + $0x768] sm:$0xff] }
 0x2e8   : > { %v2278_v3 = vmax.f32 %v2022_v12, 0.0  ;;  %v2279_v28 = vmax.f32 %v2023_v34, 0.0  ;;  %v2024_v49 = vadd.f32 %v5191_v37, %v1762_v5  ;;  %v2025_v44 = vadd.f32 %v5191_v37, %v1763_v17 }
 0x2e9   : > { %v4190_v46 = vpack.c.bf16 %v2274_v40, %v2274_v40  ;;  %v4191_v27 = vpack.c.bf16 %v2275_v45, %v2275_v45  ;;  %v4192_v55 = vpack.c.bf16 %v2276_v7, %v2276_v7  ;;  %v4193_v32 = vpack.c.bf16 %v2277_v10, %v2277_v10 }
 0x2ea   : > { %v4194_v23 = vpack.c.bf16 %v2278_v3, %v2278_v3  ;;  %v4195_v59 = vpack.c.bf16 %v2279_v28, %v2279_v28  ;;  %v2280_v50 = vmax.f32 %v2024_v49, 0.0  ;;  %v2281_v39 = vmax.f32 %v2025_v44, 0.0  ;;  %v1517_v3 = vld [vmem:[#allocation2 + $0x778] sm:$0xff] }
 0x2eb   : > { %3555 = vst.msk [vmem:[%s6729_s4 + $0x360] sm:$0xf] %vm3338_vm4, %v4190_v46  ;;  %3556 = vst.msk [vmem:[%s6729_s4 + $0x364] sm:$0xf] %vm3338_vm4, %v4191_v27  ;;  %v1764_v1 = vmul.f32 %v5182_v22, %v1502_v42  ;;  %v1765_v52 = vmul.f32 %v5182_v22, %v1503_v16  ;;  %v1766_v60 = vmul.f32 %v5182_v22, %v1504_v13  ;;  %v1516_v42 = vld [vmem:[#allocation2 + $0x770] sm:$0xff] }
 0x2ec   : > { %3557 = vst.msk [vmem:[%s6729_s4 + $0x368] sm:$0xf] %vm3338_vm4, %v4192_v55  ;;  %3558 = vst.msk [vmem:[%s6729_s4 + $0x36c] sm:$0xf] %vm3338_vm4, %v4193_v32  ;;  %v1767_v8 = vmul.f32 %v5182_v22, %v1505_v2  ;;  %v4196_v43 = vpack.c.bf16 %v2280_v50, %v2280_v50  ;;  %v4197_v61 = vpack.c.bf16 %v2281_v39, %v2281_v39 }
 0x2ed   : > { %3559 = vst.msk [vmem:[%s6729_s4 + $0x370] sm:$0xf] %vm3338_vm4, %v4194_v23  ;;  %3560 = vst.msk [vmem:[%s6729_s4 + $0x374] sm:$0xf] %vm3338_vm4, %v4195_v59  ;;  %v1768_v58 = vmul.f32 %v5182_v22, %v1506_v4  ;;  %v1769_v9 = vmul.f32 %v5182_v22, %v1507_v48  ;;  %v2026_v20 = vadd.f32 %v5191_v37, %v1764_v1  ;;  %v1518_v1 = vld [vmem:[#allocation2 + $0x780] sm:$0xff] }
 0x2ee   : > { %v2027_v21 = vadd.f32 %v5191_v37, %v1765_v52  ;;  %v2028_v57 = vadd.f32 %v5191_v37, %v1766_v60  ;;  %v2029_v25 = vadd.f32 %v5191_v37, %v1767_v8  ;;  %3561 = vst.msk [vmem:[%s6729_s4 + $0x378] sm:$0xf] %vm3338_vm4, %v4196_v43  ;;  %3562 = vst.msk [vmem:[%s6729_s4 + $0x37c] sm:$0xf] %vm3338_vm4, %v4197_v61  ;;  %v1520_v43 = vld [vmem:[#allocation2 + $0x790] sm:$0xff]  ;;  %v1521_v61 = vld [vmem:[#allocation2 + $0x798] sm:$0xff] }
 0x2ef   : > { %v2030_v31 = vadd.f32 %v5191_v37, %v1768_v58  ;;  %v2031_v14 = vadd.f32 %v5191_v37, %v1769_v9  ;;  %v1770_v15 = vmul.f32 %v5182_v22, %v1508_v54  ;;  %v1771_v11 = vmul.f32 %v5182_v22, %v1509_v53  ;;  %v1519_v53 = vld [vmem:[#allocation2 + $0x788] sm:$0xff] }
 0x2f0   : > { %v2282_v63 = vmax.f32 %v2026_v20, 0.0  ;;  %v2283_v41 = vmax.f32 %v2027_v21, 0.0  ;;  %v2284_v35 = vmax.f32 %v2028_v57, 0.0  ;;  %v2285_v24 = vmax.f32 %v2029_v25, 0.0  ;;  %v1522_v57 = vld [vmem:[#allocation2 + $0x7a0] sm:$0xff]  ;;  %v1523_v25 = vld [vmem:[#allocation2 + $0x7a8] sm:$0xff] }
 0x2f1   : > { %v2286_v26 = vmax.f32 %v2030_v31, 0.0  ;;  %v2287_v18 = vmax.f32 %v2031_v14, 0.0  ;;  %v2032_v36 = vadd.f32 %v5191_v37, %v1770_v15  ;;  %v2033_v47 = vadd.f32 %v5191_v37, %v1771_v11 }
 0x2f2   : > { %v4198_v6 = vpack.c.bf16 %v2282_v63, %v2282_v63  ;;  %v4199_v29 = vpack.c.bf16 %v2283_v41, %v2283_v41  ;;  %v4200_v38 = vpack.c.bf16 %v2284_v35, %v2284_v35  ;;  %v4201_v0 = vpack.c.bf16 %v2285_v24, %v2285_v24 }
 0x2f3   : > { %v4202_v12 = vpack.c.bf16 %v2286_v26, %v2286_v26  ;;  %v4203_v34 = vpack.c.bf16 %v2287_v18, %v2287_v18  ;;  %v2288_v5 = vmax.f32 %v2032_v36, 0.0  ;;  %v2289_v17 = vmax.f32 %v2033_v47, 0.0  ;;  %v1525_v26 = vld [vmem:[#allocation2 + $0x7b8] sm:$0xff] }
 0x2f4   : > { %3563 = vst.msk [vmem:[%s6729_s4 + $0x380] sm:$0xf] %vm3338_vm4, %v4198_v6  ;;  %3564 = vst.msk [vmem:[%s6729_s4 + $0x384] sm:$0xf] %vm3338_vm4, %v4199_v29  ;;  %v1772_v40 = vmul.f32 %v5182_v22, %v1510_v33  ;;  %v1773_v45 = vmul.f32 %v5182_v22, %v1511_v56  ;;  %v1774_v7 = vmul.f32 %v5182_v22, %v1512_v19  ;;  %v1524_v33 = vld [vmem:[#allocation2 + $0x7b0] sm:$0xff] }
 0x2f5   : > { %3565 = vst.msk [vmem:[%s6729_s4 + $0x388] sm:$0xf] %vm3338_vm4, %v4200_v38  ;;  %3566 = vst.msk [vmem:[%s6729_s4 + $0x38c] sm:$0xf] %vm3338_vm4, %v4201_v0  ;;  %v1775_v10 = vmul.f32 %v5182_v22, %v1513_v30  ;;  %v4204_v28 = vpack.c.bf16 %v2288_v5, %v2288_v5  ;;  %v4205_v49 = vpack.c.bf16 %v2289_v17, %v2289_v17 }
 0x2f6   : > { %3567 = vst.msk [vmem:[%s6729_s4 + $0x390] sm:$0xf] %vm3338_vm4, %v4202_v12  ;;  %3568 = vst.msk [vmem:[%s6729_s4 + $0x394] sm:$0xf] %vm3338_vm4, %v4203_v34  ;;  %v1776_v44 = vmul.f32 %v5182_v22, %v1514_v51  ;;  %v1777_v16 = vmul.f32 %v5182_v22, %v1515_v62  ;;  %v2034_v13 = vadd.f32 %v5191_v37, %v1772_v40  ;;  %v1526_v40 = vld [vmem:[#allocation2 + $0x7c0] sm:$0xff] }
 0x2f7   : > { %v2035_v2 = vadd.f32 %v5191_v37, %v1773_v45  ;;  %v2036_v46 = vadd.f32 %v5191_v37, %v1774_v7  ;;  %v2037_v27 = vadd.f32 %v5191_v37, %v1775_v10  ;;  %3569 = vst.msk [vmem:[%s6729_s4 + $0x398] sm:$0xf] %vm3338_vm4, %v4204_v28  ;;  %3570 = vst.msk [vmem:[%s6729_s4 + $0x39c] sm:$0xf] %vm3338_vm4, %v4205_v49  ;;  %v1528_v28 = vld [vmem:[#allocation2 + $0x7d0] sm:$0xff]  ;;  %v1529_v49 = vld [vmem:[#allocation2 + $0x7d8] sm:$0xff] }
 0x2f8   : > { %v2038_v55 = vadd.f32 %v5191_v37, %v1776_v44  ;;  %v2039_v32 = vadd.f32 %v5191_v37, %v1777_v16  ;;  %v1778_v4 = vmul.f32 %v5182_v22, %v1516_v42  ;;  %v1779_v48 = vmul.f32 %v5182_v22, %v1517_v3  ;;  %v1527_v3 = vld [vmem:[#allocation2 + $0x7c8] sm:$0xff] }
 0x2f9   : > { %v2290_v23 = vmax.f32 %v2034_v13, 0.0  ;;  %v2291_v59 = vmax.f32 %v2035_v2, 0.0  ;;  %v2292_v50 = vmax.f32 %v2036_v46, 0.0  ;;  %v2293_v39 = vmax.f32 %v2037_v27, 0.0  ;;  %v1530_v46 = vld [vmem:[#allocation2 + $0x7e0] sm:$0xff]  ;;  %v1531_v27 = vld [vmem:[#allocation2 + $0x7e8] sm:$0xff] }
 0x2fa   : > { %v2294_v52 = vmax.f32 %v2038_v55, 0.0  ;;  %v2295_v60 = vmax.f32 %v2039_v32, 0.0  ;;  %v2040_v8 = vadd.f32 %v5191_v37, %v1778_v4  ;;  %v2041_v54 = vadd.f32 %v5191_v37, %v1779_v48 }
 0x2fb   : > { %v4206_v58 = vpack.c.bf16 %v2290_v23, %v2290_v23  ;;  %v4207_v9 = vpack.c.bf16 %v2291_v59, %v2291_v59  ;;  %v4208_v20 = vpack.c.bf16 %v2292_v50, %v2292_v50  ;;  %v4209_v21 = vpack.c.bf16 %v2293_v39, %v2293_v39 }
 0x2fc   : > { %v4210_v31 = vpack.c.bf16 %v2294_v52, %v2294_v52  ;;  %v4211_v14 = vpack.c.bf16 %v2295_v60, %v2295_v60  ;;  %v2296_v15 = vmax.f32 %v2040_v8, 0.0  ;;  %v2297_v11 = vmax.f32 %v2041_v54, 0.0  ;;  %v1533_v52 = vld [vmem:[#allocation2 + $0x7f8] sm:$0xff] }
 0x2fd   : > { %3571 = vst.msk [vmem:[%s6729_s4 + $0x3a0] sm:$0xf] %vm3338_vm4, %v4206_v58  ;;  %3572 = vst.msk [vmem:[%s6729_s4 + $0x3a4] sm:$0xf] %vm3338_vm4, %v4207_v9  ;;  %v1780_v63 = vmul.f32 %v5182_v22, %v1518_v1  ;;  %v1781_v41 = vmul.f32 %v5182_v22, %v1519_v53  ;;  %v1782_v35 = vmul.f32 %v5182_v22, %v1520_v43  ;;  %v1532_v1 = vld [vmem:[#allocation2 + $0x7f0] sm:$0xff] }
 0x2fe   : > { %3573 = vst.msk [vmem:[%s6729_s4 + $0x3a8] sm:$0xf] %vm3338_vm4, %v4208_v20  ;;  %3574 = vst.msk [vmem:[%s6729_s4 + $0x3ac] sm:$0xf] %vm3338_vm4, %v4209_v21  ;;  %v1783_v24 = vmul.f32 %v5182_v22, %v1521_v61  ;;  %v4212_v18 = vpack.c.bf16 %v2296_v15, %v2296_v15  ;;  %v4213_v36 = vpack.c.bf16 %v2297_v11, %v2297_v11 }
 0x2ff   : > { %3575 = vst.msk [vmem:[%s6729_s4 + $0x3b0] sm:$0xf] %vm3338_vm4, %v4210_v31  ;;  %3576 = vst.msk [vmem:[%s6729_s4 + $0x3b4] sm:$0xf] %vm3338_vm4, %v4211_v14  ;;  %v1784_v47 = vmul.f32 %v5182_v22, %v1522_v57  ;;  %v1785_v56 = vmul.f32 %v5182_v22, %v1523_v25  ;;  %v2042_v19 = vadd.f32 %v5191_v37, %v1780_v63 }
 0x300   : > { %v2043_v30 = vadd.f32 %v5191_v37, %v1781_v41  ;;  %v2044_v6 = vadd.f32 %v5191_v37, %v1782_v35  ;;  %v2045_v29 = vadd.f32 %v5191_v37, %v1783_v24  ;;  %3577 = vst.msk [vmem:[%s6729_s4 + $0x3b8] sm:$0xf] %vm3338_vm4, %v4212_v18  ;;  %3578 = vst.msk [vmem:[%s6729_s4 + $0x3bc] sm:$0xf] %vm3338_vm4, %v4213_v36 }
 0x301   : > { %v2046_v38 = vadd.f32 %v5191_v37, %v1784_v47  ;;  %v2047_v0 = vadd.f32 %v5191_v37, %v1785_v56  ;;  %v1786_v51 = vmul.f32 %v5182_v22, %v1524_v33  ;;  %v1787_v62 = vmul.f32 %v5182_v22, %v1525_v26 }
 0x302   : > { %v2298_v12 = vmax.f32 %v2042_v19, 0.0  ;;  %v2299_v34 = vmax.f32 %v2043_v30, 0.0  ;;  %v2300_v5 = vmax.f32 %v2044_v6, 0.0  ;;  %v2301_v17 = vmax.f32 %v2045_v29, 0.0 }
 0x303   : > { %v2302_v45 = vmax.f32 %v2046_v38, 0.0  ;;  %v2303_v7 = vmax.f32 %v2047_v0, 0.0  ;;  %v2048_v10 = vadd.f32 %v5191_v37, %v1786_v51  ;;  %v2049_v42 = vadd.f32 %v5191_v37, %v1787_v62 }
 0x304   : > { %v4214_v44 = vpack.c.bf16 %v2298_v12, %v2298_v12  ;;  %v4215_v16 = vpack.c.bf16 %v2299_v34, %v2299_v34  ;;  %v4216_v13 = vpack.c.bf16 %v2300_v5, %v2300_v5  ;;  %v4217_v2 = vpack.c.bf16 %v2301_v17, %v2301_v17 }
 0x305   : > { %v4218_v55 = vpack.c.bf16 %v2302_v45, %v2302_v45  ;;  %v4219_v32 = vpack.c.bf16 %v2303_v7, %v2303_v7  ;;  %v2304_v4 = vmax.f32 %v2048_v10, 0.0  ;;  %v2305_v48 = vmax.f32 %v2049_v42, 0.0 }
 0x306   : > { %3579 = vst.msk [vmem:[%s6729_s4 + $0x3c0] sm:$0xf] %vm3338_vm4, %v4214_v44  ;;  %3580 = vst.msk [vmem:[%s6729_s4 + $0x3c4] sm:$0xf] %vm3338_vm4, %v4215_v16  ;;  %v1788_v23 = vmul.f32 %v5182_v22, %v1526_v40  ;;  %v1789_v59 = vmul.f32 %v5182_v22, %v1527_v3  ;;  %v1790_v50 = vmul.f32 %v5182_v22, %v1528_v28 }
 0x307   : > { %3581 = vst.msk [vmem:[%s6729_s4 + $0x3c8] sm:$0xf] %vm3338_vm4, %v4216_v13  ;;  %3582 = vst.msk [vmem:[%s6729_s4 + $0x3cc] sm:$0xf] %vm3338_vm4, %v4217_v2  ;;  %v1791_v39 = vmul.f32 %v5182_v22, %v1529_v49  ;;  %v4220_v60 = vpack.c.bf16 %v2304_v4, %v2304_v4  ;;  %v4221_v8 = vpack.c.bf16 %v2305_v48, %v2305_v48 }
 0x308   : > { %3583 = vst.msk [vmem:[%s6729_s4 + $0x3d0] sm:$0xf] %vm3338_vm4, %v4218_v55  ;;  %3584 = vst.msk [vmem:[%s6729_s4 + $0x3d4] sm:$0xf] %vm3338_vm4, %v4219_v32  ;;  %v1792_v54 = vmul.f32 %v5182_v22, %v1530_v46  ;;  %v1793_v53 = vmul.f32 %v5182_v22, %v1531_v27  ;;  %v2050_v43 = vadd.f32 %v5191_v37, %v1788_v23 }
 0x309   : > { %v2051_v61 = vadd.f32 %v5191_v37, %v1789_v59  ;;  %v2052_v58 = vadd.f32 %v5191_v37, %v1790_v50  ;;  %v2053_v9 = vadd.f32 %v5191_v37, %v1791_v39  ;;  %3585 = vst.msk [vmem:[%s6729_s4 + $0x3d8] sm:$0xf] %vm3338_vm4, %v4220_v60  ;;  %3586 = vst.msk [vmem:[%s6729_s4 + $0x3dc] sm:$0xf] %vm3338_vm4, %v4221_v8 }
 0x30a   : > { %v2054_v20 = vadd.f32 %v5191_v37, %v1792_v54  ;;  %v2055_v21 = vadd.f32 %v5191_v37, %v1793_v53  ;;  %v1794_v57 = vmul.f32 %v5182_v22, %v1532_v1  ;;  %v1795_v25 = vmul.f32 %v5182_v22, %v1533_v52 }
 0x30b   : > { %v2306_v31 = vmax.f32 %v2050_v43, 0.0  ;;  %v2307_v14 = vmax.f32 %v2051_v61, 0.0  ;;  %v2308_v15 = vmax.f32 %v2052_v58, 0.0  ;;  %v2309_v11 = vmax.f32 %v2053_v9, 0.0 }
 0x30c   : > { %v2310_v63 = vmax.f32 %v2054_v20, 0.0  ;;  %v2311_v41 = vmax.f32 %v2055_v21, 0.0  ;;  %v2056_v35 = vadd.f32 %v5191_v37, %v1794_v57  ;;  %v2057_v24 = vadd.f32 %v5191_v37, %v1795_v25 }
 0x30d   : > { %v4222_v33 = vpack.c.bf16 %v2306_v31, %v2306_v31  ;;  %v4223_v26 = vpack.c.bf16 %v2307_v14, %v2307_v14  ;;  %v4224_v18 = vpack.c.bf16 %v2308_v15, %v2308_v15  ;;  %v4225_v36 = vpack.c.bf16 %v2309_v11, %v2309_v11 }
 0x30e   : > { %v4226_v47 = vpack.c.bf16 %v2310_v63, %v2310_v63  ;;  %v4227_v56 = vpack.c.bf16 %v2311_v41, %v2311_v41  ;;  %v2312_v19 = vmax.f32 %v2056_v35, 0.0  ;;  %v2313_v30 = vmax.f32 %v2057_v24, 0.0 }
 0x30f   : > { %3587 = vst.msk [vmem:[%s6729_s4 + $0x3e0] sm:$0xf] %vm3338_vm4, %v4222_v33  ;;  %3588 = vst.msk [vmem:[%s6729_s4 + $0x3e4] sm:$0xf] %vm3338_vm4, %v4223_v26 }
 0x310   : > { %3589 = vst.msk [vmem:[%s6729_s4 + $0x3e8] sm:$0xf] %vm3338_vm4, %v4224_v18  ;;  %3590 = vst.msk [vmem:[%s6729_s4 + $0x3ec] sm:$0xf] %vm3338_vm4, %v4225_v36  ;;  %v4228_v22 = vpack.c.bf16 %v2312_v19, %v2312_v19  ;;  %v4229_v37 = vpack.c.bf16 %v2313_v30, %v2313_v30 }
 0x311   : > { %3591 = vst.msk [vmem:[%s6729_s4 + $0x3f0] sm:$0xf] %vm3338_vm4, %v4226_v47  ;;  %3592 = vst.msk [vmem:[%s6729_s4 + $0x3f4] sm:$0xf] %vm3338_vm4, %v4227_v56 }
 0x312   : > { %3593 = vst.msk [vmem:[%s6729_s4 + $0x3f8] sm:$0xf] %vm3338_vm4, %v4228_v22  ;;  %3594 = vst.msk [vmem:[%s6729_s4 + $0x3fc] sm:$0xf] %vm3338_vm4, %v4229_v37 }
 0x313 PF: > { %s14_s15 = sadd.s32 1, %s4399_s15  }
 0x314   : > { %p11_p7 = scmp.ge.s32.totalorder %s14_s15, 6  }
 0x316   :  { %13 = sbr.rel (!%p11_p7) target bundleno = 1 (0x1), region = 74 }

// kernel: generator_forward.11
= control target key start
LH: loop header
LB: loop body
LE: loop exit
PB: predicated region body
PF: predicated region fallthrough
CT: control target
= control target key end

     0   :  { %s4443_s9 = smov 0   ;;  %s5239_s0 = inlined_call_operand.vmem [shape: bf16[8192,32], index: 0, kind: input, shape index: {}]   ;;  %s5240_s1 = inlined_call_operand.vmem [shape: bf16[128,3], index: 1, kind: input, shape index: {}]   ;;  %s5241_s2 = inlined_call_operand.vmem [shape: f32[8192,3], index: 2, kind: output, shape index: {}]  }
   0x1 LB: > { %s3105_s10 = sadd.s32 4294967295, %s4426_s9   ;;  %p3109_p0 = scmp.ge.s32.totalorder %s4426_s9, 1  ;;  %s4426_s9 = sphi %s4443_s9, %s12_s9  }
   0x2   : > { %p124_p1 = scmp.lt.s32.totalorder %s4426_s9, 5 }
   0x4   : > { %p125_p2 = pnand %p3109_p0, %p124_p1 }
   0x5   : > { %s3112_s11 = sshll.u32 (!%p125_p2), %s3105_s10, 2  ;;  %s3110_s12 = sshll.u32 (!%p125_p2), %s3105_s10, 8 }
   0x6   : > { %128 = sbr.rel (%p125_p2) target bundleno = 486 (0x1e6), region = 28  ;;  %p158_p3 = scmp.lt.s32.totalorder (!%p125_p2), %s3112_s11, 15 }
   0x7   : > { %p152_p4 = scmp.lt.s32.totalorder (!%p125_p2), %s3110_s12, 1023 }
   0xb   : > { %s5243_s11 = smov (!%p158_p3, %s3112_s11), 15  ;;  %s5245_s12 = smov (!%p152_p4, %s3110_s12), 1023  ;;  %vm1082_vm0 = vcmask 261120   ;;  %vm2780_vm1 = vcmask 23552  }
   0xc   : > { %s3113_s13 = sshll.u32 %s5243_s11, 2  ;;  %s3111_s17 = sshll.u32 %s5245_s12, 2 }
   0xd   : > { %s161_s16 = scalar_lea.vmem %s5240_s1, %s3113_s13  ;;  %s4460_s20 = scalar_lea.vmem %s5239_s0, %s3111_s17 }
   0xe   : > { %v3778_v0 = vld [vmem:[%s161_s16 + $0x8] sm:$0xff]   ;;  %v3779_v1 = vld [vmem:[%s161_s16] sm:$0xff]   ;;  %v3784_v6 = vld [vmem:[%s4460_s20 + $0x10] sm:$0xff]   ;;  %s3115_s21 = sshll.u32 %s5245_s12, 3 }
   0xf   : > { %3506 = vmatprep.subr.bf16.mxu0 %v3778_v0  ;;  %3766 = vmatprep.subr.bf16.mxu1 %v3778_v0  ;;  %v3780_v2 = vld [vmem:[%s4460_s20] sm:$0xff]   ;;  %v3782_v4 = vld [vmem:[%s4460_s20 + $0x8] sm:$0xff]   ;;  %v3785_v7 = vld [vmem:[%s4460_s20 + $0x210] sm:$0xff]   ;;  %s4678_s24 = scalar_lea.vmem %s5241_s2, %s3115_s21 }
  0x10   : > { %3507 = vmatpush3.bf16.msra.mxu0 %v3778_v0  ;;  %3768 = vmatpush3.bf16.msra.mxu1 %v3778_v0  ;;  %v3781_v3 = vld [vmem:[%s4460_s20 + $0x200] sm:$0xff]   ;;  %v3783_v5 = vld [vmem:[%s4460_s20 + $0x208] sm:$0xff]   ;;  %v3786_v8 = vld [vmem:[%s4460_s20 + $0x18] sm:$0xff]  }
  0x11   : > { %3508 = vmatprep.subr.bf16.mxu0 %v3779_v1  ;;  %3767 = vmatprep.subr.bf16.mxu1 %v3779_v1  ;;  %v3787_v9 = vld [vmem:[%s4460_s20 + $0x218] sm:$0xff]   ;;  %v3788_v10 = vld [vmem:[%s4460_s20 + $0x20] sm:$0xff]   ;;  %v3790_v12 = vld [vmem:[%s4460_s20 + $0x28] sm:$0xff]  }
  0x12   : > { %3510 = vmatprep.mubr.msk.bf16.mxu0 %vm1082_vm0, %v3780_v2  ;;  %3638 = vmatprep.mubr.msk.bf16.mxu1 %vm1082_vm0, %v3781_v3  ;;  %v3789_v11 = vld [vmem:[%s4460_s20 + $0x220] sm:$0xff]   ;;  %v3791_v13 = vld [vmem:[%s4460_s20 + $0x228] sm:$0xff]   ;;  %v3792_v14 = vld [vmem:[%s4460_s20 + $0x30] sm:$0xff]  }
  0x13   : > { %v3793_v15 = vld [vmem:[%s4460_s20 + $0x230] sm:$0xff]   ;;  %v3794_v16 = vld [vmem:[%s4460_s20 + $0x38] sm:$0xff]   ;;  %v3796_v18 = vld [vmem:[%s4460_s20 + $0x40] sm:$0xff]  }
  0x14   : > { %3509 = vmatpush3.bf16.msra.mxu0 %v3779_v1  ;;  %3769 = vmatpush3.bf16.msra.mxu1 %v3779_v1  ;;  %v3795_v17 = vld [vmem:[%s4460_s20 + $0x238] sm:$0xff]   ;;  %v3797_v19 = vld [vmem:[%s4460_s20 + $0x240] sm:$0xff]   ;;  %v3798_v20 = vld [vmem:[%s4460_s20 + $0x48] sm:$0xff]  }
  0x15   : > { %v3799_v21 = vld [vmem:[%s4460_s20 + $0x248] sm:$0xff]   ;;  %v3800_v22 = vld [vmem:[%s4460_s20 + $0x50] sm:$0xff]   ;;  %v3802_v24 = vld [vmem:[%s4460_s20 + $0x58] sm:$0xff]  }
  0x16   : > { %v3801_v23 = vld [vmem:[%s4460_s20 + $0x250] sm:$0xff]   ;;  %v3803_v25 = vld [vmem:[%s4460_s20 + $0x258] sm:$0xff]   ;;  %v3804_v26 = vld [vmem:[%s4460_s20 + $0x60] sm:$0xff]  }
  0x17   : > { %3511 = vmatmul.mubr.msk.bf16.vlgmr.msra.gmra.mxu0 %vm1082_vm0, %v3782_v4  ;;  %3639 = vmatmul.mubr.msk.bf16.vlgmr.msra.gmra.mxu1 %vm1082_vm0, %v3783_v5  ;;  %v3805_v27 = vld [vmem:[%s4460_s20 + $0x260] sm:$0xff]   ;;  %v3806_v28 = vld [vmem:[%s4460_s20 + $0x68] sm:$0xff]   ;;  %v3808_v30 = vld [vmem:[%s4460_s20 + $0x70] sm:$0xff]  }
  0x18   : > { %3514 = vmatprep.mubr.msk.bf16.mxu0 %vm1082_vm0, %v3784_v6  ;;  %3642 = vmatprep.mubr.msk.bf16.mxu1 %vm1082_vm0, %v3785_v7  ;;  %v3807_v29 = vld [vmem:[%s4460_s20 + $0x268] sm:$0xff]   ;;  %v3809_v31 = vld [vmem:[%s4460_s20 + $0x270] sm:$0xff]   ;;  %v3810_v32 = vld [vmem:[%s4460_s20 + $0x78] sm:$0xff]  }
  0x19   : > { %v3811_v33 = vld [vmem:[%s4460_s20 + $0x278] sm:$0xff]   ;;  %v3812_v34 = vld [vmem:[%s4460_s20 + $0x80] sm:$0xff]   ;;  %v3814_v36 = vld [vmem:[%s4460_s20 + $0x88] sm:$0xff]  }
  0x1a   : > { %v3813_v35 = vld [vmem:[%s4460_s20 + $0x280] sm:$0xff]   ;;  %v3815_v37 = vld [vmem:[%s4460_s20 + $0x288] sm:$0xff]   ;;  %v3816_v38 = vld [vmem:[%s4460_s20 + $0x90] sm:$0xff]  }
  0x1b   : > { %v3817_v39 = vld [vmem:[%s4460_s20 + $0x290] sm:$0xff]   ;;  %v3818_v40 = vld [vmem:[%s4460_s20 + $0x98] sm:$0xff]   ;;  %v3820_v42 = vld [vmem:[%s4460_s20 + $0xa0] sm:$0xff]  }
  0x1c   : > { %v3819_v41 = vld [vmem:[%s4460_s20 + $0x298] sm:$0xff]   ;;  %v3821_v43 = vld [vmem:[%s4460_s20 + $0x2a0] sm:$0xff]   ;;  %v3822_v44 = vld [vmem:[%s4460_s20 + $0xa8] sm:$0xff]  }
  0x1d   : > { %v3823_v45 = vld [vmem:[%s4460_s20 + $0x2a8] sm:$0xff]   ;;  %v3824_v46 = vld [vmem:[%s4460_s20 + $0xb0] sm:$0xff]   ;;  %v3826_v48 = vld [vmem:[%s4460_s20 + $0xb8] sm:$0xff]  }
  0x1e   : > { %v3825_v47 = vld [vmem:[%s4460_s20 + $0x2b0] sm:$0xff]   ;;  %v3827_v49 = vld [vmem:[%s4460_s20 + $0x2b8] sm:$0xff]   ;;  %v3828_v50 = vld [vmem:[%s4460_s20 + $0xc0] sm:$0xff]  }
  0x1f   : > { %3515 = vmatmul.mubr.msk.bf16.gmra.mxu0 %vm1082_vm0, %v3786_v8  ;;  %3643 = vmatmul.mubr.msk.bf16.gmra.mxu1 %vm1082_vm0, %v3787_v9  ;;  %v3829_v51 = vld [vmem:[%s4460_s20 + $0x2c0] sm:$0xff]   ;;  %v3830_v52 = vld [vmem:[%s4460_s20 + $0xc8] sm:$0xff]   ;;  %v3832_v54 = vld [vmem:[%s4460_s20 + $0xd0] sm:$0xff]  }
  0x20   : > { %3518 = vmatprep.mubr.msk.bf16.mxu0 %vm1082_vm0, %v3788_v10  ;;  %3646 = vmatprep.mubr.msk.bf16.mxu1 %vm1082_vm0, %v3789_v11  ;;  %v3831_v53 = vld [vmem:[%s4460_s20 + $0x2c8] sm:$0xff]   ;;  %v3833_v55 = vld [vmem:[%s4460_s20 + $0x2d0] sm:$0xff]   ;;  %v3834_v56 = vld [vmem:[%s4460_s20 + $0xd8] sm:$0xff]  }
  0x21   : > { %v3835_v57 = vld [vmem:[%s4460_s20 + $0x2d8] sm:$0xff]   ;;  %v3836_v58 = vld [vmem:[%s4460_s20 + $0xe0] sm:$0xff]   ;;  %v3838_v60 = vld [vmem:[%s4460_s20 + $0xe8] sm:$0xff]  }
  0x22   : > { %v3837_v59 = vld [vmem:[%s4460_s20 + $0x2e0] sm:$0xff]   ;;  %v3839_v61 = vld [vmem:[%s4460_s20 + $0x2e8] sm:$0xff]   ;;  %v3840_v62 = vld [vmem:[%s4460_s20 + $0xf0] sm:$0xff]  }
  0x23   : > { %v3841_v63 = vld [vmem:[%s4460_s20 + $0x2f0] sm:$0xff]   ;;  %v3842_v0 = vld [vmem:[%s4460_s20 + $0xf8] sm:$0xff]   ;;  %v3844_v2 = vld [vmem:[%s4460_s20 + $0x100] sm:$0xff]  }
  0x24   : > { %v3843_v1 = vld [vmem:[%s4460_s20 + $0x2f8] sm:$0xff]   ;;  %v3845_v3 = vld [vmem:[%s4460_s20 + $0x300] sm:$0xff]   ;;  %v3846_v4 = vld [vmem:[%s4460_s20 + $0x108] sm:$0xff]  }
  0x25   : > { %v3847_v5 = vld [vmem:[%s4460_s20 + $0x308] sm:$0xff]   ;;  %v3848_v6 = vld [vmem:[%s4460_s20 + $0x110] sm:$0xff]   ;;  %v3850_v8 = vld [vmem:[%s4460_s20 + $0x118] sm:$0xff]  }
  0x26   : > { %v3849_v7 = vld [vmem:[%s4460_s20 + $0x310] sm:$0xff]   ;;  %v3851_v9 = vld [vmem:[%s4460_s20 + $0x318] sm:$0xff]   ;;  %v3852_v10 = vld [vmem:[%s4460_s20 + $0x120] sm:$0xff]  }
  0x27   : > { %3519 = vmatmul.mubr.msk.bf16.gmra.mxu0 %vm1082_vm0, %v3790_v12  ;;  %3647 = vmatmul.mubr.msk.bf16.gmra.mxu1 %vm1082_vm0, %v3791_v13  ;;  %v3853_v11 = vld [vmem:[%s4460_s20 + $0x320] sm:$0xff]   ;;  %v3854_v12 = vld [vmem:[%s4460_s20 + $0x128] sm:$0xff]  }
  0x28   : > { %3522 = vmatprep.mubr.msk.bf16.mxu0 %vm1082_vm0, %v3792_v14  ;;  %3650 = vmatprep.mubr.msk.bf16.mxu1 %vm1082_vm0, %v3793_v15  ;;  %v3855_v13 = vld [vmem:[%s4460_s20 + $0x328] sm:$0xff]   ;;  %v3856_v14 = vld [vmem:[%s4460_s20 + $0x130] sm:$0xff]  }
  0x29   : > { %v3857_v15 = vld [vmem:[%s4460_s20 + $0x330] sm:$0xff]  }
  0x2f   : > { %3523 = vmatmul.mubr.msk.bf16.gmra.mxu0 %vm1082_vm0, %v3794_v16  ;;  %3651 = vmatmul.mubr.msk.bf16.gmra.mxu1 %vm1082_vm0, %v3795_v17  ;;  %v3858_v16 = vld [vmem:[%s4460_s20 + $0x138] sm:$0xff]  }
  0x30   : > { %3526 = vmatprep.mubr.msk.bf16.mxu0 %vm1082_vm0, %v3796_v18  ;;  %3654 = vmatprep.mubr.msk.bf16.mxu1 %vm1082_vm0, %v3797_v19  ;;  %v3859_v17 = vld [vmem:[%s4460_s20 + $0x338] sm:$0xff]   ;;  %v3860_v18 = vld [vmem:[%s4460_s20 + $0x140] sm:$0xff]  }
  0x31   : > { %v3861_v19 = vld [vmem:[%s4460_s20 + $0x340] sm:$0xff]  }
  0x37   : > { %3527 = vmatmul.mubr.msk.bf16.gmra.mxu0 %vm1082_vm0, %v3798_v20  ;;  %3655 = vmatmul.mubr.msk.bf16.gmra.mxu1 %vm1082_vm0, %v3799_v21  ;;  %v3862_v20 = vld [vmem:[%s4460_s20 + $0x148] sm:$0xff]  }
  0x38   : > { %3530 = vmatprep.mubr.msk.bf16.mxu0 %vm1082_vm0, %v3800_v22  ;;  %3658 = vmatprep.mubr.msk.bf16.mxu1 %vm1082_vm0, %v3801_v23  ;;  %v3863_v21 = vld [vmem:[%s4460_s20 + $0x348] sm:$0xff]   ;;  %v3864_v22 = vld [vmem:[%s4460_s20 + $0x150] sm:$0xff]  }
  0x39   : > { %v3865_v23 = vld [vmem:[%s4460_s20 + $0x350] sm:$0xff]  }
  0x3f   : > { %3531 = vmatmul.mubr.msk.bf16.gmra.mxu0 %vm1082_vm0, %v3802_v24  ;;  %3659 = vmatmul.mubr.msk.bf16.gmra.mxu1 %vm1082_vm0, %v3803_v25  ;;  %v3866_v24 = vld [vmem:[%s4460_s20 + $0x158] sm:$0xff]  }
  0x40   : > { %3534 = vmatprep.mubr.msk.bf16.mxu0 %vm1082_vm0, %v3804_v26  ;;  %3662 = vmatprep.mubr.msk.bf16.mxu1 %vm1082_vm0, %v3805_v27  ;;  %v3867_v25 = vld [vmem:[%s4460_s20 + $0x358] sm:$0xff]   ;;  %v3868_v26 = vld [vmem:[%s4460_s20 + $0x160] sm:$0xff]  }
  0x41   : > { %v3869_v27 = vld [vmem:[%s4460_s20 + $0x360] sm:$0xff]  }
  0x47   : > { %3535 = vmatmul.mubr.msk.bf16.gmra.mxu0 %vm1082_vm0, %v3806_v28  ;;  %3663 = vmatmul.mubr.msk.bf16.gmra.mxu1 %vm1082_vm0, %v3807_v29  ;;  %v3870_v28 = vld [vmem:[%s4460_s20 + $0x168] sm:$0xff]  }
  0x48   : > { %3538 = vmatprep.mubr.msk.bf16.mxu0 %vm1082_vm0, %v3808_v30  ;;  %3666 = vmatprep.mubr.msk.bf16.mxu1 %vm1082_vm0, %v3809_v31  ;;  %v3871_v29 = vld [vmem:[%s4460_s20 + $0x368] sm:$0xff]   ;;  %v3872_v30 = vld [vmem:[%s4460_s20 + $0x170] sm:$0xff]  }
  0x49   : > { %v3873_v31 = vld [vmem:[%s4460_s20 + $0x370] sm:$0xff]  }
  0x4f   : > { %3539 = vmatmul.mubr.msk.bf16.gmra.mxu0 %vm1082_vm0, %v3810_v32  ;;  %3667 = vmatmul.mubr.msk.bf16.gmra.mxu1 %vm1082_vm0, %v3811_v33  ;;  %v3874_v32 = vld [vmem:[%s4460_s20 + $0x178] sm:$0xff]  }
  0x50   : > { %3542 = vmatprep.mubr.msk.bf16.mxu0 %vm1082_vm0, %v3812_v34  ;;  %3670 = vmatprep.mubr.msk.bf16.mxu1 %vm1082_vm0, %v3813_v35  ;;  %v3875_v33 = vld [vmem:[%s4460_s20 + $0x378] sm:$0xff]   ;;  %v3876_v34 = vld [vmem:[%s4460_s20 + $0x180] sm:$0xff]  }
  0x51   : > { %v3877_v35 = vld [vmem:[%s4460_s20 + $0x380] sm:$0xff]  }
  0x57   : > { %3543 = vmatmul.mubr.msk.bf16.gmra.mxu0 %vm1082_vm0, %v3814_v36  ;;  %3671 = vmatmul.mubr.msk.bf16.gmra.mxu1 %vm1082_vm0, %v3815_v37  ;;  %v3878_v36 = vld [vmem:[%s4460_s20 + $0x188] sm:$0xff]  }
  0x58   : > { %3546 = vmatprep.mubr.msk.bf16.mxu0 %vm1082_vm0, %v3816_v38  ;;  %3674 = vmatprep.mubr.msk.bf16.mxu1 %vm1082_vm0, %v3817_v39  ;;  %v3879_v37 = vld [vmem:[%s4460_s20 + $0x388] sm:$0xff]   ;;  %v3880_v38 = vld [vmem:[%s4460_s20 + $0x190] sm:$0xff]  }
  0x59   : > { %v3881_v39 = vld [vmem:[%s4460_s20 + $0x390] sm:$0xff]  }
  0x5f   : > { %3547 = vmatmul.mubr.msk.bf16.gmra.mxu0 %vm1082_vm0, %v3818_v40  ;;  %3675 = vmatmul.mubr.msk.bf16.gmra.mxu1 %vm1082_vm0, %v3819_v41 }
  0x60   : > { %3550 = vmatprep.mubr.msk.bf16.mxu0 %vm1082_vm0, %v3820_v42  ;;  %3678 = vmatprep.mubr.msk.bf16.mxu1 %vm1082_vm0, %v3821_v43 }
  0x67   : > { %3551 = vmatmul.mubr.msk.bf16.gmra.mxu0 %vm1082_vm0, %v3822_v44  ;;  %3679 = vmatmul.mubr.msk.bf16.gmra.mxu1 %vm1082_vm0, %v3823_v45 }
  0x68   : > { %3554 = vmatprep.mubr.msk.bf16.mxu0 %vm1082_vm0, %v3824_v46  ;;  %3682 = vmatprep.mubr.msk.bf16.mxu1 %vm1082_vm0, %v3825_v47  ;;  %v3882_v46 = vld [vmem:[%s4460_s20 + $0x198] sm:$0xff]  }
  0x69   : > { %v3883_v47 = vld [vmem:[%s4460_s20 + $0x398] sm:$0xff]  }
  0x6f   : > { %3555 = vmatmul.mubr.msk.bf16.gmra.mxu0 %vm1082_vm0, %v3826_v48  ;;  %3683 = vmatmul.mubr.msk.bf16.gmra.mxu1 %vm1082_vm0, %v3827_v49  ;;  %v3884_v48 = vld [vmem:[%s4460_s20 + $0x1a0] sm:$0xff]  }
  0x70   : > { %3558 = vmatprep.mubr.msk.bf16.mxu0 %vm1082_vm0, %v3828_v50  ;;  %3686 = vmatprep.mubr.msk.bf16.mxu1 %vm1082_vm0, %v3829_v51  ;;  %v3885_v49 = vld [vmem:[%s4460_s20 + $0x3a0] sm:$0xff]  }
  0x77   : > { %3559 = vmatmul.mubr.msk.bf16.gmra.mxu0 %vm1082_vm0, %v3830_v52  ;;  %3687 = vmatmul.mubr.msk.bf16.gmra.mxu1 %vm1082_vm0, %v3831_v53 }
  0x78   : > { %3562 = vmatprep.mubr.msk.bf16.mxu0 %vm1082_vm0, %v3832_v54  ;;  %3690 = vmatprep.mubr.msk.bf16.mxu1 %vm1082_vm0, %v3833_v55 }
  0x7f   : > { %3563 = vmatmul.mubr.msk.bf16.gmra.mxu0 %vm1082_vm0, %v3834_v56  ;;  %3691 = vmatmul.mubr.msk.bf16.gmra.mxu1 %vm1082_vm0, %v3835_v57 }
  0x80   : > { %3566 = vmatprep.mubr.msk.bf16.mxu0 %vm1082_vm0, %v3836_v58  ;;  %3694 = vmatprep.mubr.msk.bf16.mxu1 %vm1082_vm0, %v3837_v59  ;;  %v3886_v58 = vld [vmem:[%s4460_s20 + $0x1a8] sm:$0xff]  }
  0x81   : > { %v3887_v59 = vld [vmem:[%s4460_s20 + $0x3a8] sm:$0xff]  }
  0x87   : > { %3567 = vmatmul.mubr.msk.bf16.gmra.mxu0 %vm1082_vm0, %v3838_v60  ;;  %3695 = vmatmul.mubr.msk.bf16.gmra.mxu1 %vm1082_vm0, %v3839_v61  ;;  %v3888_v60 = vld [vmem:[%s4460_s20 + $0x1b0] sm:$0xff]  }
  0x88   : > { %3570 = vmatprep.mubr.msk.bf16.mxu0 %vm1082_vm0, %v3840_v62  ;;  %3698 = vmatprep.mubr.msk.bf16.mxu1 %vm1082_vm0, %v3841_v63  ;;  %v3889_v61 = vld [vmem:[%s4460_s20 + $0x3b0] sm:$0xff]  }
  0x8f   : > { %3571 = vmatmul.mubr.msk.bf16.gmra.mxu0 %vm1082_vm0, %v3842_v0  ;;  %3699 = vmatmul.mubr.msk.bf16.gmra.mxu1 %vm1082_vm0, %v3843_v1 }
  0x90   : > { %3574 = vmatprep.mubr.msk.bf16.mxu0 %vm1082_vm0, %v3844_v2  ;;  %3702 = vmatprep.mubr.msk.bf16.mxu1 %vm1082_vm0, %v3845_v3 }
  0x97   : > { %3575 = vmatmul.mubr.msk.bf16.gmra.mxu0 %vm1082_vm0, %v3846_v4  ;;  %3703 = vmatmul.mubr.msk.bf16.gmra.mxu1 %vm1082_vm0, %v3847_v5 }
  0x98   : > { %3578 = vmatprep.mubr.msk.bf16.mxu0 %vm1082_vm0, %v3848_v6  ;;  %3706 = vmatprep.mubr.msk.bf16.mxu1 %vm1082_vm0, %v3849_v7 }
  0x9f   : > { %3579 = vmatmul.mubr.msk.bf16.gmra.mxu0 %vm1082_vm0, %v3850_v8  ;;  %3707 = vmatmul.mubr.msk.bf16.gmra.mxu1 %vm1082_vm0, %v3851_v9 }
  0xa0   : > { %3582 = vmatprep.mubr.msk.bf16.mxu0 %vm1082_vm0, %v3852_v10  ;;  %3710 = vmatprep.mubr.msk.bf16.mxu1 %vm1082_vm0, %v3853_v11 }
  0xa7   : > { %3583 = vmatmul.mubr.msk.bf16.gmra.mxu0 %vm1082_vm0, %v3854_v12  ;;  %3711 = vmatmul.mubr.msk.bf16.gmra.mxu1 %vm1082_vm0, %v3855_v13  ;;  %v3890_v13 = vld [vmem:[%s4460_s20 + $0x1b8] sm:$0xff]  }
  0xa8   : > { %3586 = vmatprep.mubr.msk.bf16.mxu0 %vm1082_vm0, %v3856_v14  ;;  %3714 = vmatprep.mubr.msk.bf16.mxu1 %vm1082_vm0, %v3857_v15  ;;  %v3891_v14 = vld [vmem:[%s4460_s20 + $0x3b8] sm:$0xff]  }
  0xaf   : > { %3587 = vmatmul.mubr.msk.bf16.gmra.mxu0 %vm1082_vm0, %v3858_v16  ;;  %3715 = vmatmul.mubr.msk.bf16.gmra.mxu1 %vm1082_vm0, %v3859_v17  ;;  %v3892_v16 = vld [vmem:[%s4460_s20 + $0x1c0] sm:$0xff]  }
  0xb0   : > { %3590 = vmatprep.mubr.msk.bf16.mxu0 %vm1082_vm0, %v3860_v18  ;;  %3718 = vmatprep.mubr.msk.bf16.mxu1 %vm1082_vm0, %v3861_v19  ;;  %v3893_v17 = vld [vmem:[%s4460_s20 + $0x3c0] sm:$0xff]  }
  0xb7   : > { %3591 = vmatmul.mubr.msk.bf16.gmra.mxu0 %vm1082_vm0, %v3862_v20  ;;  %3719 = vmatmul.mubr.msk.bf16.gmra.mxu1 %vm1082_vm0, %v3863_v21 }
  0xb8   : > { %3594 = vmatprep.mubr.msk.bf16.mxu0 %vm1082_vm0, %v3864_v22  ;;  %3722 = vmatprep.mubr.msk.bf16.mxu1 %vm1082_vm0, %v3865_v23 }
  0xbf   : > { %3595 = vmatmul.mubr.msk.bf16.gmra.mxu0 %vm1082_vm0, %v3866_v24  ;;  %3723 = vmatmul.mubr.msk.bf16.gmra.mxu1 %vm1082_vm0, %v3867_v25 }
  0xc0   : > { %3598 = vmatprep.mubr.msk.bf16.mxu0 %vm1082_vm0, %v3868_v26  ;;  %3726 = vmatprep.mubr.msk.bf16.mxu1 %vm1082_vm0, %v3869_v27 }
  0xc7   : > { %3599 = vmatmul.mubr.msk.bf16.gmra.mxu0 %vm1082_vm0, %v3870_v28  ;;  %3727 = vmatmul.mubr.msk.bf16.gmra.mxu1 %vm1082_vm0, %v3871_v29 }
  0xc8   : > { %3602 = vmatprep.mubr.msk.bf16.mxu0 %vm1082_vm0, %v3872_v30  ;;  %3730 = vmatprep.mubr.msk.bf16.mxu1 %vm1082_vm0, %v3873_v31 }
  0xcf   : > { %3603 = vmatmul.mubr.msk.bf16.gmra.mxu0 %vm1082_vm0, %v3874_v32  ;;  %3731 = vmatmul.mubr.msk.bf16.gmra.mxu1 %vm1082_vm0, %v3875_v33  ;;  %v3894_v33 = vld [vmem:[%s4460_s20 + $0x1c8] sm:$0xff]  }
  0xd0   : > { %3606 = vmatprep.mubr.msk.bf16.mxu0 %vm1082_vm0, %v3876_v34  ;;  %3734 = vmatprep.mubr.msk.bf16.mxu1 %vm1082_vm0, %v3877_v35  ;;  %v3895_v34 = vld [vmem:[%s4460_s20 + $0x3c8] sm:$0xff]  }
  0xd7   : > { %v3512_v40 = vpop.f32.mrf.mxu0  ;;  %3607 = vmatmul.mubr.msk.bf16.gmra.mxu0 %vm1082_vm0, %v3878_v36  ;;  %v3640_v41 = vpop.f32.mrf.mxu1  ;;  %3735 = vmatmul.mubr.msk.bf16.gmra.mxu1 %vm1082_vm0, %v3879_v37  ;;  %v3896_v36 = vld [vmem:[%s4460_s20 + $0x1d0] sm:$0xff]  }
  0xd8   : > { %3908 = vtanh.f32 %v3512_v40  ;;  %3610 = vmatprep.mubr.msk.bf16.mxu0 %vm1082_vm0, %v3880_v38  ;;  %3738 = vmatprep.mubr.msk.bf16.mxu1 %vm1082_vm0, %v3881_v39  ;;  %v3897_v37 = vld [vmem:[%s4460_s20 + $0x3d0] sm:$0xff]  }
  0xd9   : > { %3910 = vtanh.f32 %v3640_v41  ;;  %v1501_v42 = vpop.f32.mrf.mxu0  ;;  %v2013_v43 = vpop.f32.mrf.mxu1 }
  0xda   : > { %3912 = vtanh.f32 %v1501_v42 }
  0xdb   : > { %3914 = vtanh.f32 %v2013_v43  ;;  %v3513_v44 = vpop.f32.mrf.mxu0  ;;  %v3641_v45 = vpop.f32.mrf.mxu1 }
  0xdc   : > { %3916 = vtanh.f32 %v3513_v44 }
  0xdd   : > { %3918 = vtanh.f32 %v3641_v45  ;;  %v1504_v50 = vpop.f32.mrf.mxu0  ;;  %v2016_v51 = vpop.f32.mrf.mxu1 }
  0xde   : > { %3920 = vtanh.f32 %v1504_v50 }
  0xdf   : > { %3922 = vtanh.f32 %v2016_v51  ;;  %v3516_v52 = vpop.f32.mrf.mxu0  ;;  %3611 = vmatmul.mubr.msk.bf16.gmra.mxu0 %vm1082_vm0, %v3882_v46  ;;  %v3644_v53 = vpop.f32.mrf.mxu1  ;;  %3739 = vmatmul.mubr.msk.bf16.gmra.mxu1 %vm1082_vm0, %v3883_v47 }
  0xe0   : > { %3924 = vtanh.f32 %v3516_v52  ;;  %3614 = vmatprep.mubr.msk.bf16.mxu0 %vm1082_vm0, %v3884_v48  ;;  %3742 = vmatprep.mubr.msk.bf16.mxu1 %vm1082_vm0, %v3885_v49 }
  0xe1   : > { %3926 = vtanh.f32 %v3644_v53  ;;  %v1517_v54 = vpop.f32.mrf.mxu0  ;;  %v2029_v55 = vpop.f32.mrf.mxu1  ;;  %v3898_v53 = vld [vmem:[%s4460_s20 + $0x1d8] sm:$0xff]  }
  0xe2   : > { %3928 = vtanh.f32 %v1517_v54  ;;  %v3899_v54 = vld [vmem:[%s4460_s20 + $0x3d8] sm:$0xff]  }
  0xe3   : > { %3930 = vtanh.f32 %v2029_v55  ;;  %v3517_v56 = vpop.f32.mrf.mxu0  ;;  %v3645_v57 = vpop.f32.mrf.mxu1 }
  0xe4   : > { %3932 = vtanh.f32 %v3517_v56  ;;  %v3900_v56 = vld [vmem:[%s4460_s20 + $0x1e0] sm:$0xff]  }
  0xe5   : > { %v3909_v62 = vpop.eup %3908  ;;  %3934 = vtanh.f32 %v3645_v57  ;;  %v1520_v63 = vpop.f32.mrf.mxu0  ;;  %v3901_v57 = vld [vmem:[%s4460_s20 + $0x3e0] sm:$0xff]  }
  0xe6   : > { %v2032_v0 = vpop.f32.mrf.mxu1  ;;  %v3911_v1 = vpop.eup %3910  ;;  %2783 = vst.msk [vmem:[%s4678_s24 + $0x10] sm:$0xff] %vm2780_vm1, %v3909_v62  ;;  %3936 = vtanh.f32 %v1520_v63 }
  0xe7   : > { %v3913_v2 = vpop.eup %3912  ;;  %2911 = vst.msk [vmem:[%s4678_s24 + $0x410] sm:$0xff] %vm2780_vm1, %v3911_v1  ;;  %3938 = vtanh.f32 %v2032_v0  ;;  %v3520_v3 = vpop.f32.mrf.mxu0  ;;  %3615 = vmatmul.mubr.msk.bf16.gmra.mxu0 %vm1082_vm0, %v3886_v58  ;;  %3743 = vmatmul.mubr.msk.bf16.gmra.mxu1 %vm1082_vm0, %v3887_v59 }
  0xe8   : > { %v3648_v4 = vpop.f32.mrf.mxu1  ;;  %v3915_v5 = vpop.eup %3914  ;;  %2781 = vst.msk [vmem:[%s4678_s24] sm:$0xff] %vm2780_vm1, %v3913_v2  ;;  %3940 = vtanh.f32 %v3520_v3  ;;  %3618 = vmatprep.mubr.msk.bf16.mxu0 %vm1082_vm0, %v3888_v60  ;;  %3746 = vmatprep.mubr.msk.bf16.mxu1 %vm1082_vm0, %v3889_v61 }
  0xe9   : > { %v3917_v6 = vpop.eup %3916  ;;  %2909 = vst.msk [vmem:[%s4678_s24 + $0x400] sm:$0xff] %vm2780_vm1, %v3915_v5  ;;  %3942 = vtanh.f32 %v3648_v4  ;;  %v1533_v7 = vpop.f32.mrf.mxu0 }
  0xea   : > { %v2045_v8 = vpop.f32.mrf.mxu1  ;;  %v3919_v9 = vpop.eup %3918  ;;  %2784 = vst.msk [vmem:[%s4678_s24 + $0x18] sm:$0xff] %vm2780_vm1, %v3917_v6  ;;  %3944 = vtanh.f32 %v1533_v7 }
  0xeb   : > { %v3921_v10 = vpop.eup %3920  ;;  %2912 = vst.msk [vmem:[%s4678_s24 + $0x418] sm:$0xff] %vm2780_vm1, %v3919_v9  ;;  %3946 = vtanh.f32 %v2045_v8  ;;  %v3521_v11 = vpop.f32.mrf.mxu0  ;;  %v3902_v9 = vld [vmem:[%s4460_s20 + $0x1e8] sm:$0xff]  }
  0xec   : > { %v3649_v12 = vpop.f32.mrf.mxu1  ;;  %v3923_v15 = vpop.eup %3922  ;;  %2782 = vst.msk [vmem:[%s4678_s24 + $0x8] sm:$0xff] %vm2780_vm1, %v3921_v10  ;;  %3948 = vtanh.f32 %v3521_v11  ;;  %v3903_v10 = vld [vmem:[%s4460_s20 + $0x3e8] sm:$0xff]  }
  0xed   : > { %v3925_v18 = vpop.eup %3924  ;;  %2910 = vst.msk [vmem:[%s4678_s24 + $0x408] sm:$0xff] %vm2780_vm1, %v3923_v15  ;;  %3950 = vtanh.f32 %v3649_v12  ;;  %v1536_v19 = vpop.f32.mrf.mxu0  ;;  %v3904_v12 = vld [vmem:[%s4460_s20 + $0x1f0] sm:$0xff]  }
  0xee   : > { %v2048_v20 = vpop.f32.mrf.mxu1  ;;  %v3927_v21 = vpop.eup %3926  ;;  %2787 = vst.msk [vmem:[%s4678_s24 + $0x30] sm:$0xff] %vm2780_vm1, %v3925_v18  ;;  %3952 = vtanh.f32 %v1536_v19 }
  0xef   : > { %v3929_v22 = vpop.eup %3928  ;;  %2915 = vst.msk [vmem:[%s4678_s24 + $0x430] sm:$0xff] %vm2780_vm1, %v3927_v21  ;;  %3954 = vtanh.f32 %v2048_v20  ;;  %v3524_v23 = vpop.f32.mrf.mxu0  ;;  %3619 = vmatmul.mubr.msk.bf16.gmra.mxu0 %vm1082_vm0, %v3890_v13  ;;  %3747 = vmatmul.mubr.msk.bf16.gmra.mxu1 %vm1082_vm0, %v3891_v14  ;;  %v3905_v13 = vld [vmem:[%s4460_s20 + $0x3f0] sm:$0xff]  }
  0xf0   : > { %v3652_v24 = vpop.f32.mrf.mxu1  ;;  %v3931_v25 = vpop.eup %3930  ;;  %2785 = vst.msk [vmem:[%s4678_s24 + $0x20] sm:$0xff] %vm2780_vm1, %v3929_v22  ;;  %3956 = vtanh.f32 %v3524_v23  ;;  %3622 = vmatprep.mubr.msk.bf16.mxu0 %vm1082_vm0, %v3892_v16  ;;  %3750 = vmatprep.mubr.msk.bf16.mxu1 %vm1082_vm0, %v3893_v17 }
  0xf1   : > { %v3933_v26 = vpop.eup %3932  ;;  %2913 = vst.msk [vmem:[%s4678_s24 + $0x420] sm:$0xff] %vm2780_vm1, %v3931_v25  ;;  %3958 = vtanh.f32 %v3652_v24  ;;  %v1549_v27 = vpop.f32.mrf.mxu0 }
  0xf2   : > { %v2061_v28 = vpop.f32.mrf.mxu1  ;;  %v3935_v29 = vpop.eup %3934  ;;  %2788 = vst.msk [vmem:[%s4678_s24 + $0x38] sm:$0xff] %vm2780_vm1, %v3933_v26  ;;  %3960 = vtanh.f32 %v1549_v27 }
  0xf3   : > { %v3937_v30 = vpop.eup %3936  ;;  %2916 = vst.msk [vmem:[%s4678_s24 + $0x438] sm:$0xff] %vm2780_vm1, %v3935_v29  ;;  %3962 = vtanh.f32 %v2061_v28  ;;  %v3525_v31 = vpop.f32.mrf.mxu0  ;;  %v3906_v29 = vld [vmem:[%s4460_s20 + $0x1f8] sm:$0xff]  }
  0xf4   : > { %v3653_v32 = vpop.f32.mrf.mxu1  ;;  %v3939_v35 = vpop.eup %3938  ;;  %2786 = vst.msk [vmem:[%s4678_s24 + $0x28] sm:$0xff] %vm2780_vm1, %v3937_v30  ;;  %3964 = vtanh.f32 %v3525_v31  ;;  %v3907_v30 = vld [vmem:[%s4460_s20 + $0x3f8] sm:$0xff]  }
  0xf5   : > { %v3941_v38 = vpop.eup %3940  ;;  %2914 = vst.msk [vmem:[%s4678_s24 + $0x428] sm:$0xff] %vm2780_vm1, %v3939_v35  ;;  %3966 = vtanh.f32 %v3653_v32  ;;  %v1552_v39 = vpop.f32.mrf.mxu0 }
  0xf6   : > { %v2064_v40 = vpop.f32.mrf.mxu1  ;;  %v3943_v41 = vpop.eup %3942  ;;  %2791 = vst.msk [vmem:[%s4678_s24 + $0x50] sm:$0xff] %vm2780_vm1, %v3941_v38  ;;  %3968 = vtanh.f32 %v1552_v39 }
  0xf7   : > { %v3945_v42 = vpop.eup %3944  ;;  %2919 = vst.msk [vmem:[%s4678_s24 + $0x450] sm:$0xff] %vm2780_vm1, %v3943_v41  ;;  %3970 = vtanh.f32 %v2064_v40  ;;  %v3528_v43 = vpop.f32.mrf.mxu0  ;;  %3623 = vmatmul.mubr.msk.bf16.gmra.mxu0 %vm1082_vm0, %v3894_v33  ;;  %3751 = vmatmul.mubr.msk.bf16.gmra.mxu1 %vm1082_vm0, %v3895_v34 }
  0xf8   : > { %v3656_v44 = vpop.f32.mrf.mxu1  ;;  %v3947_v45 = vpop.eup %3946  ;;  %2789 = vst.msk [vmem:[%s4678_s24 + $0x40] sm:$0xff] %vm2780_vm1, %v3945_v42  ;;  %3972 = vtanh.f32 %v3528_v43  ;;  %3626 = vmatprep.mubr.msk.bf16.mxu0 %vm1082_vm0, %v3896_v36  ;;  %3754 = vmatprep.mubr.msk.bf16.mxu1 %vm1082_vm0, %v3897_v37 }
  0xf9   : > { %v3949_v46 = vpop.eup %3948  ;;  %2917 = vst.msk [vmem:[%s4678_s24 + $0x440] sm:$0xff] %vm2780_vm1, %v3947_v45  ;;  %3974 = vtanh.f32 %v3656_v44  ;;  %v1565_v47 = vpop.f32.mrf.mxu0 }
  0xfa   : > { %v2077_v48 = vpop.f32.mrf.mxu1  ;;  %v3951_v49 = vpop.eup %3950  ;;  %2792 = vst.msk [vmem:[%s4678_s24 + $0x58] sm:$0xff] %vm2780_vm1, %v3949_v46  ;;  %3976 = vtanh.f32 %v1565_v47 }
  0xfb   : > { %v3953_v50 = vpop.eup %3952  ;;  %2920 = vst.msk [vmem:[%s4678_s24 + $0x458] sm:$0xff] %vm2780_vm1, %v3951_v49  ;;  %3978 = vtanh.f32 %v2077_v48  ;;  %v3529_v51 = vpop.f32.mrf.mxu0 }
  0xfc   : > { %v3657_v52 = vpop.f32.mrf.mxu1  ;;  %v3955_v55 = vpop.eup %3954  ;;  %2790 = vst.msk [vmem:[%s4678_s24 + $0x48] sm:$0xff] %vm2780_vm1, %v3953_v50  ;;  %3980 = vtanh.f32 %v3529_v51 }
  0xfd   : > { %v3957_v58 = vpop.eup %3956  ;;  %2918 = vst.msk [vmem:[%s4678_s24 + $0x448] sm:$0xff] %vm2780_vm1, %v3955_v55  ;;  %3982 = vtanh.f32 %v3657_v52  ;;  %v1568_v59 = vpop.f32.mrf.mxu0 }
  0xfe   : > { %v2080_v60 = vpop.f32.mrf.mxu1  ;;  %v3959_v61 = vpop.eup %3958  ;;  %2795 = vst.msk [vmem:[%s4678_s24 + $0x70] sm:$0xff] %vm2780_vm1, %v3957_v58  ;;  %3984 = vtanh.f32 %v1568_v59 }
  0xff   : > { %v3961_v62 = vpop.eup %3960  ;;  %2923 = vst.msk [vmem:[%s4678_s24 + $0x470] sm:$0xff] %vm2780_vm1, %v3959_v61  ;;  %3986 = vtanh.f32 %v2080_v60  ;;  %v3532_v63 = vpop.f32.mrf.mxu0  ;;  %3627 = vmatmul.mubr.msk.bf16.gmra.mxu0 %vm1082_vm0, %v3898_v53  ;;  %3755 = vmatmul.mubr.msk.bf16.gmra.mxu1 %vm1082_vm0, %v3899_v54 }
 0x100   : > { %v3660_v0 = vpop.f32.mrf.mxu1  ;;  %v3963_v1 = vpop.eup %3962  ;;  %2793 = vst.msk [vmem:[%s4678_s24 + $0x60] sm:$0xff] %vm2780_vm1, %v3961_v62  ;;  %3988 = vtanh.f32 %v3532_v63  ;;  %3630 = vmatprep.mubr.msk.bf16.mxu0 %vm1082_vm0, %v3900_v56  ;;  %3758 = vmatprep.mubr.msk.bf16.mxu1 %vm1082_vm0, %v3901_v57 }
 0x101   : > { %v3965_v2 = vpop.eup %3964  ;;  %2921 = vst.msk [vmem:[%s4678_s24 + $0x460] sm:$0xff] %vm2780_vm1, %v3963_v1  ;;  %3990 = vtanh.f32 %v3660_v0  ;;  %v1581_v3 = vpop.f32.mrf.mxu0 }
 0x102   : > { %v2093_v4 = vpop.f32.mrf.mxu1  ;;  %v3967_v5 = vpop.eup %3966  ;;  %2796 = vst.msk [vmem:[%s4678_s24 + $0x78] sm:$0xff] %vm2780_vm1, %v3965_v2  ;;  %3992 = vtanh.f32 %v1581_v3 }
 0x103   : > { %v3969_v6 = vpop.eup %3968  ;;  %2924 = vst.msk [vmem:[%s4678_s24 + $0x478] sm:$0xff] %vm2780_vm1, %v3967_v5  ;;  %3994 = vtanh.f32 %v2093_v4  ;;  %v3533_v7 = vpop.f32.mrf.mxu0 }
 0x104   : > { %v3661_v8 = vpop.f32.mrf.mxu1  ;;  %v3971_v11 = vpop.eup %3970  ;;  %2794 = vst.msk [vmem:[%s4678_s24 + $0x68] sm:$0xff] %vm2780_vm1, %v3969_v6  ;;  %3996 = vtanh.f32 %v3533_v7 }
 0x105   : > { %v3973_v14 = vpop.eup %3972  ;;  %2922 = vst.msk [vmem:[%s4678_s24 + $0x468] sm:$0xff] %vm2780_vm1, %v3971_v11  ;;  %3998 = vtanh.f32 %v3661_v8  ;;  %v1584_v15 = vpop.f32.mrf.mxu0 }
 0x106   : > { %v2096_v16 = vpop.f32.mrf.mxu1  ;;  %v3975_v17 = vpop.eup %3974  ;;  %2799 = vst.msk [vmem:[%s4678_s24 + $0x90] sm:$0xff] %vm2780_vm1, %v3973_v14  ;;  %4000 = vtanh.f32 %v1584_v15 }
 0x107   : > { %v3977_v18 = vpop.eup %3976  ;;  %2927 = vst.msk [vmem:[%s4678_s24 + $0x490] sm:$0xff] %vm2780_vm1, %v3975_v17  ;;  %4002 = vtanh.f32 %v2096_v16  ;;  %v3536_v19 = vpop.f32.mrf.mxu0  ;;  %3631 = vmatmul.mubr.msk.bf16.gmra.mxu0 %vm1082_vm0, %v3902_v9  ;;  %3759 = vmatmul.mubr.msk.bf16.gmra.mxu1 %vm1082_vm0, %v3903_v10 }
 0x108   : > { %v3664_v20 = vpop.f32.mrf.mxu1  ;;  %v3979_v21 = vpop.eup %3978  ;;  %2797 = vst.msk [vmem:[%s4678_s24 + $0x80] sm:$0xff] %vm2780_vm1, %v3977_v18  ;;  %4004 = vtanh.f32 %v3536_v19  ;;  %3634 = vmatprep.mubr.msk.bf16.mxu0 %vm1082_vm0, %v3904_v12  ;;  %3762 = vmatprep.mubr.msk.bf16.mxu1 %vm1082_vm0, %v3905_v13 }
 0x109   : > { %v3981_v22 = vpop.eup %3980  ;;  %2925 = vst.msk [vmem:[%s4678_s24 + $0x480] sm:$0xff] %vm2780_vm1, %v3979_v21  ;;  %4006 = vtanh.f32 %v3664_v20  ;;  %v1597_v23 = vpop.f32.mrf.mxu0 }
 0x10a   : > { %v2109_v24 = vpop.f32.mrf.mxu1  ;;  %v3983_v25 = vpop.eup %3982  ;;  %2800 = vst.msk [vmem:[%s4678_s24 + $0x98] sm:$0xff] %vm2780_vm1, %v3981_v22  ;;  %4008 = vtanh.f32 %v1597_v23 }
 0x10b   : > { %v3985_v26 = vpop.eup %3984  ;;  %2928 = vst.msk [vmem:[%s4678_s24 + $0x498] sm:$0xff] %vm2780_vm1, %v3983_v25  ;;  %4010 = vtanh.f32 %v2109_v24  ;;  %v3537_v27 = vpop.f32.mrf.mxu0 }
 0x10c   : > { %v3665_v28 = vpop.f32.mrf.mxu1  ;;  %v3987_v31 = vpop.eup %3986  ;;  %2798 = vst.msk [vmem:[%s4678_s24 + $0x88] sm:$0xff] %vm2780_vm1, %v3985_v26  ;;  %4012 = vtanh.f32 %v3537_v27 }
 0x10d   : > { %v3989_v32 = vpop.eup %3988  ;;  %2926 = vst.msk [vmem:[%s4678_s24 + $0x488] sm:$0xff] %vm2780_vm1, %v3987_v31  ;;  %4014 = vtanh.f32 %v3665_v28  ;;  %v1600_v33 = vpop.f32.mrf.mxu0 }
 0x10e   : > { %v2112_v34 = vpop.f32.mrf.mxu1  ;;  %v3991_v35 = vpop.eup %3990  ;;  %2803 = vst.msk [vmem:[%s4678_s24 + $0xb0] sm:$0xff] %vm2780_vm1, %v3989_v32  ;;  %4016 = vtanh.f32 %v1600_v33 }
 0x10f   : > { %v3993_v36 = vpop.eup %3992  ;;  %2931 = vst.msk [vmem:[%s4678_s24 + $0x4b0] sm:$0xff] %vm2780_vm1, %v3991_v35  ;;  %4018 = vtanh.f32 %v2112_v34  ;;  %v3540_v37 = vpop.f32.mrf.mxu0  ;;  %3635 = vmatmul.mubr.msk.bf16.gmra.mxu0 %vm1082_vm0, %v3906_v29  ;;  %3763 = vmatmul.mubr.msk.bf16.gmra.mxu1 %vm1082_vm0, %v3907_v30 }
 0x110   : > { %v3668_v38 = vpop.f32.mrf.mxu1  ;;  %v3995_v39 = vpop.eup %3994  ;;  %2801 = vst.msk [vmem:[%s4678_s24 + $0xa0] sm:$0xff] %vm2780_vm1, %v3993_v36  ;;  %4020 = vtanh.f32 %v3540_v37 }
 0x111   : > { %v3997_v40 = vpop.eup %3996  ;;  %2929 = vst.msk [vmem:[%s4678_s24 + $0x4a0] sm:$0xff] %vm2780_vm1, %v3995_v39  ;;  %4022 = vtanh.f32 %v3668_v38  ;;  %v1613_v41 = vpop.f32.mrf.mxu0 }
 0x112   : > { %v2125_v42 = vpop.f32.mrf.mxu1  ;;  %v3999_v43 = vpop.eup %3998  ;;  %2804 = vst.msk [vmem:[%s4678_s24 + $0xb8] sm:$0xff] %vm2780_vm1, %v3997_v40  ;;  %4024 = vtanh.f32 %v1613_v41 }
 0x113   : > { %v4001_v44 = vpop.eup %4000  ;;  %2932 = vst.msk [vmem:[%s4678_s24 + $0x4b8] sm:$0xff] %vm2780_vm1, %v3999_v43  ;;  %4026 = vtanh.f32 %v2125_v42  ;;  %v3541_v45 = vpop.f32.mrf.mxu0 }
 0x114   : > { %v3669_v46 = vpop.f32.mrf.mxu1  ;;  %v4003_v47 = vpop.eup %4002  ;;  %2802 = vst.msk [vmem:[%s4678_s24 + $0xa8] sm:$0xff] %vm2780_vm1, %v4001_v44  ;;  %4028 = vtanh.f32 %v3541_v45 }
 0x115   : > { %v4005_v48 = vpop.eup %4004  ;;  %2930 = vst.msk [vmem:[%s4678_s24 + $0x4a8] sm:$0xff] %vm2780_vm1, %v4003_v47  ;;  %4030 = vtanh.f32 %v3669_v46  ;;  %v1616_v49 = vpop.f32.mrf.mxu0 }
 0x116   : > { %v2128_v50 = vpop.f32.mrf.mxu1  ;;  %v4007_v51 = vpop.eup %4006  ;;  %2807 = vst.msk [vmem:[%s4678_s24 + $0xd0] sm:$0xff] %vm2780_vm1, %v4005_v48  ;;  %4032 = vtanh.f32 %v1616_v49 }
 0x117   : > { %v4009_v52 = vpop.eup %4008  ;;  %2935 = vst.msk [vmem:[%s4678_s24 + $0x4d0] sm:$0xff] %vm2780_vm1, %v4007_v51  ;;  %4034 = vtanh.f32 %v2128_v50  ;;  %v3544_v53 = vpop.f32.mrf.mxu0 }
 0x118   : > { %v3672_v54 = vpop.f32.mrf.mxu1  ;;  %v4011_v55 = vpop.eup %4010  ;;  %2805 = vst.msk [vmem:[%s4678_s24 + $0xc0] sm:$0xff] %vm2780_vm1, %v4009_v52  ;;  %4036 = vtanh.f32 %v3544_v53 }
 0x119   : > { %v4013_v56 = vpop.eup %4012  ;;  %2933 = vst.msk [vmem:[%s4678_s24 + $0x4c0] sm:$0xff] %vm2780_vm1, %v4011_v55  ;;  %4038 = vtanh.f32 %v3672_v54  ;;  %v1629_v57 = vpop.f32.mrf.mxu0 }
 0x11a   : > { %v2141_v58 = vpop.f32.mrf.mxu1  ;;  %v4015_v59 = vpop.eup %4014  ;;  %2808 = vst.msk [vmem:[%s4678_s24 + $0xd8] sm:$0xff] %vm2780_vm1, %v4013_v56  ;;  %4040 = vtanh.f32 %v1629_v57 }
 0x11b   : > { %v4017_v60 = vpop.eup %4016  ;;  %2936 = vst.msk [vmem:[%s4678_s24 + $0x4d8] sm:$0xff] %vm2780_vm1, %v4015_v59  ;;  %4042 = vtanh.f32 %v2141_v58  ;;  %v3545_v61 = vpop.f32.mrf.mxu0 }
 0x11c   : > { %v3673_v62 = vpop.f32.mrf.mxu1  ;;  %v4019_v63 = vpop.eup %4018  ;;  %2806 = vst.msk [vmem:[%s4678_s24 + $0xc8] sm:$0xff] %vm2780_vm1, %v4017_v60  ;;  %4044 = vtanh.f32 %v3545_v61 }
 0x11d   : > { %v4021_v0 = vpop.eup %4020  ;;  %2934 = vst.msk [vmem:[%s4678_s24 + $0x4c8] sm:$0xff] %vm2780_vm1, %v4019_v63  ;;  %4046 = vtanh.f32 %v3673_v62  ;;  %v1632_v1 = vpop.f32.mrf.mxu0 }
 0x11e   : > { %v2144_v2 = vpop.f32.mrf.mxu1  ;;  %v4023_v3 = vpop.eup %4022  ;;  %2811 = vst.msk [vmem:[%s4678_s24 + $0xf0] sm:$0xff] %vm2780_vm1, %v4021_v0  ;;  %4048 = vtanh.f32 %v1632_v1 }
 0x11f   : > { %v4025_v4 = vpop.eup %4024  ;;  %2939 = vst.msk [vmem:[%s4678_s24 + $0x4f0] sm:$0xff] %vm2780_vm1, %v4023_v3  ;;  %4050 = vtanh.f32 %v2144_v2  ;;  %v3548_v5 = vpop.f32.mrf.mxu0 }
 0x120   : > { %v3676_v6 = vpop.f32.mrf.mxu1  ;;  %v4027_v7 = vpop.eup %4026  ;;  %2809 = vst.msk [vmem:[%s4678_s24 + $0xe0] sm:$0xff] %vm2780_vm1, %v4025_v4  ;;  %4052 = vtanh.f32 %v3548_v5 }
 0x121   : > { %v4029_v8 = vpop.eup %4028  ;;  %2937 = vst.msk [vmem:[%s4678_s24 + $0x4e0] sm:$0xff] %vm2780_vm1, %v4027_v7  ;;  %4054 = vtanh.f32 %v3676_v6  ;;  %v1645_v9 = vpop.f32.mrf.mxu0 }
 0x122   : > { %v2157_v10 = vpop.f32.mrf.mxu1  ;;  %v4031_v11 = vpop.eup %4030  ;;  %2812 = vst.msk [vmem:[%s4678_s24 + $0xf8] sm:$0xff] %vm2780_vm1, %v4029_v8  ;;  %4056 = vtanh.f32 %v1645_v9 }
 0x123   : > { %v4033_v12 = vpop.eup %4032  ;;  %2940 = vst.msk [vmem:[%s4678_s24 + $0x4f8] sm:$0xff] %vm2780_vm1, %v4031_v11  ;;  %4058 = vtanh.f32 %v2157_v10  ;;  %v3549_v13 = vpop.f32.mrf.mxu0 }
 0x124   : > { %v3677_v14 = vpop.f32.mrf.mxu1  ;;  %v4035_v15 = vpop.eup %4034  ;;  %2810 = vst.msk [vmem:[%s4678_s24 + $0xe8] sm:$0xff] %vm2780_vm1, %v4033_v12  ;;  %4060 = vtanh.f32 %v3549_v13 }
 0x125   : > { %v4037_v16 = vpop.eup %4036  ;;  %2938 = vst.msk [vmem:[%s4678_s24 + $0x4e8] sm:$0xff] %vm2780_vm1, %v4035_v15  ;;  %4062 = vtanh.f32 %v3677_v14  ;;  %v1648_v17 = vpop.f32.mrf.mxu0 }
 0x126   : > { %v2160_v18 = vpop.f32.mrf.mxu1  ;;  %v4039_v19 = vpop.eup %4038  ;;  %2815 = vst.msk [vmem:[%s4678_s24 + $0x110] sm:$0xff] %vm2780_vm1, %v4037_v16  ;;  %4064 = vtanh.f32 %v1648_v17 }
 0x127   : > { %v4041_v20 = vpop.eup %4040  ;;  %2943 = vst.msk [vmem:[%s4678_s24 + $0x510] sm:$0xff] %vm2780_vm1, %v4039_v19  ;;  %4066 = vtanh.f32 %v2160_v18  ;;  %v3552_v21 = vpop.f32.mrf.mxu0 }
 0x128   : > { %v3680_v22 = vpop.f32.mrf.mxu1  ;;  %v4043_v23 = vpop.eup %4042  ;;  %2813 = vst.msk [vmem:[%s4678_s24 + $0x100] sm:$0xff] %vm2780_vm1, %v4041_v20  ;;  %4068 = vtanh.f32 %v3552_v21 }
 0x129   : > { %v4045_v24 = vpop.eup %4044  ;;  %2941 = vst.msk [vmem:[%s4678_s24 + $0x500] sm:$0xff] %vm2780_vm1, %v4043_v23  ;;  %4070 = vtanh.f32 %v3680_v22  ;;  %v1661_v25 = vpop.f32.mrf.mxu0 }
 0x12a   : > { %v2173_v26 = vpop.f32.mrf.mxu1  ;;  %v4047_v27 = vpop.eup %4046  ;;  %2816 = vst.msk [vmem:[%s4678_s24 + $0x118] sm:$0xff] %vm2780_vm1, %v4045_v24  ;;  %4072 = vtanh.f32 %v1661_v25 }
 0x12b   : > { %v4049_v28 = vpop.eup %4048  ;;  %2944 = vst.msk [vmem:[%s4678_s24 + $0x518] sm:$0xff] %vm2780_vm1, %v4047_v27  ;;  %4074 = vtanh.f32 %v2173_v26  ;;  %v3553_v29 = vpop.f32.mrf.mxu0 }
 0x12c   : > { %v3681_v30 = vpop.f32.mrf.mxu1  ;;  %v4051_v31 = vpop.eup %4050  ;;  %2814 = vst.msk [vmem:[%s4678_s24 + $0x108] sm:$0xff] %vm2780_vm1, %v4049_v28  ;;  %4076 = vtanh.f32 %v3553_v29 }
 0x12d   : > { %v4053_v32 = vpop.eup %4052  ;;  %2942 = vst.msk [vmem:[%s4678_s24 + $0x508] sm:$0xff] %vm2780_vm1, %v4051_v31  ;;  %4078 = vtanh.f32 %v3681_v30  ;;  %v1664_v33 = vpop.f32.mrf.mxu0 }
 0x12e   : > { %v2176_v34 = vpop.f32.mrf.mxu1  ;;  %v4055_v35 = vpop.eup %4054  ;;  %2819 = vst.msk [vmem:[%s4678_s24 + $0x130] sm:$0xff] %vm2780_vm1, %v4053_v32  ;;  %4080 = vtanh.f32 %v1664_v33 }
 0x12f   : > { %v4057_v36 = vpop.eup %4056  ;;  %2947 = vst.msk [vmem:[%s4678_s24 + $0x530] sm:$0xff] %vm2780_vm1, %v4055_v35  ;;  %4082 = vtanh.f32 %v2176_v34  ;;  %v3556_v37 = vpop.f32.mrf.mxu0 }
 0x130   : > { %v3684_v38 = vpop.f32.mrf.mxu1  ;;  %v4059_v39 = vpop.eup %4058  ;;  %2817 = vst.msk [vmem:[%s4678_s24 + $0x120] sm:$0xff] %vm2780_vm1, %v4057_v36  ;;  %4084 = vtanh.f32 %v3556_v37 }
 0x131   : > { %v4061_v40 = vpop.eup %4060  ;;  %2945 = vst.msk [vmem:[%s4678_s24 + $0x520] sm:$0xff] %vm2780_vm1, %v4059_v39  ;;  %4086 = vtanh.f32 %v3684_v38  ;;  %v1677_v41 = vpop.f32.mrf.mxu0 }
 0x132   : > { %v2189_v42 = vpop.f32.mrf.mxu1  ;;  %v4063_v43 = vpop.eup %4062  ;;  %2820 = vst.msk [vmem:[%s4678_s24 + $0x138] sm:$0xff] %vm2780_vm1, %v4061_v40  ;;  %4088 = vtanh.f32 %v1677_v41 }
 0x133   : > { %v4065_v44 = vpop.eup %4064  ;;  %2948 = vst.msk [vmem:[%s4678_s24 + $0x538] sm:$0xff] %vm2780_vm1, %v4063_v43  ;;  %4090 = vtanh.f32 %v2189_v42  ;;  %v3557_v45 = vpop.f32.mrf.mxu0 }
 0x134   : > { %v3685_v46 = vpop.f32.mrf.mxu1  ;;  %v4067_v47 = vpop.eup %4066  ;;  %2818 = vst.msk [vmem:[%s4678_s24 + $0x128] sm:$0xff] %vm2780_vm1, %v4065_v44  ;;  %4092 = vtanh.f32 %v3557_v45 }
 0x135   : > { %v4069_v48 = vpop.eup %4068  ;;  %2946 = vst.msk [vmem:[%s4678_s24 + $0x528] sm:$0xff] %vm2780_vm1, %v4067_v47  ;;  %4094 = vtanh.f32 %v3685_v46  ;;  %v1680_v49 = vpop.f32.mrf.mxu0 }
 0x136   : > { %v2192_v50 = vpop.f32.mrf.mxu1  ;;  %v4071_v51 = vpop.eup %4070  ;;  %2823 = vst.msk [vmem:[%s4678_s24 + $0x150] sm:$0xff] %vm2780_vm1, %v4069_v48  ;;  %4096 = vtanh.f32 %v1680_v49 }
 0x137   : > { %v4073_v52 = vpop.eup %4072  ;;  %2951 = vst.msk [vmem:[%s4678_s24 + $0x550] sm:$0xff] %vm2780_vm1, %v4071_v51  ;;  %4098 = vtanh.f32 %v2192_v50  ;;  %v3560_v53 = vpop.f32.mrf.mxu0 }
 0x138   : > { %v3688_v54 = vpop.f32.mrf.mxu1  ;;  %v4075_v55 = vpop.eup %4074  ;;  %2821 = vst.msk [vmem:[%s4678_s24 + $0x140] sm:$0xff] %vm2780_vm1, %v4073_v52  ;;  %4100 = vtanh.f32 %v3560_v53 }
 0x139   : > { %v4077_v56 = vpop.eup %4076  ;;  %2949 = vst.msk [vmem:[%s4678_s24 + $0x540] sm:$0xff] %vm2780_vm1, %v4075_v55  ;;  %4102 = vtanh.f32 %v3688_v54  ;;  %v1693_v57 = vpop.f32.mrf.mxu0 }
 0x13a   : > { %v2205_v58 = vpop.f32.mrf.mxu1  ;;  %v4079_v59 = vpop.eup %4078  ;;  %2824 = vst.msk [vmem:[%s4678_s24 + $0x158] sm:$0xff] %vm2780_vm1, %v4077_v56  ;;  %4104 = vtanh.f32 %v1693_v57 }
 0x13b   : > { %v4081_v60 = vpop.eup %4080  ;;  %2952 = vst.msk [vmem:[%s4678_s24 + $0x558] sm:$0xff] %vm2780_vm1, %v4079_v59  ;;  %4106 = vtanh.f32 %v2205_v58  ;;  %v3561_v61 = vpop.f32.mrf.mxu0 }
 0x13c   : > { %v3689_v62 = vpop.f32.mrf.mxu1  ;;  %v4083_v63 = vpop.eup %4082  ;;  %2822 = vst.msk [vmem:[%s4678_s24 + $0x148] sm:$0xff] %vm2780_vm1, %v4081_v60  ;;  %4108 = vtanh.f32 %v3561_v61 }
 0x13d   : > { %v4085_v0 = vpop.eup %4084  ;;  %2950 = vst.msk [vmem:[%s4678_s24 + $0x548] sm:$0xff] %vm2780_vm1, %v4083_v63  ;;  %4110 = vtanh.f32 %v3689_v62  ;;  %v1696_v1 = vpop.f32.mrf.mxu0 }
 0x13e   : > { %v2208_v2 = vpop.f32.mrf.mxu1  ;;  %v4087_v3 = vpop.eup %4086  ;;  %2827 = vst.msk [vmem:[%s4678_s24 + $0x170] sm:$0xff] %vm2780_vm1, %v4085_v0  ;;  %4112 = vtanh.f32 %v1696_v1 }
 0x13f   : > { %v4089_v4 = vpop.eup %4088  ;;  %2955 = vst.msk [vmem:[%s4678_s24 + $0x570] sm:$0xff] %vm2780_vm1, %v4087_v3  ;;  %4114 = vtanh.f32 %v2208_v2  ;;  %v3564_v5 = vpop.f32.mrf.mxu0 }
 0x140   : > { %v3692_v6 = vpop.f32.mrf.mxu1  ;;  %v4091_v7 = vpop.eup %4090  ;;  %2825 = vst.msk [vmem:[%s4678_s24 + $0x160] sm:$0xff] %vm2780_vm1, %v4089_v4  ;;  %4116 = vtanh.f32 %v3564_v5 }
 0x141   : > { %v4093_v8 = vpop.eup %4092  ;;  %2953 = vst.msk [vmem:[%s4678_s24 + $0x560] sm:$0xff] %vm2780_vm1, %v4091_v7  ;;  %4118 = vtanh.f32 %v3692_v6  ;;  %v1709_v9 = vpop.f32.mrf.mxu0 }
 0x142   : > { %v2221_v10 = vpop.f32.mrf.mxu1  ;;  %v4095_v11 = vpop.eup %4094  ;;  %2828 = vst.msk [vmem:[%s4678_s24 + $0x178] sm:$0xff] %vm2780_vm1, %v4093_v8  ;;  %4120 = vtanh.f32 %v1709_v9 }
 0x143   : > { %v4097_v12 = vpop.eup %4096  ;;  %2956 = vst.msk [vmem:[%s4678_s24 + $0x578] sm:$0xff] %vm2780_vm1, %v4095_v11  ;;  %4122 = vtanh.f32 %v2221_v10  ;;  %v3565_v13 = vpop.f32.mrf.mxu0 }
 0x144   : > { %v3693_v14 = vpop.f32.mrf.mxu1  ;;  %v4099_v15 = vpop.eup %4098  ;;  %2826 = vst.msk [vmem:[%s4678_s24 + $0x168] sm:$0xff] %vm2780_vm1, %v4097_v12  ;;  %4124 = vtanh.f32 %v3565_v13 }
 0x145   : > { %v4101_v16 = vpop.eup %4100  ;;  %2954 = vst.msk [vmem:[%s4678_s24 + $0x568] sm:$0xff] %vm2780_vm1, %v4099_v15  ;;  %4126 = vtanh.f32 %v3693_v14  ;;  %v1712_v17 = vpop.f32.mrf.mxu0 }
 0x146   : > { %v2224_v18 = vpop.f32.mrf.mxu1  ;;  %v4103_v19 = vpop.eup %4102  ;;  %2831 = vst.msk [vmem:[%s4678_s24 + $0x190] sm:$0xff] %vm2780_vm1, %v4101_v16  ;;  %4128 = vtanh.f32 %v1712_v17 }
 0x147   : > { %v4105_v20 = vpop.eup %4104  ;;  %2959 = vst.msk [vmem:[%s4678_s24 + $0x590] sm:$0xff] %vm2780_vm1, %v4103_v19  ;;  %4130 = vtanh.f32 %v2224_v18  ;;  %v3568_v21 = vpop.f32.mrf.mxu0 }
 0x148   : > { %v3696_v22 = vpop.f32.mrf.mxu1  ;;  %v4107_v23 = vpop.eup %4106  ;;  %2829 = vst.msk [vmem:[%s4678_s24 + $0x180] sm:$0xff] %vm2780_vm1, %v4105_v20  ;;  %4132 = vtanh.f32 %v3568_v21 }
 0x149   : > { %v4109_v24 = vpop.eup %4108  ;;  %2957 = vst.msk [vmem:[%s4678_s24 + $0x580] sm:$0xff] %vm2780_vm1, %v4107_v23  ;;  %4134 = vtanh.f32 %v3696_v22  ;;  %v1725_v25 = vpop.f32.mrf.mxu0 }
 0x14a   : > { %v2237_v26 = vpop.f32.mrf.mxu1  ;;  %v4111_v27 = vpop.eup %4110  ;;  %2832 = vst.msk [vmem:[%s4678_s24 + $0x198] sm:$0xff] %vm2780_vm1, %v4109_v24  ;;  %4136 = vtanh.f32 %v1725_v25 }
 0x14b   : > { %v4113_v28 = vpop.eup %4112  ;;  %2960 = vst.msk [vmem:[%s4678_s24 + $0x598] sm:$0xff] %vm2780_vm1, %v4111_v27  ;;  %4138 = vtanh.f32 %v2237_v26  ;;  %v3569_v29 = vpop.f32.mrf.mxu0 }
 0x14c   : > { %v3697_v30 = vpop.f32.mrf.mxu1  ;;  %v4115_v31 = vpop.eup %4114  ;;  %2830 = vst.msk [vmem:[%s4678_s24 + $0x188] sm:$0xff] %vm2780_vm1, %v4113_v28  ;;  %4140 = vtanh.f32 %v3569_v29 }
 0x14d   : > { %v4117_v32 = vpop.eup %4116  ;;  %2958 = vst.msk [vmem:[%s4678_s24 + $0x588] sm:$0xff] %vm2780_vm1, %v4115_v31  ;;  %4142 = vtanh.f32 %v3697_v30  ;;  %v1728_v33 = vpop.f32.mrf.mxu0 }
 0x14e   : > { %v2240_v34 = vpop.f32.mrf.mxu1  ;;  %v4119_v35 = vpop.eup %4118  ;;  %2835 = vst.msk [vmem:[%s4678_s24 + $0x1b0] sm:$0xff] %vm2780_vm1, %v4117_v32  ;;  %4144 = vtanh.f32 %v1728_v33 }
 0x14f   : > { %v4121_v36 = vpop.eup %4120  ;;  %2963 = vst.msk [vmem:[%s4678_s24 + $0x5b0] sm:$0xff] %vm2780_vm1, %v4119_v35  ;;  %4146 = vtanh.f32 %v2240_v34  ;;  %v3572_v37 = vpop.f32.mrf.mxu0 }
 0x150   : > { %v3700_v38 = vpop.f32.mrf.mxu1  ;;  %v4123_v39 = vpop.eup %4122  ;;  %2833 = vst.msk [vmem:[%s4678_s24 + $0x1a0] sm:$0xff] %vm2780_vm1, %v4121_v36  ;;  %4148 = vtanh.f32 %v3572_v37 }
 0x151   : > { %v4125_v40 = vpop.eup %4124  ;;  %2961 = vst.msk [vmem:[%s4678_s24 + $0x5a0] sm:$0xff] %vm2780_vm1, %v4123_v39  ;;  %4150 = vtanh.f32 %v3700_v38  ;;  %v1741_v41 = vpop.f32.mrf.mxu0 }
 0x152   : > { %v2253_v42 = vpop.f32.mrf.mxu1  ;;  %v4127_v43 = vpop.eup %4126  ;;  %2836 = vst.msk [vmem:[%s4678_s24 + $0x1b8] sm:$0xff] %vm2780_vm1, %v4125_v40  ;;  %4152 = vtanh.f32 %v1741_v41 }
 0x153   : > { %v4129_v44 = vpop.eup %4128  ;;  %2964 = vst.msk [vmem:[%s4678_s24 + $0x5b8] sm:$0xff] %vm2780_vm1, %v4127_v43  ;;  %4154 = vtanh.f32 %v2253_v42  ;;  %v3573_v45 = vpop.f32.mrf.mxu0 }
 0x154   : > { %v3701_v46 = vpop.f32.mrf.mxu1  ;;  %v4131_v47 = vpop.eup %4130  ;;  %2834 = vst.msk [vmem:[%s4678_s24 + $0x1a8] sm:$0xff] %vm2780_vm1, %v4129_v44  ;;  %4156 = vtanh.f32 %v3573_v45 }
 0x155   : > { %v4133_v48 = vpop.eup %4132  ;;  %2962 = vst.msk [vmem:[%s4678_s24 + $0x5a8] sm:$0xff] %vm2780_vm1, %v4131_v47  ;;  %4158 = vtanh.f32 %v3701_v46  ;;  %v1744_v49 = vpop.f32.mrf.mxu0 }
 0x156   : > { %v2256_v50 = vpop.f32.mrf.mxu1  ;;  %v4135_v51 = vpop.eup %4134  ;;  %2839 = vst.msk [vmem:[%s4678_s24 + $0x1d0] sm:$0xff] %vm2780_vm1, %v4133_v48  ;;  %4160 = vtanh.f32 %v1744_v49 }
 0x157   : > { %v4137_v52 = vpop.eup %4136  ;;  %2967 = vst.msk [vmem:[%s4678_s24 + $0x5d0] sm:$0xff] %vm2780_vm1, %v4135_v51  ;;  %4162 = vtanh.f32 %v2256_v50  ;;  %v3576_v53 = vpop.f32.mrf.mxu0 }
 0x158   : > { %v3704_v54 = vpop.f32.mrf.mxu1  ;;  %v4139_v55 = vpop.eup %4138  ;;  %2837 = vst.msk [vmem:[%s4678_s24 + $0x1c0] sm:$0xff] %vm2780_vm1, %v4137_v52  ;;  %4164 = vtanh.f32 %v3576_v53 }
 0x159   : > { %v4141_v56 = vpop.eup %4140  ;;  %2965 = vst.msk [vmem:[%s4678_s24 + $0x5c0] sm:$0xff] %vm2780_vm1, %v4139_v55  ;;  %4166 = vtanh.f32 %v3704_v54  ;;  %v1757_v57 = vpop.f32.mrf.mxu0 }
 0x15a   : > { %v2269_v58 = vpop.f32.mrf.mxu1  ;;  %v4143_v59 = vpop.eup %4142  ;;  %2840 = vst.msk [vmem:[%s4678_s24 + $0x1d8] sm:$0xff] %vm2780_vm1, %v4141_v56  ;;  %4168 = vtanh.f32 %v1757_v57 }
 0x15b   : > { %v4145_v60 = vpop.eup %4144  ;;  %2968 = vst.msk [vmem:[%s4678_s24 + $0x5d8] sm:$0xff] %vm2780_vm1, %v4143_v59  ;;  %4170 = vtanh.f32 %v2269_v58  ;;  %v3577_v61 = vpop.f32.mrf.mxu0 }
 0x15c   : > { %v3705_v62 = vpop.f32.mrf.mxu1  ;;  %v4147_v63 = vpop.eup %4146  ;;  %2838 = vst.msk [vmem:[%s4678_s24 + $0x1c8] sm:$0xff] %vm2780_vm1, %v4145_v60  ;;  %4172 = vtanh.f32 %v3577_v61 }
 0x15d   : > { %v4149_v0 = vpop.eup %4148  ;;  %2966 = vst.msk [vmem:[%s4678_s24 + $0x5c8] sm:$0xff] %vm2780_vm1, %v4147_v63  ;;  %4174 = vtanh.f32 %v3705_v62  ;;  %v1760_v1 = vpop.f32.mrf.mxu0 }
 0x15e   : > { %v2272_v2 = vpop.f32.mrf.mxu1  ;;  %v4151_v3 = vpop.eup %4150  ;;  %2843 = vst.msk [vmem:[%s4678_s24 + $0x1f0] sm:$0xff] %vm2780_vm1, %v4149_v0  ;;  %4176 = vtanh.f32 %v1760_v1 }
 0x15f   : > { %v4153_v4 = vpop.eup %4152  ;;  %2971 = vst.msk [vmem:[%s4678_s24 + $0x5f0] sm:$0xff] %vm2780_vm1, %v4151_v3  ;;  %4178 = vtanh.f32 %v2272_v2  ;;  %v3580_v5 = vpop.f32.mrf.mxu0 }
 0x160   : > { %v3708_v6 = vpop.f32.mrf.mxu1  ;;  %v4155_v7 = vpop.eup %4154  ;;  %2841 = vst.msk [vmem:[%s4678_s24 + $0x1e0] sm:$0xff] %vm2780_vm1, %v4153_v4  ;;  %4180 = vtanh.f32 %v3580_v5 }
 0x161   : > { %v4157_v8 = vpop.eup %4156  ;;  %2969 = vst.msk [vmem:[%s4678_s24 + $0x5e0] sm:$0xff] %vm2780_vm1, %v4155_v7  ;;  %4182 = vtanh.f32 %v3708_v6  ;;  %v1773_v9 = vpop.f32.mrf.mxu0 }
 0x162   : > { %v2285_v10 = vpop.f32.mrf.mxu1  ;;  %v4159_v11 = vpop.eup %4158  ;;  %2844 = vst.msk [vmem:[%s4678_s24 + $0x1f8] sm:$0xff] %vm2780_vm1, %v4157_v8  ;;  %4184 = vtanh.f32 %v1773_v9 }
 0x163   : > { %v4161_v12 = vpop.eup %4160  ;;  %2972 = vst.msk [vmem:[%s4678_s24 + $0x5f8] sm:$0xff] %vm2780_vm1, %v4159_v11  ;;  %4186 = vtanh.f32 %v2285_v10  ;;  %v3581_v13 = vpop.f32.mrf.mxu0 }
 0x164   : > { %v3709_v14 = vpop.f32.mrf.mxu1  ;;  %v4163_v15 = vpop.eup %4162  ;;  %2842 = vst.msk [vmem:[%s4678_s24 + $0x1e8] sm:$0xff] %vm2780_vm1, %v4161_v12  ;;  %4188 = vtanh.f32 %v3581_v13 }
 0x165   : > { %v4165_v16 = vpop.eup %4164  ;;  %2970 = vst.msk [vmem:[%s4678_s24 + $0x5e8] sm:$0xff] %vm2780_vm1, %v4163_v15  ;;  %4190 = vtanh.f32 %v3709_v14  ;;  %v1776_v17 = vpop.f32.mrf.mxu0 }
 0x166   : > { %v2288_v18 = vpop.f32.mrf.mxu1  ;;  %v4167_v19 = vpop.eup %4166  ;;  %2847 = vst.msk [vmem:[%s4678_s24 + $0x210] sm:$0xff] %vm2780_vm1, %v4165_v16  ;;  %4192 = vtanh.f32 %v1776_v17 }
 0x167   : > { %v4169_v20 = vpop.eup %4168  ;;  %2975 = vst.msk [vmem:[%s4678_s24 + $0x610] sm:$0xff] %vm2780_vm1, %v4167_v19  ;;  %4194 = vtanh.f32 %v2288_v18  ;;  %v3584_v21 = vpop.f32.mrf.mxu0 }
 0x168   : > { %v3712_v22 = vpop.f32.mrf.mxu1  ;;  %v4171_v23 = vpop.eup %4170  ;;  %2845 = vst.msk [vmem:[%s4678_s24 + $0x200] sm:$0xff] %vm2780_vm1, %v4169_v20  ;;  %4196 = vtanh.f32 %v3584_v21 }
 0x169   : > { %v4173_v24 = vpop.eup %4172  ;;  %2973 = vst.msk [vmem:[%s4678_s24 + $0x600] sm:$0xff] %vm2780_vm1, %v4171_v23  ;;  %4198 = vtanh.f32 %v3712_v22  ;;  %v1789_v25 = vpop.f32.mrf.mxu0 }
 0x16a   : > { %v2301_v26 = vpop.f32.mrf.mxu1  ;;  %v4175_v27 = vpop.eup %4174  ;;  %2848 = vst.msk [vmem:[%s4678_s24 + $0x218] sm:$0xff] %vm2780_vm1, %v4173_v24  ;;  %4200 = vtanh.f32 %v1789_v25 }
 0x16b   : > { %v4177_v28 = vpop.eup %4176  ;;  %2976 = vst.msk [vmem:[%s4678_s24 + $0x618] sm:$0xff] %vm2780_vm1, %v4175_v27  ;;  %4202 = vtanh.f32 %v2301_v26  ;;  %v3585_v29 = vpop.f32.mrf.mxu0 }
 0x16c   : > { %v3713_v30 = vpop.f32.mrf.mxu1  ;;  %v4179_v31 = vpop.eup %4178  ;;  %2846 = vst.msk [vmem:[%s4678_s24 + $0x208] sm:$0xff] %vm2780_vm1, %v4177_v28  ;;  %4204 = vtanh.f32 %v3585_v29 }
 0x16d   : > { %v4181_v32 = vpop.eup %4180  ;;  %2974 = vst.msk [vmem:[%s4678_s24 + $0x608] sm:$0xff] %vm2780_vm1, %v4179_v31  ;;  %4206 = vtanh.f32 %v3713_v30  ;;  %v1792_v33 = vpop.f32.mrf.mxu0 }
 0x16e   : > { %v2304_v34 = vpop.f32.mrf.mxu1  ;;  %v4183_v35 = vpop.eup %4182  ;;  %2851 = vst.msk [vmem:[%s4678_s24 + $0x230] sm:$0xff] %vm2780_vm1, %v4181_v32  ;;  %4208 = vtanh.f32 %v1792_v33 }
 0x16f   : > { %v4185_v36 = vpop.eup %4184  ;;  %2979 = vst.msk [vmem:[%s4678_s24 + $0x630] sm:$0xff] %vm2780_vm1, %v4183_v35  ;;  %4210 = vtanh.f32 %v2304_v34  ;;  %v3588_v37 = vpop.f32.mrf.mxu0 }
 0x170   : > { %v3716_v38 = vpop.f32.mrf.mxu1  ;;  %v4187_v39 = vpop.eup %4186  ;;  %2849 = vst.msk [vmem:[%s4678_s24 + $0x220] sm:$0xff] %vm2780_vm1, %v4185_v36  ;;  %4212 = vtanh.f32 %v3588_v37 }
 0x171   : > { %v4189_v40 = vpop.eup %4188  ;;  %2977 = vst.msk [vmem:[%s4678_s24 + $0x620] sm:$0xff] %vm2780_vm1, %v4187_v39  ;;  %4214 = vtanh.f32 %v3716_v38  ;;  %v1805_v41 = vpop.f32.mrf.mxu0 }
 0x172   : > { %v2317_v42 = vpop.f32.mrf.mxu1  ;;  %v4191_v43 = vpop.eup %4190  ;;  %2852 = vst.msk [vmem:[%s4678_s24 + $0x238] sm:$0xff] %vm2780_vm1, %v4189_v40  ;;  %4216 = vtanh.f32 %v1805_v41 }
 0x173   : > { %v4193_v44 = vpop.eup %4192  ;;  %2980 = vst.msk [vmem:[%s4678_s24 + $0x638] sm:$0xff] %vm2780_vm1, %v4191_v43  ;;  %4218 = vtanh.f32 %v2317_v42  ;;  %v3589_v45 = vpop.f32.mrf.mxu0 }
 0x174   : > { %v3717_v46 = vpop.f32.mrf.mxu1  ;;  %v4195_v47 = vpop.eup %4194  ;;  %2850 = vst.msk [vmem:[%s4678_s24 + $0x228] sm:$0xff] %vm2780_vm1, %v4193_v44  ;;  %4220 = vtanh.f32 %v3589_v45 }
 0x175   : > { %v4197_v48 = vpop.eup %4196  ;;  %2978 = vst.msk [vmem:[%s4678_s24 + $0x628] sm:$0xff] %vm2780_vm1, %v4195_v47  ;;  %4222 = vtanh.f32 %v3717_v46  ;;  %v1808_v49 = vpop.f32.mrf.mxu0 }
 0x176   : > { %v2320_v50 = vpop.f32.mrf.mxu1  ;;  %v4199_v51 = vpop.eup %4198  ;;  %2855 = vst.msk [vmem:[%s4678_s24 + $0x250] sm:$0xff] %vm2780_vm1, %v4197_v48  ;;  %4224 = vtanh.f32 %v1808_v49 }
 0x177   : > { %v4201_v52 = vpop.eup %4200  ;;  %2983 = vst.msk [vmem:[%s4678_s24 + $0x650] sm:$0xff] %vm2780_vm1, %v4199_v51  ;;  %4226 = vtanh.f32 %v2320_v50  ;;  %v3592_v53 = vpop.f32.mrf.mxu0 }
 0x178   : > { %v3720_v54 = vpop.f32.mrf.mxu1  ;;  %v4203_v55 = vpop.eup %4202  ;;  %2853 = vst.msk [vmem:[%s4678_s24 + $0x240] sm:$0xff] %vm2780_vm1, %v4201_v52  ;;  %4228 = vtanh.f32 %v3592_v53 }
 0x179   : > { %v4205_v56 = vpop.eup %4204  ;;  %2981 = vst.msk [vmem:[%s4678_s24 + $0x640] sm:$0xff] %vm2780_vm1, %v4203_v55  ;;  %4230 = vtanh.f32 %v3720_v54  ;;  %v1821_v57 = vpop.f32.mrf.mxu0 }
 0x17a   : > { %v2333_v58 = vpop.f32.mrf.mxu1  ;;  %v4207_v59 = vpop.eup %4206  ;;  %2856 = vst.msk [vmem:[%s4678_s24 + $0x258] sm:$0xff] %vm2780_vm1, %v4205_v56  ;;  %4232 = vtanh.f32 %v1821_v57 }
 0x17b   : > { %v4209_v60 = vpop.eup %4208  ;;  %2984 = vst.msk [vmem:[%s4678_s24 + $0x658] sm:$0xff] %vm2780_vm1, %v4207_v59  ;;  %4234 = vtanh.f32 %v2333_v58  ;;  %v3593_v61 = vpop.f32.mrf.mxu0 }
 0x17c   : > { %v3721_v62 = vpop.f32.mrf.mxu1  ;;  %v4211_v63 = vpop.eup %4210  ;;  %2854 = vst.msk [vmem:[%s4678_s24 + $0x248] sm:$0xff] %vm2780_vm1, %v4209_v60  ;;  %4236 = vtanh.f32 %v3593_v61 }
 0x17d   : > { %v4213_v0 = vpop.eup %4212  ;;  %2982 = vst.msk [vmem:[%s4678_s24 + $0x648] sm:$0xff] %vm2780_vm1, %v4211_v63  ;;  %4238 = vtanh.f32 %v3721_v62  ;;  %v1824_v1 = vpop.f32.mrf.mxu0 }
 0x17e   : > { %v2336_v2 = vpop.f32.mrf.mxu1  ;;  %v4215_v3 = vpop.eup %4214  ;;  %2859 = vst.msk [vmem:[%s4678_s24 + $0x270] sm:$0xff] %vm2780_vm1, %v4213_v0  ;;  %4240 = vtanh.f32 %v1824_v1 }
 0x17f   : > { %v4217_v4 = vpop.eup %4216  ;;  %2987 = vst.msk [vmem:[%s4678_s24 + $0x670] sm:$0xff] %vm2780_vm1, %v4215_v3  ;;  %4242 = vtanh.f32 %v2336_v2  ;;  %v3596_v5 = vpop.f32.mrf.mxu0 }
 0x180   : > { %v3724_v6 = vpop.f32.mrf.mxu1  ;;  %v4219_v7 = vpop.eup %4218  ;;  %2857 = vst.msk [vmem:[%s4678_s24 + $0x260] sm:$0xff] %vm2780_vm1, %v4217_v4  ;;  %4244 = vtanh.f32 %v3596_v5 }
 0x181   : > { %v4221_v8 = vpop.eup %4220  ;;  %2985 = vst.msk [vmem:[%s4678_s24 + $0x660] sm:$0xff] %vm2780_vm1, %v4219_v7  ;;  %4246 = vtanh.f32 %v3724_v6  ;;  %v1837_v9 = vpop.f32.mrf.mxu0 }
 0x182   : > { %v2349_v10 = vpop.f32.mrf.mxu1  ;;  %v4223_v11 = vpop.eup %4222  ;;  %2860 = vst.msk [vmem:[%s4678_s24 + $0x278] sm:$0xff] %vm2780_vm1, %v4221_v8  ;;  %4248 = vtanh.f32 %v1837_v9 }
 0x183   : > { %v4225_v12 = vpop.eup %4224  ;;  %2988 = vst.msk [vmem:[%s4678_s24 + $0x678] sm:$0xff] %vm2780_vm1, %v4223_v11  ;;  %4250 = vtanh.f32 %v2349_v10  ;;  %v3597_v13 = vpop.f32.mrf.mxu0 }
 0x184   : > { %v3725_v14 = vpop.f32.mrf.mxu1  ;;  %v4227_v15 = vpop.eup %4226  ;;  %2858 = vst.msk [vmem:[%s4678_s24 + $0x268] sm:$0xff] %vm2780_vm1, %v4225_v12  ;;  %4252 = vtanh.f32 %v3597_v13 }
 0x185   : > { %v4229_v16 = vpop.eup %4228  ;;  %2986 = vst.msk [vmem:[%s4678_s24 + $0x668] sm:$0xff] %vm2780_vm1, %v4227_v15  ;;  %4254 = vtanh.f32 %v3725_v14  ;;  %v1840_v17 = vpop.f32.mrf.mxu0 }
 0x186   : > { %v2352_v18 = vpop.f32.mrf.mxu1  ;;  %v4231_v19 = vpop.eup %4230  ;;  %2863 = vst.msk [vmem:[%s4678_s24 + $0x290] sm:$0xff] %vm2780_vm1, %v4229_v16  ;;  %4256 = vtanh.f32 %v1840_v17 }
 0x187   : > { %v4233_v20 = vpop.eup %4232  ;;  %2991 = vst.msk [vmem:[%s4678_s24 + $0x690] sm:$0xff] %vm2780_vm1, %v4231_v19  ;;  %4258 = vtanh.f32 %v2352_v18  ;;  %v3600_v21 = vpop.f32.mrf.mxu0 }
 0x188   : > { %v3728_v22 = vpop.f32.mrf.mxu1  ;;  %v4235_v23 = vpop.eup %4234  ;;  %2861 = vst.msk [vmem:[%s4678_s24 + $0x280] sm:$0xff] %vm2780_vm1, %v4233_v20  ;;  %4260 = vtanh.f32 %v3600_v21 }
 0x189   : > { %v4237_v24 = vpop.eup %4236  ;;  %2989 = vst.msk [vmem:[%s4678_s24 + $0x680] sm:$0xff] %vm2780_vm1, %v4235_v23  ;;  %4262 = vtanh.f32 %v3728_v22  ;;  %v1853_v25 = vpop.f32.mrf.mxu0 }
 0x18a   : > { %v2365_v26 = vpop.f32.mrf.mxu1  ;;  %v4239_v27 = vpop.eup %4238  ;;  %2864 = vst.msk [vmem:[%s4678_s24 + $0x298] sm:$0xff] %vm2780_vm1, %v4237_v24  ;;  %4264 = vtanh.f32 %v1853_v25 }
 0x18b   : > { %v4241_v28 = vpop.eup %4240  ;;  %2992 = vst.msk [vmem:[%s4678_s24 + $0x698] sm:$0xff] %vm2780_vm1, %v4239_v27  ;;  %4266 = vtanh.f32 %v2365_v26  ;;  %v3601_v29 = vpop.f32.mrf.mxu0 }
 0x18c   : > { %v3729_v30 = vpop.f32.mrf.mxu1  ;;  %v4243_v31 = vpop.eup %4242  ;;  %2862 = vst.msk [vmem:[%s4678_s24 + $0x288] sm:$0xff] %vm2780_vm1, %v4241_v28  ;;  %4268 = vtanh.f32 %v3601_v29 }
 0x18d   : > { %v4245_v32 = vpop.eup %4244  ;;  %2990 = vst.msk [vmem:[%s4678_s24 + $0x688] sm:$0xff] %vm2780_vm1, %v4243_v31  ;;  %4270 = vtanh.f32 %v3729_v30  ;;  %v1856_v33 = vpop.f32.mrf.mxu0 }
 0x18e   : > { %v2368_v34 = vpop.f32.mrf.mxu1  ;;  %v4247_v35 = vpop.eup %4246  ;;  %2867 = vst.msk [vmem:[%s4678_s24 + $0x2b0] sm:$0xff] %vm2780_vm1, %v4245_v32  ;;  %4272 = vtanh.f32 %v1856_v33 }
 0x18f   : > { %v4249_v36 = vpop.eup %4248  ;;  %2995 = vst.msk [vmem:[%s4678_s24 + $0x6b0] sm:$0xff] %vm2780_vm1, %v4247_v35  ;;  %4274 = vtanh.f32 %v2368_v34  ;;  %v3604_v37 = vpop.f32.mrf.mxu0 }
 0x190   : > { %v3732_v38 = vpop.f32.mrf.mxu1  ;;  %v4251_v39 = vpop.eup %4250  ;;  %2865 = vst.msk [vmem:[%s4678_s24 + $0x2a0] sm:$0xff] %vm2780_vm1, %v4249_v36  ;;  %4276 = vtanh.f32 %v3604_v37 }
 0x191   : > { %v4253_v40 = vpop.eup %4252  ;;  %2993 = vst.msk [vmem:[%s4678_s24 + $0x6a0] sm:$0xff] %vm2780_vm1, %v4251_v39  ;;  %4278 = vtanh.f32 %v3732_v38  ;;  %v1869_v41 = vpop.f32.mrf.mxu0 }
 0x192   : > { %v2381_v42 = vpop.f32.mrf.mxu1  ;;  %v4255_v43 = vpop.eup %4254  ;;  %2868 = vst.msk [vmem:[%s4678_s24 + $0x2b8] sm:$0xff] %vm2780_vm1, %v4253_v40  ;;  %4280 = vtanh.f32 %v1869_v41 }
 0x193   : > { %v4257_v44 = vpop.eup %4256  ;;  %2996 = vst.msk [vmem:[%s4678_s24 + $0x6b8] sm:$0xff] %vm2780_vm1, %v4255_v43  ;;  %4282 = vtanh.f32 %v2381_v42  ;;  %v3605_v45 = vpop.f32.mrf.mxu0 }
 0x194   : > { %v3733_v46 = vpop.f32.mrf.mxu1  ;;  %v4259_v47 = vpop.eup %4258  ;;  %2866 = vst.msk [vmem:[%s4678_s24 + $0x2a8] sm:$0xff] %vm2780_vm1, %v4257_v44  ;;  %4284 = vtanh.f32 %v3605_v45 }
 0x195   : > { %v4261_v48 = vpop.eup %4260  ;;  %2994 = vst.msk [vmem:[%s4678_s24 + $0x6a8] sm:$0xff] %vm2780_vm1, %v4259_v47  ;;  %4286 = vtanh.f32 %v3733_v46  ;;  %v1872_v49 = vpop.f32.mrf.mxu0 }
 0x196   : > { %v2384_v50 = vpop.f32.mrf.mxu1  ;;  %v4263_v51 = vpop.eup %4262  ;;  %2871 = vst.msk [vmem:[%s4678_s24 + $0x2d0] sm:$0xff] %vm2780_vm1, %v4261_v48  ;;  %4288 = vtanh.f32 %v1872_v49 }
 0x197   : > { %v4265_v52 = vpop.eup %4264  ;;  %2999 = vst.msk [vmem:[%s4678_s24 + $0x6d0] sm:$0xff] %vm2780_vm1, %v4263_v51  ;;  %4290 = vtanh.f32 %v2384_v50  ;;  %v3608_v53 = vpop.f32.mrf.mxu0 }
 0x198   : > { %v3736_v54 = vpop.f32.mrf.mxu1  ;;  %v4267_v55 = vpop.eup %4266  ;;  %2869 = vst.msk [vmem:[%s4678_s24 + $0x2c0] sm:$0xff] %vm2780_vm1, %v4265_v52  ;;  %4292 = vtanh.f32 %v3608_v53 }
 0x199   : > { %v4269_v56 = vpop.eup %4268  ;;  %2997 = vst.msk [vmem:[%s4678_s24 + $0x6c0] sm:$0xff] %vm2780_vm1, %v4267_v55  ;;  %4294 = vtanh.f32 %v3736_v54  ;;  %v1885_v57 = vpop.f32.mrf.mxu0 }
 0x19a   : > { %v2397_v58 = vpop.f32.mrf.mxu1  ;;  %v4271_v59 = vpop.eup %4270  ;;  %2872 = vst.msk [vmem:[%s4678_s24 + $0x2d8] sm:$0xff] %vm2780_vm1, %v4269_v56  ;;  %4296 = vtanh.f32 %v1885_v57 }
 0x19b   : > { %v4273_v60 = vpop.eup %4272  ;;  %3000 = vst.msk [vmem:[%s4678_s24 + $0x6d8] sm:$0xff] %vm2780_vm1, %v4271_v59  ;;  %4298 = vtanh.f32 %v2397_v58  ;;  %v3609_v61 = vpop.f32.mrf.mxu0 }
 0x19c   : > { %v3737_v62 = vpop.f32.mrf.mxu1  ;;  %v4275_v63 = vpop.eup %4274  ;;  %2870 = vst.msk [vmem:[%s4678_s24 + $0x2c8] sm:$0xff] %vm2780_vm1, %v4273_v60  ;;  %4300 = vtanh.f32 %v3609_v61 }
 0x19d   : > { %v4277_v0 = vpop.eup %4276  ;;  %2998 = vst.msk [vmem:[%s4678_s24 + $0x6c8] sm:$0xff] %vm2780_vm1, %v4275_v63  ;;  %4302 = vtanh.f32 %v3737_v62  ;;  %v1888_v1 = vpop.f32.mrf.mxu0 }
 0x19e   : > { %v2400_v2 = vpop.f32.mrf.mxu1  ;;  %v4279_v3 = vpop.eup %4278  ;;  %2875 = vst.msk [vmem:[%s4678_s24 + $0x2f0] sm:$0xff] %vm2780_vm1, %v4277_v0  ;;  %4304 = vtanh.f32 %v1888_v1 }
 0x19f   : > { %v4281_v4 = vpop.eup %4280  ;;  %3003 = vst.msk [vmem:[%s4678_s24 + $0x6f0] sm:$0xff] %vm2780_vm1, %v4279_v3  ;;  %4306 = vtanh.f32 %v2400_v2  ;;  %v3612_v5 = vpop.f32.mrf.mxu0 }
 0x1a0   : > { %v3740_v6 = vpop.f32.mrf.mxu1  ;;  %v4283_v7 = vpop.eup %4282  ;;  %2873 = vst.msk [vmem:[%s4678_s24 + $0x2e0] sm:$0xff] %vm2780_vm1, %v4281_v4  ;;  %4308 = vtanh.f32 %v3612_v5 }
 0x1a1   : > { %v4285_v8 = vpop.eup %4284  ;;  %3001 = vst.msk [vmem:[%s4678_s24 + $0x6e0] sm:$0xff] %vm2780_vm1, %v4283_v7  ;;  %4310 = vtanh.f32 %v3740_v6  ;;  %v1901_v9 = vpop.f32.mrf.mxu0 }
 0x1a2   : > { %v2413_v10 = vpop.f32.mrf.mxu1  ;;  %v4287_v11 = vpop.eup %4286  ;;  %2876 = vst.msk [vmem:[%s4678_s24 + $0x2f8] sm:$0xff] %vm2780_vm1, %v4285_v8  ;;  %4312 = vtanh.f32 %v1901_v9 }
 0x1a3   : > { %v4289_v12 = vpop.eup %4288  ;;  %3004 = vst.msk [vmem:[%s4678_s24 + $0x6f8] sm:$0xff] %vm2780_vm1, %v4287_v11  ;;  %4314 = vtanh.f32 %v2413_v10  ;;  %v3613_v13 = vpop.f32.mrf.mxu0 }
 0x1a4   : > { %v3741_v14 = vpop.f32.mrf.mxu1  ;;  %v4291_v15 = vpop.eup %4290  ;;  %2874 = vst.msk [vmem:[%s4678_s24 + $0x2e8] sm:$0xff] %vm2780_vm1, %v4289_v12  ;;  %4316 = vtanh.f32 %v3613_v13 }
 0x1a5   : > { %v4293_v16 = vpop.eup %4292  ;;  %3002 = vst.msk [vmem:[%s4678_s24 + $0x6e8] sm:$0xff] %vm2780_vm1, %v4291_v15  ;;  %4318 = vtanh.f32 %v3741_v14  ;;  %v1904_v17 = vpop.f32.mrf.mxu0 }
 0x1a6   : > { %v2416_v18 = vpop.f32.mrf.mxu1  ;;  %v4295_v19 = vpop.eup %4294  ;;  %2879 = vst.msk [vmem:[%s4678_s24 + $0x310] sm:$0xff] %vm2780_vm1, %v4293_v16  ;;  %4320 = vtanh.f32 %v1904_v17 }
 0x1a7   : > { %v4297_v20 = vpop.eup %4296  ;;  %3007 = vst.msk [vmem:[%s4678_s24 + $0x710] sm:$0xff] %vm2780_vm1, %v4295_v19  ;;  %4322 = vtanh.f32 %v2416_v18  ;;  %v3616_v21 = vpop.f32.mrf.mxu0 }
 0x1a8   : > { %v3744_v22 = vpop.f32.mrf.mxu1  ;;  %v4299_v23 = vpop.eup %4298  ;;  %2877 = vst.msk [vmem:[%s4678_s24 + $0x300] sm:$0xff] %vm2780_vm1, %v4297_v20  ;;  %4324 = vtanh.f32 %v3616_v21 }
 0x1a9   : > { %v4301_v24 = vpop.eup %4300  ;;  %3005 = vst.msk [vmem:[%s4678_s24 + $0x700] sm:$0xff] %vm2780_vm1, %v4299_v23  ;;  %4326 = vtanh.f32 %v3744_v22  ;;  %v1917_v25 = vpop.f32.mrf.mxu0 }
 0x1aa   : > { %v2429_v26 = vpop.f32.mrf.mxu1  ;;  %v4303_v27 = vpop.eup %4302  ;;  %2880 = vst.msk [vmem:[%s4678_s24 + $0x318] sm:$0xff] %vm2780_vm1, %v4301_v24  ;;  %4328 = vtanh.f32 %v1917_v25 }
 0x1ab   : > { %v4305_v28 = vpop.eup %4304  ;;  %3008 = vst.msk [vmem:[%s4678_s24 + $0x718] sm:$0xff] %vm2780_vm1, %v4303_v27  ;;  %4330 = vtanh.f32 %v2429_v26  ;;  %v3617_v29 = vpop.f32.mrf.mxu0 }
 0x1ac   : > { %v3745_v30 = vpop.f32.mrf.mxu1  ;;  %v4307_v31 = vpop.eup %4306  ;;  %2878 = vst.msk [vmem:[%s4678_s24 + $0x308] sm:$0xff] %vm2780_vm1, %v4305_v28  ;;  %4332 = vtanh.f32 %v3617_v29 }
 0x1ad   : > { %v4309_v32 = vpop.eup %4308  ;;  %3006 = vst.msk [vmem:[%s4678_s24 + $0x708] sm:$0xff] %vm2780_vm1, %v4307_v31  ;;  %4334 = vtanh.f32 %v3745_v30  ;;  %v1920_v33 = vpop.f32.mrf.mxu0 }
 0x1ae   : > { %v2432_v34 = vpop.f32.mrf.mxu1  ;;  %v4311_v35 = vpop.eup %4310  ;;  %2883 = vst.msk [vmem:[%s4678_s24 + $0x330] sm:$0xff] %vm2780_vm1, %v4309_v32  ;;  %4336 = vtanh.f32 %v1920_v33 }
 0x1af   : > { %v4313_v36 = vpop.eup %4312  ;;  %3011 = vst.msk [vmem:[%s4678_s24 + $0x730] sm:$0xff] %vm2780_vm1, %v4311_v35  ;;  %4338 = vtanh.f32 %v2432_v34  ;;  %v3620_v37 = vpop.f32.mrf.mxu0 }
 0x1b0   : > { %v3748_v38 = vpop.f32.mrf.mxu1  ;;  %v4315_v39 = vpop.eup %4314  ;;  %2881 = vst.msk [vmem:[%s4678_s24 + $0x320] sm:$0xff] %vm2780_vm1, %v4313_v36  ;;  %4340 = vtanh.f32 %v3620_v37 }
 0x1b1   : > { %v4317_v40 = vpop.eup %4316  ;;  %3009 = vst.msk [vmem:[%s4678_s24 + $0x720] sm:$0xff] %vm2780_vm1, %v4315_v39  ;;  %4342 = vtanh.f32 %v3748_v38  ;;  %v1933_v41 = vpop.f32.mrf.mxu0 }
 0x1b2   : > { %v2445_v42 = vpop.f32.mrf.mxu1  ;;  %v4319_v43 = vpop.eup %4318  ;;  %2884 = vst.msk [vmem:[%s4678_s24 + $0x338] sm:$0xff] %vm2780_vm1, %v4317_v40  ;;  %4344 = vtanh.f32 %v1933_v41 }
 0x1b3   : > { %v4321_v44 = vpop.eup %4320  ;;  %3012 = vst.msk [vmem:[%s4678_s24 + $0x738] sm:$0xff] %vm2780_vm1, %v4319_v43  ;;  %4346 = vtanh.f32 %v2445_v42  ;;  %v3621_v45 = vpop.f32.mrf.mxu0 }
 0x1b4   : > { %v3749_v46 = vpop.f32.mrf.mxu1  ;;  %v4323_v47 = vpop.eup %4322  ;;  %2882 = vst.msk [vmem:[%s4678_s24 + $0x328] sm:$0xff] %vm2780_vm1, %v4321_v44  ;;  %4348 = vtanh.f32 %v3621_v45 }
 0x1b5   : > { %v4325_v48 = vpop.eup %4324  ;;  %3010 = vst.msk [vmem:[%s4678_s24 + $0x728] sm:$0xff] %vm2780_vm1, %v4323_v47  ;;  %4350 = vtanh.f32 %v3749_v46  ;;  %v1936_v49 = vpop.f32.mrf.mxu0 }
 0x1b6   : > { %v2448_v50 = vpop.f32.mrf.mxu1  ;;  %v4327_v51 = vpop.eup %4326  ;;  %2887 = vst.msk [vmem:[%s4678_s24 + $0x350] sm:$0xff] %vm2780_vm1, %v4325_v48  ;;  %4352 = vtanh.f32 %v1936_v49 }
 0x1b7   : > { %v4329_v52 = vpop.eup %4328  ;;  %3015 = vst.msk [vmem:[%s4678_s24 + $0x750] sm:$0xff] %vm2780_vm1, %v4327_v51  ;;  %4354 = vtanh.f32 %v2448_v50  ;;  %v3624_v53 = vpop.f32.mrf.mxu0 }
 0x1b8   : > { %v3752_v54 = vpop.f32.mrf.mxu1  ;;  %v4331_v55 = vpop.eup %4330  ;;  %2885 = vst.msk [vmem:[%s4678_s24 + $0x340] sm:$0xff] %vm2780_vm1, %v4329_v52  ;;  %4356 = vtanh.f32 %v3624_v53 }
 0x1b9   : > { %v4333_v56 = vpop.eup %4332  ;;  %3013 = vst.msk [vmem:[%s4678_s24 + $0x740] sm:$0xff] %vm2780_vm1, %v4331_v55  ;;  %4358 = vtanh.f32 %v3752_v54  ;;  %v1949_v57 = vpop.f32.mrf.mxu0 }
 0x1ba   : > { %v2461_v58 = vpop.f32.mrf.mxu1  ;;  %v4335_v59 = vpop.eup %4334  ;;  %2888 = vst.msk [vmem:[%s4678_s24 + $0x358] sm:$0xff] %vm2780_vm1, %v4333_v56  ;;  %4360 = vtanh.f32 %v1949_v57 }
 0x1bb   : > { %v4337_v60 = vpop.eup %4336  ;;  %3016 = vst.msk [vmem:[%s4678_s24 + $0x758] sm:$0xff] %vm2780_vm1, %v4335_v59  ;;  %4362 = vtanh.f32 %v2461_v58  ;;  %v3625_v61 = vpop.f32.mrf.mxu0 }
 0x1bc   : > { %v3753_v62 = vpop.f32.mrf.mxu1  ;;  %v4339_v63 = vpop.eup %4338  ;;  %2886 = vst.msk [vmem:[%s4678_s24 + $0x348] sm:$0xff] %vm2780_vm1, %v4337_v60  ;;  %4364 = vtanh.f32 %v3625_v61 }
 0x1bd   : > { %v4341_v0 = vpop.eup %4340  ;;  %3014 = vst.msk [vmem:[%s4678_s24 + $0x748] sm:$0xff] %vm2780_vm1, %v4339_v63  ;;  %4366 = vtanh.f32 %v3753_v62  ;;  %v1952_v1 = vpop.f32.mrf.mxu0 }
 0x1be   : > { %v2464_v2 = vpop.f32.mrf.mxu1  ;;  %v4343_v3 = vpop.eup %4342  ;;  %2891 = vst.msk [vmem:[%s4678_s24 + $0x370] sm:$0xff] %vm2780_vm1, %v4341_v0  ;;  %4368 = vtanh.f32 %v1952_v1 }
 0x1bf   : > { %v4345_v4 = vpop.eup %4344  ;;  %3019 = vst.msk [vmem:[%s4678_s24 + $0x770] sm:$0xff] %vm2780_vm1, %v4343_v3  ;;  %4370 = vtanh.f32 %v2464_v2  ;;  %v3628_v5 = vpop.f32.mrf.mxu0 }
 0x1c0   : > { %v3756_v6 = vpop.f32.mrf.mxu1  ;;  %v4347_v7 = vpop.eup %4346  ;;  %2889 = vst.msk [vmem:[%s4678_s24 + $0x360] sm:$0xff] %vm2780_vm1, %v4345_v4  ;;  %4372 = vtanh.f32 %v3628_v5 }
 0x1c1   : > { %v4349_v8 = vpop.eup %4348  ;;  %3017 = vst.msk [vmem:[%s4678_s24 + $0x760] sm:$0xff] %vm2780_vm1, %v4347_v7  ;;  %4374 = vtanh.f32 %v3756_v6  ;;  %v1965_v9 = vpop.f32.mrf.mxu0 }
 0x1c2   : > { %v2477_v10 = vpop.f32.mrf.mxu1  ;;  %v4351_v11 = vpop.eup %4350  ;;  %2892 = vst.msk [vmem:[%s4678_s24 + $0x378] sm:$0xff] %vm2780_vm1, %v4349_v8  ;;  %4376 = vtanh.f32 %v1965_v9 }
 0x1c3   : > { %v4353_v12 = vpop.eup %4352  ;;  %3020 = vst.msk [vmem:[%s4678_s24 + $0x778] sm:$0xff] %vm2780_vm1, %v4351_v11  ;;  %4378 = vtanh.f32 %v2477_v10  ;;  %v3629_v13 = vpop.f32.mrf.mxu0 }
 0x1c4   : > { %v3757_v14 = vpop.f32.mrf.mxu1  ;;  %v4355_v15 = vpop.eup %4354  ;;  %2890 = vst.msk [vmem:[%s4678_s24 + $0x368] sm:$0xff] %vm2780_vm1, %v4353_v12  ;;  %4380 = vtanh.f32 %v3629_v13 }
 0x1c5   : > { %v4357_v16 = vpop.eup %4356  ;;  %3018 = vst.msk [vmem:[%s4678_s24 + $0x768] sm:$0xff] %vm2780_vm1, %v4355_v15  ;;  %4382 = vtanh.f32 %v3757_v14  ;;  %v1968_v17 = vpop.f32.mrf.mxu0 }
 0x1c6   : > { %v2480_v18 = vpop.f32.mrf.mxu1  ;;  %v4359_v19 = vpop.eup %4358  ;;  %2895 = vst.msk [vmem:[%s4678_s24 + $0x390] sm:$0xff] %vm2780_vm1, %v4357_v16  ;;  %4384 = vtanh.f32 %v1968_v17 }
 0x1c7   : > { %v4361_v20 = vpop.eup %4360  ;;  %3023 = vst.msk [vmem:[%s4678_s24 + $0x790] sm:$0xff] %vm2780_vm1, %v4359_v19  ;;  %4386 = vtanh.f32 %v2480_v18  ;;  %v3632_v21 = vpop.f32.mrf.mxu0 }
 0x1c8   : > { %v3760_v22 = vpop.f32.mrf.mxu1  ;;  %v4363_v23 = vpop.eup %4362  ;;  %2893 = vst.msk [vmem:[%s4678_s24 + $0x380] sm:$0xff] %vm2780_vm1, %v4361_v20  ;;  %4388 = vtanh.f32 %v3632_v21 }
 0x1c9   : > { %v4365_v24 = vpop.eup %4364  ;;  %3021 = vst.msk [vmem:[%s4678_s24 + $0x780] sm:$0xff] %vm2780_vm1, %v4363_v23  ;;  %4390 = vtanh.f32 %v3760_v22  ;;  %v1981_v25 = vpop.f32.mrf.mxu0 }
 0x1ca   : > { %v2493_v26 = vpop.f32.mrf.mxu1  ;;  %v4367_v27 = vpop.eup %4366  ;;  %2896 = vst.msk [vmem:[%s4678_s24 + $0x398] sm:$0xff] %vm2780_vm1, %v4365_v24  ;;  %4392 = vtanh.f32 %v1981_v25 }
 0x1cb   : > { %v4369_v28 = vpop.eup %4368  ;;  %3024 = vst.msk [vmem:[%s4678_s24 + $0x798] sm:$0xff] %vm2780_vm1, %v4367_v27  ;;  %4394 = vtanh.f32 %v2493_v26  ;;  %v3633_v29 = vpop.f32.mrf.mxu0 }
 0x1cc   : > { %v3761_v30 = vpop.f32.mrf.mxu1  ;;  %v4371_v31 = vpop.eup %4370  ;;  %2894 = vst.msk [vmem:[%s4678_s24 + $0x388] sm:$0xff] %vm2780_vm1, %v4369_v28  ;;  %4396 = vtanh.f32 %v3633_v29 }
 0x1cd   : > { %v4373_v32 = vpop.eup %4372  ;;  %3022 = vst.msk [vmem:[%s4678_s24 + $0x788] sm:$0xff] %vm2780_vm1, %v4371_v31  ;;  %4398 = vtanh.f32 %v3761_v30  ;;  %v1984_v33 = vpop.f32.mrf.mxu0 }
 0x1ce   : > { %v2496_v34 = vpop.f32.mrf.mxu1  ;;  %v4375_v35 = vpop.eup %4374  ;;  %2899 = vst.msk [vmem:[%s4678_s24 + $0x3b0] sm:$0xff] %vm2780_vm1, %v4373_v32  ;;  %4400 = vtanh.f32 %v1984_v33 }
 0x1cf   : > { %v4377_v36 = vpop.eup %4376  ;;  %3027 = vst.msk [vmem:[%s4678_s24 + $0x7b0] sm:$0xff] %vm2780_vm1, %v4375_v35  ;;  %4402 = vtanh.f32 %v2496_v34  ;;  %v3636_v37 = vpop.f32.mrf.mxu0 }
 0x1d0   : > { %v3764_v38 = vpop.f32.mrf.mxu1  ;;  %v4379_v39 = vpop.eup %4378  ;;  %2897 = vst.msk [vmem:[%s4678_s24 + $0x3a0] sm:$0xff] %vm2780_vm1, %v4377_v36  ;;  %4404 = vtanh.f32 %v3636_v37 }
 0x1d1   : > { %v4381_v40 = vpop.eup %4380  ;;  %3025 = vst.msk [vmem:[%s4678_s24 + $0x7a0] sm:$0xff] %vm2780_vm1, %v4379_v39  ;;  %4406 = vtanh.f32 %v3764_v38  ;;  %v1997_v41 = vpop.f32.mrf.mxu0 }
 0x1d2   : > { %v2509_v42 = vpop.f32.mrf.mxu1  ;;  %v4383_v43 = vpop.eup %4382  ;;  %2900 = vst.msk [vmem:[%s4678_s24 + $0x3b8] sm:$0xff] %vm2780_vm1, %v4381_v40  ;;  %4408 = vtanh.f32 %v1997_v41 }
 0x1d3   : > { %v4385_v44 = vpop.eup %4384  ;;  %3028 = vst.msk [vmem:[%s4678_s24 + $0x7b8] sm:$0xff] %vm2780_vm1, %v4383_v43  ;;  %4410 = vtanh.f32 %v2509_v42  ;;  %v3637_v45 = vpop.f32.mrf.mxu0 }
 0x1d4   : > { %v3765_v46 = vpop.f32.mrf.mxu1  ;;  %v4387_v47 = vpop.eup %4386  ;;  %2898 = vst.msk [vmem:[%s4678_s24 + $0x3a8] sm:$0xff] %vm2780_vm1, %v4385_v44  ;;  %4412 = vtanh.f32 %v3637_v45 }
 0x1d5   : > { %v4389_v48 = vpop.eup %4388  ;;  %3026 = vst.msk [vmem:[%s4678_s24 + $0x7a8] sm:$0xff] %vm2780_vm1, %v4387_v47  ;;  %4414 = vtanh.f32 %v3765_v46  ;;  %v2000_v49 = vpop.f32.mrf.mxu0 }
 0x1d6   : > { %v2512_v50 = vpop.f32.mrf.mxu1  ;;  %v4391_v51 = vpop.eup %4390  ;;  %2903 = vst.msk [vmem:[%s4678_s24 + $0x3d0] sm:$0xff] %vm2780_vm1, %v4389_v48  ;;  %4416 = vtanh.f32 %v2000_v49 }
 0x1d7   : > { %v4393_v52 = vpop.eup %4392  ;;  %3031 = vst.msk [vmem:[%s4678_s24 + $0x7d0] sm:$0xff] %vm2780_vm1, %v4391_v51  ;;  %4418 = vtanh.f32 %v2512_v50 }
 0x1d8   : > { %v4395_v53 = vpop.eup %4394  ;;  %2901 = vst.msk [vmem:[%s4678_s24 + $0x3c0] sm:$0xff] %vm2780_vm1, %v4393_v52 }
 0x1d9   : > { %v4397_v54 = vpop.eup %4396  ;;  %3029 = vst.msk [vmem:[%s4678_s24 + $0x7c0] sm:$0xff] %vm2780_vm1, %v4395_v53 }
 0x1da   : > { %v4399_v55 = vpop.eup %4398  ;;  %2904 = vst.msk [vmem:[%s4678_s24 + $0x3d8] sm:$0xff] %vm2780_vm1, %v4397_v54 }
 0x1db   : > { %v4401_v56 = vpop.eup %4400  ;;  %3032 = vst.msk [vmem:[%s4678_s24 + $0x7d8] sm:$0xff] %vm2780_vm1, %v4399_v55 }
 0x1dc   : > { %v4403_v57 = vpop.eup %4402  ;;  %2902 = vst.msk [vmem:[%s4678_s24 + $0x3c8] sm:$0xff] %vm2780_vm1, %v4401_v56 }
 0x1dd   : > { %v4405_v58 = vpop.eup %4404  ;;  %3030 = vst.msk [vmem:[%s4678_s24 + $0x7c8] sm:$0xff] %vm2780_vm1, %v4403_v57 }
 0x1de   : > { %v4407_v59 = vpop.eup %4406  ;;  %2907 = vst.msk [vmem:[%s4678_s24 + $0x3f0] sm:$0xff] %vm2780_vm1, %v4405_v58 }
 0x1df   : > { %v4409_v60 = vpop.eup %4408  ;;  %3035 = vst.msk [vmem:[%s4678_s24 + $0x7f0] sm:$0xff] %vm2780_vm1, %v4407_v59 }
 0x1e0   : > { %v4411_v61 = vpop.eup %4410  ;;  %2905 = vst.msk [vmem:[%s4678_s24 + $0x3e0] sm:$0xff] %vm2780_vm1, %v4409_v60 }
 0x1e1   : > { %v4413_v62 = vpop.eup %4412  ;;  %3033 = vst.msk [vmem:[%s4678_s24 + $0x7e0] sm:$0xff] %vm2780_vm1, %v4411_v61 }
 0x1e2   : > { %v4415_v63 = vpop.eup %4414  ;;  %2908 = vst.msk [vmem:[%s4678_s24 + $0x3f8] sm:$0xff] %vm2780_vm1, %v4413_v62 }
 0x1e3   : > { %v4417_v0 = vpop.eup %4416  ;;  %3036 = vst.msk [vmem:[%s4678_s24 + $0x7f8] sm:$0xff] %vm2780_vm1, %v4415_v63 }
 0x1e4   : > { %v4419_v1 = vpop.eup %4418  ;;  %2906 = vst.msk [vmem:[%s4678_s24 + $0x3e8] sm:$0xff] %vm2780_vm1, %v4417_v0 }
 0x1e5   : > { %3034 = vst.msk [vmem:[%s4678_s24 + $0x7e8] sm:$0xff] %vm2780_vm1, %v4419_v1 }
 0x1e6 PF: > { %s12_s9 = sadd.s32 1, %s4426_s9  }
 0x1e7   : > { %p9_p5 = scmp.ge.s32.totalorder %s12_s9, 6  }
 0x1e9   :  { %11 = sbr.rel (!%p9_p5) target bundleno = 1 (0x1), region = 61 }

</bundles_post_ra>
